<compile_context>
chip_gen: v7x
topology: tpu7x:2x2x1
jax: 0.10.0
libtpu: 0.0.40
codegen_flags: <defaults>
</compile_context>

<pallas_src>
import functools
import numpy as np
import jax
import jax.numpy as jnp
from jax import lax
from jax.experimental import pallas as pl
from jax.experimental.pallas import tpu as pltpu

# Constants from the PyTorch module.
D_K = D_V = 64
N_HEADS = 8
D_FF = 2048
D_MODEL = 512
MAX_LEN = 1000
EPS = 1e-5


# --------------------------- generation-aware tuning ---------------------------

def _vmem_capacity_bytes():
    try:
        info = pltpu.get_tpu_info()
        for name in ("vmem_capacity_bytes", "vmem_size_bytes", "vmem_bytes"):
            v = getattr(info, name, None)
            if v:
                return int(v)
    except Exception:
        pass
    return 64 * 1024 * 1024  # conservative (v7x-shaped) default


_VMEM_CAP = _vmem_capacity_bytes()
if _VMEM_CAP >= 100 * 1024 * 1024:        # v5e / v6e: 128 MiB physical VMEM
    _ROW_TILE_TARGET = 512
    _VMEM_LIMIT = 100 * 1024 * 1024
else:                                      # v7x: 64 MiB per TensorCore
    _ROW_TILE_TARGET = 256
    _VMEM_LIMIT = 48 * 1024 * 1024


def _round_up(x, m):
    return ((x + m - 1) // m) * m


@functools.lru_cache(maxsize=None)
def _row_tiling(M):
    """Row tile (multiple of 8) and padded M.  Never collapses the grid to one step
    when M > 8, so the 'parallel' row axis can use both TensorCores on v7x."""
    m8 = _round_up(M, 8)
    tm = min(_ROW_TILE_TARGET, m8)
    if tm == m8 and m8 > 8:
        tm = _round_up(m8 // 2, 8)
    return tm, _round_up(M, tm)


def _pad_rows(x, m_pad):
    M = x.shape[0]
    return x if m_pad == M else jnp.pad(x, ((0, m_pad - M), (0, 0)))


def _const_spec(shape, index_map):
    """BlockSpec for a weight block whose index never changes: single-buffer it
    (double-buffering a constant block only doubles its VMEM footprint)."""
    if hasattr(pl, "Buffered"):
        try:
            return pl.BlockSpec(shape, index_map, pipeline_mode=pl.Buffered(1))
        except Exception:
            pass
    return pl.BlockSpec(shape, index_map)


# ----------------------------- linear kernels -----------------------------

def _linear_bias_kernel(x_ref, w_ref, b_ref, o_ref):
    o_ref[...] = jnp.dot(x_ref[...].astype(jnp.bfloat16), w_ref[...],
                         preferred_element_type=jnp.float32) + b_ref[...]


def _linear_nobias_kernel(x_ref, w_ref, o_ref):
    o_ref[...] = jnp.dot(x_ref[...].astype(jnp.bfloat16), w_ref[...],
                         preferred_element_type=jnp.float32)


@functools.lru_cache(maxsize=None)
def _make_linear(M, K, N, tm, has_bias):
    in_specs = [pl.BlockSpec((tm, K), lambda i: (i, 0)),
                _const_spec((K, N), lambda i: (0, 0))]
    if has_bias:
        in_specs.append(_const_spec((1, N), lambda i: (0, 0)))
    return pl.pallas_call(
        _linear_bias_kernel if has_bias else _linear_nobias_kernel,
        out_shape=jax.ShapeDtypeStruct((M, N), jnp.float32),
        grid=(M // tm,),
        in_specs=in_specs,
        out_specs=pl.BlockSpec((tm, N), lambda i: (i, 0)),
        compiler_params=pltpu.CompilerParams(
            dimension_semantics=("parallel",),
            vmem_limit_bytes=_VMEM_LIMIT),
    )


def linear(x, w_bf16, b=None):
    """y = x @ w (+ b); w is the torch weight pre-transposed to [in, out], bf16."""
    M, K = x.shape
    N = w_bf16.shape[1]
    tm, m_pad = _row_tiling(M)
    xp = _pad_rows(x, m_pad)
    if b is None:
        out = _make_linear(m_pad, K, N, tm, False)(xp, w_bf16)
    else:
        out = _make_linear(m_pad, K, N, tm, True)(xp, w_bf16, b.reshape(1, N))
    return out if m_pad == M else out[:M]


# ---- fused (QKV proj + attention + output proj + residual + LayerNorm), grid=(B,H) ----

def _attn_ln_kernel(x_ref, wqkv_ref, wo_ref, m_ref, out_ref, attn_ref, acc_ref):
    h = pl.program_id(1)
    x32 = x_ref[0]                                       # [L, D] f32 (also the residual)
    x16 = x32.astype(jnp.bfloat16)

    # Per-head Q/K/V projections fused into the kernel (bf16 MXU, f32 accumulate).
    q = jnp.dot(x16, wqkv_ref[0, 0], preferred_element_type=jnp.float32)   # [L, dk]
    k = jnp.dot(x16, wqkv_ref[1, 0], preferred_element_type=jnp.float32)   # [L, dk]
    v = jnp.dot(x16, wqkv_ref[2, 0], preferred_element_type=jnp.float32)   # [L, dv]

    scale = jnp.float32(1.0 / np.sqrt(D_K))
    scores = lax.dot_general(q.astype(jnp.bfloat16), k.astype(jnp.bfloat16),
                             (((1,), (1,)), ((), ())),
                             preferred_element_type=jnp.float32) * scale   # [L, L]

    key_mask = m_ref[0]                                  # [1, L], 1.0 == padded key
    scores = jnp.where(key_mask > 0.0, jnp.float32(-1e9), scores)
    scores = scores - jnp.max(scores, axis=-1, keepdims=True)
    e = jnp.exp(scores)
    attn = e * pl.reciprocal(jnp.sum(e, axis=-1, keepdims=True), approx=True)
    attn_ref[0, 0] = attn                                # [L, L] per-(b,h) writeback

    ctx = jnp.dot(attn.astype(jnp.bfloat16), v.astype(jnp.bfloat16),
                  preferred_element_type=jnp.float32)                      # [L, dv]
    proj = jnp.dot(ctx.astype(jnp.bfloat16), wo_ref[0],
                   preferred_element_type=jnp.float32)                     # [L, D]

    @pl.when(h == 0)
    def _():
        acc_ref[...] = jnp.zeros_like(acc_ref)

    acc_ref[...] += proj                                 # accumulate heads in VMEM

    @pl.when(h == pl.num_programs(1) - 1)
    def _():
        y = acc_ref[...] + x32                           # residual
        mean = jnp.mean(y, axis=-1, keepdims=True)
        c = y - mean
        var = jnp.mean(c * c, axis=-1, keepdims=True)
        out_ref[0] = c * lax.rsqrt(var + EPS)            # LayerNorm(gamma=1, beta=0)


@functools.lru_cache(maxsize=None)
def _make_attn_ln(B, H, L, dk, dv, D):
    # TODO(synk): for L beyond a few hundred, add query-block tiling + online softmax.
    return pl.pallas_call(
        _attn_ln_kernel,
        out_shape=(jax.ShapeDtypeStruct((B, L, D), jnp.float32),
                   jax.ShapeDtypeStruct((B, H, L, L), jnp.float32)),
        grid=(B, H),
        in_specs=[pl.BlockSpec((1, L, D), lambda b, h: (b, 0, 0)),
                  pl.BlockSpec((3, 1, D, dk), lambda b, h: (0, h, 0, 0)),
                  pl.BlockSpec((1, dv, D), lambda b, h: (h, 0, 0)),
                  pl.BlockSpec((1, 1, L), lambda b, h: (b, 0, 0))],
        out_specs=(pl.BlockSpec((1, L, D), lambda b, h: (b, 0, 0)),
                   pl.BlockSpec((1, 1, L, L), lambda b, h: (b, h, 0, 0))),
        scratch_shapes=[pltpu.VMEM((L, D), jnp.float32)],
        compiler_params=pltpu.CompilerParams(
            # B is megacore-parallel; the head axis MUST stay 'arbitrary' because the
            # output projection accumulates into VMEM scratch across heads.
            dimension_semantics=("parallel", "arbitrary"),
            vmem_limit_bytes=_VMEM_LIMIT),
    )


def attention_layer(x, key_mask, w_qkv, w_o):
    B, L, D = x.shape
    return _make_attn_ln(B, N_HEADS, L, D_K, D_V, D)(x, w_qkv, w_o, key_mask)


# -------------------- fused FFN (Linear-ReLU-Linear) + residual + LN --------------------

def _ffn_ln_kernel(x_ref, w1_ref, w2_ref, o_ref):
    x32 = x_ref[...]                                                      # [tm, D] f32
    h = jnp.dot(x32.astype(jnp.bfloat16), w1_ref[...],
                preferred_element_type=jnp.float32)                       # [tm, F] VMEM only
    h = jnp.maximum(h, 0.0)
    y = jnp.dot(h.astype(jnp.bfloat16), w2_ref[...],
                preferred_element_type=jnp.float32) + x32                 # residual
    mean = jnp.mean(y, axis=-1, keepdims=True)
    c = y - mean
    var = jnp.mean(c * c, axis=-1, keepdims=True)
    o_ref[...] = c * lax.rsqrt(var + EPS)


@functools.lru_cache(maxsize=None)
def _make_ffn_ln(M, D, F, tm):
    return pl.pallas_call(
        _ffn_ln_kernel,
        out_shape=jax.ShapeDtypeStruct((M, D), jnp.float32),
        grid=(M // tm,),
        in_specs=[pl.BlockSpec((tm, D), lambda i: (i, 0)),
                  _const_spec((D, F), lambda i: (0, 0)),
                  _const_spec((F, D), lambda i: (0, 0))],
        out_specs=pl.BlockSpec((tm, D), lambda i: (i, 0)),
        compiler_params=pltpu.CompilerParams(
            dimension_semantics=("parallel",),
            vmem_limit_bytes=_VMEM_LIMIT),
    )


def ffn_ln(x, w1, w2):
    M, D = x.shape
    tm, m_pad = _row_tiling(M)
    out = _make_ffn_ln(m_pad, D, w1.shape[1], tm)(_pad_rows(x, m_pad), w1, w2)
    return out if m_pad == M else out[:M]


# ------------------------------------ GRU ------------------------------------

def _gru_kernel(gi_ref, whh_ref, bhh_ref, y_ref):
    # PyTorch GRU cell, gate order (r, z, n); h0 = 0.  The whole time loop runs inside
    # ONE kernel invocation: h carried through lax.fori_loop, only h @ Whh in the
    # sequential chain (X @ Wih + bih precomputed outside as one big matmul).
    L, B, _ = gi_ref.shape
    D = y_ref.shape[2]
    bhh = bhh_ref[...]                                   # [1, 3D] f32

    def step(t, h):
        gi = gi_ref[t]                                   # [B, 3D] f32
        gh = jnp.dot(h.astype(jnp.bfloat16), whh_ref[...],
                     preferred_element_type=jnp.float32) + bhh
        i_r, i_z, i_n = gi[:, :D], gi[:, D:2 * D], gi[:, 2 * D:]
        h_r, h_z, h_n = gh[:, :D], gh[:, D:2 * D], gh[:, 2 * D:]
        r = jax.nn.sigmoid(i_r + h_r)
        z = jax.nn.sigmoid(i_z + h_z)
        n = jnp.tanh(i_n + r * h_n)
        h_new = (1.0 - z) * n + z * h
        y_ref[t] = h_new
        return h_new

    lax.fori_loop(0, L, step, jnp.zeros((B, D), jnp.float32))


@functools.lru_cache(maxsize=None)
def _make_gru(L, B, D):
    # TODO(synk): gi is kept fully resident in VMEM; stream it (emit_pipeline) for very long L.
    return pl.pallas_call(
        _gru_kernel,
        out_shape=jax.ShapeDtypeStruct((L, B, D), jnp.float32),
        compiler_params=pltpu.CompilerParams(vmem_limit_bytes=_VMEM_LIMIT),
    )


# ------------------------------ glue (plain JAX) ------------------------------

@functools.lru_cache(maxsize=None)
def _pos_table_np(max_len, d_model):
    pos_table = np.array(
        [[pos / np.power(10000, 2 * i / d_model) for i in range(d_model)]
         if pos != 0 else np.zeros(d_model) for pos in range(max_len)])
    pos_table[1:, 0::2] = np.sin(pos_table[1:, 0::2])
    pos_table[1:, 1::2] = np.cos(pos_table[1:, 1::2])
    return pos_table


def init_encoder_params(key, src_vocab_size, d_model=D_MODEL, n_layers=2):
    assert D_K == D_V  # required for the stacked [3, H, D, dk] QKV weight

    def nrm(k, shape, scale=0.02):
        return scale * jax.random.normal(k, shape, dtype=jnp.float32)

    keys = iter(jax.random.split(key, 2 + 6 * n_layers + 4))
    H, dk, dv = N_HEADS, D_K, D_V
    params = {
        # torch Linear(V, D): weight [D, V], bias [D]; stored pre-transposed [V, D], bf16.
        "emb_w": nrm(next(keys), (src_vocab_size, d_model)).astype(jnp.bfloat16),
        "emb_b": nrm(next(keys), (d_model,)),
        "layers": [],
    }
    for _ in range(n_layers):
        wq = nrm(next(keys), (d_model, H * dk)).reshape(d_model, H, dk).transpose(1, 0, 2)
        wk = nrm(next(keys), (d_model, H * dk)).reshape(d_model, H, dk).transpose(1, 0, 2)
        wv = nrm(next(keys), (d_model, H * dv)).reshape(d_model, H, dv).transpose(1, 0, 2)
        params["layers"].append({
            "w_qkv": jnp.stack([wq, wk, wv], axis=0).astype(jnp.bfloat16),   # [3, H, D, dk]
            "w_o": nrm(next(keys), (H * dv, d_model)).reshape(H, dv, d_model).astype(jnp.bfloat16),
            "ff1": nrm(next(keys), (d_model, D_FF)).astype(jnp.bfloat16),
            "ff2": nrm(next(keys), (D_FF, d_model)).astype(jnp.bfloat16),
        })
    # torch GRU: weight_ih_l0 [3D, D], weight_hh_l0 [3D, D], biases [3D]; pre-transposed.
    params["gru_wih"] = nrm(next(keys), (d_model, 3 * d_model)).astype(jnp.bfloat16)
    params["gru_whh"] = nrm(next(keys), (d_model, 3 * d_model)).astype(jnp.bfloat16)
    params["gru_bih"] = nrm(next(keys), (3 * d_model,))
    params["gru_bhh"] = nrm(next(keys), (3 * d_model,))
    return params


def encoder_forward(params, enc_inputs):
    B, L, V = enc_inputs.shape
    D = D_MODEL

    # src_emb (Linear with bias).
    emb = linear(enc_inputs.reshape(B * L, V), params["emb_w"], params["emb_b"])
    emb = emb.reshape(B, L, D)

    # Positional encoding (in-place in torch => the GRU input also gets it).
    pos = jnp.asarray(_pos_table_np(MAX_LEN, D)[:L], dtype=jnp.float32)
    emb = emb + pos[None, :, :]
    enc_inputs_gru = emb
    # TODO(synk): nn.Dropout(p=0.1) in PositionalEncoding is treated as identity (eval mode).
    enc_out = emb

    # get_attn_pad_mask: a key row that is entirely zero is masked.  Kept as [B, 1, L];
    # the [L_q, L_k] expansion happens inside the attention kernel.
    key_mask = jnp.all(enc_inputs == 0.0, axis=-1)[:, None, :].astype(jnp.float32)

    attns = []
    for lp in params["layers"]:
        # Fused QKV + attention + per-head output proj + residual + LayerNorm.
        enc_out, attn = attention_layer(enc_out, key_mask, lp["w_qkv"], lp["w_o"])
        attns.append(attn)
        # Fused position-wise FFN + residual + LayerNorm.
        enc_out = ffn_ln(enc_out.reshape(B * L, D), lp["ff1"], lp["ff2"]).reshape(B, L, D)

    # GRU over the (pos-encoded, see note) embedding, time-major.
    x_tm = enc_inputs_gru.transpose(1, 0, 2)                     # [L, B, D]
    gi = linear(x_tm.reshape(L * B, D), params["gru_wih"], params["gru_bih"])
    gi = gi.reshape(L, B, 3 * D)
    gru_y = _make_gru(L, B, D)(gi, params["gru_whh"],
                               params["gru_bhh"].reshape(1, 3 * D))        # [L, B, D]
    hidden_gru = gru_y[L - 1][None]                              # [1, B, D] == h_n (1-layer GRU)

    enc_out = enc_out + gru_y.transpose(1, 0, 2)                 # [B, L, D]
    # Matches the reference exactly: enc_out already contains gru_y at this point.
    output_gru = gru_y + enc_out.transpose(1, 0, 2)              # [L, B, D]
    return enc_out, attns, output_gru, hidden_gru


if __name__ == "__main__":
    key = jax.random.PRNGKey(0)
    kp, kx = jax.random.split(key)
    B, L, V = 2, 8, 16
    N_LAYERS = 2   # n_layers is a constructor argument of Encoder; kept small here.

    params = init_encoder_params(kp, src_vocab_size=V, n_layers=N_LAYERS)
    enc_inputs = jax.random.normal(kx, (B, L, V), dtype=jnp.float32)

    fwd = jax.jit(encoder_forward)
    enc_out, attns, out_gru, hid = fwd(params, enc_inputs)
    jax.block_until_ready((enc_out, attns, out_gru, hid))

    assert enc_out.shape == (B, L, D_MODEL)
    assert len(attns) == N_LAYERS and attns[0].shape == (B, N_HEADS, L, L)
    assert out_gru.shape == (L, B, D_MODEL)
    assert hid.shape == (1, B, D_MODEL)
    assert bool(jnp.all(jnp.isfinite(enc_out)))
    assert bool(jnp.all(jnp.isfinite(out_gru)))
    print("KERNEL_OK")
</pallas_src>

<mosaic_0001>
module attributes {stable_mosaic.version = 11 : i64} {
  func.func @_linear_bias_kernel(%arg0: i32, %arg1: memref<8x16xf32, #tpu.memory_space<vmem>>, %arg2: memref<16x512xbf16, #tpu.memory_space<vmem>>, %arg3: memref<1x512xf32, #tpu.memory_space<vmem>>, %arg4: memref<8x512xf32, #tpu.memory_space<vmem>>) attributes {dimension_semantics = [#tpu.dimension_semantics<parallel>], iteration_bounds = array<i64: 2>, scalar_prefetch = 0 : i64, scratch_operands = 0 : i64, tpu.core_type = #tpu.core_type<tc>, window_params = [{transform_indices = @transform_0, window_bounds = array<i64: 8, 16>}, {pipeline_mode = #tpu.pipeline_mode<synchronous>, transform_indices = @transform_1, window_bounds = array<i64: 16, 512>}, {pipeline_mode = #tpu.pipeline_mode<synchronous>, transform_indices = @transform_2, window_bounds = array<i64: 1, 512>}, {transform_indices = @transform_3, window_bounds = array<i64: 8, 512>}]} {
    %c0 = arith.constant 0 : index
    %c0_0 = arith.constant 0 : index
    %0 = vector.load %arg1[%c0, %c0_0] : memref<8x16xf32, #tpu.memory_space<vmem>>, vector<8x16xf32>
    %1 = arith.truncf %0 : vector<8x16xf32> to vector<8x16xbf16>
    %c0_1 = arith.constant 0 : index
    %c0_2 = arith.constant 0 : index
    %2 = vector.load %arg2[%c0_1, %c0_2] : memref<16x512xbf16, #tpu.memory_space<vmem>>, vector<16x512xbf16>
    %cst = arith.constant dense<0.000000e+00> : vector<8x512xf32>
    %3 = tpu.matmul %1, %2, %cst {dimension_numbers = #tpu.dot_dimension_numbers<[1], [0], [0], [1], [0, 0, 1, 1], [], []>} : vector<8x16xbf16>, vector<16x512xbf16>, vector<8x512xf32> -> vector<8x512xf32>
    %c0_3 = arith.constant 0 : index
    %c0_4 = arith.constant 0 : index
    %4 = vector.load %arg3[%c0_3, %c0_4] : memref<1x512xf32, #tpu.memory_space<vmem>>, vector<1x512xf32>
    %5 = vector.broadcast %4 : vector<1x512xf32> to vector<8x512xf32>
    %6 = arith.addf %3, %5 : vector<8x512xf32>
    %c0_5 = arith.constant 0 : index
    %c0_6 = arith.constant 0 : index
    %7 = vector.load %arg4[%c0_5, %c0_6] : memref<8x512xf32, #tpu.memory_space<vmem>>, vector<8x512xf32>
    tpu.vector_store %arg4[%c0_5, %c0_6], %6 {strides = array<i32>} : memref<8x512xf32, #tpu.memory_space<vmem>>, vector<8x512xf32>,
    return
  }
  func.func @transform_0(%arg0: i32) -> (i32, i32) {
    %c0_i32 = arith.constant 0 : i32
    %c0_i32_0 = arith.constant 0 : i32
    return %arg0, %c0_i32 : i32, i32
  }
  func.func @transform_1(%arg0: i32) -> (i32, i32) {
    %c0_i32 = arith.constant 0 : i32
    %c0_i32_0 = arith.constant 0 : i32
    %c0_i32_1 = arith.constant 0 : i32
    return %c0_i32, %c0_i32_0 : i32, i32
  }
  func.func @transform_2(%arg0: i32) -> (i32, i32) {
    %c0_i32 = arith.constant 0 : i32
    %c0_i32_0 = arith.constant 0 : i32
    %c0_i32_1 = arith.constant 0 : i32
    return %c0_i32, %c0_i32_0 : i32, i32
  }
  func.func @transform_3(%arg0: i32) -> (i32, i32) {
    %c0_i32 = arith.constant 0 : i32
    %c0_i32_0 = arith.constant 0 : i32
    return %arg0, %c0_i32 : i32, i32
  }
}

module attributes {stable_mosaic.version = 11 : i64} {
  func.func @_linear_bias_kernel(%arg0: i32, %arg1: memref<8x512xf32, #tpu.memory_space<vmem>>, %arg2: memref<512x1536xbf16, #tpu.memory_space<vmem>>, %arg3: memref<1x1536xf32, #tpu.memory_space<vmem>>, %arg4: memref<8x1536xf32, #tpu.memory_space<vmem>>) attributes {dimension_semantics = [#tpu.dimension_semantics<parallel>], iteration_bounds = array<i64: 2>, scalar_prefetch = 0 : i64, scratch_operands = 0 : i64, tpu.core_type = #tpu.core_type<tc>, window_params = [{transform_indices = @transform_0, window_bounds = array<i64: 8, 512>}, {pipeline_mode = #tpu.pipeline_mode<synchronous>, transform_indices = @transform_1, window_bounds = array<i64: 512, 1536>}, {pipeline_mode = #tpu.pipeline_mode<synchronous>, transform_indices = @transform_2, window_bounds = array<i64: 1, 1536>}, {transform_indices = @transform_3, window_bounds = array<i64: 8, 1536>}]} {
    %c0 = arith.constant 0 : index
    %c0_0 = arith.constant 0 : index
    %0 = vector.load %arg1[%c0, %c0_0] : memref<8x512xf32, #tpu.memory_space<vmem>>, vector<8x512xf32>
    %1 = arith.truncf %0 : vector<8x512xf32> to vector<8x512xbf16>
    %c0_1 = arith.constant 0 : index
    %c0_2 = arith.constant 0 : index
    %2 = vector.load %arg2[%c0_1, %c0_2] : memref<512x1536xbf16, #tpu.memory_space<vmem>>, vector<512x1536xbf16>
    %cst = arith.constant dense<0.000000e+00> : vector<8x1536xf32>
    %3 = tpu.matmul %1, %2, %cst {dimension_numbers = #tpu.dot_dimension_numbers<[1], [0], [0], [1], [0, 0, 1, 1], [], []>} : vector<8x512xbf16>, vector<512x1536xbf16>, vector<8x1536xf32> -> vector<8x1536xf32>
    %c0_3 = arith.constant 0 : index
    %c0_4 = arith.constant 0 : index
    %4 = vector.load %arg3[%c0_3, %c0_4] : memref<1x1536xf32, #tpu.memory_space<vmem>>, vector<1x1536xf32>
    %5 = vector.broadcast %4 : vector<1x1536xf32> to vector<8x1536xf32>
    %6 = arith.addf %3, %5 : vector<8x1536xf32>
    %c0_5 = arith.constant 0 : index
    %c0_6 = arith.constant 0 : index
    %7 = vector.load %arg4[%c0_5, %c0_6] : memref<8x1536xf32, #tpu.memory_space<vmem>>, vector<8x1536xf32>
    tpu.vector_store %arg4[%c0_5, %c0_6], %6 {strides = array<i32>} : memref<8x1536xf32, #tpu.memory_space<vmem>>, vector<8x1536xf32>,
    return
  }
  func.func @transform_0(%arg0: i32) -> (i32, i32) {
    %c0_i32 = arith.constant 0 : i32
    %c0_i32_0 = arith.constant 0 : i32
    return %arg0, %c0_i32 : i32, i32
  }
  func.func @transform_1(%arg0: i32) -> (i32, i32) {
    %c0_i32 = arith.constant 0 : i32
    %c0_i32_0 = arith.constant 0 : i32
    %c0_i32_1 = arith.constant 0 : i32
    return %c0_i32, %c0_i32_0 : i32, i32
  }
  func.func @transform_2(%arg0: i32) -> (i32, i32) {
    %c0_i32 = arith.constant 0 : i32
    %c0_i32_0 = arith.constant 0 : i32
    %c0_i32_1 = arith.constant 0 : i32
    return %c0_i32, %c0_i32_0 : i32, i32
  }
  func.func @transform_3(%arg0: i32) -> (i32, i32) {
    %c0_i32 = arith.constant 0 : i32
    %c0_i32_0 = arith.constant 0 : i32
    return %arg0, %c0_i32 : i32, i32
  }
}

module attributes {stable_mosaic.version = 11 : i64} {
  func.func @_gru_kernel(%arg0: memref<8x2x1536xf32, #tpu.memory_space<vmem>>, %arg1: memref<512x1536xbf16, #tpu.memory_space<vmem>>, %arg2: memref<1x1536xf32, #tpu.memory_space<vmem>>, %arg3: memref<8x2x512xf32, #tpu.memory_space<vmem>>) attributes {dimension_semantics = [], scalar_prefetch = 0 : i64, scratch_operands = 0 : i64, tpu.core_type = #tpu.core_type<tc>} {
    %c0 = arith.constant 0 : index
    %c0_0 = arith.constant 0 : index
    %0 = vector.load %arg2[%c0, %c0_0] : memref<1x1536xf32, #tpu.memory_space<vmem>>, vector<1x1536xf32>
    %cst = arith.constant 0.000000e+00 : f32
    %1 = vector.broadcast %cst : f32 to vector<2x512xf32>
    %c0_i32 = arith.constant 0 : i32
    %c8_i32 = arith.constant 8 : i32
    %2 = arith.addi %c0_i32, %c8_i32 : i32
    %c1_i32 = arith.constant 1 : i32
    %3 = scf.for %arg4 = %c0_i32 to %2 step %c1_i32 iter_args(%arg5 = %1) -> (vector<2x512xf32>)  : i32 {
      %4 = arith.index_cast %arg4 : i32 to index
      %c0_2 = arith.constant 0 : index
      %c0_3 = arith.constant 0 : index
      %5 = vector.load %arg0[%4, %c0_2, %c0_3] : memref<8x2x1536xf32, #tpu.memory_space<vmem>>, vector<1x2x1536xf32>
      %6 = vector.shape_cast %5 : vector<1x2x1536xf32> to vector<2x1536xf32>
      %7 = arith.truncf %arg5 : vector<2x512xf32> to vector<2x512xbf16>
      %c0_4 = arith.constant 0 : index
      %c0_5 = arith.constant 0 : index
      %8 = vector.load %arg1[%c0_4, %c0_5] : memref<512x1536xbf16, #tpu.memory_space<vmem>>, vector<512x1536xbf16>
      %cst_6 = arith.constant dense<0.000000e+00> : vector<2x1536xf32>
      %9 = tpu.matmul %7, %8, %cst_6 {dimension_numbers = #tpu.dot_dimension_numbers<[1], [0], [0], [1], [0, 0, 1, 1], [], []>} : vector<2x512xbf16>, vector<512x1536xbf16>, vector<2x1536xf32> -> vector<2x1536xf32>
      %10 = vector.broadcast %0 : vector<1x1536xf32> to vector<2x1536xf32>
      %11 = arith.addf %9, %10 : vector<2x1536xf32>
      %12 = vector.extract_strided_slice %6 {offsets = [0, 0], sizes = [2, 512], strides = [1, 1]} : vector<2x1536xf32> to vector<2x512xf32>
      %13 = vector.extract_strided_slice %6 {offsets = [0, 512], sizes = [2, 512], strides = [1, 1]} : vector<2x1536xf32> to vector<2x512xf32>
      %14 = vector.extract_strided_slice %6 {offsets = [0, 1024], sizes = [2, 512], strides = [1, 1]} : vector<2x1536xf32> to vector<2x512xf32>
      %15 = vector.extract_strided_slice %11 {offsets = [0, 0], sizes = [2, 512], strides = [1, 1]} : vector<2x1536xf32> to vector<2x512xf32>
      %16 = vector.extract_strided_slice %11 {offsets = [0, 512], sizes = [2, 512], strides = [1, 1]} : vector<2x1536xf32> to vector<2x512xf32>
      %17 = vector.extract_strided_slice %11 {offsets = [0, 1024], sizes = [2, 512], strides = [1, 1]} : vector<2x1536xf32> to vector<2x512xf32>
      %18 = arith.addf %12, %15 : vector<2x512xf32>
      %19 = arith.negf %18 : vector<2x512xf32>
      %20 = math.exp %19 : vector<2x512xf32>
      %cst_7 = arith.constant 1.000000e+00 : f32
      %21 = vector.broadcast %cst_7 : f32 to vector<2x512xf32>
      %22 = arith.addf %21, %20 : vector<2x512xf32>
      %23 = arith.divf %21, %22 : vector<2x512xf32>
      %24 = arith.addf %13, %16 : vector<2x512xf32>
      %25 = arith.negf %24 : vector<2x512xf32>
      %26 = math.exp %25 : vector<2x512xf32>
      %cst_8 = arith.constant 1.000000e+00 : f32
      %27 = vector.broadcast %cst_8 : f32 to vector<2x512xf32>
      %28 = arith.addf %27, %26 : vector<2x512xf32>
      %29 = arith.divf %27, %28 : vector<2x512xf32>
      %30 = arith.mulf %23, %17 : vector<2x512xf32>
      %31 = arith.addf %14, %30 : vector<2x512xf32>
      %32 = math.tanh %31 : vector<2x512xf32>
      %cst_9 = arith.constant 1.000000e+00 : f32
      %33 = vector.broadcast %cst_9 : f32 to vector<2x512xf32>
      %34 = arith.subf %33, %29 : vector<2x512xf32>
      %35 = arith.mulf %34, %32 : vector<2x512xf32>
      %36 = arith.mulf %29, %arg5 : vector<2x512xf32>
      %37 = arith.addf %35, %36 : vector<2x512xf32>
      %38 = arith.index_cast %arg4 : i32 to index
      %c0_10 = arith.constant 0 : index
      %c0_11 = arith.constant 0 : index
      %39 = vector.load %arg3[%38, %c0_10, %c0_11] : memref<8x2x512xf32, #tpu.memory_space<vmem>>, vector<1x2x512xf32>
      %40 = vector.shape_cast %39 : vector<1x2x512xf32> to vector<2x512xf32>
      %41 = vector.shape_cast %37 : vector<2x512xf32> to vector<1x2x512xf32>
      tpu.vector_store %arg3[%38, %c0_10, %c0_11], %41 {strides = array<i32>} : memref<8x2x512xf32, #tpu.memory_space<vmem>>, vector<1x2x512xf32>,
      scf.yield %37 : vector<2x512xf32>
    }
    %c8_i32_1 = arith.constant 8 : i32
    return
  }
}

module attributes {stable_mosaic.version = 11 : i64} {
  func.func @_attn_ln_kernel(%arg0: i32, %arg1: i32, %arg2: memref<1x8x512xf32, #tpu.memory_space<vmem>>, %arg3: memref<3x1x512x64xbf16, #tpu.memory_space<vmem>>, %arg4: memref<1x64x512xbf16, #tpu.memory_space<vmem>>, %arg5: memref<1x1x8xf32, #tpu.memory_space<vmem>>, %arg6: memref<1x8x512xf32, #tpu.memory_space<vmem>>, %arg7: memref<1x1x8x8xf32, #tpu.memory_space<vmem>>, %arg8: memref<8x512xf32, #tpu.memory_space<vmem>>) attributes {dimension_semantics = [#tpu.dimension_semantics<parallel>, #tpu.dimension_semantics<arbitrary>], iteration_bounds = array<i64: 2, 8>, scalar_prefetch = 0 : i64, scratch_operands = 1 : i64, tpu.core_type = #tpu.core_type<tc>, window_params = [{transform_indices = @transform_0, window_bounds = array<i64: 1, 8, 512>}, {transform_indices = @transform_1, window_bounds = array<i64: 3, 1, 512, 64>}, {transform_indices = @transform_2, window_bounds = array<i64: 1, 64, 512>}, {transform_indices = @transform_3, window_bounds = array<i64: 1, 1, 8>}, {transform_indices = @transform_4, window_bounds = array<i64: 1, 8, 512>}, {transform_indices = @transform_5, window_bounds = array<i64: 1, 1, 8, 8>}]} {
    %c0 = arith.constant 0 : index
    %c0_0 = arith.constant 0 : index
    %c0_1 = arith.constant 0 : index
    %0 = vector.load %arg2[%c0, %c0_0, %c0_1] : memref<1x8x512xf32, #tpu.memory_space<vmem>>, vector<1x8x512xf32>
    %1 = vector.shape_cast %0 : vector<1x8x512xf32> to vector<8x512xf32>
    %2 = arith.truncf %1 : vector<8x512xf32> to vector<8x512xbf16>
    %c0_2 = arith.constant 0 : index
    %c0_3 = arith.constant 0 : index
    %c0_4 = arith.constant 0 : index
    %c0_5 = arith.constant 0 : index
    %3 = vector.load %arg3[%c0_2, %c0_3, %c0_4, %c0_5] : memref<3x1x512x64xbf16, #tpu.memory_space<vmem>>, vector<1x1x512x64xbf16>
    %4 = vector.shape_cast %3 : vector<1x1x512x64xbf16> to vector<512x64xbf16>
    %cst = arith.constant dense<0.000000e+00> : vector<8x64xf32>
    %5 = tpu.matmul %2, %4, %cst {dimension_numbers = #tpu.dot_dimension_numbers<[1], [0], [0], [1], [0, 0, 1, 1], [], []>} : vector<8x512xbf16>, vector<512x64xbf16>, vector<8x64xf32> -> vector<8x64xf32>
    %c1 = arith.constant 1 : index
    %c0_6 = arith.constant 0 : index
    %c0_7 = arith.constant 0 : index
    %c0_8 = arith.constant 0 : index
    %6 = vector.load %arg3[%c1, %c0_6, %c0_7, %c0_8] : memref<3x1x512x64xbf16, #tpu.memory_space<vmem>>, vector<1x1x512x64xbf16>
    %7 = vector.shape_cast %6 : vector<1x1x512x64xbf16> to vector<512x64xbf16>
    %cst_9 = arith.constant dense<0.000000e+00> : vector<8x64xf32>
    %8 = tpu.matmul %2, %7, %cst_9 {dimension_numbers = #tpu.dot_dimension_numbers<[1], [0], [0], [1], [0, 0, 1, 1], [], []>} : vector<8x512xbf16>, vector<512x64xbf16>, vector<8x64xf32> -> vector<8x64xf32>
    %c2 = arith.constant 2 : index
    %c0_10 = arith.constant 0 : index
    %c0_11 = arith.constant 0 : index
    %c0_12 = arith.constant 0 : index
    %9 = vector.load %arg3[%c2, %c0_10, %c0_11, %c0_12] : memref<3x1x512x64xbf16, #tpu.memory_space<vmem>>, vector<1x1x512x64xbf16>
    %10 = vector.shape_cast %9 : vector<1x1x512x64xbf16> to vector<512x64xbf16>
    %cst_13 = arith.constant dense<0.000000e+00> : vector<8x64xf32>
    %11 = tpu.matmul %2, %10, %cst_13 {dimension_numbers = #tpu.dot_dimension_numbers<[1], [0], [0], [1], [0, 0, 1, 1], [], []>} : vector<8x512xbf16>, vector<512x64xbf16>, vector<8x64xf32> -> vector<8x64xf32>
    %12 = arith.truncf %5 : vector<8x64xf32> to vector<8x64xbf16>
    %13 = arith.truncf %8 : vector<8x64xf32> to vector<8x64xbf16>
    %cst_14 = arith.constant dense<0.000000e+00> : vector<8x8xf32>
    %14 = tpu.matmul %12, %13, %cst_14 {dimension_numbers = #tpu.dot_dimension_numbers<[1], [1], [0], [0], [0, 0, 1, 0], [], []>} : vector<8x64xbf16>, vector<8x64xbf16>, vector<8x8xf32> -> vector<8x8xf32>
    %cst_15 = arith.constant 1.250000e-01 : f32
    %15 = vector.broadcast %cst_15 : f32 to vector<8x8xf32>
    %16 = arith.mulf %14, %15 : vector<8x8xf32>
    %c0_16 = arith.constant 0 : index
    %c0_17 = arith.constant 0 : index
    %c0_18 = arith.constant 0 : index
    %17 = vector.load %arg5[%c0_16, %c0_17, %c0_18] : memref<1x1x8xf32, #tpu.memory_space<vmem>>, vector<1x1x8xf32>
    %18 = vector.shape_cast %17 : vector<1x1x8xf32> to vector<1x8xf32>
    %cst_19 = arith.constant 0.000000e+00 : f32
    %19 = vector.broadcast %cst_19 : f32 to vector<1x8xf32>
    %20 = arith.cmpf ogt, %18, %19 : vector<1x8xf32>
    %cst_20 = arith.constant -1.000000e+09 : f32
    %21 = vector.shape_cast %20 : vector<1x8xi1> to vector<1x8xi1>
    %22 = vector.broadcast %21 : vector<1x8xi1> to vector<8x8xi1>
    %23 = vector.broadcast %cst_20 : f32 to vector<8x8xf32>
    %24 = arith.select %22, %23, %16 : vector<8x8xi1>, vector<8x8xf32>
    %cst_21 = arith.constant dense<0xFF800000> : vector<8xf32>
    %25 = vector.multi_reduction <maximumf>, %24, %cst_21 [1] : vector<8x8xf32> to vector<8xf32>
    %26 = vector.shape_cast %25 : vector<8xf32> to vector<8x1xf32>
    %27 = vector.broadcast %26 : vector<8x1xf32> to vector<8x8xf32>
    %28 = arith.subf %24, %27 : vector<8x8xf32>
    %29 = math.exp %28 : vector<8x8xf32>
    %cst_22 = arith.constant dense<0.000000e+00> : vector<8xf32>
    %30 = vector.multi_reduction <add>, %29, %cst_22 [1] : vector<8x8xf32> to vector<8xf32>
    %31 = vector.shape_cast %30 : vector<8xf32> to vector<8x1xf32>
    %32 = tpu.reciprocal %31 {approx = true} : vector<8x1xf32> -> vector<8x1xf32>
    %33 = vector.broadcast %32 : vector<8x1xf32> to vector<8x8xf32>
    %34 = arith.mulf %29, %33 : vector<8x8xf32>
    %c0_23 = arith.constant 0 : index
    %c0_24 = arith.constant 0 : index
    %c0_25 = arith.constant 0 : index
    %c0_26 = arith.constant 0 : index
    %35 = vector.load %arg7[%c0_23, %c0_24, %c0_25, %c0_26] : memref<1x1x8x8xf32, #tpu.memory_space<vmem>>, vector<1x1x8x8xf32>
    %36 = vector.shape_cast %35 : vector<1x1x8x8xf32> to vector<8x8xf32>
    %37 = vector.shape_cast %34 : vector<8x8xf32> to vector<1x1x8x8xf32>
    tpu.vector_store %arg7[%c0_23, %c0_24, %c0_25, %c0_26], %37 {strides = array<i32>} : memref<1x1x8x8xf32, #tpu.memory_space<vmem>>, vector<1x1x8x8xf32>,
    %38 = arith.truncf %34 : vector<8x8xf32> to vector<8x8xbf16>
    %39 = arith.truncf %11 : vector<8x64xf32> to vector<8x64xbf16>
    %cst_27 = arith.constant dense<0.000000e+00> : vector<8x64xf32>
    %40 = tpu.matmul %38, %39, %cst_27 {dimension_numbers = #tpu.dot_dimension_numbers<[1], [0], [0], [1], [0, 0, 1, 1], [], []>} : vector<8x8xbf16>, vector<8x64xbf16>, vector<8x64xf32> -> vector<8x64xf32>
    %41 = arith.truncf %40 : vector<8x64xf32> to vector<8x64xbf16>
    %c0_28 = arith.constant 0 : index
    %c0_29 = arith.constant 0 : index
    %c0_30 = arith.constant 0 : index
    %42 = vector.load %arg4[%c0_28, %c0_29, %c0_30] : memref<1x64x512xbf16, #tpu.memory_space<vmem>>, vector<1x64x512xbf16>
    %43 = vector.shape_cast %42 : vector<1x64x512xbf16> to vector<64x512xbf16>
    %cst_31 = arith.constant dense<0.000000e+00> : vector<8x512xf32>
    %44 = tpu.matmul %41, %43, %cst_31 {dimension_numbers = #tpu.dot_dimension_numbers<[1], [0], [0], [1], [0, 0, 1, 1], [], []>} : vector<8x64xbf16>, vector<64x512xbf16>, vector<8x512xf32> -> vector<8x512xf32>
    %c0_i32 = arith.constant 0 : i32
    %45 = arith.cmpi eq, %arg1, %c0_i32 : i32
    %46 = arith.extui %45 : i1 to i32
    %c0_i32_32 = arith.constant 0 : i32
    %47 = arith.cmpi ne, %46, %c0_i32_32 : i32
    scf.if %47 {
      %cst_38 = arith.constant 0.000000e+00 : f32
      %54 = vector.broadcast %cst_38 : f32 to vector<8x512xf32>
      %c0_39 = arith.constant 0 : index
      %c0_40 = arith.constant 0 : index
      %55 = vector.load %arg8[%c0_39, %c0_40] : memref<8x512xf32, #tpu.memory_space<vmem>>, vector<8x512xf32>
      tpu.vector_store %arg8[%c0_39, %c0_40], %54 {strides = array<i32>} : memref<8x512xf32, #tpu.memory_space<vmem>>, vector<8x512xf32>,
    } else {
    }
    %c0_33 = arith.constant 0 : index
    %c0_34 = arith.constant 0 : index
    %48 = vector.load %arg8[%c0_33, %c0_34] : memref<8x512xf32, #tpu.memory_space<vmem>>, vector<8x512xf32>
    %49 = arith.addf %48, %44 : vector<8x512xf32>
    %c0_35 = arith.constant 0 : index
    %c0_36 = arith.constant 0 : index
    %50 = vector.load %arg8[%c0_35, %c0_36] : memref<8x512xf32, #tpu.memory_space<vmem>>, vector<8x512xf32>
    tpu.vector_store %arg8[%c0_35, %c0_36], %49 {strides = array<i32>} : memref<8x512xf32, #tpu.memory_space<vmem>>, vector<8x512xf32>,
    %c7_i32 = arith.constant 7 : i32
    %51 = arith.cmpi eq, %arg1, %c7_i32 : i32
    %52 = arith.extui %51 : i1 to i32
    %c0_i32_37 = arith.constant 0 : i32
    %53 = arith.cmpi ne, %52, %c0_i32_37 : i32
    scf.if %53 {
      %c0_38 = arith.constant 0 : index
      %c0_39 = arith.constant 0 : index
      %54 = vector.load %arg8[%c0_38, %c0_39] : memref<8x512xf32, #tpu.memory_space<vmem>>, vector<8x512xf32>
      %55 = arith.addf %54, %1 : vector<8x512xf32>
      %cst_40 = arith.constant dense<0.000000e+00> : vector<8xf32>
      %56 = vector.multi_reduction <add>, %55, %cst_40 [1] : vector<8x512xf32> to vector<8xf32>
      %57 = vector.shape_cast %56 : vector<8xf32> to vector<8x1xf32>
      %cst_41 = arith.constant 5.120000e+02 : f32
      %58 = vector.broadcast %cst_41 : f32 to vector<8x1xf32>
      %59 = arith.divf %57, %58 : vector<8x1xf32>
      %60 = vector.broadcast %59 : vector<8x1xf32> to vector<8x512xf32>
      %61 = arith.subf %55, %60 : vector<8x512xf32>
      %62 = arith.mulf %61, %61 : vector<8x512xf32>
      %cst_42 = arith.constant dense<0.000000e+00> : vector<8xf32>
      %63 = vector.multi_reduction <add>, %62, %cst_42 [1] : vector<8x512xf32> to vector<8xf32>
      %64 = vector.shape_cast %63 : vector<8xf32> to vector<8x1xf32>
      %cst_43 = arith.constant 5.120000e+02 : f32
      %65 = vector.broadcast %cst_43 : f32 to vector<8x1xf32>
      %66 = arith.divf %64, %65 : vector<8x1xf32>
      %cst_44 = arith.constant 9.99999974E-6 : f32
      %67 = vector.broadcast %cst_44 : f32 to vector<8x1xf32>
      %68 = arith.addf %66, %67 : vector<8x1xf32>
      %69 = math.rsqrt %68 : vector<8x1xf32>
      %70 = vector.broadcast %69 : vector<8x1xf32> to vector<8x512xf32>
      %71 = arith.mulf %61, %70 : vector<8x512xf32>
      %c0_45 = arith.constant 0 : index
      %c0_46 = arith.constant 0 : index
      %c0_47 = arith.constant 0 : index
      %72 = vector.load %arg6[%c0_45, %c0_46, %c0_47] : memref<1x8x512xf32, #tpu.memory_space<vmem>>, vector<1x8x512xf32>
      %73 = vector.shape_cast %72 : vector<1x8x512xf32> to vector<8x512xf32>
      %74 = vector.shape_cast %71 : vector<8x512xf32> to vector<1x8x512xf32>
      tpu.vector_store %arg6[%c0_45, %c0_46, %c0_47], %74 {strides = array<i32>} : memref<1x8x512xf32, #tpu.memory_space<vmem>>, vector<1x8x512xf32>,
    } else {
    }
    return
  }
  func.func @transform_0(%arg0: i32, %arg1: i32) -> (i32, i32, i32) {
    %c0_i32 = arith.constant 0 : i32
    %c0_i32_0 = arith.constant 0 : i32
    %c0_i32_1 = arith.constant 0 : i32
    return %arg0, %c0_i32, %c0_i32_0 : i32, i32, i32
  }
  func.func @transform_1(%arg0: i32, %arg1: i32) -> (i32, i32, i32, i32) {
    %c0_i32 = arith.constant 0 : i32
    %c0_i32_0 = arith.constant 0 : i32
    %c0_i32_1 = arith.constant 0 : i32
    %c0_i32_2 = arith.constant 0 : i32
    return %c0_i32, %arg1, %c0_i32_0, %c0_i32_1 : i32, i32, i32, i32
  }
  func.func @transform_2(%arg0: i32, %arg1: i32) -> (i32, i32, i32) {
    %c0_i32 = arith.constant 0 : i32
    %c0_i32_0 = arith.constant 0 : i32
    %c0_i32_1 = arith.constant 0 : i32
    return %arg1, %c0_i32, %c0_i32_0 : i32, i32, i32
  }
  func.func @transform_3(%arg0: i32, %arg1: i32) -> (i32, i32, i32) {
    %c0_i32 = arith.constant 0 : i32
    %c0_i32_0 = arith.constant 0 : i32
    %c0_i32_1 = arith.constant 0 : i32
    return %arg0, %c0_i32, %c0_i32_0 : i32, i32, i32
  }
  func.func @transform_4(%arg0: i32, %arg1: i32) -> (i32, i32, i32) {
    %c0_i32 = arith.constant 0 : i32
    %c0_i32_0 = arith.constant 0 : i32
    %c0_i32_1 = arith.constant 0 : i32
    return %arg0, %c0_i32, %c0_i32_0 : i32, i32, i32
  }
  func.func @transform_5(%arg0: i32, %arg1: i32) -> (i32, i32, i32, i32) {
    %c0_i32 = arith.constant 0 : i32
    %c0_i32_0 = arith.constant 0 : i32
    %c0_i32_1 = arith.constant 0 : i32
    return %arg0, %arg1, %c0_i32, %c0_i32_0 : i32, i32, i32, i32
  }
}

module attributes {stable_mosaic.version = 11 : i64} {
  func.func @_ffn_ln_kernel(%arg0: i32, %arg1: memref<8x512xf32, #tpu.memory_space<vmem>>, %arg2: memref<512x2048xbf16, #tpu.memory_space<vmem>>, %arg3: memref<2048x512xbf16, #tpu.memory_space<vmem>>, %arg4: memref<8x512xf32, #tpu.memory_space<vmem>>) attributes {dimension_semantics = [#tpu.dimension_semantics<parallel>], iteration_bounds = array<i64: 2>, scalar_prefetch = 0 : i64, scratch_operands = 0 : i64, tpu.core_type = #tpu.core_type<tc>, window_params = [{transform_indices = @transform_0, window_bounds = array<i64: 8, 512>}, {pipeline_mode = #tpu.pipeline_mode<synchronous>, transform_indices = @transform_1, window_bounds = array<i64: 512, 2048>}, {pipeline_mode = #tpu.pipeline_mode<synchronous>, transform_indices = @transform_2, window_bounds = array<i64: 2048, 512>}, {transform_indices = @transform_3, window_bounds = array<i64: 8, 512>}]} {
    %c0 = arith.constant 0 : index
    %c0_0 = arith.constant 0 : index
    %0 = vector.load %arg1[%c0, %c0_0] : memref<8x512xf32, #tpu.memory_space<vmem>>, vector<8x512xf32>
    %1 = arith.truncf %0 : vector<8x512xf32> to vector<8x512xbf16>
    %c0_1 = arith.constant 0 : index
    %c0_2 = arith.constant 0 : index
    %2 = vector.load %arg2[%c0_1, %c0_2] : memref<512x2048xbf16, #tpu.memory_space<vmem>>, vector<512x2048xbf16>
    %cst = arith.constant dense<0.000000e+00> : vector<8x2048xf32>
    %3 = tpu.matmul %1, %2, %cst {dimension_numbers = #tpu.dot_dimension_numbers<[1], [0], [0], [1], [0, 0, 1, 1], [], []>} : vector<8x512xbf16>, vector<512x2048xbf16>, vector<8x2048xf32> -> vector<8x2048xf32>
    %cst_3 = arith.constant 0.000000e+00 : f32
    %4 = vector.broadcast %cst_3 : f32 to vector<8x2048xf32>
    %5 = arith.maximumf %3, %4 : vector<8x2048xf32>
    %6 = arith.truncf %5 : vector<8x2048xf32> to vector<8x2048xbf16>
    %c0_4 = arith.constant 0 : index
    %c0_5 = arith.constant 0 : index
    %7 = vector.load %arg3[%c0_4, %c0_5] : memref<2048x512xbf16, #tpu.memory_space<vmem>>, vector<2048x512xbf16>
    %cst_6 = arith.constant dense<0.000000e+00> : vector<8x512xf32>
    %8 = tpu.matmul %6, %7, %cst_6 {dimension_numbers = #tpu.dot_dimension_numbers<[1], [0], [0], [1], [0, 0, 1, 1], [], []>} : vector<8x2048xbf16>, vector<2048x512xbf16>, vector<8x512xf32> -> vector<8x512xf32>
    %9 = arith.addf %8, %0 : vector<8x512xf32>
    %cst_7 = arith.constant dense<0.000000e+00> : vector<8xf32>
    %10 = vector.multi_reduction <add>, %9, %cst_7 [1] : vector<8x512xf32> to vector<8xf32>
    %11 = vector.shape_cast %10 : vector<8xf32> to vector<8x1xf32>
    %cst_8 = arith.constant 5.120000e+02 : f32
    %12 = vector.broadcast %cst_8 : f32 to vector<8x1xf32>
    %13 = arith.divf %11, %12 : vector<8x1xf32>
    %14 = vector.broadcast %13 : vector<8x1xf32> to vector<8x512xf32>
    %15 = arith.subf %9, %14 : vector<8x512xf32>
    %16 = arith.mulf %15, %15 : vector<8x512xf32>
    %cst_9 = arith.constant dense<0.000000e+00> : vector<8xf32>
    %17 = vector.multi_reduction <add>, %16, %cst_9 [1] : vector<8x512xf32> to vector<8xf32>
    %18 = vector.shape_cast %17 : vector<8xf32> to vector<8x1xf32>
    %cst_10 = arith.constant 5.120000e+02 : f32
    %19 = vector.broadcast %cst_10 : f32 to vector<8x1xf32>
    %20 = arith.divf %18, %19 : vector<8x1xf32>
    %cst_11 = arith.constant 9.99999974E-6 : f32
    %21 = vector.broadcast %cst_11 : f32 to vector<8x1xf32>
    %22 = arith.addf %20, %21 : vector<8x1xf32>
    %23 = math.rsqrt %22 : vector<8x1xf32>
    %24 = vector.broadcast %23 : vector<8x1xf32> to vector<8x512xf32>
    %25 = arith.mulf %15, %24 : vector<8x512xf32>
    %c0_12 = arith.constant 0 : index
    %c0_13 = arith.constant 0 : index
    %26 = vector.load %arg4[%c0_12, %c0_13] : memref<8x512xf32, #tpu.memory_space<vmem>>, vector<8x512xf32>
    tpu.vector_store %arg4[%c0_12, %c0_13], %25 {strides = array<i32>} : memref<8x512xf32, #tpu.memory_space<vmem>>, vector<8x512xf32>,
    return
  }
  func.func @transform_0(%arg0: i32) -> (i32, i32) {
    %c0_i32 = arith.constant 0 : i32
    %c0_i32_0 = arith.constant 0 : i32
    return %arg0, %c0_i32 : i32, i32
  }
  func.func @transform_1(%arg0: i32) -> (i32, i32) {
    %c0_i32 = arith.constant 0 : i32
    %c0_i32_0 = arith.constant 0 : i32
    %c0_i32_1 = arith.constant 0 : i32
    return %c0_i32, %c0_i32_0 : i32, i32
  }
  func.func @transform_2(%arg0: i32) -> (i32, i32) {
    %c0_i32 = arith.constant 0 : i32
    %c0_i32_0 = arith.constant 0 : i32
    %c0_i32_1 = arith.constant 0 : i32
    return %c0_i32, %c0_i32_0 : i32, i32
  }
  func.func @transform_3(%arg0: i32) -> (i32, i32) {
    %c0_i32 = arith.constant 0 : i32
    %c0_i32_0 = arith.constant 0 : i32
    return %arg0, %c0_i32 : i32, i32
  }
}

</mosaic_0001>

<bundles_post_ra>
// kernel: encoder_forward.7
= control target key start
LH: loop header
LB: loop body
LE: loop exit
PB: predicated region body
PF: predicated region fallthrough
CT: control target
= control target key end

     0   :  { %8 = vsyncpa [#allocation3], 0  ;;  %s855_s0 = inlined_call_operand.hbm [shape: f32[16,16], index: 0, kind: input, shape index: {}]   ;;  %s856_s1 = inlined_call_operand.hbm [shape: bf16[16,512], index: 1, kind: input, shape index: {}]   ;;  %s857_s2 = inlined_call_operand.hbm [shape: f32[1,512], index: 2, kind: input, shape index: {}]   ;;  %s858_s3 = inlined_call_operand.vmem [shape: f32[16,512], index: 3, kind: output, shape index: {}]  }
   0x1   :  { %10 = vsyncpa [#allocation3 + $0x1], 0 }
   0x2   :  { %11 = vsyncpa [#allocation5], 0  ;;  %s683_s12 = smov 0   ;;  %s685_s13 = smov 0  }
   0x3   :  { %s687_s14 = smov 0   ;;  %s689_s15 = smov 0  }
   0x4 LB: > { %s702_s16 = sadd.s32 4294967295, %s655_s15   ;;  %p37_p0 = scmp.ne.s32.totalorder %s647_s13, %s643_s12  ;;  %s655_s15 = sphi %s689_s15, %s873_s15   ;;  %s651_s14 = sphi %s687_s14, %s872_s14   ;;  %s647_s13 = sphi %s685_s13, %s871_s13   ;;  %s643_s12 = sphi %s683_s12, %s870_s12  }
   0x5   : > { %p859_p1 = scmp.eq.s32.totalorder %s702_s16, 0  ;;  %p441_p2 = scmp.ge.s32.totalorder %s655_s15, 1 }
   0x6   : > { %p116_p3 = scmp.lt.s32.totalorder %s655_s15, 3  ;;  %s657_s19 = smov [#allocation4]  }
   0x7   : > { %p710_p4 = por %p859_p1, %p37_p0  ;;  %s128_s20 = sshll.u32 %s657_s19, 4  ;;  %s129_s20 = int_to_ptr.vmem [resolvable:$true] %s128_s20 }
   0x8   : > { %p714_p5 = pnand %p441_p2, %p116_p3  ;;  %s658_s22 = smov [#allocation6]  }
   0x9   : > { %s862_s17 = scalar_select %p710_p4, 1, 0 }
   0xa   : > { %s863_s18 = scalar_select %p714_p5, 1, 0 }
   0xb   : > { %p472_p6 = pneg %p714_p5  ;;  %s142_s23 = sshll.u32 %s658_s22, 4  ;;  %s726_s23 = int_to_ptr.vmem [resolvable:$true] %s142_s23 }
   0xc   : > { %s531_s26 = scalar_lea.hbm %s856_s1, 512 }
   0xd   : > { %p722_p7 = pnand %p472_p6, %p859_p1  ;;  %p532_p8 = scmp.ne.s32.totalorder %s856_s1, %s531_s26 }
   0xe   : > { %p538_p12 = scmp.lt.u32.totalorder %s531_s26, %s856_s1 }
   0xf   : > { %p533_p9 = pneg %p722_p7 }
  0x11   : > { %p534_p10 = pnand %p533_p9, %p532_p8 }
  0x13   : > { %p535_p11 = pneg %p534_p10 }
  0x15   : > { %p540_p13 = pnand %p538_p12, %p535_p11 }
  0x17   : > { %543 = shalt.err (!%p540_p13)
}
  0x18   : > { %s544_s4 = scalar_lea.vmem %s129_s20, 512  ;;  %p552_p6 = scmp.lt.s32.totalorder %s129_s20, %s129_s20 }
  0x19   : > { %p545_p0 = scmp.ne.s32.totalorder %s129_s20, %s544_s4  ;;  %p553_p1 = scmp.lt.s32.totalorder %s544_s4, %s544_s4 }
  0x1b   : > { %p547_p2 = pnand %p545_p0, %p533_p9  ;;  %p554_p4 = por %p553_p1, %p552_p6 }
  0x1d   : > { %p548_p3 = pneg %p547_p2 }
  0x1f   : > { %p555_p5 = pnand %p554_p4, %p548_p3 }
  0x21   : > { %558 = shalt.err (!%p555_p5)
}
  0x22   : > { %s659_s5 = smov 256   ;;  %s660_s6 = smov 16  }
  0x23   : > { %475 = dma.hbm_to_vmem [thread:$0]  (!%p722_p7), %s856_s1, 512, %s129_s20, [#allocation5], %s659_s5, %s659_s5, %s660_s6  }
  0x24   : > { %s559_s11 = scalar_lea.hbm %s857_s2, 64 }
  0x25   : > { %p560_p8 = scmp.ne.s32.totalorder %s857_s2, %s559_s11  ;;  %p566_p5 = scmp.lt.u32.totalorder %s559_s11, %s857_s2 }
  0x27   : > { %p562_p1 = pnand %p560_p8, %p533_p9 }
  0x29   : > { %p563_p4 = pneg %p562_p1 }
  0x2b   : > { %p568_p10 = pnand %p566_p5, %p563_p4 }
  0x2d   : > { %571 = shalt.err (!%p568_p10)
}
  0x2e   : > { %s572_s20 = scalar_lea.vmem %s726_s23, 64  ;;  %p580_p0 = scmp.lt.s32.totalorder %s726_s23, %s726_s23 }
  0x2f   : > { %p573_p11 = scmp.ne.s32.totalorder %s726_s23, %s572_s20  ;;  %p581_p2 = scmp.lt.s32.totalorder %s572_s20, %s572_s20 }
  0x31   : > { %p575_p12 = pnand %p573_p11, %p533_p9  ;;  %p582_p3 = por %p581_p2, %p580_p0 }
  0x33   : > { %p576_p13 = pneg %p575_p12 }
  0x35   : > { %p583_p6 = pnand %p582_p3, %p576_p13 }
  0x37   : > { %586 = shalt.err (!%p583_p6)
}
  0x38   : > { %478 = dma.hbm_to_vmem [thread:$0]  (!%p722_p7), %s857_s2, 64, %s726_s23, [#allocation5]  }
  0x39   : > { %s776_s27 = sadd.s32 1, %s655_s15   ;;  %s24_s28 = sadd.s32 1, %s651_s14 }
  0x3a   : > { %s21_s21 = ssub.s32 %s655_s15, %s776_s27  ;;  %p31_p9 = scmp.ne.s32.totalorder %s651_s14, %s647_s13 }
  0x3b   : > { %p22_p8 = scmp.eq.s32.totalorder %s21_s21, 0  ;;  %p32_p1 = scmp.eq.s32.totalorder %s655_s15, 0 }
  0x3c   : > { %p485_p4 = scmp.lt.s32.totalorder %s655_s15, 2  ;;  %s153_s29 = sand.u32 1, %s651_s14  }
  0x3d   : > { %s787_s30 = scalar_select %p22_p8, %s651_s14, %s24_s28  }
  0x3e   : > { %p33_p5 = por %p32_p1, %p31_p9  ;;  %s445_s4 = sshll.u32 %s153_s29, 3 }
  0x3f   : > { %s446_s5 = sshll.u32 %s655_s15, 7  ;;  %s157_s23 = scalar_lea.vmem [#allocation2], %s445_s4 }
  0x40   : > { %s793_s8 = scalar_lea.hbm %s855_s0, %s446_s5  ;;  %s164_s9 = sshll.u32 %s157_s23, 4  ;;  %s799_s9 = int_to_ptr.vmem [resolvable:$true] %s164_s9 }
  0x41   : > { %p795_p7 = pnand %p485_p4, %p33_p5  ;;  %s154_s15 = scalar_lea.sflag [#allocation3], %s153_s29 }
  0x42   : > { %s587_s11 = scalar_lea.hbm %s793_s8, 128  ;;  %s592_s22 = scalar_lea.hbm %s855_s0, 256 }
  0x43   : > { %p588_p10 = scmp.ne.s32.totalorder %s793_s8, %s587_s11  ;;  %p589_p11 = pneg %p795_p7 }
  0x44   : > { %p593_p0 = scmp.lt.u32.totalorder %s793_s8, %s855_s0  ;;  %p594_p2 = scmp.lt.u32.totalorder %s592_s22, %s587_s11 }
  0x45   : > { %p590_p12 = pnand %p589_p11, %p588_p10  ;;  %p596_p6 = scmp.lt.u32.totalorder %s587_s11, %s793_s8 }
  0x46   : > { %p595_p3 = por %p594_p2, %p593_p0 }
  0x47   : > { %p591_p13 = pneg %p590_p12 }
  0x48   : > { %p597_p9 = por %p596_p6, %p595_p3 }
  0x4a   : > { %p598_p8 = pnand %p597_p9, %p591_p13 }
  0x4c   : > { %601 = shalt.err (!%p598_p8)
}
  0x4d   : > { %s602_s25 = scalar_lea.vmem %s799_s9, 128  ;;  %s661_s26 = smov [#allocation2]  }
  0x4e   : > { %p603_p1 = scmp.ne.s32.totalorder %s799_s9, %s602_s25  ;;  %s607_s28 = sshll.u32 %s661_s26, 4  ;;  %s608_s28 = int_to_ptr.vmem [resolvable:$false] %s607_s28 }
  0x4f   : > { %s609_s21 = scalar_lea.vmem %s608_s28, 256  ;;  %p610_p10 = scmp.lt.s32.totalorder %s799_s9, %s608_s28 }
  0x50   : > { %p605_p4 = pnand %p603_p1, %p589_p11  ;;  %p611_p12 = scmp.lt.s32.totalorder %s609_s21, %s602_s25 }
  0x52   : > { %p606_p5 = pneg %p605_p4  ;;  %p612_p0 = por %p611_p12, %p610_p10 }
  0x54   : > { %p613_p2 = pnand %p612_p0, %p606_p5 }
  0x56   : > { %616 = shalt.err (!%p613_p2)
}
  0x57   : > { %482 = dma.hbm_to_vmem [thread:$0]  (!%p795_p7), %s793_s8, 128, %s799_s9, %s154_s15  }
  0x58   : > { %p866_p13 = scmp.ne.s32.totalorder %s863_s18, 0 }
  0x59   : > { %s175_s29 = sand.u32 (!%p866_p13), 1, %s647_s13   ;;  %p867_p11 = scmp.ne.s32.totalorder (!%p866_p13), %s862_s17, 0 }
  0x5a   : > { %173 = sbr.rel (%p866_p13) target bundleno = 323 (0x143), region = 32  ;;  %s448_s4 = sshll.u32 (!%p866_p13), %s175_s29, 3 }
  0x5b   : > { %s176_s5 = scalar_lea.sflag (!%p866_p13), [#allocation3], %s175_s29  ;;  %s179_s6 = scalar_lea.vmem (!%p866_p13), [#allocation2], %s448_s4 }
  0x61   : > { %634 = dma.done.wait (%p867_p11), %s176_s5, 128  }
  0x62   : > { %636 = vsyncadd (%p867_p11), %s176_s5, 4294967168  ;;  %p868_p3 = scmp.eq.s32.totalorder %s702_s16, 0 }
  0x64   : > { %638 = dma.done.wait (%p868_p3), [#allocation5], 576   ;;  %p869_p6 = pmov %p868_p3 }
  0x65   : > { %v662_v0 = vmov 0   ;;  %v525_v1 = vld [vmem:[#allocation4 + $0x4] ss:$16 sps:$4 sm:$0xff]   ;;  %v527_v2 = vld [vmem:[#allocation4 + $0xc] ss:$16 sps:$4 sm:$0xff]   ;;  %vm264_vm0 = vcmask 130048   ;;  %v224_v7 = vlaneseq }
  0x66   : > { %640 = vsyncadd (%p869_p6), [#allocation5], 4294966720  ;;  %300 = vmatprep.mubr.bf16.mxu0 %v662_v0  ;;  %341 = vmatprep.mubr.bf16.mxu1 %v662_v0  ;;  %v529_v3 = vld [vmem:[#allocation4] ss:$16 sps:$4 sm:$0xff]   ;;  %v530_v4 = vld [vmem:[#allocation4 + $0x8] ss:$16 sps:$4 sm:$0xff]  }
  0x67   : > { %268 = vmatprep.subr.bf16.mxu0 %v525_v1  ;;  %v216_v5 = vld [vmem:[%s179_s6] sm:$0xff]  ;;  %309 = vmatprep.subr.bf16.mxu1 %v527_v2  ;;  %p210_p7 = scmp.lt.s32.totalorder %s702_s16, 1  ;;  %v225_v8 = vshrl.u32 %v224_v7, 7  ;;  %v222_v11 = vld [vmem:[#allocation6] sm:$0xf] }
  0x68   : > { %v217_v6 = vpack.c.bf16 %v216_v5, %v216_v5  ;;  %269 = vmatpush1.bf16.msra.mxu0 %v529_v3  ;;  %310 = vmatpush1.bf16.msra.mxu1 %v530_v4 }
  0x69   : > { %s875_s16 = smov (!%p210_p7, %s702_s16), 1  ;;  %v226_v9 = vsub.s32 0, %v225_v8  ;;  %v234_v10 = vsub.s32 2, %v225_v8  ;;  %v230_v12 = vsub.s32 1, %v225_v8  ;;  %v238_v13 = vsub.s32 3, %v225_v8 }
  0x6a   : > { %s461_s17 = sshll.u32 %s875_s16, 5 }
  0x6b   : > { %457 = vmatmul.mubr.msk.bf16.vlgmr.msra.gmra.mrb[0].mxu0 %vm264_vm0, %v217_v6  ;;  %458 = vmatmul.mubr.msk.bf16.vlgmr.msra.gmra.mrb[0].mxu1 %vm264_vm0, %v217_v6  ;;  %v227_v14 = vrot.slane %v222_v11, %v226_v9  ;;  %v235_v15 = vrot.slane %v222_v11, %v234_v10  ;;  %v231_v16 = vrot.slane %v222_v11, %v230_v12  ;;  %s214_s8 = scalar_lea.vmem %s858_s3, %s461_s17 }
  0x6c   : > { %v239_v17 = vrot.slane %v222_v11, %v238_v13 }
 0x13e   : > { %v302_v18 = vpop.f32.mrb[0].mxu0  ;;  %v343_v19 = vpop.f32.mrb[0].mxu1 }
 0x13f   : > { %v303_v20 = vadd.f32 %v302_v18, %v227_v14  ;;  %v344_v21 = vadd.f32 %v343_v19, %v235_v15  ;;  %v304_v22 = vpop.f32.mrb[1].mxu0  ;;  %v345_v23 = vpop.f32.mrb[1].mxu1 }
 0x140   : > { %v305_v24 = vadd.f32 %v304_v22, %v231_v16  ;;  %v346_v25 = vadd.f32 %v345_v23, %v239_v17  ;;  %v306_v26 = vpop.f32.mrb[2].mxu0  ;;  %v347_v27 = vpop.f32.mrb[2].mxu1 }
 0x141   : > { %350 = vst [vmem:[%s214_s8] sm:$0xff] %v303_v20  ;;  %352 = vst [vmem:[%s214_s8 + $0x10] sm:$0xff] %v344_v21  ;;  %v307_v28 = vpop.f32.mrb[3].mxu0  ;;  %v348_v29 = vpop.f32.mrb[3].mxu1 }
 0x142   : > { %351 = vst [vmem:[%s214_s8 + $0x8] sm:$0xff] %v305_v24  ;;  %353 = vst [vmem:[%s214_s8 + $0x18] sm:$0xff] %v346_v25 }
 0x143 PF: > { %p14_p9 = scmp.ge.s32.totalorder %s776_s27, 4   ;;  %s870_s12 = smov %s647_s13 }
 0x144   : > { %s871_s13 = smov %s651_s14  ;;  %s872_s14 = smov %s787_s30 }
 0x145   : > { %s873_s15 = smov %s776_s27  ;;  %16 = sbr.rel (!%p14_p9) target bundleno = 4 (0x4), region = 80 }
 0x14c   :  { %375 = vsyncpa [#allocation3], 1 }
 0x14d   :  { %377 = vsyncpa [#allocation3 + $0x1], 1 }
 0x14e   :  { %378 = vsyncpa [#allocation5], 1 }

// kernel: encoder_forward.13
= control target key start
LH: loop header
LB: loop body
LE: loop exit
PB: predicated region body
PF: predicated region fallthrough
CT: control target
= control target key end

     0   :  { %v4097_v2 = vmov 0.0   ;;  %s4099_s16 = smov 0   ;;  %s5383_s0 = inlined_call_operand.vmem [shape: f32[8,2,1536], index: 0, kind: input, shape index: {}]   ;;  %s5384_s1 = inlined_call_operand.vmem [shape: bf16[512,1536], index: 1, kind: input, shape index: {}]   ;;  %s5385_s2 = inlined_call_operand.vmem [shape: f32[1,1536], index: 2, kind: input, shape index: {}]   ;;  %s5386_s3 = inlined_call_operand.vmem [shape: f32[8,2,512], index: 3, kind: output, shape index: {}]  }
   0x1   :  { %v4090_v0 = vld [vmem:[%s5385_s2] sm:$0xff]  ;;  %v4095_v1 = vld [vmem:[%s5385_s2 + $0x8] sm:$0xf] }
   0x2 LB: > { %v3464_v3 = vld [vmem:[%s5384_s1 + $0x4] ss:$48 sps:$4 sm:$0xff]   ;;  %v34_v4 = vlaneseq  ;;  %v3466_v5 = vld [vmem:[%s5384_s1 + $0xc] ss:$48 sps:$4 sm:$0xff]   ;;  %v4066_v6 = vmov 1983009808   ;;  %s4064_s16 = sphi %s4099_s16, %s21_s16   ;;  %v4060_v2 = vphi %v4097_v2, %v2999_v2  }
   0x3   : > { %v32_v7 = vunpack.c.l.s4 %v4066_v6  ;;  %2421 = vmatprep.subr.bf16.mxu0 %v3464_v3  ;;  %v3468_v8 = vld [vmem:[%s5384_s1] ss:$48 sps:$4 sm:$0xff]   ;;  %v3469_v9 = vld [vmem:[%s5384_s1 + $0x8] ss:$48 sps:$4 sm:$0xff]   ;;  %2503 = vmatprep.subr.bf16.mxu1 %v3466_v5  ;;  %v3470_v11 = vld [vmem:[%s5384_s1 + $0x64] ss:$48 sps:$4 sm:$0xff]  }
   0x4   : > { %v4119_v10 = vshrl.u32 %v34_v4, 7  ;;  %2422 = vmatpush1.bf16.msra.mxu0 %v3468_v8  ;;  %2504 = vmatpush1.bf16.msra.mxu1 %v3469_v9  ;;  %v3472_v13 = vld [vmem:[%s5384_s1 + $0x6c] ss:$48 sps:$4 sm:$0xff]   ;;  %v3474_v14 = vld [vmem:[%s5384_s1 + $0x60] ss:$48 sps:$4 sm:$0xff]   ;;  %v30_v9 = vcombine.high %v4060_v2, %v4060_v2  ;;  %s3409_s28 = smul.u32 24, %s4064_s16 }
   0x5   : > { %v33_v12 = vunpack.c.0.s8 %v32_v7  ;;  %2423 = vmatprep.subr.bf16.mxu0 %v3470_v11  ;;  %v3475_v15 = vld [vmem:[%s5384_s1 + $0x68] ss:$48 sps:$4 sm:$0xff]   ;;  %2505 = vmatprep.subr.bf16.mxu1 %v3472_v13  ;;  %v3476_v17 = vld [vmem:[%s5384_s1 + $0xc4] ss:$48 sps:$4 sm:$0xff]   ;;  %v3478_v18 = vld [vmem:[%s5384_s1 + $0xcc] ss:$48 sps:$4 sm:$0xff]  }
   0x6   : > { %v3480_v19 = vld [vmem:[%s5384_s1 + $0xc0] ss:$48 sps:$4 sm:$0xff]   ;;  %v3481_v20 = vld [vmem:[%s5384_s1 + $0xc8] ss:$48 sps:$4 sm:$0xff]   ;;  %v3482_v22 = vld [vmem:[%s5384_s1 + $0x124] ss:$48 sps:$4 sm:$0xff]   ;;  %s5351_s4 = scalar_lea.vmem %s5383_s0, %s3409_s28 }
   0x7   : > { %v4134_v16 = vsub.s32 %v33_v12, %v4119_v10  ;;  %v3484_v23 = vld [vmem:[%s5384_s1 + $0x12c] ss:$48 sps:$4 sm:$0xff]   ;;  %v3486_v25 = vld [vmem:[%s5384_s1 + $0x120] ss:$48 sps:$4 sm:$0xff]   ;;  %v3487_v27 = vld [vmem:[%s5384_s1 + $0x128] ss:$48 sps:$4 sm:$0xff]  }
   0x8   : > { %2424 = vmatpush1.bf16.msra.mxu0 %v3474_v14  ;;  %2506 = vmatpush1.bf16.msra.mxu1 %v3475_v15  ;;  %v3488_v28 = vld [vmem:[%s5384_s1 + $0x184] ss:$48 sps:$4 sm:$0xff]   ;;  %v3490_v29 = vld [vmem:[%s5384_s1 + $0x18c] ss:$48 sps:$4 sm:$0xff]   ;;  %v3492_v30 = vld [vmem:[%s5384_s1 + $0x180] ss:$48 sps:$4 sm:$0xff]  }
   0x9   : > { %v4150_v21 = vrot.slane %v4060_v2, %v4134_v16  ;;  %2425 = vmatprep.subr.bf16.mxu0 %v3476_v17  ;;  %2507 = vmatprep.subr.bf16.mxu1 %v3478_v18  ;;  %v3493_v31 = vld [vmem:[%s5384_s1 + $0x188] ss:$48 sps:$4 sm:$0xff]   ;;  %v3494_v32 = vld [vmem:[%s5384_s1 + $0x1e4] ss:$48 sps:$4 sm:$0xff]   ;;  %v3496_v33 = vld [vmem:[%s5384_s1 + $0x1ec] ss:$48 sps:$4 sm:$0xff]   ;;  %v4311_v15 = vrot.slane %v30_v9, %v4134_v16 }
   0xa   : > { %v3498_v34 = vld [vmem:[%s5384_s1 + $0x1e0] ss:$48 sps:$4 sm:$0xff]   ;;  %v3499_v35 = vld [vmem:[%s5384_s1 + $0x1e8] ss:$48 sps:$4 sm:$0xff]   ;;  %v3500_v36 = vld [vmem:[%s5384_s1 + $0x244] ss:$48 sps:$4 sm:$0xff]  }
   0xb   : > { %v45_v24 = vcombine.high %v4150_v21, %v4150_v21  ;;  %v3502_v37 = vld [vmem:[%s5384_s1 + $0x24c] ss:$48 sps:$4 sm:$0xff]   ;;  %v3504_v38 = vld [vmem:[%s5384_s1 + $0x240] ss:$48 sps:$4 sm:$0xff]   ;;  %v3505_v39 = vld [vmem:[%s5384_s1 + $0x248] ss:$48 sps:$4 sm:$0xff]  }
   0xc   : > { %2426 = vmatpush1.bf16.msra.mxu0 %v3480_v19  ;;  %2508 = vmatpush1.bf16.msra.mxu1 %v3481_v20  ;;  %v3506_v40 = vld [vmem:[%s5384_s1 + $0x2a4] ss:$48 sps:$4 sm:$0xff]   ;;  %v3508_v41 = vld [vmem:[%s5384_s1 + $0x2ac] ss:$48 sps:$4 sm:$0xff]   ;;  %v3510_v42 = vld [vmem:[%s5384_s1 + $0x2a0] ss:$48 sps:$4 sm:$0xff]  }
   0xd   : > { %v4163_v26 = vpack.c.bf16 %v45_v24, %v45_v24  ;;  %2427 = vmatprep.subr.bf16.mxu0 %v3482_v22  ;;  %2509 = vmatprep.subr.bf16.mxu1 %v3484_v23  ;;  %v3511_v43 = vld [vmem:[%s5384_s1 + $0x2a8] ss:$48 sps:$4 sm:$0xff]   ;;  %v3512_v44 = vld [vmem:[%s5384_s1 + $0x304] ss:$48 sps:$4 sm:$0xff]   ;;  %v3514_v45 = vld [vmem:[%s5384_s1 + $0x30c] ss:$48 sps:$4 sm:$0xff]   ;;  %v46_v22 = vcombine.high %v4311_v15, %v4311_v15 }
   0xe   : > { %v3516_v46 = vld [vmem:[%s5384_s1 + $0x300] ss:$48 sps:$4 sm:$0xff]   ;;  %v3517_v47 = vld [vmem:[%s5384_s1 + $0x308] ss:$48 sps:$4 sm:$0xff]   ;;  %v3518_v48 = vld [vmem:[%s5384_s1 + $0x364] ss:$48 sps:$4 sm:$0xff]  }
   0xf   : > { %2453 = vmatprep.mubr.bf16.mxu0 %v4163_v26  ;;  %2535 = vmatprep.mubr.bf16.mxu1 %v4163_v26  ;;  %v3520_v49 = vld [vmem:[%s5384_s1 + $0x36c] ss:$48 sps:$4 sm:$0xff]   ;;  %v3522_v50 = vld [vmem:[%s5384_s1 + $0x360] ss:$48 sps:$4 sm:$0xff]   ;;  %v3523_v51 = vld [vmem:[%s5384_s1 + $0x368] ss:$48 sps:$4 sm:$0xff]  }
  0x10   : > { %2428 = vmatpush1.bf16.msra.mxu0 %v3486_v25  ;;  %2510 = vmatpush1.bf16.msra.mxu1 %v3487_v27  ;;  %v3524_v52 = vld [vmem:[%s5384_s1 + $0x3c4] ss:$48 sps:$4 sm:$0xff]   ;;  %v3526_v53 = vld [vmem:[%s5384_s1 + $0x3cc] ss:$48 sps:$4 sm:$0xff]   ;;  %v3528_v54 = vld [vmem:[%s5384_s1 + $0x3c0] ss:$48 sps:$4 sm:$0xff]   ;;  %v4335_v25 = vpack.c.bf16 %v4150_v21, %v4150_v21 }
  0x11   : > { %2429 = vmatprep.subr.bf16.mxu0 %v3488_v28  ;;  %2511 = vmatprep.subr.bf16.mxu1 %v3490_v29  ;;  %v3529_v55 = vld [vmem:[%s5384_s1 + $0x3c8] ss:$48 sps:$4 sm:$0xff]   ;;  %v3530_v56 = vld [vmem:[%s5384_s1 + $0x424] ss:$48 sps:$4 sm:$0xff]   ;;  %v3532_v57 = vld [vmem:[%s5384_s1 + $0x42c] ss:$48 sps:$4 sm:$0xff]   ;;  %v4343_v29 = vpack.c.bf16 %v46_v22, %v46_v22 }
  0x12   : > { %v3534_v58 = vld [vmem:[%s5384_s1 + $0x420] ss:$48 sps:$4 sm:$0xff]   ;;  %v3535_v59 = vld [vmem:[%s5384_s1 + $0x428] ss:$48 sps:$4 sm:$0xff]   ;;  %v3536_v60 = vld [vmem:[%s5384_s1 + $0x484] ss:$48 sps:$4 sm:$0xff]  }
  0x13   : > { %v3538_v61 = vld [vmem:[%s5384_s1 + $0x48c] ss:$48 sps:$4 sm:$0xff]   ;;  %v3540_v62 = vld [vmem:[%s5384_s1 + $0x480] ss:$48 sps:$4 sm:$0xff]   ;;  %v3541_v63 = vld [vmem:[%s5384_s1 + $0x488] ss:$48 sps:$4 sm:$0xff]  }
  0x14   : > { %2430 = vmatpush1.bf16.msra.mxu0 %v3492_v30  ;;  %2512 = vmatpush1.bf16.msra.mxu1 %v3493_v31  ;;  %v3542_v3 = vld [vmem:[%s5384_s1 + $0x4e4] ss:$48 sps:$4 sm:$0xff]   ;;  %v3544_v4 = vld [vmem:[%s5384_s1 + $0x4ec] ss:$48 sps:$4 sm:$0xff]   ;;  %v3546_v5 = vld [vmem:[%s5384_s1 + $0x4e0] ss:$48 sps:$4 sm:$0xff]  }
  0x15   : > { %2431 = vmatprep.subr.bf16.mxu0 %v3494_v32  ;;  %2513 = vmatprep.subr.bf16.mxu1 %v3496_v33  ;;  %v3547_v6 = vld [vmem:[%s5384_s1 + $0x4e8] ss:$48 sps:$4 sm:$0xff]   ;;  %v3548_v7 = vld [vmem:[%s5384_s1 + $0x544] ss:$48 sps:$4 sm:$0xff]   ;;  %v3550_v8 = vld [vmem:[%s5384_s1 + $0x54c] ss:$48 sps:$4 sm:$0xff]  }
  0x16   : > { %v3552_v11 = vld [vmem:[%s5384_s1 + $0x540] ss:$48 sps:$4 sm:$0xff]   ;;  %v3553_v12 = vld [vmem:[%s5384_s1 + $0x548] ss:$48 sps:$4 sm:$0xff]   ;;  %v3554_v13 = vld [vmem:[%s5384_s1 + $0x5a4] ss:$48 sps:$4 sm:$0xff]  }
  0x17   : > { %v3556_v14 = vld [vmem:[%s5384_s1 + $0x5ac] ss:$48 sps:$4 sm:$0xff]   ;;  %v3558_v17 = vld [vmem:[%s5384_s1 + $0x5a0] ss:$48 sps:$4 sm:$0xff]   ;;  %v3559_v18 = vld [vmem:[%s5384_s1 + $0x5a8] ss:$48 sps:$4 sm:$0xff]  }
  0x18   : > { %2432 = vmatpush1.bf16.msra.mxu0 %v3498_v34  ;;  %2514 = vmatpush1.bf16.msra.mxu1 %v3499_v35  ;;  %v3562_v19 = vld [vmem:[%s5384_s1 + $0x604] ss:$48 sps:$4 sm:$0xff]   ;;  %v3565_v20 = vld [vmem:[%s5384_s1 + $0x60c] ss:$48 sps:$4 sm:$0xff]   ;;  %v3560_v23 = vld [vmem:[%s5384_s1 + $0x600] ss:$48 sps:$4 sm:$0xff]  }
  0x19   : > { %2433 = vmatprep.subr.bf16.mxu0 %v3500_v36  ;;  %2515 = vmatprep.subr.bf16.mxu1 %v3502_v37  ;;  %v3563_v24 = vld [vmem:[%s5384_s1 + $0x608] ss:$48 sps:$4 sm:$0xff]   ;;  %v3568_v27 = vld [vmem:[%s5384_s1 + $0x664] ss:$48 sps:$4 sm:$0xff]   ;;  %v3571_v28 = vld [vmem:[%s5384_s1 + $0x66c] ss:$48 sps:$4 sm:$0xff]  }
  0x1a   : > { %v3566_v21 = vld [vmem:[%s5384_s1 + $0x660] ss:$48 sps:$4 sm:$0xff]   ;;  %v3569_v30 = vld [vmem:[%s5384_s1 + $0x668] ss:$48 sps:$4 sm:$0xff]   ;;  %v3574_v31 = vld [vmem:[%s5384_s1 + $0x6c4] ss:$48 sps:$4 sm:$0xff]  }
  0x1b   : > { %v3577_v32 = vld [vmem:[%s5384_s1 + $0x6cc] ss:$48 sps:$4 sm:$0xff]   ;;  %v3572_v33 = vld [vmem:[%s5384_s1 + $0x6c0] ss:$48 sps:$4 sm:$0xff]   ;;  %v3575_v34 = vld [vmem:[%s5384_s1 + $0x6c8] ss:$48 sps:$4 sm:$0xff]  }
  0x1c   : > { %2434 = vmatpush1.bf16.msra.mxu0 %v3504_v38  ;;  %2516 = vmatpush1.bf16.msra.mxu1 %v3505_v39  ;;  %v3580_v35 = vld [vmem:[%s5384_s1 + $0x724] ss:$48 sps:$4 sm:$0xff]   ;;  %v3583_v36 = vld [vmem:[%s5384_s1 + $0x72c] ss:$48 sps:$4 sm:$0xff]   ;;  %v3578_v37 = vld [vmem:[%s5384_s1 + $0x720] ss:$48 sps:$4 sm:$0xff]  }
  0x1d   : > { %2435 = vmatprep.subr.bf16.mxu0 %v3506_v40  ;;  %2517 = vmatprep.subr.bf16.mxu1 %v3508_v41  ;;  %v3581_v38 = vld [vmem:[%s5384_s1 + $0x728] ss:$48 sps:$4 sm:$0xff]   ;;  %v3586_v39 = vld [vmem:[%s5384_s1 + $0x784] ss:$48 sps:$4 sm:$0xff]   ;;  %v3589_v40 = vld [vmem:[%s5384_s1 + $0x78c] ss:$48 sps:$4 sm:$0xff]  }
  0x1e   : > { %v3584_v41 = vld [vmem:[%s5384_s1 + $0x780] ss:$48 sps:$4 sm:$0xff]   ;;  %v3629_v9 = vld [vmem:[%s5384_s1 + $0xa28] ss:$48 sps:$4 sm:$0xff]   ;;  %v3646_v22 = vld [vmem:[%s5384_s1 + $0xb44] ss:$48 sps:$4 sm:$0xff]  }
  0x1f   : > { %s3410_s5 = sshll.u32 %s4064_s16, 3  ;;  %s21_s16 = sadd.s32 1, %s4064_s16  }
  0x20   : > { %2436 = vmatpush1.bf16.msra.mxu0 %v3510_v42  ;;  %2518 = vmatpush1.bf16.msra.mxu1 %v3511_v43  ;;  %v3587_v42 = vld [vmem:[%s5384_s1 + $0x788] ss:$48 sps:$4 sm:$0xff]   ;;  %v3592_v43 = vld [vmem:[%s5384_s1 + $0x7e4] ss:$48 sps:$4 sm:$0xff]   ;;  %s3002_s8 = scalar_lea.vmem %s5386_s3, %s3410_s5  ;;  %p18_p0 = scmp.ge.s32.totalorder %s21_s16, 8  }
  0x21   : > { %2437 = vmatprep.subr.bf16.mxu0 %v3512_v44  ;;  %2519 = vmatprep.subr.bf16.mxu1 %v3514_v45  ;;  %v3595_v44 = vld [vmem:[%s5384_s1 + $0x7ec] ss:$48 sps:$4 sm:$0xff]   ;;  %v3590_v45 = vld [vmem:[%s5384_s1 + $0x7e0] ss:$48 sps:$4 sm:$0xff]  }
  0x24   : > { %2438 = vmatpush1.bf16.msra.mxu0 %v3516_v46  ;;  %2520 = vmatpush1.bf16.msra.mxu1 %v3517_v47  ;;  %v3593_v46 = vld [vmem:[%s5384_s1 + $0x7e8] ss:$48 sps:$4 sm:$0xff]   ;;  %v3598_v47 = vld [vmem:[%s5384_s1 + $0x844] ss:$48 sps:$4 sm:$0xff]  }
  0x25   : > { %2439 = vmatprep.subr.bf16.mxu0 %v3518_v48  ;;  %2521 = vmatprep.subr.bf16.mxu1 %v3520_v49  ;;  %v3601_v48 = vld [vmem:[%s5384_s1 + $0x84c] ss:$48 sps:$4 sm:$0xff]   ;;  %v3596_v49 = vld [vmem:[%s5384_s1 + $0x840] ss:$48 sps:$4 sm:$0xff]  }
  0x28   : > { %2440 = vmatpush1.bf16.msra.mxu0 %v3522_v50  ;;  %2522 = vmatpush1.bf16.msra.mxu1 %v3523_v51  ;;  %v3599_v50 = vld [vmem:[%s5384_s1 + $0x848] ss:$48 sps:$4 sm:$0xff]   ;;  %v3604_v51 = vld [vmem:[%s5384_s1 + $0x8a4] ss:$48 sps:$4 sm:$0xff]  }
  0x29   : > { %2441 = vmatprep.subr.bf16.mxu0 %v3524_v52  ;;  %2523 = vmatprep.subr.bf16.mxu1 %v3526_v53  ;;  %v3607_v52 = vld [vmem:[%s5384_s1 + $0x8ac] ss:$48 sps:$4 sm:$0xff]   ;;  %v3602_v53 = vld [vmem:[%s5384_s1 + $0x8a0] ss:$48 sps:$4 sm:$0xff]  }
  0x2c   : > { %2442 = vmatpush1.bf16.msra.mxu0 %v3528_v54  ;;  %2524 = vmatpush1.bf16.msra.mxu1 %v3529_v55  ;;  %v3605_v54 = vld [vmem:[%s5384_s1 + $0x8a8] ss:$48 sps:$4 sm:$0xff]   ;;  %v3610_v55 = vld [vmem:[%s5384_s1 + $0x904] ss:$48 sps:$4 sm:$0xff]  }
  0x2d   : > { %2443 = vmatprep.subr.bf16.mxu0 %v3530_v56  ;;  %2525 = vmatprep.subr.bf16.mxu1 %v3532_v57  ;;  %v3613_v56 = vld [vmem:[%s5384_s1 + $0x90c] ss:$48 sps:$4 sm:$0xff]   ;;  %v3608_v57 = vld [vmem:[%s5384_s1 + $0x900] ss:$48 sps:$4 sm:$0xff]  }
  0x30   : > { %2444 = vmatpush1.bf16.msra.mxu0 %v3534_v58  ;;  %2526 = vmatpush1.bf16.msra.mxu1 %v3535_v59  ;;  %v3611_v58 = vld [vmem:[%s5384_s1 + $0x908] ss:$48 sps:$4 sm:$0xff]   ;;  %v3616_v59 = vld [vmem:[%s5384_s1 + $0x964] ss:$48 sps:$4 sm:$0xff]  }
  0x31   : > { %2445 = vmatprep.subr.bf16.mxu0 %v3536_v60  ;;  %2527 = vmatprep.subr.bf16.mxu1 %v3538_v61  ;;  %v3619_v60 = vld [vmem:[%s5384_s1 + $0x96c] ss:$48 sps:$4 sm:$0xff]   ;;  %v3614_v61 = vld [vmem:[%s5384_s1 + $0x960] ss:$48 sps:$4 sm:$0xff]  }
  0x34   : > { %2446 = vmatpush1.bf16.msra.mxu0 %v3540_v62  ;;  %2528 = vmatpush1.bf16.msra.mxu1 %v3541_v63  ;;  %v3617_v62 = vld [vmem:[%s5384_s1 + $0x968] ss:$48 sps:$4 sm:$0xff]   ;;  %v3622_v63 = vld [vmem:[%s5384_s1 + $0x9c4] ss:$48 sps:$4 sm:$0xff]  }
  0x35   : > { %2447 = vmatprep.subr.bf16.mxu0 %v3542_v3  ;;  %2529 = vmatprep.subr.bf16.mxu1 %v3544_v4  ;;  %v3625_v3 = vld [vmem:[%s5384_s1 + $0x9cc] ss:$48 sps:$4 sm:$0xff]   ;;  %v3620_v4 = vld [vmem:[%s5384_s1 + $0x9c0] ss:$48 sps:$4 sm:$0xff]  }
  0x38   : > { %2448 = vmatpush1.bf16.msra.mxu0 %v3546_v5  ;;  %2530 = vmatpush1.bf16.msra.mxu1 %v3547_v6  ;;  %v3623_v5 = vld [vmem:[%s5384_s1 + $0x9c8] ss:$48 sps:$4 sm:$0xff]   ;;  %v3628_v6 = vld [vmem:[%s5384_s1 + $0xa24] ss:$48 sps:$4 sm:$0xff]  }
  0x39   : > { %2449 = vmatprep.subr.bf16.mxu0 %v3548_v7  ;;  %2531 = vmatprep.subr.bf16.mxu1 %v3550_v8  ;;  %v3631_v7 = vld [vmem:[%s5384_s1 + $0xa2c] ss:$48 sps:$4 sm:$0xff]   ;;  %v3626_v8 = vld [vmem:[%s5384_s1 + $0xa20] ss:$48 sps:$4 sm:$0xff]  }
  0x3c   : > { %2450 = vmatpush1.bf16.msra.mxu0 %v3552_v11  ;;  %2532 = vmatpush1.bf16.msra.mxu1 %v3553_v12  ;;  %v3634_v11 = vld [vmem:[%s5384_s1 + $0xa84] ss:$48 sps:$4 sm:$0xff]   ;;  %v3637_v12 = vld [vmem:[%s5384_s1 + $0xa8c] ss:$48 sps:$4 sm:$0xff]  }
  0x3d   : > { %2451 = vmatprep.subr.bf16.mxu0 %v3554_v13  ;;  %2533 = vmatprep.subr.bf16.mxu1 %v3556_v14  ;;  %v3632_v13 = vld [vmem:[%s5384_s1 + $0xa80] ss:$48 sps:$4 sm:$0xff]   ;;  %v3635_v14 = vld [vmem:[%s5384_s1 + $0xa88] ss:$48 sps:$4 sm:$0xff]  }
  0x40   : > { %2452 = vmatpush1.bf16.msra.mxu0 %v3558_v17  ;;  %2534 = vmatpush1.bf16.msra.mxu1 %v3559_v18  ;;  %v3640_v17 = vld [vmem:[%s5384_s1 + $0xae4] ss:$48 sps:$4 sm:$0xff]   ;;  %v3643_v18 = vld [vmem:[%s5384_s1 + $0xaec] ss:$48 sps:$4 sm:$0xff]  }
  0x41   : > { %2462 = vmatprep.subr.bf16.mxu0 %v3562_v19  ;;  %2544 = vmatprep.subr.bf16.mxu1 %v3565_v20  ;;  %v3638_v19 = vld [vmem:[%s5384_s1 + $0xae0] ss:$48 sps:$4 sm:$0xff]   ;;  %v3641_v20 = vld [vmem:[%s5384_s1 + $0xae8] ss:$48 sps:$4 sm:$0xff]  }
  0x43   : > { %2454 = vmatmul.mubr.bf16.vlgmr.msra.gmra.mrb[0].mxu0 %v4335_v25  ;;  %2536 = vmatmul.mubr.bf16.vlgmr.msra.gmra.mrb[0].mxu1 %v4335_v25 }
  0x44   : > { %2463 = vmatpush1.bf16.msra.mxu0 %v3560_v23  ;;  %2545 = vmatpush1.bf16.msra.mxu1 %v3563_v24  ;;  %v3649_v23 = vld [vmem:[%s5384_s1 + $0xb4c] ss:$48 sps:$4 sm:$0xff]   ;;  %v3644_v24 = vld [vmem:[%s5384_s1 + $0xb40] ss:$48 sps:$4 sm:$0xff]  }
  0x45   : > { %2464 = vmatprep.subr.bf16.mxu0 %v3568_v27  ;;  %2546 = vmatprep.subr.bf16.mxu1 %v3571_v28  ;;  %v3647_v27 = vld [vmem:[%s5384_s1 + $0xb48] ss:$48 sps:$4 sm:$0xff]   ;;  %v3652_v28 = vld [vmem:[%s5384_s1 + $0xba4] ss:$48 sps:$4 sm:$0xff]  }
  0x46   : > { %2494 = vmatprep.mubr.bf16.mxu0 %v4343_v29  ;;  %2576 = vmatprep.mubr.bf16.mxu1 %v4343_v29 }
  0x48   : > { %2465 = vmatpush1.bf16.msra.mxu0 %v3566_v21  ;;  %2547 = vmatpush1.bf16.msra.mxu1 %v3569_v30  ;;  %v3655_v21 = vld [vmem:[%s5384_s1 + $0xbac] ss:$48 sps:$4 sm:$0xff]   ;;  %v3650_v30 = vld [vmem:[%s5384_s1 + $0xba0] ss:$48 sps:$4 sm:$0xff]  }
  0x49   : > { %2466 = vmatprep.subr.bf16.mxu0 %v3574_v31  ;;  %2548 = vmatprep.subr.bf16.mxu1 %v3577_v32  ;;  %v3653_v31 = vld [vmem:[%s5384_s1 + $0xba8] ss:$48 sps:$4 sm:$0xff]   ;;  %v3658_v32 = vld [vmem:[%s5384_s1 + $0x14] ss:$48 sps:$4 sm:$0xff]  }
  0x4c   : > { %2467 = vmatpush1.bf16.msra.mxu0 %v3572_v33  ;;  %2549 = vmatpush1.bf16.msra.mxu1 %v3575_v34  ;;  %v3661_v33 = vld [vmem:[%s5384_s1 + $0x1c] ss:$48 sps:$4 sm:$0xff]   ;;  %v4531_v34 = vpack.c.bf16 %v4311_v15, %v4311_v15 }
  0x4d   : > { %2468 = vmatprep.subr.bf16.mxu0 %v3580_v35  ;;  %2550 = vmatprep.subr.bf16.mxu1 %v3583_v36  ;;  %v3656_v35 = vld [vmem:[%s5384_s1 + $0x10] ss:$48 sps:$4 sm:$0xff]   ;;  %v3659_v36 = vld [vmem:[%s5384_s1 + $0x18] ss:$48 sps:$4 sm:$0xff]   ;;  %v3667_v15 = vld [vmem:[%s5384_s1 + $0x7c] ss:$48 sps:$4 sm:$0xff]  }
  0x50   : > { %2469 = vmatpush1.bf16.msra.mxu0 %v3578_v37  ;;  %2551 = vmatpush1.bf16.msra.mxu1 %v3581_v38  ;;  %v3664_v37 = vld [vmem:[%s5384_s1 + $0x74] ss:$48 sps:$4 sm:$0xff]   ;;  %v3662_v38 = vld [vmem:[%s5384_s1 + $0x70] ss:$48 sps:$4 sm:$0xff]  }
  0x51   : > { %2470 = vmatprep.subr.bf16.mxu0 %v3586_v39  ;;  %2552 = vmatprep.subr.bf16.mxu1 %v3589_v40  ;;  %v3665_v39 = vld [vmem:[%s5384_s1 + $0x78] ss:$48 sps:$4 sm:$0xff]   ;;  %v3670_v40 = vld [vmem:[%s5384_s1 + $0xd4] ss:$48 sps:$4 sm:$0xff]  }
  0x54   : > { %2471 = vmatpush1.bf16.msra.mxu0 %v3584_v41  ;;  %2553 = vmatpush1.bf16.msra.mxu1 %v3587_v42  ;;  %v3673_v41 = vld [vmem:[%s5384_s1 + $0xdc] ss:$48 sps:$4 sm:$0xff]   ;;  %v3668_v42 = vld [vmem:[%s5384_s1 + $0xd0] ss:$48 sps:$4 sm:$0xff]  }
  0x55   : > { %2472 = vmatprep.subr.bf16.mxu0 %v3592_v43  ;;  %2554 = vmatprep.subr.bf16.mxu1 %v3595_v44  ;;  %v3671_v43 = vld [vmem:[%s5384_s1 + $0xd8] ss:$48 sps:$4 sm:$0xff]   ;;  %v3676_v44 = vld [vmem:[%s5384_s1 + $0x134] ss:$48 sps:$4 sm:$0xff]  }
  0x58   : > { %2473 = vmatpush1.bf16.msra.mxu0 %v3590_v45  ;;  %2555 = vmatpush1.bf16.msra.mxu1 %v3593_v46  ;;  %v3679_v45 = vld [vmem:[%s5384_s1 + $0x13c] ss:$48 sps:$4 sm:$0xff]   ;;  %v3674_v46 = vld [vmem:[%s5384_s1 + $0x130] ss:$48 sps:$4 sm:$0xff]  }
  0x59   : > { %2474 = vmatprep.subr.bf16.mxu0 %v3598_v47  ;;  %2556 = vmatprep.subr.bf16.mxu1 %v3601_v48  ;;  %v3677_v47 = vld [vmem:[%s5384_s1 + $0x138] ss:$48 sps:$4 sm:$0xff]   ;;  %v3682_v48 = vld [vmem:[%s5384_s1 + $0x194] ss:$48 sps:$4 sm:$0xff]  }
  0x5c   : > { %2475 = vmatpush1.bf16.msra.mxu0 %v3596_v49  ;;  %2557 = vmatpush1.bf16.msra.mxu1 %v3599_v50  ;;  %v3685_v49 = vld [vmem:[%s5384_s1 + $0x19c] ss:$48 sps:$4 sm:$0xff]   ;;  %v3680_v50 = vld [vmem:[%s5384_s1 + $0x190] ss:$48 sps:$4 sm:$0xff]  }
  0x5d   : > { %2476 = vmatprep.subr.bf16.mxu0 %v3604_v51  ;;  %2558 = vmatprep.subr.bf16.mxu1 %v3607_v52  ;;  %v3683_v51 = vld [vmem:[%s5384_s1 + $0x198] ss:$48 sps:$4 sm:$0xff]   ;;  %v3688_v52 = vld [vmem:[%s5384_s1 + $0x1f4] ss:$48 sps:$4 sm:$0xff]  }
  0x60   : > { %2477 = vmatpush1.bf16.msra.mxu0 %v3602_v53  ;;  %2559 = vmatpush1.bf16.msra.mxu1 %v3605_v54  ;;  %v3691_v53 = vld [vmem:[%s5384_s1 + $0x1fc] ss:$48 sps:$4 sm:$0xff]   ;;  %v3686_v54 = vld [vmem:[%s5384_s1 + $0x1f0] ss:$48 sps:$4 sm:$0xff]  }
  0x61   : > { %2478 = vmatprep.subr.bf16.mxu0 %v3610_v55  ;;  %2560 = vmatprep.subr.bf16.mxu1 %v3613_v56  ;;  %v3689_v55 = vld [vmem:[%s5384_s1 + $0x1f8] ss:$48 sps:$4 sm:$0xff]   ;;  %v3694_v56 = vld [vmem:[%s5384_s1 + $0x254] ss:$48 sps:$4 sm:$0xff]  }
  0x64   : > { %2479 = vmatpush1.bf16.msra.mxu0 %v3608_v57  ;;  %2561 = vmatpush1.bf16.msra.mxu1 %v3611_v58  ;;  %v3697_v57 = vld [vmem:[%s5384_s1 + $0x25c] ss:$48 sps:$4 sm:$0xff]   ;;  %v3692_v58 = vld [vmem:[%s5384_s1 + $0x250] ss:$48 sps:$4 sm:$0xff]  }
  0x65   : > { %2480 = vmatprep.subr.bf16.mxu0 %v3616_v59  ;;  %2562 = vmatprep.subr.bf16.mxu1 %v3619_v60  ;;  %v3695_v59 = vld [vmem:[%s5384_s1 + $0x258] ss:$48 sps:$4 sm:$0xff]   ;;  %v3700_v60 = vld [vmem:[%s5384_s1 + $0x2b4] ss:$48 sps:$4 sm:$0xff]  }
  0x68   : > { %2481 = vmatpush1.bf16.msra.mxu0 %v3614_v61  ;;  %2563 = vmatpush1.bf16.msra.mxu1 %v3617_v62  ;;  %v3703_v61 = vld [vmem:[%s5384_s1 + $0x2bc] ss:$48 sps:$4 sm:$0xff]   ;;  %v3698_v62 = vld [vmem:[%s5384_s1 + $0x2b0] ss:$48 sps:$4 sm:$0xff]  }
  0x69   : > { %2482 = vmatprep.subr.bf16.mxu0 %v3622_v63  ;;  %2564 = vmatprep.subr.bf16.mxu1 %v3625_v3  ;;  %v3701_v63 = vld [vmem:[%s5384_s1 + $0x2b8] ss:$48 sps:$4 sm:$0xff]   ;;  %v3706_v3 = vld [vmem:[%s5384_s1 + $0x314] ss:$48 sps:$4 sm:$0xff]  }
  0x6c   : > { %2483 = vmatpush1.bf16.msra.mxu0 %v3620_v4  ;;  %2565 = vmatpush1.bf16.msra.mxu1 %v3623_v5  ;;  %v3709_v4 = vld [vmem:[%s5384_s1 + $0x31c] ss:$48 sps:$4 sm:$0xff]   ;;  %v3704_v5 = vld [vmem:[%s5384_s1 + $0x310] ss:$48 sps:$4 sm:$0xff]  }
  0x6d   : > { %2484 = vmatprep.subr.bf16.mxu0 %v3628_v6  ;;  %2566 = vmatprep.subr.bf16.mxu1 %v3631_v7  ;;  %v3707_v6 = vld [vmem:[%s5384_s1 + $0x318] ss:$48 sps:$4 sm:$0xff]   ;;  %v3712_v7 = vld [vmem:[%s5384_s1 + $0x374] ss:$48 sps:$4 sm:$0xff]  }
  0x70   : > { %2485 = vmatpush1.bf16.msra.mxu0 %v3626_v8  ;;  %2567 = vmatpush1.bf16.msra.mxu1 %v3629_v9  ;;  %v3715_v8 = vld [vmem:[%s5384_s1 + $0x37c] ss:$48 sps:$4 sm:$0xff]   ;;  %v3710_v9 = vld [vmem:[%s5384_s1 + $0x370] ss:$48 sps:$4 sm:$0xff]  }
  0x71   : > { %2486 = vmatprep.subr.bf16.mxu0 %v3634_v11  ;;  %2568 = vmatprep.subr.bf16.mxu1 %v3637_v12  ;;  %v3713_v11 = vld [vmem:[%s5384_s1 + $0x378] ss:$48 sps:$4 sm:$0xff]   ;;  %v3718_v12 = vld [vmem:[%s5384_s1 + $0x3d4] ss:$48 sps:$4 sm:$0xff]  }
  0x74   : > { %2487 = vmatpush1.bf16.msra.mxu0 %v3632_v13  ;;  %2569 = vmatpush1.bf16.msra.mxu1 %v3635_v14  ;;  %v3721_v13 = vld [vmem:[%s5384_s1 + $0x3dc] ss:$48 sps:$4 sm:$0xff]   ;;  %v3716_v14 = vld [vmem:[%s5384_s1 + $0x3d0] ss:$48 sps:$4 sm:$0xff]  }
  0x75   : > { %2488 = vmatprep.subr.bf16.mxu0 %v3640_v17  ;;  %2570 = vmatprep.subr.bf16.mxu1 %v3643_v18  ;;  %v3719_v17 = vld [vmem:[%s5384_s1 + $0x3d8] ss:$48 sps:$4 sm:$0xff]   ;;  %v3724_v18 = vld [vmem:[%s5384_s1 + $0x434] ss:$48 sps:$4 sm:$0xff]  }
  0x78   : > { %2489 = vmatpush1.bf16.msra.mxu0 %v3638_v19  ;;  %2571 = vmatpush1.bf16.msra.mxu1 %v3641_v20  ;;  %v3727_v19 = vld [vmem:[%s5384_s1 + $0x43c] ss:$48 sps:$4 sm:$0xff]   ;;  %v3722_v20 = vld [vmem:[%s5384_s1 + $0x430] ss:$48 sps:$4 sm:$0xff]  }
  0x79   : > { %2490 = vmatprep.subr.bf16.mxu0 %v3646_v22  ;;  %2572 = vmatprep.subr.bf16.mxu1 %v3649_v23  ;;  %v3725_v22 = vld [vmem:[%s5384_s1 + $0x438] ss:$48 sps:$4 sm:$0xff]   ;;  %v3730_v23 = vld [vmem:[%s5384_s1 + $0x494] ss:$48 sps:$4 sm:$0xff]  }
  0x7c   : > { %2491 = vmatpush1.bf16.msra.mxu0 %v3644_v24  ;;  %2573 = vmatpush1.bf16.msra.mxu1 %v3647_v27  ;;  %v3733_v24 = vld [vmem:[%s5384_s1 + $0x49c] ss:$48 sps:$4 sm:$0xff]   ;;  %v3728_v27 = vld [vmem:[%s5384_s1 + $0x490] ss:$48 sps:$4 sm:$0xff]  }
  0x7d   : > { %2492 = vmatprep.subr.bf16.mxu0 %v3652_v28  ;;  %2574 = vmatprep.subr.bf16.mxu1 %v3655_v21  ;;  %v3731_v28 = vld [vmem:[%s5384_s1 + $0x498] ss:$48 sps:$4 sm:$0xff]   ;;  %v3736_v21 = vld [vmem:[%s5384_s1 + $0x4f4] ss:$48 sps:$4 sm:$0xff]  }
  0x80   : > { %2493 = vmatpush1.bf16.msra.mxu0 %v3650_v30  ;;  %2575 = vmatpush1.bf16.msra.mxu1 %v3653_v31  ;;  %v3739_v30 = vld [vmem:[%s5384_s1 + $0x4fc] ss:$48 sps:$4 sm:$0xff]   ;;  %v3734_v31 = vld [vmem:[%s5384_s1 + $0x4f0] ss:$48 sps:$4 sm:$0xff]  }
  0x81   : > { %2585 = vmatprep.subr.bf16.mxu0 %v3658_v32  ;;  %2667 = vmatprep.subr.bf16.mxu1 %v3661_v33  ;;  %v3737_v32 = vld [vmem:[%s5384_s1 + $0x4f8] ss:$48 sps:$4 sm:$0xff]   ;;  %v3742_v33 = vld [vmem:[%s5384_s1 + $0x554] ss:$48 sps:$4 sm:$0xff]  }
  0x83   : > { %2495 = vmatmul.mubr.bf16.vlgmr.msra.gmra.mrb[0].mxu0 %v4531_v34  ;;  %2577 = vmatmul.mubr.bf16.vlgmr.msra.gmra.mrb[0].mxu1 %v4531_v34 }
  0x84   : > { %2586 = vmatpush1.bf16.msra.mxu0 %v3656_v35  ;;  %2668 = vmatpush1.bf16.msra.mxu1 %v3659_v36  ;;  %v3745_v35 = vld [vmem:[%s5384_s1 + $0x55c] ss:$48 sps:$4 sm:$0xff]   ;;  %v3740_v36 = vld [vmem:[%s5384_s1 + $0x550] ss:$48 sps:$4 sm:$0xff]  }
  0x85   : > { %2587 = vmatprep.subr.bf16.mxu0 %v3664_v37  ;;  %2669 = vmatprep.subr.bf16.mxu1 %v3667_v15  ;;  %v3743_v37 = vld [vmem:[%s5384_s1 + $0x558] ss:$48 sps:$4 sm:$0xff]   ;;  %v3748_v15 = vld [vmem:[%s5384_s1 + $0x5b4] ss:$48 sps:$4 sm:$0xff]  }
  0x86   : > { %2617 = vmatprep.mubr.bf16.mxu0 %v4163_v26  ;;  %2699 = vmatprep.mubr.bf16.mxu1 %v4163_v26 }
  0x88   : > { %2588 = vmatpush1.bf16.msra.mxu0 %v3662_v38  ;;  %2670 = vmatpush1.bf16.msra.mxu1 %v3665_v39  ;;  %v3751_v38 = vld [vmem:[%s5384_s1 + $0x5bc] ss:$48 sps:$4 sm:$0xff]   ;;  %v3746_v39 = vld [vmem:[%s5384_s1 + $0x5b0] ss:$48 sps:$4 sm:$0xff]  }
  0x89   : > { %2589 = vmatprep.subr.bf16.mxu0 %v3670_v40  ;;  %2671 = vmatprep.subr.bf16.mxu1 %v3673_v41  ;;  %v3749_v40 = vld [vmem:[%s5384_s1 + $0x5b8] ss:$48 sps:$4 sm:$0xff]   ;;  %v3754_v41 = vld [vmem:[%s5384_s1 + $0x614] ss:$48 sps:$4 sm:$0xff]  }
  0x8c   : > { %2590 = vmatpush1.bf16.msra.mxu0 %v3668_v42  ;;  %2672 = vmatpush1.bf16.msra.mxu1 %v3671_v43  ;;  %v3757_v42 = vld [vmem:[%s5384_s1 + $0x61c] ss:$48 sps:$4 sm:$0xff]   ;;  %v3752_v43 = vld [vmem:[%s5384_s1 + $0x610] ss:$48 sps:$4 sm:$0xff]  }
  0x8d   : > { %2591 = vmatprep.subr.bf16.mxu0 %v3676_v44  ;;  %2673 = vmatprep.subr.bf16.mxu1 %v3679_v45  ;;  %v3755_v44 = vld [vmem:[%s5384_s1 + $0x618] ss:$48 sps:$4 sm:$0xff]   ;;  %v3760_v45 = vld [vmem:[%s5384_s1 + $0x674] ss:$48 sps:$4 sm:$0xff]  }
  0x90   : > { %2592 = vmatpush1.bf16.msra.mxu0 %v3674_v46  ;;  %2674 = vmatpush1.bf16.msra.mxu1 %v3677_v47  ;;  %v3763_v46 = vld [vmem:[%s5384_s1 + $0x67c] ss:$48 sps:$4 sm:$0xff]   ;;  %v3758_v47 = vld [vmem:[%s5384_s1 + $0x670] ss:$48 sps:$4 sm:$0xff]  }
  0x91   : > { %2593 = vmatprep.subr.bf16.mxu0 %v3682_v48  ;;  %2675 = vmatprep.subr.bf16.mxu1 %v3685_v49  ;;  %v3761_v48 = vld [vmem:[%s5384_s1 + $0x678] ss:$48 sps:$4 sm:$0xff]   ;;  %v3766_v49 = vld [vmem:[%s5384_s1 + $0x6d4] ss:$48 sps:$4 sm:$0xff]  }
  0x94   : > { %2594 = vmatpush1.bf16.msra.mxu0 %v3680_v50  ;;  %2676 = vmatpush1.bf16.msra.mxu1 %v3683_v51  ;;  %v3769_v50 = vld [vmem:[%s5384_s1 + $0x6dc] ss:$48 sps:$4 sm:$0xff]   ;;  %v3764_v51 = vld [vmem:[%s5384_s1 + $0x6d0] ss:$48 sps:$4 sm:$0xff]  }
  0x95   : > { %2595 = vmatprep.subr.bf16.mxu0 %v3688_v52  ;;  %2677 = vmatprep.subr.bf16.mxu1 %v3691_v53  ;;  %v3767_v52 = vld [vmem:[%s5384_s1 + $0x6d8] ss:$48 sps:$4 sm:$0xff]   ;;  %v3772_v53 = vld [vmem:[%s5384_s1 + $0x734] ss:$48 sps:$4 sm:$0xff]  }
  0x98   : > { %2596 = vmatpush1.bf16.msra.mxu0 %v3686_v54  ;;  %2678 = vmatpush1.bf16.msra.mxu1 %v3689_v55  ;;  %v3775_v54 = vld [vmem:[%s5384_s1 + $0x73c] ss:$48 sps:$4 sm:$0xff]   ;;  %v3770_v55 = vld [vmem:[%s5384_s1 + $0x730] ss:$48 sps:$4 sm:$0xff]  }
  0x99   : > { %2597 = vmatprep.subr.bf16.mxu0 %v3694_v56  ;;  %2679 = vmatprep.subr.bf16.mxu1 %v3697_v57  ;;  %v3773_v56 = vld [vmem:[%s5384_s1 + $0x738] ss:$48 sps:$4 sm:$0xff]   ;;  %v3778_v57 = vld [vmem:[%s5384_s1 + $0x794] ss:$48 sps:$4 sm:$0xff]  }
  0x9c   : > { %2598 = vmatpush1.bf16.msra.mxu0 %v3692_v58  ;;  %2680 = vmatpush1.bf16.msra.mxu1 %v3695_v59  ;;  %v3781_v58 = vld [vmem:[%s5384_s1 + $0x79c] ss:$48 sps:$4 sm:$0xff]   ;;  %v3776_v59 = vld [vmem:[%s5384_s1 + $0x790] ss:$48 sps:$4 sm:$0xff]  }
  0x9d   : > { %2599 = vmatprep.subr.bf16.mxu0 %v3700_v60  ;;  %2681 = vmatprep.subr.bf16.mxu1 %v3703_v61  ;;  %v3779_v60 = vld [vmem:[%s5384_s1 + $0x798] ss:$48 sps:$4 sm:$0xff]   ;;  %v3784_v61 = vld [vmem:[%s5384_s1 + $0x7f4] ss:$48 sps:$4 sm:$0xff]  }
  0xa0   : > { %2600 = vmatpush1.bf16.msra.mxu0 %v3698_v62  ;;  %2682 = vmatpush1.bf16.msra.mxu1 %v3701_v63  ;;  %v3787_v62 = vld [vmem:[%s5384_s1 + $0x7fc] ss:$48 sps:$4 sm:$0xff]   ;;  %v3782_v63 = vld [vmem:[%s5384_s1 + $0x7f0] ss:$48 sps:$4 sm:$0xff]  }
  0xa1   : > { %2601 = vmatprep.subr.bf16.mxu0 %v3706_v3  ;;  %2683 = vmatprep.subr.bf16.mxu1 %v3709_v4  ;;  %v3785_v3 = vld [vmem:[%s5384_s1 + $0x7f8] ss:$48 sps:$4 sm:$0xff]   ;;  %v3790_v4 = vld [vmem:[%s5384_s1 + $0x854] ss:$48 sps:$4 sm:$0xff]  }
  0xa4   : > { %2602 = vmatpush1.bf16.msra.mxu0 %v3704_v5  ;;  %2684 = vmatpush1.bf16.msra.mxu1 %v3707_v6  ;;  %v3793_v5 = vld [vmem:[%s5384_s1 + $0x85c] ss:$48 sps:$4 sm:$0xff]   ;;  %v3788_v6 = vld [vmem:[%s5384_s1 + $0x850] ss:$48 sps:$4 sm:$0xff]  }
  0xa5   : > { %2603 = vmatprep.subr.bf16.mxu0 %v3712_v7  ;;  %2685 = vmatprep.subr.bf16.mxu1 %v3715_v8  ;;  %v3791_v7 = vld [vmem:[%s5384_s1 + $0x858] ss:$48 sps:$4 sm:$0xff]   ;;  %v3796_v8 = vld [vmem:[%s5384_s1 + $0x8b4] ss:$48 sps:$4 sm:$0xff]  }
  0xa8   : > { %2604 = vmatpush1.bf16.msra.mxu0 %v3710_v9  ;;  %2686 = vmatpush1.bf16.msra.mxu1 %v3713_v11  ;;  %v3799_v9 = vld [vmem:[%s5384_s1 + $0x8bc] ss:$48 sps:$4 sm:$0xff]   ;;  %v3794_v11 = vld [vmem:[%s5384_s1 + $0x8b0] ss:$48 sps:$4 sm:$0xff]  }
  0xa9   : > { %2605 = vmatprep.subr.bf16.mxu0 %v3718_v12  ;;  %2687 = vmatprep.subr.bf16.mxu1 %v3721_v13  ;;  %v3797_v12 = vld [vmem:[%s5384_s1 + $0x8b8] ss:$48 sps:$4 sm:$0xff]   ;;  %v3802_v13 = vld [vmem:[%s5384_s1 + $0x914] ss:$48 sps:$4 sm:$0xff]  }
  0xac   : > { %2606 = vmatpush1.bf16.msra.mxu0 %v3716_v14  ;;  %2688 = vmatpush1.bf16.msra.mxu1 %v3719_v17  ;;  %v3805_v14 = vld [vmem:[%s5384_s1 + $0x91c] ss:$48 sps:$4 sm:$0xff]   ;;  %v3800_v17 = vld [vmem:[%s5384_s1 + $0x910] ss:$48 sps:$4 sm:$0xff]  }
  0xad   : > { %2607 = vmatprep.subr.bf16.mxu0 %v3724_v18  ;;  %2689 = vmatprep.subr.bf16.mxu1 %v3727_v19  ;;  %v3803_v18 = vld [vmem:[%s5384_s1 + $0x918] ss:$48 sps:$4 sm:$0xff]   ;;  %v3808_v19 = vld [vmem:[%s5384_s1 + $0x974] ss:$48 sps:$4 sm:$0xff]  }
  0xb0   : > { %2608 = vmatpush1.bf16.msra.mxu0 %v3722_v20  ;;  %2690 = vmatpush1.bf16.msra.mxu1 %v3725_v22  ;;  %v3811_v20 = vld [vmem:[%s5384_s1 + $0x97c] ss:$48 sps:$4 sm:$0xff]   ;;  %v3806_v22 = vld [vmem:[%s5384_s1 + $0x970] ss:$48 sps:$4 sm:$0xff]  }
  0xb1   : > { %2609 = vmatprep.subr.bf16.mxu0 %v3730_v23  ;;  %2691 = vmatprep.subr.bf16.mxu1 %v3733_v24  ;;  %v3809_v23 = vld [vmem:[%s5384_s1 + $0x978] ss:$48 sps:$4 sm:$0xff]   ;;  %v3814_v24 = vld [vmem:[%s5384_s1 + $0x9d4] ss:$48 sps:$4 sm:$0xff]  }
  0xb4   : > { %2610 = vmatpush1.bf16.msra.mxu0 %v3728_v27  ;;  %2692 = vmatpush1.bf16.msra.mxu1 %v3731_v28  ;;  %v3817_v27 = vld [vmem:[%s5384_s1 + $0x9dc] ss:$48 sps:$4 sm:$0xff]   ;;  %v3812_v28 = vld [vmem:[%s5384_s1 + $0x9d0] ss:$48 sps:$4 sm:$0xff]  }
  0xb5   : > { %2611 = vmatprep.subr.bf16.mxu0 %v3736_v21  ;;  %2693 = vmatprep.subr.bf16.mxu1 %v3739_v30  ;;  %v3815_v21 = vld [vmem:[%s5384_s1 + $0x9d8] ss:$48 sps:$4 sm:$0xff]   ;;  %v3820_v30 = vld [vmem:[%s5384_s1 + $0xa34] ss:$48 sps:$4 sm:$0xff]  }
  0xb8   : > { %2612 = vmatpush1.bf16.msra.mxu0 %v3734_v31  ;;  %2694 = vmatpush1.bf16.msra.mxu1 %v3737_v32  ;;  %v3823_v31 = vld [vmem:[%s5384_s1 + $0xa3c] ss:$48 sps:$4 sm:$0xff]   ;;  %v3818_v32 = vld [vmem:[%s5384_s1 + $0xa30] ss:$48 sps:$4 sm:$0xff]  }
  0xb9   : > { %2613 = vmatprep.subr.bf16.mxu0 %v3742_v33  ;;  %2695 = vmatprep.subr.bf16.mxu1 %v3745_v35  ;;  %v3821_v33 = vld [vmem:[%s5384_s1 + $0xa38] ss:$48 sps:$4 sm:$0xff]   ;;  %v3826_v35 = vld [vmem:[%s5384_s1 + $0xa94] ss:$48 sps:$4 sm:$0xff]  }
  0xbc   : > { %2614 = vmatpush1.bf16.msra.mxu0 %v3740_v36  ;;  %2696 = vmatpush1.bf16.msra.mxu1 %v3743_v37  ;;  %v3829_v36 = vld [vmem:[%s5384_s1 + $0xa9c] ss:$48 sps:$4 sm:$0xff]   ;;  %v3824_v37 = vld [vmem:[%s5384_s1 + $0xa90] ss:$48 sps:$4 sm:$0xff]  }
  0xbd   : > { %2615 = vmatprep.subr.bf16.mxu0 %v3748_v15  ;;  %2697 = vmatprep.subr.bf16.mxu1 %v3751_v38  ;;  %v3827_v15 = vld [vmem:[%s5384_s1 + $0xa98] ss:$48 sps:$4 sm:$0xff]   ;;  %v3832_v38 = vld [vmem:[%s5384_s1 + $0xaf4] ss:$48 sps:$4 sm:$0xff]  }
  0xc0   : > { %2616 = vmatpush1.bf16.msra.mxu0 %v3746_v39  ;;  %2698 = vmatpush1.bf16.msra.mxu1 %v3749_v40  ;;  %v3835_v39 = vld [vmem:[%s5384_s1 + $0xafc] ss:$48 sps:$4 sm:$0xff]   ;;  %v3830_v40 = vld [vmem:[%s5384_s1 + $0xaf0] ss:$48 sps:$4 sm:$0xff]  }
  0xc1   : > { %2626 = vmatprep.subr.bf16.mxu0 %v3754_v41  ;;  %2708 = vmatprep.subr.bf16.mxu1 %v3757_v42  ;;  %v3833_v41 = vld [vmem:[%s5384_s1 + $0xaf8] ss:$48 sps:$4 sm:$0xff]   ;;  %v3838_v42 = vld [vmem:[%s5384_s1 + $0xb54] ss:$48 sps:$4 sm:$0xff]  }
  0xc3   : > { %2618 = vmatmul.mubr.bf16.vlgmr.msra.gmra.mrb[4].mxu0 %v4335_v25  ;;  %2700 = vmatmul.mubr.bf16.vlgmr.msra.gmra.mrb[4].mxu1 %v4335_v25 }
  0xc4   : > { %2627 = vmatpush1.bf16.msra.mxu0 %v3752_v43  ;;  %2709 = vmatpush1.bf16.msra.mxu1 %v3755_v44  ;;  %v3841_v43 = vld [vmem:[%s5384_s1 + $0xb5c] ss:$48 sps:$4 sm:$0xff]   ;;  %v3836_v44 = vld [vmem:[%s5384_s1 + $0xb50] ss:$48 sps:$4 sm:$0xff]  }
  0xc5   : > { %2628 = vmatprep.subr.bf16.mxu0 %v3760_v45  ;;  %2710 = vmatprep.subr.bf16.mxu1 %v3763_v46  ;;  %v3839_v45 = vld [vmem:[%s5384_s1 + $0xb58] ss:$48 sps:$4 sm:$0xff]   ;;  %v3844_v46 = vld [vmem:[%s5384_s1 + $0xbb4] ss:$48 sps:$4 sm:$0xff]  }
  0xc6   : > { %2658 = vmatprep.mubr.bf16.mxu0 %v4343_v29  ;;  %2740 = vmatprep.mubr.bf16.mxu1 %v4343_v29 }
  0xc8   : > { %2629 = vmatpush1.bf16.msra.mxu0 %v3758_v47  ;;  %2711 = vmatpush1.bf16.msra.mxu1 %v3761_v48  ;;  %v3847_v47 = vld [vmem:[%s5384_s1 + $0xbbc] ss:$48 sps:$4 sm:$0xff]   ;;  %v3842_v48 = vld [vmem:[%s5384_s1 + $0xbb0] ss:$48 sps:$4 sm:$0xff]  }
  0xc9   : > { %2630 = vmatprep.subr.bf16.mxu0 %v3766_v49  ;;  %2712 = vmatprep.subr.bf16.mxu1 %v3769_v50  ;;  %v3845_v49 = vld [vmem:[%s5384_s1 + $0xbb8] ss:$48 sps:$4 sm:$0xff]   ;;  %v3850_v50 = vld [vmem:[%s5384_s1 + $0x24] ss:$48 sps:$4 sm:$0xff]  }
  0xcc   : > { %2631 = vmatpush1.bf16.msra.mxu0 %v3764_v51  ;;  %2713 = vmatpush1.bf16.msra.mxu1 %v3767_v52  ;;  %v3853_v51 = vld [vmem:[%s5384_s1 + $0x2c] ss:$48 sps:$4 sm:$0xff]   ;;  %v3848_v52 = vld [vmem:[%s5384_s1 + $0x20] ss:$48 sps:$4 sm:$0xff]  }
  0xcd   : > { %2632 = vmatprep.subr.bf16.mxu0 %v3772_v53  ;;  %2714 = vmatprep.subr.bf16.mxu1 %v3775_v54  ;;  %v3851_v53 = vld [vmem:[%s5384_s1 + $0x28] ss:$48 sps:$4 sm:$0xff]   ;;  %v3856_v54 = vld [vmem:[%s5384_s1 + $0x84] ss:$48 sps:$4 sm:$0xff]  }
  0xd0   : > { %2633 = vmatpush1.bf16.msra.mxu0 %v3770_v55  ;;  %2715 = vmatpush1.bf16.msra.mxu1 %v3773_v56  ;;  %v3859_v55 = vld [vmem:[%s5384_s1 + $0x8c] ss:$48 sps:$4 sm:$0xff]   ;;  %v3854_v56 = vld [vmem:[%s5384_s1 + $0x80] ss:$48 sps:$4 sm:$0xff]  }
  0xd1   : > { %2634 = vmatprep.subr.bf16.mxu0 %v3778_v57  ;;  %2716 = vmatprep.subr.bf16.mxu1 %v3781_v58  ;;  %v3857_v57 = vld [vmem:[%s5384_s1 + $0x88] ss:$48 sps:$4 sm:$0xff]   ;;  %v3862_v58 = vld [vmem:[%s5384_s1 + $0xe4] ss:$48 sps:$4 sm:$0xff]  }
  0xd4   : > { %2635 = vmatpush1.bf16.msra.mxu0 %v3776_v59  ;;  %2717 = vmatpush1.bf16.msra.mxu1 %v3779_v60  ;;  %v3865_v59 = vld [vmem:[%s5384_s1 + $0xec] ss:$48 sps:$4 sm:$0xff]   ;;  %v3860_v60 = vld [vmem:[%s5384_s1 + $0xe0] ss:$48 sps:$4 sm:$0xff]  }
  0xd5   : > { %2636 = vmatprep.subr.bf16.mxu0 %v3784_v61  ;;  %2718 = vmatprep.subr.bf16.mxu1 %v3787_v62  ;;  %v3863_v61 = vld [vmem:[%s5384_s1 + $0xe8] ss:$48 sps:$4 sm:$0xff]   ;;  %v3868_v62 = vld [vmem:[%s5384_s1 + $0x144] ss:$48 sps:$4 sm:$0xff]  }
  0xd8   : > { %2637 = vmatpush1.bf16.msra.mxu0 %v3782_v63  ;;  %2719 = vmatpush1.bf16.msra.mxu1 %v3785_v3  ;;  %v3866_v63 = vld [vmem:[%s5384_s1 + $0x140] ss:$48 sps:$4 sm:$0xff]   ;;  %v3869_v3 = vld [vmem:[%s5384_s1 + $0x148] ss:$48 sps:$4 sm:$0xff]  }
  0xd9   : > { %2638 = vmatprep.subr.bf16.mxu0 %v3790_v4  ;;  %2720 = vmatprep.subr.bf16.mxu1 %v3793_v5  ;;  %v3874_v4 = vld [vmem:[%s5384_s1 + $0x1a4] ss:$48 sps:$4 sm:$0xff]   ;;  %v3877_v5 = vld [vmem:[%s5384_s1 + $0x1ac] ss:$48 sps:$4 sm:$0xff]  }
  0xdc   : > { %2639 = vmatpush1.bf16.msra.mxu0 %v3788_v6  ;;  %2721 = vmatpush1.bf16.msra.mxu1 %v3791_v7  ;;  %v3872_v6 = vld [vmem:[%s5384_s1 + $0x1a0] ss:$48 sps:$4 sm:$0xff]   ;;  %v3875_v7 = vld [vmem:[%s5384_s1 + $0x1a8] ss:$48 sps:$4 sm:$0xff]  }
  0xdd   : > { %2640 = vmatprep.subr.bf16.mxu0 %v3796_v8  ;;  %2722 = vmatprep.subr.bf16.mxu1 %v3799_v9  ;;  %v3880_v8 = vld [vmem:[%s5384_s1 + $0x204] ss:$48 sps:$4 sm:$0xff]   ;;  %v3883_v9 = vld [vmem:[%s5384_s1 + $0x20c] ss:$48 sps:$4 sm:$0xff]  }
  0xe0   : > { %2641 = vmatpush1.bf16.msra.mxu0 %v3794_v11  ;;  %2723 = vmatpush1.bf16.msra.mxu1 %v3797_v12  ;;  %v3878_v11 = vld [vmem:[%s5384_s1 + $0x200] ss:$48 sps:$4 sm:$0xff]   ;;  %v3881_v12 = vld [vmem:[%s5384_s1 + $0x208] ss:$48 sps:$4 sm:$0xff]  }
  0xe1   : > { %2642 = vmatprep.subr.bf16.mxu0 %v3802_v13  ;;  %2724 = vmatprep.subr.bf16.mxu1 %v3805_v14  ;;  %v3886_v13 = vld [vmem:[%s5384_s1 + $0x264] ss:$48 sps:$4 sm:$0xff]   ;;  %v3889_v14 = vld [vmem:[%s5384_s1 + $0x26c] ss:$48 sps:$4 sm:$0xff]  }
  0xe4   : > { %2643 = vmatpush1.bf16.msra.mxu0 %v3800_v17  ;;  %2725 = vmatpush1.bf16.msra.mxu1 %v3803_v18  ;;  %v3884_v17 = vld [vmem:[%s5384_s1 + $0x260] ss:$48 sps:$4 sm:$0xff]   ;;  %v3887_v18 = vld [vmem:[%s5384_s1 + $0x268] ss:$48 sps:$4 sm:$0xff]  }
  0xe5   : > { %2644 = vmatprep.subr.bf16.mxu0 %v3808_v19  ;;  %2726 = vmatprep.subr.bf16.mxu1 %v3811_v20  ;;  %v3892_v19 = vld [vmem:[%s5384_s1 + $0x2c4] ss:$48 sps:$4 sm:$0xff]   ;;  %v3895_v20 = vld [vmem:[%s5384_s1 + $0x2cc] ss:$48 sps:$4 sm:$0xff]  }
  0xe8   : > { %2645 = vmatpush1.bf16.msra.mxu0 %v3806_v22  ;;  %2727 = vmatpush1.bf16.msra.mxu1 %v3809_v23  ;;  %v3890_v22 = vld [vmem:[%s5384_s1 + $0x2c0] ss:$48 sps:$4 sm:$0xff]   ;;  %v3893_v23 = vld [vmem:[%s5384_s1 + $0x2c8] ss:$48 sps:$4 sm:$0xff]  }
  0xe9   : > { %2646 = vmatprep.subr.bf16.mxu0 %v3814_v24  ;;  %2728 = vmatprep.subr.bf16.mxu1 %v3817_v27  ;;  %v3898_v24 = vld [vmem:[%s5384_s1 + $0x324] ss:$48 sps:$4 sm:$0xff]   ;;  %v3901_v27 = vld [vmem:[%s5384_s1 + $0x32c] ss:$48 sps:$4 sm:$0xff]  }
  0xec   : > { %2647 = vmatpush1.bf16.msra.mxu0 %v3812_v28  ;;  %2729 = vmatpush1.bf16.msra.mxu1 %v3815_v21  ;;  %v3896_v28 = vld [vmem:[%s5384_s1 + $0x320] ss:$48 sps:$4 sm:$0xff]   ;;  %v3899_v21 = vld [vmem:[%s5384_s1 + $0x328] ss:$48 sps:$4 sm:$0xff]  }
  0xed   : > { %2648 = vmatprep.subr.bf16.mxu0 %v3820_v30  ;;  %2730 = vmatprep.subr.bf16.mxu1 %v3823_v31  ;;  %v3904_v30 = vld [vmem:[%s5384_s1 + $0x384] ss:$48 sps:$4 sm:$0xff]   ;;  %v3907_v31 = vld [vmem:[%s5384_s1 + $0x38c] ss:$48 sps:$4 sm:$0xff]  }
  0xf0   : > { %2649 = vmatpush1.bf16.msra.mxu0 %v3818_v32  ;;  %2731 = vmatpush1.bf16.msra.mxu1 %v3821_v33  ;;  %v3902_v32 = vld [vmem:[%s5384_s1 + $0x380] ss:$48 sps:$4 sm:$0xff]   ;;  %v3905_v33 = vld [vmem:[%s5384_s1 + $0x388] ss:$48 sps:$4 sm:$0xff]  }
  0xf1   : > { %2650 = vmatprep.subr.bf16.mxu0 %v3826_v35  ;;  %2732 = vmatprep.subr.bf16.mxu1 %v3829_v36  ;;  %v3910_v35 = vld [vmem:[%s5384_s1 + $0x3e4] ss:$48 sps:$4 sm:$0xff]   ;;  %v3913_v36 = vld [vmem:[%s5384_s1 + $0x3ec] ss:$48 sps:$4 sm:$0xff]  }
  0xf4   : > { %2651 = vmatpush1.bf16.msra.mxu0 %v3824_v37  ;;  %2733 = vmatpush1.bf16.msra.mxu1 %v3827_v15  ;;  %v3908_v37 = vld [vmem:[%s5384_s1 + $0x3e0] ss:$48 sps:$4 sm:$0xff]   ;;  %v3911_v15 = vld [vmem:[%s5384_s1 + $0x3e8] ss:$48 sps:$4 sm:$0xff]  }
  0xf5   : > { %2652 = vmatprep.subr.bf16.mxu0 %v3832_v38  ;;  %2734 = vmatprep.subr.bf16.mxu1 %v3835_v39  ;;  %v3916_v38 = vld [vmem:[%s5384_s1 + $0x444] ss:$48 sps:$4 sm:$0xff]   ;;  %v3919_v39 = vld [vmem:[%s5384_s1 + $0x44c] ss:$48 sps:$4 sm:$0xff]  }
  0xf8   : > { %2653 = vmatpush1.bf16.msra.mxu0 %v3830_v40  ;;  %2735 = vmatpush1.bf16.msra.mxu1 %v3833_v41  ;;  %v3914_v40 = vld [vmem:[%s5384_s1 + $0x440] ss:$48 sps:$4 sm:$0xff]   ;;  %v3917_v41 = vld [vmem:[%s5384_s1 + $0x448] ss:$48 sps:$4 sm:$0xff]  }
  0xf9   : > { %2654 = vmatprep.subr.bf16.mxu0 %v3838_v42  ;;  %2736 = vmatprep.subr.bf16.mxu1 %v3841_v43  ;;  %v3922_v42 = vld [vmem:[%s5384_s1 + $0x4a4] ss:$48 sps:$4 sm:$0xff]   ;;  %v3925_v43 = vld [vmem:[%s5384_s1 + $0x4ac] ss:$48 sps:$4 sm:$0xff]  }
  0xfc   : > { %2655 = vmatpush1.bf16.msra.mxu0 %v3836_v44  ;;  %2737 = vmatpush1.bf16.msra.mxu1 %v3839_v45  ;;  %v3920_v44 = vld [vmem:[%s5384_s1 + $0x4a0] ss:$48 sps:$4 sm:$0xff]   ;;  %v3923_v45 = vld [vmem:[%s5384_s1 + $0x4a8] ss:$48 sps:$4 sm:$0xff]  }
  0xfd   : > { %2656 = vmatprep.subr.bf16.mxu0 %v3844_v46  ;;  %2738 = vmatprep.subr.bf16.mxu1 %v3847_v47  ;;  %v3928_v46 = vld [vmem:[%s5384_s1 + $0x504] ss:$48 sps:$4 sm:$0xff]   ;;  %v3931_v47 = vld [vmem:[%s5384_s1 + $0x50c] ss:$48 sps:$4 sm:$0xff]  }
 0x100   : > { %2657 = vmatpush1.bf16.msra.mxu0 %v3842_v48  ;;  %2739 = vmatpush1.bf16.msra.mxu1 %v3845_v49  ;;  %v3926_v48 = vld [vmem:[%s5384_s1 + $0x500] ss:$48 sps:$4 sm:$0xff]   ;;  %v3929_v49 = vld [vmem:[%s5384_s1 + $0x508] ss:$48 sps:$4 sm:$0xff]  }
 0x101   : > { %2749 = vmatprep.subr.bf16.mxu0 %v3850_v50  ;;  %2831 = vmatprep.subr.bf16.mxu1 %v3853_v51  ;;  %v3934_v50 = vld [vmem:[%s5384_s1 + $0x564] ss:$48 sps:$4 sm:$0xff]   ;;  %v3937_v51 = vld [vmem:[%s5384_s1 + $0x56c] ss:$48 sps:$4 sm:$0xff]  }
 0x103   : > { %2659 = vmatmul.mubr.bf16.vlgmr.msra.gmra.mrb[4].mxu0 %v4531_v34  ;;  %2741 = vmatmul.mubr.bf16.vlgmr.msra.gmra.mrb[4].mxu1 %v4531_v34 }
 0x104   : > { %2750 = vmatpush1.bf16.msra.mxu0 %v3848_v52  ;;  %2832 = vmatpush1.bf16.msra.mxu1 %v3851_v53  ;;  %v3932_v52 = vld [vmem:[%s5384_s1 + $0x560] ss:$48 sps:$4 sm:$0xff]   ;;  %v3935_v53 = vld [vmem:[%s5384_s1 + $0x568] ss:$48 sps:$4 sm:$0xff]  }
 0x105   : > { %2751 = vmatprep.subr.bf16.mxu0 %v3856_v54  ;;  %2833 = vmatprep.subr.bf16.mxu1 %v3859_v55  ;;  %v3940_v54 = vld [vmem:[%s5384_s1 + $0x5c4] ss:$48 sps:$4 sm:$0xff]   ;;  %v3943_v55 = vld [vmem:[%s5384_s1 + $0x5cc] ss:$48 sps:$4 sm:$0xff]  }
 0x106   : > { %2781 = vmatprep.mubr.bf16.mxu0 %v4163_v26  ;;  %2863 = vmatprep.mubr.bf16.mxu1 %v4163_v26  ;;  %v3871_v26 = vld [vmem:[%s5384_s1 + $0x14c] ss:$48 sps:$4 sm:$0xff]  }
 0x108   : > { %2752 = vmatpush1.bf16.msra.mxu0 %v3854_v56  ;;  %2834 = vmatpush1.bf16.msra.mxu1 %v3857_v57  ;;  %v3938_v56 = vld [vmem:[%s5384_s1 + $0x5c0] ss:$48 sps:$4 sm:$0xff]   ;;  %v3941_v57 = vld [vmem:[%s5384_s1 + $0x5c8] ss:$48 sps:$4 sm:$0xff]  }
 0x109   : > { %2753 = vmatprep.subr.bf16.mxu0 %v3862_v58  ;;  %2835 = vmatprep.subr.bf16.mxu1 %v3865_v59  ;;  %v3946_v58 = vld [vmem:[%s5384_s1 + $0x624] ss:$48 sps:$4 sm:$0xff]   ;;  %v3949_v59 = vld [vmem:[%s5384_s1 + $0x62c] ss:$48 sps:$4 sm:$0xff]  }
 0x10c   : > { %2754 = vmatpush1.bf16.msra.mxu0 %v3860_v60  ;;  %2836 = vmatpush1.bf16.msra.mxu1 %v3863_v61  ;;  %v3944_v60 = vld [vmem:[%s5384_s1 + $0x620] ss:$48 sps:$4 sm:$0xff]   ;;  %v3947_v61 = vld [vmem:[%s5384_s1 + $0x628] ss:$48 sps:$4 sm:$0xff]  }
 0x10d   : > { %2755 = vmatprep.subr.bf16.mxu0 %v3868_v62  ;;  %2837 = vmatprep.subr.bf16.mxu1 %v3871_v26  ;;  %v3952_v62 = vld [vmem:[%s5384_s1 + $0x684] ss:$48 sps:$4 sm:$0xff]   ;;  %v3955_v26 = vld [vmem:[%s5384_s1 + $0x68c] ss:$48 sps:$4 sm:$0xff]  }
 0x110   : > { %2756 = vmatpush1.bf16.msra.mxu0 %v3866_v63  ;;  %2838 = vmatpush1.bf16.msra.mxu1 %v3869_v3  ;;  %v3950_v63 = vld [vmem:[%s5384_s1 + $0x680] ss:$48 sps:$4 sm:$0xff]   ;;  %v3953_v3 = vld [vmem:[%s5384_s1 + $0x688] ss:$48 sps:$4 sm:$0xff]  }
 0x111   : > { %2757 = vmatprep.subr.bf16.mxu0 %v3874_v4  ;;  %2839 = vmatprep.subr.bf16.mxu1 %v3877_v5  ;;  %v3958_v4 = vld [vmem:[%s5384_s1 + $0x6e4] ss:$48 sps:$4 sm:$0xff]   ;;  %v3956_v5 = vld [vmem:[%s5384_s1 + $0x6e0] ss:$48 sps:$4 sm:$0xff]  }
 0x114   : > { %2758 = vmatpush1.bf16.msra.mxu0 %v3872_v6  ;;  %2840 = vmatpush1.bf16.msra.mxu1 %v3875_v7  ;;  %v3959_v6 = vld [vmem:[%s5384_s1 + $0x6e8] ss:$48 sps:$4 sm:$0xff]   ;;  %v3964_v7 = vld [vmem:[%s5384_s1 + $0x744] ss:$48 sps:$4 sm:$0xff]  }
 0x115   : > { %2759 = vmatprep.subr.bf16.mxu0 %v3880_v8  ;;  %2841 = vmatprep.subr.bf16.mxu1 %v3883_v9  ;;  %v3962_v8 = vld [vmem:[%s5384_s1 + $0x740] ss:$48 sps:$4 sm:$0xff]   ;;  %v3965_v9 = vld [vmem:[%s5384_s1 + $0x748] ss:$48 sps:$4 sm:$0xff]  }
 0x118   : > { %2760 = vmatpush1.bf16.msra.mxu0 %v3878_v11  ;;  %2842 = vmatpush1.bf16.msra.mxu1 %v3881_v12  ;;  %v3970_v11 = vld [vmem:[%s5384_s1 + $0x7a4] ss:$48 sps:$4 sm:$0xff]   ;;  %v3973_v12 = vld [vmem:[%s5384_s1 + $0x7ac] ss:$48 sps:$4 sm:$0xff]  }
 0x119   : > { %2761 = vmatprep.subr.bf16.mxu0 %v3886_v13  ;;  %2843 = vmatprep.subr.bf16.mxu1 %v3889_v14  ;;  %v443_v13 = vsub.s32 0, %v4119_v10  ;;  %v451_v14 = vsub.s32 2, %v4119_v10 }
 0x11c   : > { %2762 = vmatpush1.bf16.msra.mxu0 %v3884_v17  ;;  %2844 = vmatpush1.bf16.msra.mxu1 %v3887_v18  ;;  %v3968_v17 = vld [vmem:[%s5384_s1 + $0x7a0] ss:$48 sps:$4 sm:$0xff]   ;;  %v3971_v18 = vld [vmem:[%s5384_s1 + $0x7a8] ss:$48 sps:$4 sm:$0xff]  }
 0x11d   : > { %2763 = vmatprep.subr.bf16.mxu0 %v3892_v19  ;;  %2845 = vmatprep.subr.bf16.mxu1 %v3895_v20  ;;  %v447_v19 = vsub.s32 1, %v4119_v10  ;;  %v455_v20 = vsub.s32 3, %v4119_v10 }
 0x120   : > { %2764 = vmatpush1.bf16.msra.mxu0 %v3890_v22  ;;  %2846 = vmatpush1.bf16.msra.mxu1 %v3893_v23  ;;  %v3976_v22 = vld [vmem:[%s5384_s1 + $0x804] ss:$48 sps:$4 sm:$0xff]   ;;  %v3979_v23 = vld [vmem:[%s5384_s1 + $0x80c] ss:$48 sps:$4 sm:$0xff]  }
 0x121   : > { %2765 = vmatprep.subr.bf16.mxu0 %v3898_v24  ;;  %2847 = vmatprep.subr.bf16.mxu1 %v3901_v27  ;;  %v444_v24 = vrot.slane %v4090_v0, %v443_v13  ;;  %v452_v27 = vrot.slane %v4090_v0, %v451_v14 }
 0x124   : > { %2766 = vmatpush1.bf16.msra.mxu0 %v3896_v28  ;;  %2848 = vmatpush1.bf16.msra.mxu1 %v3899_v21  ;;  %v448_v28 = vrot.slane %v4090_v0, %v447_v19  ;;  %v456_v21 = vrot.slane %v4090_v0, %v455_v20 }
 0x125   : > { %2767 = vmatprep.subr.bf16.mxu0 %v3904_v30  ;;  %2849 = vmatprep.subr.bf16.mxu1 %v3907_v31  ;;  %v3974_v30 = vld [vmem:[%s5384_s1 + $0x800] ss:$48 sps:$4 sm:$0xff]   ;;  %v3977_v31 = vld [vmem:[%s5384_s1 + $0x808] ss:$48 sps:$4 sm:$0xff]  }
 0x128   : > { %2768 = vmatpush1.bf16.msra.mxu0 %v3902_v32  ;;  %2850 = vmatpush1.bf16.msra.mxu1 %v3905_v33  ;;  %v3982_v32 = vld [vmem:[%s5384_s1 + $0x864] ss:$48 sps:$4 sm:$0xff]   ;;  %v3985_v33 = vld [vmem:[%s5384_s1 + $0x86c] ss:$48 sps:$4 sm:$0xff]  }
 0x129   : > { %2769 = vmatprep.subr.bf16.mxu0 %v3910_v35  ;;  %2851 = vmatprep.subr.bf16.mxu1 %v3913_v36 }
 0x12c   : > { %2770 = vmatpush1.bf16.msra.mxu0 %v3908_v37  ;;  %2852 = vmatpush1.bf16.msra.mxu1 %v3911_v15 }
 0x12d   : > { %2771 = vmatprep.subr.bf16.mxu0 %v3916_v38  ;;  %2853 = vmatprep.subr.bf16.mxu1 %v3919_v39 }
 0x130   : > { %2772 = vmatpush1.bf16.msra.mxu0 %v3914_v40  ;;  %2854 = vmatpush1.bf16.msra.mxu1 %v3917_v41 }
 0x131   : > { %2773 = vmatprep.subr.bf16.mxu0 %v3922_v42  ;;  %2855 = vmatprep.subr.bf16.mxu1 %v3925_v43 }
 0x134   : > { %2774 = vmatpush1.bf16.msra.mxu0 %v3920_v44  ;;  %2856 = vmatpush1.bf16.msra.mxu1 %v3923_v45  ;;  %v3980_v44 = vld [vmem:[%s5384_s1 + $0x860] ss:$48 sps:$4 sm:$0xff]   ;;  %v3983_v45 = vld [vmem:[%s5384_s1 + $0x868] ss:$48 sps:$4 sm:$0xff]  }
 0x135   : > { %2775 = vmatprep.subr.bf16.mxu0 %v3928_v46  ;;  %2857 = vmatprep.subr.bf16.mxu1 %v3931_v47 }
 0x138   : > { %2776 = vmatpush1.bf16.msra.mxu0 %v3926_v48  ;;  %2858 = vmatpush1.bf16.msra.mxu1 %v3929_v49  ;;  %v3988_v48 = vld [vmem:[%s5384_s1 + $0x8c4] ss:$48 sps:$4 sm:$0xff]   ;;  %v3991_v49 = vld [vmem:[%s5384_s1 + $0x8cc] ss:$48 sps:$4 sm:$0xff]  }
 0x139   : > { %2777 = vmatprep.subr.bf16.mxu0 %v3934_v50  ;;  %2859 = vmatprep.subr.bf16.mxu1 %v3937_v51 }
 0x13c   : > { %2778 = vmatpush1.bf16.msra.mxu0 %v3932_v52  ;;  %2860 = vmatpush1.bf16.msra.mxu1 %v3935_v53 }
 0x13d   : > { %2779 = vmatprep.subr.bf16.mxu0 %v3940_v54  ;;  %2861 = vmatprep.subr.bf16.mxu1 %v3943_v55  ;;  %v3986_v54 = vld [vmem:[%s5384_s1 + $0x8c0] ss:$48 sps:$4 sm:$0xff]   ;;  %v3989_v55 = vld [vmem:[%s5384_s1 + $0x8c8] ss:$48 sps:$4 sm:$0xff]  }
 0x140   : > { %2780 = vmatpush1.bf16.msra.mxu0 %v3938_v56  ;;  %2862 = vmatpush1.bf16.msra.mxu1 %v3941_v57  ;;  %v3994_v56 = vld [vmem:[%s5384_s1 + $0x924] ss:$48 sps:$4 sm:$0xff]   ;;  %v3997_v57 = vld [vmem:[%s5384_s1 + $0x92c] ss:$48 sps:$4 sm:$0xff]  }
 0x141   : > { %2790 = vmatprep.subr.bf16.mxu0 %v3946_v58  ;;  %2872 = vmatprep.subr.bf16.mxu1 %v3949_v59  ;;  %v3992_v59 = vld [vmem:[%s5384_s1 + $0x920] ss:$48 sps:$4 sm:$0xff]  }
 0x143   : > { %2782 = vmatmul.mubr.bf16.vlgmr.msra.gmra.mrb[8].mxu0 %v4335_v25  ;;  %2864 = vmatmul.mubr.bf16.vlgmr.msra.gmra.mrb[8].mxu1 %v4335_v25  ;;  %v3961_v25 = vld [vmem:[%s5384_s1 + $0x6ec] ss:$48 sps:$4 sm:$0xff]  }
 0x144   : > { %2791 = vmatpush1.bf16.msra.mxu0 %v3944_v60  ;;  %2873 = vmatpush1.bf16.msra.mxu1 %v3947_v61  ;;  %v3995_v60 = vld [vmem:[%s5384_s1 + $0x928] ss:$48 sps:$4 sm:$0xff]   ;;  %v4000_v61 = vld [vmem:[%s5384_s1 + $0x984] ss:$48 sps:$4 sm:$0xff]  }
 0x145   : > { %2792 = vmatprep.subr.bf16.mxu0 %v3952_v62  ;;  %2874 = vmatprep.subr.bf16.mxu1 %v3955_v26  ;;  %v4003_v62 = vld [vmem:[%s5384_s1 + $0x98c] ss:$48 sps:$4 sm:$0xff]   ;;  %v3998_v26 = vld [vmem:[%s5384_s1 + $0x980] ss:$48 sps:$4 sm:$0xff]  }
 0x146   : > { %2822 = vmatprep.mubr.bf16.mxu0 %v4343_v29  ;;  %2904 = vmatprep.mubr.bf16.mxu1 %v4343_v29  ;;  %v3967_v29 = vld [vmem:[%s5384_s1 + $0x74c] ss:$48 sps:$4 sm:$0xff]  }
 0x148   : > { %2793 = vmatpush1.bf16.msra.mxu0 %v3950_v63  ;;  %2875 = vmatpush1.bf16.msra.mxu1 %v3953_v3  ;;  %v4001_v63 = vld [vmem:[%s5384_s1 + $0x988] ss:$48 sps:$4 sm:$0xff]   ;;  %v4006_v3 = vld [vmem:[%s5384_s1 + $0x9e4] ss:$48 sps:$4 sm:$0xff]  }
 0x149   : > { %2794 = vmatprep.subr.bf16.mxu0 %v3958_v4  ;;  %2876 = vmatprep.subr.bf16.mxu1 %v3961_v25  ;;  %v4009_v4 = vld [vmem:[%s5384_s1 + $0x9ec] ss:$48 sps:$4 sm:$0xff]   ;;  %v4004_v25 = vld [vmem:[%s5384_s1 + $0x9e0] ss:$48 sps:$4 sm:$0xff]  }
 0x14c   : > { %2795 = vmatpush1.bf16.msra.mxu0 %v3956_v5  ;;  %2877 = vmatpush1.bf16.msra.mxu1 %v3959_v6  ;;  %v4007_v5 = vld [vmem:[%s5384_s1 + $0x9e8] ss:$48 sps:$4 sm:$0xff]   ;;  %v4012_v6 = vld [vmem:[%s5384_s1 + $0xa44] ss:$48 sps:$4 sm:$0xff]  }
 0x14d   : > { %2796 = vmatprep.subr.bf16.mxu0 %v3964_v7  ;;  %2878 = vmatprep.subr.bf16.mxu1 %v3967_v29  ;;  %v4015_v7 = vld [vmem:[%s5384_s1 + $0xa4c] ss:$48 sps:$4 sm:$0xff]   ;;  %v4010_v29 = vld [vmem:[%s5384_s1 + $0xa40] ss:$48 sps:$4 sm:$0xff]  }
 0x150   : > { %2797 = vmatpush1.bf16.msra.mxu0 %v3962_v8  ;;  %2879 = vmatpush1.bf16.msra.mxu1 %v3965_v9  ;;  %v4013_v8 = vld [vmem:[%s5384_s1 + $0xa48] ss:$48 sps:$4 sm:$0xff]   ;;  %v4018_v9 = vld [vmem:[%s5384_s1 + $0xaa4] ss:$48 sps:$4 sm:$0xff]  }
 0x151   : > { %2798 = vmatprep.subr.bf16.mxu0 %v3970_v11  ;;  %2880 = vmatprep.subr.bf16.mxu1 %v3973_v12  ;;  %v4021_v11 = vld [vmem:[%s5384_s1 + $0xaac] ss:$48 sps:$4 sm:$0xff]   ;;  %v4016_v12 = vld [vmem:[%s5384_s1 + $0xaa0] ss:$48 sps:$4 sm:$0xff]  }
 0x154   : > { %2799 = vmatpush1.bf16.msra.mxu0 %v3968_v17  ;;  %2881 = vmatpush1.bf16.msra.mxu1 %v3971_v18  ;;  %v4019_v17 = vld [vmem:[%s5384_s1 + $0xaa8] ss:$48 sps:$4 sm:$0xff]   ;;  %v4024_v18 = vld [vmem:[%s5384_s1 + $0xb04] ss:$48 sps:$4 sm:$0xff]  }
 0x155   : > { %2800 = vmatprep.subr.bf16.mxu0 %v3976_v22  ;;  %2882 = vmatprep.subr.bf16.mxu1 %v3979_v23  ;;  %v4027_v22 = vld [vmem:[%s5384_s1 + $0xb0c] ss:$48 sps:$4 sm:$0xff]   ;;  %v4022_v23 = vld [vmem:[%s5384_s1 + $0xb00] ss:$48 sps:$4 sm:$0xff]  }
 0x156   : > { %v2496_v35 = vpop.f32.mrb[0].mxu0  ;;  %v2578_v36 = vpop.f32.mrb[0].mxu1 }
 0x157   : > { %v3411_v37 = vadd.f32 %v2496_v35, %v444_v24  ;;  %v3413_v15 = vadd.f32 %v2578_v36, %v452_v27  ;;  %v2498_v38 = vpop.f32.mrb[1].mxu0  ;;  %v2580_v39 = vpop.f32.mrb[1].mxu1  ;;  %v4025_v24 = vld [vmem:[%s5384_s1 + $0xb08] ss:$48 sps:$4 sm:$0xff]   ;;  %v4030_v27 = vld [vmem:[%s5384_s1 + $0xb64] ss:$48 sps:$4 sm:$0xff]  }
 0x158   : > { %v3412_v40 = vadd.f32 %v2498_v38, %v448_v28  ;;  %v3414_v41 = vadd.f32 %v2580_v39, %v456_v21  ;;  %v2500_v42 = vpop.f32.mrb[2].mxu0  ;;  %v2582_v43 = vpop.f32.mrb[2].mxu1  ;;  %2801 = vmatpush1.bf16.msra.mxu0 %v3974_v30  ;;  %2883 = vmatpush1.bf16.msra.mxu1 %v3977_v31  ;;  %v4033_v28 = vld [vmem:[%s5384_s1 + $0xb6c] ss:$48 sps:$4 sm:$0xff]   ;;  %v4028_v21 = vld [vmem:[%s5384_s1 + $0xb60] ss:$48 sps:$4 sm:$0xff]  }
 0x159   : > { %v2501_v46 = vpop.f32.mrb[3].mxu0  ;;  %v2583_v47 = vpop.f32.mrb[3].mxu1  ;;  %2802 = vmatprep.subr.bf16.mxu0 %v3982_v32  ;;  %2884 = vmatprep.subr.bf16.mxu1 %v3985_v33  ;;  %v4031_v30 = vld [vmem:[%s5384_s1 + $0xb68] ss:$48 sps:$4 sm:$0xff]   ;;  %v4036_v31 = vld [vmem:[%s5384_s1 + $0xbc4] ss:$48 sps:$4 sm:$0xff]  }
 0x15a   : > { %v2917_v50 = vcombine.low %v3411_v37, %v3412_v40  ;;  %v2918_v51 = vcombine.low %v3413_v15, %v3414_v41  ;;  %v4039_v32 = vld [vmem:[%s5384_s1 + $0xbcc] ss:$48 sps:$4 sm:$0xff]   ;;  %v4034_v33 = vld [vmem:[%s5384_s1 + $0xbc0] ss:$48 sps:$4 sm:$0xff]   ;;  %v4037_v35 = vld [vmem:[%s5384_s1 + $0xbc8] ss:$48 sps:$4 sm:$0xff]  }
 0x15b   : > { %v459_v36 = vsub.s32 4, %v4119_v10  ;;  %v467_v37 = vsub.s32 6, %v4119_v10  ;;  %v463_v15 = vsub.s32 5, %v4119_v10  ;;  %v471_v38 = vsub.s32 7, %v4119_v10 }
 0x15c   : > { %v5226_v52 = vrot.slane %v2917_v50, %v4134_v16  ;;  %v5229_v53 = vrot.slane %v2918_v51, %v4134_v16  ;;  %2803 = vmatpush1.bf16.msra.mxu0 %v3980_v44  ;;  %2885 = vmatpush1.bf16.msra.mxu1 %v3983_v45 }
 0x15d   : > { %2804 = vmatprep.subr.bf16.mxu0 %v3988_v48  ;;  %2886 = vmatprep.subr.bf16.mxu1 %v3991_v49  ;;  %v460_v39 = vrot.slane %v4090_v0, %v459_v36  ;;  %v468_v40 = vrot.slane %v4090_v0, %v467_v37  ;;  %v464_v41 = vrot.slane %v4090_v0, %v463_v15 }
 0x15e   : > { %v2933_v58 = vcombine.low %v5226_v52, %v5229_v53  ;;  %v472_v42 = vrot.slane %v4090_v0, %v471_v38  ;;  %v480_v52 = vrot.slane %v4095_v1, %v447_v19  ;;  %v488_v53 = vrot.slane %v4095_v1, %v455_v20 }
 0x160   : > { %2805 = vmatpush1.bf16.msra.mxu0 %v3986_v54  ;;  %2887 = vmatpush1.bf16.msra.mxu1 %v3989_v55 }
 0x161   : > { %2806 = vmatprep.subr.bf16.mxu0 %v3994_v56  ;;  %2888 = vmatprep.subr.bf16.mxu1 %v3997_v57 }
 0x164   : > { %2807 = vmatpush1.bf16.msra.mxu0 %v3992_v59  ;;  %2889 = vmatpush1.bf16.msra.mxu1 %v3995_v60 }
 0x165   : > { %2808 = vmatprep.subr.bf16.mxu0 %v4000_v61  ;;  %2890 = vmatprep.subr.bf16.mxu1 %v4003_v62  ;;  %v26_v62 = vld [vmem:[%s5351_s4] sm:$0xff] }
 0x168   : > { %2809 = vmatpush1.bf16.msra.mxu0 %v3998_v26  ;;  %2891 = vmatpush1.bf16.msra.mxu1 %v4001_v63  ;;  %v2935_v26 = vadd.f32 %v2933_v58, %v26_v62 }
 0x169   : > { %2810 = vmatprep.subr.bf16.mxu0 %v4006_v3  ;;  %2892 = vmatprep.subr.bf16.mxu1 %v4009_v4  ;;  %v27_v3 = vld [vmem:[%s5351_s4 + $0x8] sm:$0xff] }
 0x16a   : > { %v3405_v63 = vmul.f32 -1.442695, %v2935_v26 }
 0x16c   : > { %2811 = vmatpush1.bf16.msra.mxu0 %v4004_v25  ;;  %2893 = vmatpush1.bf16.msra.mxu1 %v4007_v5  ;;  %4040 = vpow2.f32 %v3405_v63 }
 0x16d   : > { %2812 = vmatprep.subr.bf16.mxu0 %v4012_v6  ;;  %2894 = vmatprep.subr.bf16.mxu1 %v4015_v7  ;;  %v476_v7 = vrot.slane %v4095_v1, %v443_v13 }
 0x170   : > { %2813 = vmatpush1.bf16.msra.mxu0 %v4010_v29  ;;  %2895 = vmatpush1.bf16.msra.mxu1 %v4013_v8  ;;  %v484_v29 = vrot.slane %v4095_v1, %v451_v14 }
 0x171   : > { %2814 = vmatprep.subr.bf16.mxu0 %v4018_v9  ;;  %2896 = vmatprep.subr.bf16.mxu1 %v4021_v11 }
 0x174   : > { %2815 = vmatpush1.bf16.msra.mxu0 %v4016_v12  ;;  %2897 = vmatpush1.bf16.msra.mxu1 %v4019_v17 }
 0x175   : > { %2816 = vmatprep.subr.bf16.mxu0 %v4024_v18  ;;  %2898 = vmatprep.subr.bf16.mxu1 %v4027_v22 }
 0x176   : > { %v4041_v5 = vpop.eup %4040 }
 0x177   : > { %v2939_v6 = vadd.f32 1.0, %v4041_v5 }
 0x178   : > { %2817 = vmatpush1.bf16.msra.mxu0 %v4022_v23  ;;  %2899 = vmatpush1.bf16.msra.mxu1 %v4025_v24 }
 0x179   : > { %2818 = vmatprep.subr.bf16.mxu0 %v4030_v27  ;;  %2900 = vmatprep.subr.bf16.mxu1 %v4033_v28 }
 0x17c   : > { %2819 = vmatpush1.bf16.msra.mxu0 %v4028_v21  ;;  %2901 = vmatpush1.bf16.msra.mxu1 %v4031_v30 }
 0x17d   : > { %2820 = vmatprep.subr.bf16.mxu0 %v4036_v31  ;;  %2902 = vmatprep.subr.bf16.mxu1 %v4039_v32  ;;  %v28_v32 = vld [vmem:[%s5351_s4 + $0x10] sm:$0xff] }
 0x180   : > { %2821 = vmatpush1.bf16.msra.mxu0 %v4034_v33  ;;  %2903 = vmatpush1.bf16.msra.mxu1 %v4037_v35 }
 0x183   : > { %2823 = vmatmul.mubr.bf16.vlgmr.msra.gmra.mrb[8].mxu0 %v4531_v34  ;;  %2905 = vmatmul.mubr.bf16.vlgmr.msra.gmra.mrb[8].mxu1 %v4531_v34 }
 0x1d6   : > { %v2660_v43 = vpop.f32.mrb[4].mxu0  ;;  %v2742_v44 = vpop.f32.mrb[4].mxu1 }
 0x1d7   : > { %v3415_v34 = vadd.f32 %v2660_v43, %v460_v39  ;;  %v3417_v45 = vadd.f32 %v2742_v44, %v468_v40  ;;  %v2662_v46 = vpop.f32.mrb[5].mxu0  ;;  %v2744_v47 = vpop.f32.mrb[5].mxu1 }
 0x1d8   : > { %v3416_v48 = vadd.f32 %v2662_v46, %v464_v41  ;;  %v3418_v49 = vadd.f32 %v2744_v47, %v472_v42  ;;  %v2664_v50 = vpop.f32.mrb[6].mxu0  ;;  %v2746_v51 = vpop.f32.mrb[6].mxu1 }
 0x1d9   : > { %v2665_v54 = vpop.f32.mrb[7].mxu0  ;;  %v2747_v55 = vpop.f32.mrb[7].mxu1 }
 0x1da   : > { %v2946_v56 = vcombine.low %v3415_v34, %v3416_v48  ;;  %v2947_v57 = vcombine.low %v3417_v45, %v3418_v49 }
 0x1dc   : > { %v2954_v59 = vrot.slane %v2946_v56, %v4134_v16  ;;  %v2961_v60 = vrot.slane %v2947_v57, %v4134_v16 }
 0x1de   : > { %v2962_v61 = vcombine.low %v2954_v59, %v2961_v60 }
 0x1e0   : > { %v2964_v4 = vadd.f32 %v2962_v61, %v27_v3 }
 0x1e2   : > { %v3406_v25 = vmul.f32 -1.442695, %v2964_v4 }
 0x1e4   : > { %4042 = vpow2.f32 %v3406_v25 }
 0x1e5   : > { %4044 = vrcp.f32 %v2939_v6 }
 0x1ee   : > { %v4043_v23 = vpop.eup %4042 }
 0x1ef   : > { %v2968_v28 = vadd.f32 1.0, %v4043_v23  ;;  %v4045_v31 = vpop.eup %4044 }
 0x1f1   : > { %4046 = vrcp.f32 %v2968_v28 }
 0x1fb   : > { %v4047_v36 = vpop.eup %4046 }
 0x1fc   : > { %v2996_v37 = vsub.f32 1.0, %v4047_v36  ;;  %v2998_v38 = vmul.f32 %v4060_v2, %v4047_v36 }
 0x256   : > { %v2824_v58 = vpop.f32.mrb[8].mxu0  ;;  %v2906_v8 = vpop.f32.mrb[8].mxu1 }
 0x257   : > { %v3419_v9 = vadd.f32 %v2824_v58, %v476_v7  ;;  %v3421_v11 = vadd.f32 %v2906_v8, %v484_v29  ;;  %v2826_v12 = vpop.f32.mrb[9].mxu0  ;;  %v2908_v13 = vpop.f32.mrb[9].mxu1 }
 0x258   : > { %v3420_v17 = vadd.f32 %v2826_v12, %v480_v52  ;;  %v3422_v18 = vadd.f32 %v2908_v13, %v488_v53  ;;  %v2828_v22 = vpop.f32.mrb[10].mxu0  ;;  %v2910_v14 = vpop.f32.mrb[10].mxu1 }
 0x259   : > { %v2829_v24 = vpop.f32.mrb[11].mxu0  ;;  %v2911_v19 = vpop.f32.mrb[11].mxu1 }
 0x25a   : > { %v2975_v27 = vcombine.low %v3419_v9, %v3420_v17  ;;  %v2976_v10 = vcombine.low %v3421_v11, %v3422_v18 }
 0x25c   : > { %v2983_v20 = vrot.slane %v2975_v27, %v4134_v16  ;;  %v2990_v21 = vrot.slane %v2976_v10, %v4134_v16 }
 0x25e   : > { %v2991_v30 = vcombine.low %v2983_v20, %v2990_v21 }
 0x260   : > { %v2993_v33 = vmul.f32 %v4045_v31, %v2991_v30 }
 0x262   : > { %v2994_v35 = vadd.f32 %v2993_v33, %v28_v32 }
 0x264   : > { %4048 = vtanh.f32 %v2994_v35 }
 0x26d   :  { %20 = sbr.rel (!%p18_p0) target bundleno = 2 (0x2), region = 41 }
 0x26e   : > { %v4049_v15 = vpop.eup %4048 }
 0x26f   : > { %v2997_v39 = vmul.f32 %v4049_v15, %v2996_v37 }
 0x271   : > { %v2999_v2 = vadd.f32 %v2998_v38, %v2997_v39  }
 0x273   : > { %3003 = vst [vmem:[%s3002_s8] sm:$0xff] %v2999_v2 }

// kernel: encoder_forward.12
= control target key start
LH: loop header
LB: loop body
LE: loop exit
PB: predicated region body
PF: predicated region fallthrough
CT: control target
= control target key end

     0   :  { %8 = vsyncpa [#allocation3], 0  ;;  %s4227_s12 = smov 0   ;;  %s4381_s0 = inlined_call_operand.vmem [shape: f32[16,512], index: 0, kind: input, shape index: {}]   ;;  %s4382_s1 = inlined_call_operand.hbm [shape: bf16[512,1536], index: 1, kind: input, shape index: {}]   ;;  %s4383_s2 = inlined_call_operand.vmem [shape: f32[1,1536], index: 2, kind: input, shape index: {}]   ;;  %s4384_s3 = inlined_call_operand.vmem [shape: f32[16,1536], index: 3, kind: output, shape index: {}]  }
   0x1 LB: > { %s4233_s13 = sadd.s32 4294967295, %s4202_s12   ;;  %p3135_p0 = scmp.ge.s32.totalorder %s4202_s12, 1  ;;  %s4202_s12 = sphi %s4227_s12, %s14_s12  }
   0x2   : > { %p113_p1 = scmp.lt.s32.totalorder %s4202_s12, 3  ;;  %s4204_s14 = smov [#allocation2]  }
   0x3   : > { %s125_s15 = sshll.u32 %s4204_s14, 4  ;;  %p4385_p3 = scmp.eq.s32.totalorder %s4233_s13, 0  ;;  %s126_s15 = int_to_ptr.vmem [resolvable:$true] %s125_s15 }
   0x4   : > { %p4237_p2 = pnand %p3135_p0, %p113_p1  ;;  %s4164_s20 = scalar_lea.hbm %s4382_s1, 49152 }
   0x5   : > { %p4165_p6 = scmp.ne.s32.totalorder %s4382_s1, %s4164_s20  ;;  %p4171_p10 = scmp.lt.u32.totalorder %s4164_s20, %s4382_s1 }
   0x6   : > { %s4387_s16 = scalar_select %p4237_p2, 1, 0 }
   0x7   : > { %p3571_p4 = pneg %p4237_p2 }
   0x9   : > { %p4246_p5 = pnand %p4385_p3, %p3571_p4 }
   0xb   : > { %p4166_p7 = pneg %p4246_p5 }
   0xd   : > { %p4167_p8 = pnand %p4166_p7, %p4165_p6 }
   0xf   : > { %p4168_p9 = pneg %p4167_p8 }
  0x11   : > { %p4173_p11 = pnand %p4171_p10, %p4168_p9 }
  0x13   : > { %4176 = shalt.err (!%p4173_p11)
}
  0x14   : > { %s4177_s25 = scalar_lea.vmem %s126_s15, 49152  ;;  %p4185_p1 = scmp.lt.s32.totalorder %s126_s15, %s126_s15 }
  0x15   : > { %p4178_p12 = scmp.ne.s32.totalorder %s126_s15, %s4177_s25  ;;  %p4186_p4 = scmp.lt.s32.totalorder %s4177_s25, %s4177_s25 }
  0x17   : > { %p4180_p13 = pnand %p4178_p12, %p4166_p7  ;;  %p4187_p3 = por %p4186_p4, %p4185_p1 }
  0x19   : > { %p4181_p0 = pneg %p4180_p13 }
  0x1b   : > { %p4188_p2 = pnand %p4187_p3, %p4181_p0 }
  0x1d   : > { %4191 = shalt.err (!%p4188_p2)
}
  0x1e   : > { %s4205_s26 = smov 768   ;;  %s4206_s27 = smov 48  }
  0x1f   : > { %3574 = dma.hbm_to_vmem [thread:$0]  (!%p4246_p5), %s4382_s1, 49152, %s126_s15, [#allocation3], %s4205_s26, %s4205_s26, %s4206_s27  }
  0x20   : > { %p4389_p6 = scmp.ne.s32.totalorder %s4387_s16, 0 }
  0x21   : > { %p4390_p8 = scmp.eq.s32.totalorder (!%p4389_p6), %s4233_s13, 0 }
  0x22   : > { %152 = sbr.rel (%p4389_p6) target bundleno = 643 (0x283), region = 32 }
  0x29   : > { %4197 = dma.done.wait (%p4390_p8), [#allocation3], 49152   ;;  %p4391_p7 = pmov %p4390_p8 }
  0x2a   : > { %v3588_v0 = vld [vmem:[#allocation2 + $0x4] ss:$48 sps:$4 sm:$0xff]   ;;  %v3590_v1 = vld [vmem:[#allocation2 + $0xc] ss:$48 sps:$4 sm:$0xff]   ;;  %v3592_v2 = vld [vmem:[#allocation2] ss:$48 sps:$4 sm:$0xff]  }
  0x2b   : > { %4199 = vsyncadd (%p4391_p7), [#allocation3], 4294918144  ;;  %2562 = vmatprep.subr.bf16.mxu0 %v3588_v0  ;;  %v3593_v3 = vld [vmem:[#allocation2 + $0x8] ss:$48 sps:$4 sm:$0xff]   ;;  %2644 = vmatprep.subr.bf16.mxu1 %v3590_v1  ;;  %v3594_v4 = vld [vmem:[#allocation2 + $0x64] ss:$48 sps:$4 sm:$0xff]  }
  0x2c   : > { %2563 = vmatpush1.bf16.msra.mxu0 %v3592_v2  ;;  %2645 = vmatpush1.bf16.msra.mxu1 %v3593_v3  ;;  %v3596_v5 = vld [vmem:[#allocation2 + $0x6c] ss:$48 sps:$4 sm:$0xff]   ;;  %v3598_v6 = vld [vmem:[#allocation2 + $0x60] ss:$48 sps:$4 sm:$0xff]   ;;  %v3599_v7 = vld [vmem:[#allocation2 + $0x68] ss:$48 sps:$4 sm:$0xff]  }
  0x2d   : > { %2564 = vmatprep.subr.bf16.mxu0 %v3594_v4  ;;  %2646 = vmatprep.subr.bf16.mxu1 %v3596_v5  ;;  %v3600_v8 = vld [vmem:[#allocation2 + $0xc4] ss:$48 sps:$4 sm:$0xff]   ;;  %v3602_v9 = vld [vmem:[#allocation2 + $0xcc] ss:$48 sps:$4 sm:$0xff]   ;;  %v3604_v10 = vld [vmem:[#allocation2 + $0xc0] ss:$48 sps:$4 sm:$0xff]  }
  0x2e   : > { %v3605_v11 = vld [vmem:[#allocation2 + $0xc8] ss:$48 sps:$4 sm:$0xff]   ;;  %v3606_v12 = vld [vmem:[#allocation2 + $0x124] ss:$48 sps:$4 sm:$0xff]   ;;  %v3608_v13 = vld [vmem:[#allocation2 + $0x12c] ss:$48 sps:$4 sm:$0xff]  }
  0x2f   : > { %v3610_v14 = vld [vmem:[#allocation2 + $0x120] ss:$48 sps:$4 sm:$0xff]   ;;  %v3611_v15 = vld [vmem:[#allocation2 + $0x128] ss:$48 sps:$4 sm:$0xff]   ;;  %v3612_v16 = vld [vmem:[#allocation2 + $0x184] ss:$48 sps:$4 sm:$0xff]  }
  0x30   : > { %2565 = vmatpush1.bf16.msra.mxu0 %v3598_v6  ;;  %2647 = vmatpush1.bf16.msra.mxu1 %v3599_v7  ;;  %v3614_v17 = vld [vmem:[#allocation2 + $0x18c] ss:$48 sps:$4 sm:$0xff]   ;;  %v3616_v18 = vld [vmem:[#allocation2 + $0x180] ss:$48 sps:$4 sm:$0xff]   ;;  %v3617_v19 = vld [vmem:[#allocation2 + $0x188] ss:$48 sps:$4 sm:$0xff]  }
  0x31   : > { %2566 = vmatprep.subr.bf16.mxu0 %v3600_v8  ;;  %2648 = vmatprep.subr.bf16.mxu1 %v3602_v9  ;;  %v3618_v20 = vld [vmem:[#allocation2 + $0x1e4] ss:$48 sps:$4 sm:$0xff]   ;;  %v3620_v21 = vld [vmem:[#allocation2 + $0x1ec] ss:$48 sps:$4 sm:$0xff]   ;;  %v3622_v22 = vld [vmem:[#allocation2 + $0x1e0] ss:$48 sps:$4 sm:$0xff]  }
  0x32   : > { %v3623_v23 = vld [vmem:[#allocation2 + $0x1e8] ss:$48 sps:$4 sm:$0xff]   ;;  %v3624_v24 = vld [vmem:[#allocation2 + $0x244] ss:$48 sps:$4 sm:$0xff]   ;;  %v3626_v25 = vld [vmem:[#allocation2 + $0x24c] ss:$48 sps:$4 sm:$0xff]  }
  0x33   : > { %v3628_v26 = vld [vmem:[#allocation2 + $0x240] ss:$48 sps:$4 sm:$0xff]   ;;  %v3629_v27 = vld [vmem:[#allocation2 + $0x248] ss:$48 sps:$4 sm:$0xff]   ;;  %v3630_v28 = vld [vmem:[#allocation2 + $0x2a4] ss:$48 sps:$4 sm:$0xff]  }
  0x34   : > { %2567 = vmatpush1.bf16.msra.mxu0 %v3604_v10  ;;  %2649 = vmatpush1.bf16.msra.mxu1 %v3605_v11  ;;  %v3632_v29 = vld [vmem:[#allocation2 + $0x2ac] ss:$48 sps:$4 sm:$0xff]   ;;  %v3634_v30 = vld [vmem:[#allocation2 + $0x2a0] ss:$48 sps:$4 sm:$0xff]   ;;  %v3635_v31 = vld [vmem:[#allocation2 + $0x2a8] ss:$48 sps:$4 sm:$0xff]  }
  0x35   : > { %2568 = vmatprep.subr.bf16.mxu0 %v3606_v12  ;;  %2650 = vmatprep.subr.bf16.mxu1 %v3608_v13  ;;  %v3636_v32 = vld [vmem:[#allocation2 + $0x304] ss:$48 sps:$4 sm:$0xff]   ;;  %p176_p2 = scmp.lt.s32.totalorder %s4233_s13, 1  ;;  %v3638_v33 = vld [vmem:[#allocation2 + $0x30c] ss:$48 sps:$4 sm:$0xff]  }
  0x36   : > { %v3640_v34 = vld [vmem:[#allocation2 + $0x300] ss:$48 sps:$4 sm:$0xff]   ;;  %v3641_v35 = vld [vmem:[#allocation2 + $0x308] ss:$48 sps:$4 sm:$0xff]   ;;  %v3642_v36 = vld [vmem:[#allocation2 + $0x364] ss:$48 sps:$4 sm:$0xff]  }
  0x37   : > { %s4393_s13 = smov (!%p176_p2, %s4233_s13), 1  ;;  %v3644_v37 = vld [vmem:[#allocation2 + $0x36c] ss:$48 sps:$4 sm:$0xff]   ;;  %v3646_v38 = vld [vmem:[#allocation2 + $0x360] ss:$48 sps:$4 sm:$0xff]  }
  0x38   : > { %2569 = vmatpush1.bf16.msra.mxu0 %v3610_v14  ;;  %2651 = vmatpush1.bf16.msra.mxu1 %v3611_v15  ;;  %v3647_v39 = vld [vmem:[#allocation2 + $0x368] ss:$48 sps:$4 sm:$0xff]   ;;  %v3648_v40 = vld [vmem:[#allocation2 + $0x3c4] ss:$48 sps:$4 sm:$0xff]   ;;  %s3529_s30 = sshll.u32 %s4393_s13, 5  ;;  %s3566_s9 = smul.u32 96, %s4393_s13 }
  0x39   : > { %2570 = vmatprep.subr.bf16.mxu0 %v3612_v16  ;;  %2652 = vmatprep.subr.bf16.mxu1 %v3614_v17  ;;  %v3650_v41 = vld [vmem:[#allocation2 + $0x3cc] ss:$48 sps:$4 sm:$0xff]   ;;  %v3652_v42 = vld [vmem:[#allocation2 + $0x3c0] ss:$48 sps:$4 sm:$0xff]   ;;  %v3653_v43 = vld [vmem:[#allocation2 + $0x3c8] ss:$48 sps:$4 sm:$0xff]   ;;  %s4280_s6 = scalar_lea.vmem %s4381_s0, %s3529_s30 }
  0x3a   : > { %v3654_v44 = vld [vmem:[#allocation2 + $0x424] ss:$48 sps:$4 sm:$0xff]   ;;  %v3656_v45 = vld [vmem:[#allocation2 + $0x42c] ss:$48 sps:$4 sm:$0xff]   ;;  %v3658_v47 = vld [vmem:[#allocation2 + $0x420] ss:$48 sps:$4 sm:$0xff]   ;;  %s4343_s13 = scalar_lea.vmem %s4384_s3, %s3566_s9 }
  0x3b   : > { %v187_v46 = vld [vmem:[%s4280_s6 + $0x8] sm:$0xff]  ;;  %v3660_v50 = vld [vmem:[#allocation2 + $0x484] ss:$48 sps:$4 sm:$0xff]   ;;  %v3664_v52 = vld [vmem:[#allocation2 + $0x480] ss:$48 sps:$4 sm:$0xff]  }
  0x3c   : > { %2571 = vmatpush1.bf16.msra.mxu0 %v3616_v18  ;;  %2653 = vmatpush1.bf16.msra.mxu1 %v3617_v19  ;;  %v4283_v48 = vpack.c.bf16 %v187_v46, %v187_v46  ;;  %v3659_v49 = vld [vmem:[#allocation2 + $0x428] ss:$48 sps:$4 sm:$0xff]   ;;  %v3662_v51 = vld [vmem:[#allocation2 + $0x48c] ss:$48 sps:$4 sm:$0xff]   ;;  %v3666_v54 = vld [vmem:[#allocation2 + $0x4e4] ss:$48 sps:$4 sm:$0xff]  }
  0x3d   : > { %2572 = vmatprep.subr.bf16.mxu0 %v3618_v20  ;;  %2654 = vmatprep.subr.bf16.mxu1 %v3620_v21  ;;  %v3665_v53 = vld [vmem:[#allocation2 + $0x488] ss:$48 sps:$4 sm:$0xff]   ;;  %v3668_v55 = vld [vmem:[#allocation2 + $0x4ec] ss:$48 sps:$4 sm:$0xff]   ;;  %v3670_v56 = vld [vmem:[#allocation2 + $0x4e0] ss:$48 sps:$4 sm:$0xff]  }
  0x3e   : > { %2594 = vmatprep.mubr.bf16.mxu0 %v4283_v48  ;;  %2676 = vmatprep.mubr.bf16.mxu1 %v4283_v48  ;;  %v3671_v57 = vld [vmem:[#allocation2 + $0x4e8] ss:$48 sps:$4 sm:$0xff]   ;;  %v3672_v58 = vld [vmem:[#allocation2 + $0x544] ss:$48 sps:$4 sm:$0xff]   ;;  %v3674_v59 = vld [vmem:[#allocation2 + $0x54c] ss:$48 sps:$4 sm:$0xff]  }
  0x3f   : > { %v3676_v60 = vld [vmem:[#allocation2 + $0x540] ss:$48 sps:$4 sm:$0xff]   ;;  %v3677_v61 = vld [vmem:[#allocation2 + $0x548] ss:$48 sps:$4 sm:$0xff]   ;;  %v3678_v62 = vld [vmem:[#allocation2 + $0x5a4] ss:$48 sps:$4 sm:$0xff]  }
  0x40   : > { %2573 = vmatpush1.bf16.msra.mxu0 %v3622_v22  ;;  %2655 = vmatpush1.bf16.msra.mxu1 %v3623_v23  ;;  %v3680_v63 = vld [vmem:[#allocation2 + $0x5ac] ss:$48 sps:$4 sm:$0xff]   ;;  %v3682_v0 = vld [vmem:[#allocation2 + $0x5a0] ss:$48 sps:$4 sm:$0xff]   ;;  %v3683_v1 = vld [vmem:[#allocation2 + $0x5a8] ss:$48 sps:$4 sm:$0xff]  }
  0x41   : > { %2574 = vmatprep.subr.bf16.mxu0 %v3624_v24  ;;  %2656 = vmatprep.subr.bf16.mxu1 %v3626_v25  ;;  %v186_v2 = vld [vmem:[%s4280_s6] sm:$0xff]  ;;  %v3689_v4 = vld [vmem:[#allocation2 + $0x60c] ss:$48 sps:$4 sm:$0xff]   ;;  %v3687_v7 = vld [vmem:[#allocation2 + $0x608] ss:$48 sps:$4 sm:$0xff]  }
  0x42   : > { %v3686_v3 = vld [vmem:[#allocation2 + $0x604] ss:$48 sps:$4 sm:$0xff]   ;;  %v4288_v5 = vpack.c.bf16 %v186_v2, %v186_v2  ;;  %v3684_v6 = vld [vmem:[#allocation2 + $0x600] ss:$48 sps:$4 sm:$0xff]   ;;  %v3695_v9 = vld [vmem:[#allocation2 + $0x66c] ss:$48 sps:$4 sm:$0xff]  }
  0x43   : > { %v3692_v8 = vld [vmem:[#allocation2 + $0x664] ss:$48 sps:$4 sm:$0xff]   ;;  %v3690_v10 = vld [vmem:[#allocation2 + $0x660] ss:$48 sps:$4 sm:$0xff]   ;;  %v3693_v11 = vld [vmem:[#allocation2 + $0x668] ss:$48 sps:$4 sm:$0xff]  }
  0x44   : > { %2575 = vmatpush1.bf16.msra.mxu0 %v3628_v26  ;;  %2657 = vmatpush1.bf16.msra.mxu1 %v3629_v27  ;;  %v3698_v12 = vld [vmem:[#allocation2 + $0x6c4] ss:$48 sps:$4 sm:$0xff]   ;;  %v3701_v13 = vld [vmem:[#allocation2 + $0x6cc] ss:$48 sps:$4 sm:$0xff]   ;;  %v3696_v14 = vld [vmem:[#allocation2 + $0x6c0] ss:$48 sps:$4 sm:$0xff]  }
  0x45   : > { %2576 = vmatprep.subr.bf16.mxu0 %v3630_v28  ;;  %2658 = vmatprep.subr.bf16.mxu1 %v3632_v29  ;;  %v3699_v15 = vld [vmem:[#allocation2 + $0x6c8] ss:$48 sps:$4 sm:$0xff]   ;;  %v3704_v16 = vld [vmem:[#allocation2 + $0x724] ss:$48 sps:$4 sm:$0xff]   ;;  %v3707_v17 = vld [vmem:[#allocation2 + $0x72c] ss:$48 sps:$4 sm:$0xff]  }
  0x46   : > { %v3702_v18 = vld [vmem:[#allocation2 + $0x720] ss:$48 sps:$4 sm:$0xff]   ;;  %v3705_v19 = vld [vmem:[#allocation2 + $0x728] ss:$48 sps:$4 sm:$0xff]   ;;  %v3710_v20 = vld [vmem:[#allocation2 + $0x784] ss:$48 sps:$4 sm:$0xff]  }
  0x47   : > { %v3713_v21 = vld [vmem:[#allocation2 + $0x78c] ss:$48 sps:$4 sm:$0xff]   ;;  %v3708_v22 = vld [vmem:[#allocation2 + $0x780] ss:$48 sps:$4 sm:$0xff]   ;;  %v3711_v23 = vld [vmem:[#allocation2 + $0x788] ss:$48 sps:$4 sm:$0xff]  }
  0x48   : > { %2577 = vmatpush1.bf16.msra.mxu0 %v3634_v30  ;;  %2659 = vmatpush1.bf16.msra.mxu1 %v3635_v31  ;;  %v3716_v24 = vld [vmem:[#allocation2 + $0x7e4] ss:$48 sps:$4 sm:$0xff]   ;;  %v3719_v25 = vld [vmem:[#allocation2 + $0x7ec] ss:$48 sps:$4 sm:$0xff]   ;;  %v3714_v26 = vld [vmem:[#allocation2 + $0x7e0] ss:$48 sps:$4 sm:$0xff]  }
  0x49   : > { %2578 = vmatprep.subr.bf16.mxu0 %v3636_v32  ;;  %2660 = vmatprep.subr.bf16.mxu1 %v3638_v33  ;;  %v3717_v27 = vld [vmem:[#allocation2 + $0x7e8] ss:$48 sps:$4 sm:$0xff]   ;;  %v3722_v28 = vld [vmem:[#allocation2 + $0x844] ss:$48 sps:$4 sm:$0xff]   ;;  %v3725_v29 = vld [vmem:[#allocation2 + $0x84c] ss:$48 sps:$4 sm:$0xff]  }
  0x4a   : > { %v189_v30 = vld [vmem:[%s4280_s6 + $0x18] sm:$0xff]  ;;  %v3720_v31 = vld [vmem:[#allocation2 + $0x840] ss:$48 sps:$4 sm:$0xff]   ;;  %v3746_v46 = vld [vmem:[#allocation2 + $0x9c4] ss:$48 sps:$4 sm:$0xff]  }
  0x4b   : > { %v3723_v32 = vld [vmem:[#allocation2 + $0x848] ss:$48 sps:$4 sm:$0xff]   ;;  %v4293_v33 = vpack.c.bf16 %v189_v30, %v189_v30  ;;  %v3812_v30 = vld [vmem:[#allocation2 + $0x1f4] ss:$48 sps:$4 sm:$0xff]  }
  0x4c   : > { %2579 = vmatpush1.bf16.msra.mxu0 %v3640_v34  ;;  %2661 = vmatpush1.bf16.msra.mxu1 %v3641_v35  ;;  %v3728_v34 = vld [vmem:[#allocation2 + $0x8a4] ss:$48 sps:$4 sm:$0xff]   ;;  %v3731_v35 = vld [vmem:[#allocation2 + $0x8ac] ss:$48 sps:$4 sm:$0xff]   ;;  %v3771_v2 = vld [vmem:[#allocation2 + $0xb48] ss:$48 sps:$4 sm:$0xff]  }
  0x4d   : > { %2580 = vmatprep.subr.bf16.mxu0 %v3642_v36  ;;  %2662 = vmatprep.subr.bf16.mxu1 %v3644_v37  ;;  %v3726_v36 = vld [vmem:[#allocation2 + $0x8a0] ss:$48 sps:$4 sm:$0xff]   ;;  %v3729_v37 = vld [vmem:[#allocation2 + $0x8a8] ss:$48 sps:$4 sm:$0xff]  }
  0x50   : > { %2581 = vmatpush1.bf16.msra.mxu0 %v3646_v38  ;;  %2663 = vmatpush1.bf16.msra.mxu1 %v3647_v39  ;;  %v3734_v38 = vld [vmem:[#allocation2 + $0x904] ss:$48 sps:$4 sm:$0xff]   ;;  %v3737_v39 = vld [vmem:[#allocation2 + $0x90c] ss:$48 sps:$4 sm:$0xff]  }
  0x51   : > { %2582 = vmatprep.subr.bf16.mxu0 %v3648_v40  ;;  %2664 = vmatprep.subr.bf16.mxu1 %v3650_v41  ;;  %v3732_v40 = vld [vmem:[#allocation2 + $0x900] ss:$48 sps:$4 sm:$0xff]   ;;  %v3735_v41 = vld [vmem:[#allocation2 + $0x908] ss:$48 sps:$4 sm:$0xff]  }
  0x54   : > { %2583 = vmatpush1.bf16.msra.mxu0 %v3652_v42  ;;  %2665 = vmatpush1.bf16.msra.mxu1 %v3653_v43  ;;  %v3740_v42 = vld [vmem:[#allocation2 + $0x964] ss:$48 sps:$4 sm:$0xff]   ;;  %v3743_v43 = vld [vmem:[#allocation2 + $0x96c] ss:$48 sps:$4 sm:$0xff]  }
  0x55   : > { %2584 = vmatprep.subr.bf16.mxu0 %v3654_v44  ;;  %2666 = vmatprep.subr.bf16.mxu1 %v3656_v45  ;;  %v3738_v44 = vld [vmem:[#allocation2 + $0x960] ss:$48 sps:$4 sm:$0xff]   ;;  %v3741_v45 = vld [vmem:[#allocation2 + $0x968] ss:$48 sps:$4 sm:$0xff]  }
  0x58   : > { %2585 = vmatpush1.bf16.msra.mxu0 %v3658_v47  ;;  %2667 = vmatpush1.bf16.msra.mxu1 %v3659_v49  ;;  %v3749_v47 = vld [vmem:[#allocation2 + $0x9cc] ss:$48 sps:$4 sm:$0xff]   ;;  %v3744_v49 = vld [vmem:[#allocation2 + $0x9c0] ss:$48 sps:$4 sm:$0xff]  }
  0x59   : > { %2586 = vmatprep.subr.bf16.mxu0 %v3660_v50  ;;  %2668 = vmatprep.subr.bf16.mxu1 %v3662_v51  ;;  %v3747_v50 = vld [vmem:[#allocation2 + $0x9c8] ss:$48 sps:$4 sm:$0xff]   ;;  %v3752_v51 = vld [vmem:[#allocation2 + $0xa24] ss:$48 sps:$4 sm:$0xff]  }
  0x5c   : > { %2587 = vmatpush1.bf16.msra.mxu0 %v3664_v52  ;;  %2669 = vmatpush1.bf16.msra.mxu1 %v3665_v53  ;;  %v3755_v52 = vld [vmem:[#allocation2 + $0xa2c] ss:$48 sps:$4 sm:$0xff]   ;;  %v3750_v53 = vld [vmem:[#allocation2 + $0xa20] ss:$48 sps:$4 sm:$0xff]  }
  0x5d   : > { %2588 = vmatprep.subr.bf16.mxu0 %v3666_v54  ;;  %2670 = vmatprep.subr.bf16.mxu1 %v3668_v55  ;;  %v3753_v54 = vld [vmem:[#allocation2 + $0xa28] ss:$48 sps:$4 sm:$0xff]   ;;  %v3758_v55 = vld [vmem:[#allocation2 + $0xa84] ss:$48 sps:$4 sm:$0xff]  }
  0x60   : > { %2589 = vmatpush1.bf16.msra.mxu0 %v3670_v56  ;;  %2671 = vmatpush1.bf16.msra.mxu1 %v3671_v57  ;;  %v3761_v56 = vld [vmem:[#allocation2 + $0xa8c] ss:$48 sps:$4 sm:$0xff]   ;;  %v3756_v57 = vld [vmem:[#allocation2 + $0xa80] ss:$48 sps:$4 sm:$0xff]  }
  0x61   : > { %2590 = vmatprep.subr.bf16.mxu0 %v3672_v58  ;;  %2672 = vmatprep.subr.bf16.mxu1 %v3674_v59  ;;  %v3759_v58 = vld [vmem:[#allocation2 + $0xa88] ss:$48 sps:$4 sm:$0xff]   ;;  %v3764_v59 = vld [vmem:[#allocation2 + $0xae4] ss:$48 sps:$4 sm:$0xff]  }
  0x64   : > { %2591 = vmatpush1.bf16.msra.mxu0 %v3676_v60  ;;  %2673 = vmatpush1.bf16.msra.mxu1 %v3677_v61  ;;  %v3767_v60 = vld [vmem:[#allocation2 + $0xaec] ss:$48 sps:$4 sm:$0xff]   ;;  %v3762_v61 = vld [vmem:[#allocation2 + $0xae0] ss:$48 sps:$4 sm:$0xff]  }
  0x65   : > { %2592 = vmatprep.subr.bf16.mxu0 %v3678_v62  ;;  %2674 = vmatprep.subr.bf16.mxu1 %v3680_v63  ;;  %v3765_v62 = vld [vmem:[#allocation2 + $0xae8] ss:$48 sps:$4 sm:$0xff]   ;;  %v3770_v63 = vld [vmem:[#allocation2 + $0xb44] ss:$48 sps:$4 sm:$0xff]  }
  0x68   : > { %2593 = vmatpush1.bf16.msra.mxu0 %v3682_v0  ;;  %2675 = vmatpush1.bf16.msra.mxu1 %v3683_v1  ;;  %v3773_v0 = vld [vmem:[#allocation2 + $0xb4c] ss:$48 sps:$4 sm:$0xff]   ;;  %v3768_v1 = vld [vmem:[#allocation2 + $0xb40] ss:$48 sps:$4 sm:$0xff]  }
  0x69   : > { %2603 = vmatprep.subr.bf16.mxu0 %v3686_v3  ;;  %2685 = vmatprep.subr.bf16.mxu1 %v3689_v4  ;;  %v3776_v3 = vld [vmem:[#allocation2 + $0xba4] ss:$48 sps:$4 sm:$0xff]   ;;  %v3779_v4 = vld [vmem:[#allocation2 + $0xbac] ss:$48 sps:$4 sm:$0xff]  }
  0x6b   : > { %2595 = vmatmul.mubr.bf16.vlgmr.msra.gmra.mrb[0].mxu0 %v4288_v5  ;;  %2677 = vmatmul.mubr.bf16.vlgmr.msra.gmra.mrb[0].mxu1 %v4288_v5 }
  0x6c   : > { %2604 = vmatpush1.bf16.msra.mxu0 %v3684_v6  ;;  %2686 = vmatpush1.bf16.msra.mxu1 %v3687_v7  ;;  %v3774_v6 = vld [vmem:[#allocation2 + $0xba0] ss:$48 sps:$4 sm:$0xff]   ;;  %v3777_v7 = vld [vmem:[#allocation2 + $0xba8] ss:$48 sps:$4 sm:$0xff]  }
  0x6d   : > { %2605 = vmatprep.subr.bf16.mxu0 %v3692_v8  ;;  %2687 = vmatprep.subr.bf16.mxu1 %v3695_v9  ;;  %v188_v8 = vld [vmem:[%s4280_s6 + $0x10] sm:$0xff] }
  0x6e   : > { %2635 = vmatprep.mubr.bf16.mxu0 %v4293_v33  ;;  %2717 = vmatprep.mubr.bf16.mxu1 %v4293_v33  ;;  %v3782_v9 = vld [vmem:[#allocation2 + $0x14] ss:$48 sps:$4 sm:$0xff]  }
  0x70   : > { %2606 = vmatpush1.bf16.msra.mxu0 %v3690_v10  ;;  %2688 = vmatpush1.bf16.msra.mxu1 %v3693_v11  ;;  %v3785_v10 = vld [vmem:[#allocation2 + $0x1c] ss:$48 sps:$4 sm:$0xff]   ;;  %v4298_v11 = vpack.c.bf16 %v188_v8, %v188_v8  ;;  %v3867_v8 = vld [vmem:[#allocation2 + $0x558] ss:$48 sps:$4 sm:$0xff]  }
  0x71   : > { %2607 = vmatprep.subr.bf16.mxu0 %v3698_v12  ;;  %2689 = vmatprep.subr.bf16.mxu1 %v3701_v13  ;;  %v3780_v12 = vld [vmem:[#allocation2 + $0x10] ss:$48 sps:$4 sm:$0xff]   ;;  %v3783_v13 = vld [vmem:[#allocation2 + $0x18] ss:$48 sps:$4 sm:$0xff]  }
  0x74   : > { %2608 = vmatpush1.bf16.msra.mxu0 %v3696_v14  ;;  %2690 = vmatpush1.bf16.msra.mxu1 %v3699_v15  ;;  %v3788_v14 = vld [vmem:[#allocation2 + $0x74] ss:$48 sps:$4 sm:$0xff]   ;;  %v3791_v15 = vld [vmem:[#allocation2 + $0x7c] ss:$48 sps:$4 sm:$0xff]  }
  0x75   : > { %2609 = vmatprep.subr.bf16.mxu0 %v3704_v16  ;;  %2691 = vmatprep.subr.bf16.mxu1 %v3707_v17  ;;  %v3786_v16 = vld [vmem:[#allocation2 + $0x70] ss:$48 sps:$4 sm:$0xff]   ;;  %v3789_v17 = vld [vmem:[#allocation2 + $0x78] ss:$48 sps:$4 sm:$0xff]  }
  0x78   : > { %2610 = vmatpush1.bf16.msra.mxu0 %v3702_v18  ;;  %2692 = vmatpush1.bf16.msra.mxu1 %v3705_v19  ;;  %v3794_v18 = vld [vmem:[#allocation2 + $0xd4] ss:$48 sps:$4 sm:$0xff]   ;;  %v3797_v19 = vld [vmem:[#allocation2 + $0xdc] ss:$48 sps:$4 sm:$0xff]  }
  0x79   : > { %2611 = vmatprep.subr.bf16.mxu0 %v3710_v20  ;;  %2693 = vmatprep.subr.bf16.mxu1 %v3713_v21  ;;  %v3792_v20 = vld [vmem:[#allocation2 + $0xd0] ss:$48 sps:$4 sm:$0xff]   ;;  %v3795_v21 = vld [vmem:[#allocation2 + $0xd8] ss:$48 sps:$4 sm:$0xff]  }
  0x7c   : > { %2612 = vmatpush1.bf16.msra.mxu0 %v3708_v22  ;;  %2694 = vmatpush1.bf16.msra.mxu1 %v3711_v23  ;;  %v3800_v22 = vld [vmem:[#allocation2 + $0x134] ss:$48 sps:$4 sm:$0xff]   ;;  %v3803_v23 = vld [vmem:[#allocation2 + $0x13c] ss:$48 sps:$4 sm:$0xff]  }
  0x7d   : > { %2613 = vmatprep.subr.bf16.mxu0 %v3716_v24  ;;  %2695 = vmatprep.subr.bf16.mxu1 %v3719_v25  ;;  %v3798_v24 = vld [vmem:[#allocation2 + $0x130] ss:$48 sps:$4 sm:$0xff]   ;;  %v3801_v25 = vld [vmem:[#allocation2 + $0x138] ss:$48 sps:$4 sm:$0xff]  }
  0x80   : > { %2614 = vmatpush1.bf16.msra.mxu0 %v3714_v26  ;;  %2696 = vmatpush1.bf16.msra.mxu1 %v3717_v27  ;;  %v3806_v26 = vld [vmem:[#allocation2 + $0x194] ss:$48 sps:$4 sm:$0xff]   ;;  %v3809_v27 = vld [vmem:[#allocation2 + $0x19c] ss:$48 sps:$4 sm:$0xff]  }
  0x81   : > { %2615 = vmatprep.subr.bf16.mxu0 %v3722_v28  ;;  %2697 = vmatprep.subr.bf16.mxu1 %v3725_v29  ;;  %v3804_v28 = vld [vmem:[#allocation2 + $0x190] ss:$48 sps:$4 sm:$0xff]   ;;  %v3807_v29 = vld [vmem:[#allocation2 + $0x198] ss:$48 sps:$4 sm:$0xff]  }
  0x84   : > { %2616 = vmatpush1.bf16.msra.mxu0 %v3720_v31  ;;  %2698 = vmatpush1.bf16.msra.mxu1 %v3723_v32  ;;  %v3815_v31 = vld [vmem:[#allocation2 + $0x1fc] ss:$48 sps:$4 sm:$0xff]   ;;  %v3810_v32 = vld [vmem:[#allocation2 + $0x1f0] ss:$48 sps:$4 sm:$0xff]  }
  0x85   : > { %2617 = vmatprep.subr.bf16.mxu0 %v3728_v34  ;;  %2699 = vmatprep.subr.bf16.mxu1 %v3731_v35  ;;  %v3813_v34 = vld [vmem:[#allocation2 + $0x1f8] ss:$48 sps:$4 sm:$0xff]   ;;  %v3818_v35 = vld [vmem:[#allocation2 + $0x254] ss:$48 sps:$4 sm:$0xff]  }
  0x88   : > { %2618 = vmatpush1.bf16.msra.mxu0 %v3726_v36  ;;  %2700 = vmatpush1.bf16.msra.mxu1 %v3729_v37  ;;  %v3821_v36 = vld [vmem:[#allocation2 + $0x25c] ss:$48 sps:$4 sm:$0xff]   ;;  %v3816_v37 = vld [vmem:[#allocation2 + $0x250] ss:$48 sps:$4 sm:$0xff]  }
  0x89   : > { %2619 = vmatprep.subr.bf16.mxu0 %v3734_v38  ;;  %2701 = vmatprep.subr.bf16.mxu1 %v3737_v39  ;;  %v3819_v38 = vld [vmem:[#allocation2 + $0x258] ss:$48 sps:$4 sm:$0xff]   ;;  %v3824_v39 = vld [vmem:[#allocation2 + $0x2b4] ss:$48 sps:$4 sm:$0xff]  }
  0x8c   : > { %2620 = vmatpush1.bf16.msra.mxu0 %v3732_v40  ;;  %2702 = vmatpush1.bf16.msra.mxu1 %v3735_v41  ;;  %v3827_v40 = vld [vmem:[#allocation2 + $0x2bc] ss:$48 sps:$4 sm:$0xff]   ;;  %v3822_v41 = vld [vmem:[#allocation2 + $0x2b0] ss:$48 sps:$4 sm:$0xff]  }
  0x8d   : > { %2621 = vmatprep.subr.bf16.mxu0 %v3740_v42  ;;  %2703 = vmatprep.subr.bf16.mxu1 %v3743_v43  ;;  %v3825_v42 = vld [vmem:[#allocation2 + $0x2b8] ss:$48 sps:$4 sm:$0xff]   ;;  %v3830_v43 = vld [vmem:[#allocation2 + $0x314] ss:$48 sps:$4 sm:$0xff]  }
  0x90   : > { %2622 = vmatpush1.bf16.msra.mxu0 %v3738_v44  ;;  %2704 = vmatpush1.bf16.msra.mxu1 %v3741_v45  ;;  %v3833_v44 = vld [vmem:[#allocation2 + $0x31c] ss:$48 sps:$4 sm:$0xff]   ;;  %v3828_v45 = vld [vmem:[#allocation2 + $0x310] ss:$48 sps:$4 sm:$0xff]  }
  0x91   : > { %2623 = vmatprep.subr.bf16.mxu0 %v3746_v46  ;;  %2705 = vmatprep.subr.bf16.mxu1 %v3749_v47  ;;  %v3831_v46 = vld [vmem:[#allocation2 + $0x318] ss:$48 sps:$4 sm:$0xff]   ;;  %v3836_v47 = vld [vmem:[#allocation2 + $0x374] ss:$48 sps:$4 sm:$0xff]  }
  0x94   : > { %2624 = vmatpush1.bf16.msra.mxu0 %v3744_v49  ;;  %2706 = vmatpush1.bf16.msra.mxu1 %v3747_v50  ;;  %v3839_v49 = vld [vmem:[#allocation2 + $0x37c] ss:$48 sps:$4 sm:$0xff]   ;;  %v3834_v50 = vld [vmem:[#allocation2 + $0x370] ss:$48 sps:$4 sm:$0xff]  }
  0x95   : > { %2625 = vmatprep.subr.bf16.mxu0 %v3752_v51  ;;  %2707 = vmatprep.subr.bf16.mxu1 %v3755_v52  ;;  %v3837_v51 = vld [vmem:[#allocation2 + $0x378] ss:$48 sps:$4 sm:$0xff]   ;;  %v3842_v52 = vld [vmem:[#allocation2 + $0x3d4] ss:$48 sps:$4 sm:$0xff]  }
  0x98   : > { %2626 = vmatpush1.bf16.msra.mxu0 %v3750_v53  ;;  %2708 = vmatpush1.bf16.msra.mxu1 %v3753_v54  ;;  %v3845_v53 = vld [vmem:[#allocation2 + $0x3dc] ss:$48 sps:$4 sm:$0xff]   ;;  %v3840_v54 = vld [vmem:[#allocation2 + $0x3d0] ss:$48 sps:$4 sm:$0xff]  }
  0x99   : > { %2627 = vmatprep.subr.bf16.mxu0 %v3758_v55  ;;  %2709 = vmatprep.subr.bf16.mxu1 %v3761_v56  ;;  %v3843_v55 = vld [vmem:[#allocation2 + $0x3d8] ss:$48 sps:$4 sm:$0xff]   ;;  %v3848_v56 = vld [vmem:[#allocation2 + $0x434] ss:$48 sps:$4 sm:$0xff]  }
  0x9c   : > { %2628 = vmatpush1.bf16.msra.mxu0 %v3756_v57  ;;  %2710 = vmatpush1.bf16.msra.mxu1 %v3759_v58  ;;  %v3851_v57 = vld [vmem:[#allocation2 + $0x43c] ss:$48 sps:$4 sm:$0xff]   ;;  %v3846_v58 = vld [vmem:[#allocation2 + $0x430] ss:$48 sps:$4 sm:$0xff]  }
  0x9d   : > { %2629 = vmatprep.subr.bf16.mxu0 %v3764_v59  ;;  %2711 = vmatprep.subr.bf16.mxu1 %v3767_v60  ;;  %v3849_v59 = vld [vmem:[#allocation2 + $0x438] ss:$48 sps:$4 sm:$0xff]   ;;  %v3854_v60 = vld [vmem:[#allocation2 + $0x494] ss:$48 sps:$4 sm:$0xff]  }
  0xa0   : > { %2630 = vmatpush1.bf16.msra.mxu0 %v3762_v61  ;;  %2712 = vmatpush1.bf16.msra.mxu1 %v3765_v62  ;;  %v3857_v61 = vld [vmem:[#allocation2 + $0x49c] ss:$48 sps:$4 sm:$0xff]   ;;  %v3852_v62 = vld [vmem:[#allocation2 + $0x490] ss:$48 sps:$4 sm:$0xff]  }
  0xa1   : > { %2631 = vmatprep.subr.bf16.mxu0 %v3770_v63  ;;  %2713 = vmatprep.subr.bf16.mxu1 %v3773_v0  ;;  %v3855_v63 = vld [vmem:[#allocation2 + $0x498] ss:$48 sps:$4 sm:$0xff]   ;;  %v3860_v0 = vld [vmem:[#allocation2 + $0x4f4] ss:$48 sps:$4 sm:$0xff]  }
  0xa4   : > { %2632 = vmatpush1.bf16.msra.mxu0 %v3768_v1  ;;  %2714 = vmatpush1.bf16.msra.mxu1 %v3771_v2  ;;  %v3863_v1 = vld [vmem:[#allocation2 + $0x4fc] ss:$48 sps:$4 sm:$0xff]   ;;  %v3858_v2 = vld [vmem:[#allocation2 + $0x4f0] ss:$48 sps:$4 sm:$0xff]  }
  0xa5   : > { %2633 = vmatprep.subr.bf16.mxu0 %v3776_v3  ;;  %2715 = vmatprep.subr.bf16.mxu1 %v3779_v4  ;;  %v3861_v3 = vld [vmem:[#allocation2 + $0x4f8] ss:$48 sps:$4 sm:$0xff]   ;;  %v3866_v4 = vld [vmem:[#allocation2 + $0x554] ss:$48 sps:$4 sm:$0xff]  }
  0xa8   : > { %2634 = vmatpush1.bf16.msra.mxu0 %v3774_v6  ;;  %2716 = vmatpush1.bf16.msra.mxu1 %v3777_v7  ;;  %v3869_v6 = vld [vmem:[#allocation2 + $0x55c] ss:$48 sps:$4 sm:$0xff]   ;;  %v3864_v7 = vld [vmem:[#allocation2 + $0x550] ss:$48 sps:$4 sm:$0xff]  }
  0xa9   : > { %2726 = vmatprep.subr.bf16.mxu0 %v3782_v9  ;;  %2808 = vmatprep.subr.bf16.mxu1 %v3785_v10  ;;  %v3872_v9 = vld [vmem:[#allocation2 + $0x5b4] ss:$48 sps:$4 sm:$0xff]   ;;  %v3875_v10 = vld [vmem:[#allocation2 + $0x5bc] ss:$48 sps:$4 sm:$0xff]  }
  0xab   : > { %2636 = vmatmul.mubr.bf16.vlgmr.msra.gmra.mrb[0].mxu0 %v4298_v11  ;;  %2718 = vmatmul.mubr.bf16.vlgmr.msra.gmra.mrb[0].mxu1 %v4298_v11 }
  0xac   : > { %2727 = vmatpush1.bf16.msra.mxu0 %v3780_v12  ;;  %2809 = vmatpush1.bf16.msra.mxu1 %v3783_v13  ;;  %v3870_v12 = vld [vmem:[#allocation2 + $0x5b0] ss:$48 sps:$4 sm:$0xff]   ;;  %v3873_v13 = vld [vmem:[#allocation2 + $0x5b8] ss:$48 sps:$4 sm:$0xff]  }
  0xad   : > { %2728 = vmatprep.subr.bf16.mxu0 %v3788_v14  ;;  %2810 = vmatprep.subr.bf16.mxu1 %v3791_v15  ;;  %v3878_v14 = vld [vmem:[#allocation2 + $0x614] ss:$48 sps:$4 sm:$0xff]   ;;  %v3881_v15 = vld [vmem:[#allocation2 + $0x61c] ss:$48 sps:$4 sm:$0xff]  }
  0xae   : > { %2758 = vmatprep.mubr.bf16.mxu0 %v4283_v48  ;;  %2840 = vmatprep.mubr.bf16.mxu1 %v4283_v48 }
  0xb0   : > { %2729 = vmatpush1.bf16.msra.mxu0 %v3786_v16  ;;  %2811 = vmatpush1.bf16.msra.mxu1 %v3789_v17  ;;  %v3876_v16 = vld [vmem:[#allocation2 + $0x610] ss:$48 sps:$4 sm:$0xff]   ;;  %v3879_v17 = vld [vmem:[#allocation2 + $0x618] ss:$48 sps:$4 sm:$0xff]  }
  0xb1   : > { %2730 = vmatprep.subr.bf16.mxu0 %v3794_v18  ;;  %2812 = vmatprep.subr.bf16.mxu1 %v3797_v19  ;;  %v3884_v18 = vld [vmem:[#allocation2 + $0x674] ss:$48 sps:$4 sm:$0xff]   ;;  %v3887_v19 = vld [vmem:[#allocation2 + $0x67c] ss:$48 sps:$4 sm:$0xff]  }
  0xb4   : > { %2731 = vmatpush1.bf16.msra.mxu0 %v3792_v20  ;;  %2813 = vmatpush1.bf16.msra.mxu1 %v3795_v21  ;;  %v3882_v20 = vld [vmem:[#allocation2 + $0x670] ss:$48 sps:$4 sm:$0xff]   ;;  %v3885_v21 = vld [vmem:[#allocation2 + $0x678] ss:$48 sps:$4 sm:$0xff]  }
  0xb5   : > { %2732 = vmatprep.subr.bf16.mxu0 %v3800_v22  ;;  %2814 = vmatprep.subr.bf16.mxu1 %v3803_v23  ;;  %v3890_v22 = vld [vmem:[#allocation2 + $0x6d4] ss:$48 sps:$4 sm:$0xff]   ;;  %v3893_v23 = vld [vmem:[#allocation2 + $0x6dc] ss:$48 sps:$4 sm:$0xff]  }
  0xb8   : > { %2733 = vmatpush1.bf16.msra.mxu0 %v3798_v24  ;;  %2815 = vmatpush1.bf16.msra.mxu1 %v3801_v25  ;;  %v3888_v24 = vld [vmem:[#allocation2 + $0x6d0] ss:$48 sps:$4 sm:$0xff]   ;;  %v3891_v25 = vld [vmem:[#allocation2 + $0x6d8] ss:$48 sps:$4 sm:$0xff]  }
  0xb9   : > { %2734 = vmatprep.subr.bf16.mxu0 %v3806_v26  ;;  %2816 = vmatprep.subr.bf16.mxu1 %v3809_v27  ;;  %v3896_v26 = vld [vmem:[#allocation2 + $0x734] ss:$48 sps:$4 sm:$0xff]   ;;  %v3899_v27 = vld [vmem:[#allocation2 + $0x73c] ss:$48 sps:$4 sm:$0xff]  }
  0xbc   : > { %2735 = vmatpush1.bf16.msra.mxu0 %v3804_v28  ;;  %2817 = vmatpush1.bf16.msra.mxu1 %v3807_v29  ;;  %v3894_v28 = vld [vmem:[#allocation2 + $0x730] ss:$48 sps:$4 sm:$0xff]   ;;  %v3897_v29 = vld [vmem:[#allocation2 + $0x738] ss:$48 sps:$4 sm:$0xff]  }
  0xbd   : > { %2736 = vmatprep.subr.bf16.mxu0 %v3812_v30  ;;  %2818 = vmatprep.subr.bf16.mxu1 %v3815_v31  ;;  %v3902_v30 = vld [vmem:[#allocation2 + $0x794] ss:$48 sps:$4 sm:$0xff]   ;;  %v3905_v31 = vld [vmem:[#allocation2 + $0x79c] ss:$48 sps:$4 sm:$0xff]  }
  0xc0   : > { %2737 = vmatpush1.bf16.msra.mxu0 %v3810_v32  ;;  %2819 = vmatpush1.bf16.msra.mxu1 %v3813_v34  ;;  %v3900_v32 = vld [vmem:[#allocation2 + $0x790] ss:$48 sps:$4 sm:$0xff]   ;;  %v3903_v34 = vld [vmem:[#allocation2 + $0x798] ss:$48 sps:$4 sm:$0xff]  }
  0xc1   : > { %2738 = vmatprep.subr.bf16.mxu0 %v3818_v35  ;;  %2820 = vmatprep.subr.bf16.mxu1 %v3821_v36  ;;  %v3908_v35 = vld [vmem:[#allocation2 + $0x7f4] ss:$48 sps:$4 sm:$0xff]   ;;  %v3911_v36 = vld [vmem:[#allocation2 + $0x7fc] ss:$48 sps:$4 sm:$0xff]  }
  0xc4   : > { %2739 = vmatpush1.bf16.msra.mxu0 %v3816_v37  ;;  %2821 = vmatpush1.bf16.msra.mxu1 %v3819_v38  ;;  %v3906_v37 = vld [vmem:[#allocation2 + $0x7f0] ss:$48 sps:$4 sm:$0xff]   ;;  %v3909_v38 = vld [vmem:[#allocation2 + $0x7f8] ss:$48 sps:$4 sm:$0xff]  }
  0xc5   : > { %2740 = vmatprep.subr.bf16.mxu0 %v3824_v39  ;;  %2822 = vmatprep.subr.bf16.mxu1 %v3827_v40  ;;  %v3914_v39 = vld [vmem:[#allocation2 + $0x854] ss:$48 sps:$4 sm:$0xff]   ;;  %v3917_v40 = vld [vmem:[#allocation2 + $0x85c] ss:$48 sps:$4 sm:$0xff]  }
  0xc8   : > { %2741 = vmatpush1.bf16.msra.mxu0 %v3822_v41  ;;  %2823 = vmatpush1.bf16.msra.mxu1 %v3825_v42  ;;  %v3912_v41 = vld [vmem:[#allocation2 + $0x850] ss:$48 sps:$4 sm:$0xff]   ;;  %v3915_v42 = vld [vmem:[#allocation2 + $0x858] ss:$48 sps:$4 sm:$0xff]  }
  0xc9   : > { %2742 = vmatprep.subr.bf16.mxu0 %v3830_v43  ;;  %2824 = vmatprep.subr.bf16.mxu1 %v3833_v44  ;;  %v3920_v43 = vld [vmem:[#allocation2 + $0x8b4] ss:$48 sps:$4 sm:$0xff]   ;;  %v3923_v44 = vld [vmem:[#allocation2 + $0x8bc] ss:$48 sps:$4 sm:$0xff]  }
  0xcc   : > { %2743 = vmatpush1.bf16.msra.mxu0 %v3828_v45  ;;  %2825 = vmatpush1.bf16.msra.mxu1 %v3831_v46  ;;  %v3918_v45 = vld [vmem:[#allocation2 + $0x8b0] ss:$48 sps:$4 sm:$0xff]   ;;  %v3921_v46 = vld [vmem:[#allocation2 + $0x8b8] ss:$48 sps:$4 sm:$0xff]  }
  0xcd   : > { %2744 = vmatprep.subr.bf16.mxu0 %v3836_v47  ;;  %2826 = vmatprep.subr.bf16.mxu1 %v3839_v49  ;;  %v3926_v47 = vld [vmem:[#allocation2 + $0x914] ss:$48 sps:$4 sm:$0xff]   ;;  %v3929_v49 = vld [vmem:[#allocation2 + $0x91c] ss:$48 sps:$4 sm:$0xff]  }
  0xd0   : > { %2745 = vmatpush1.bf16.msra.mxu0 %v3834_v50  ;;  %2827 = vmatpush1.bf16.msra.mxu1 %v3837_v51  ;;  %v3924_v50 = vld [vmem:[#allocation2 + $0x910] ss:$48 sps:$4 sm:$0xff]   ;;  %v3927_v51 = vld [vmem:[#allocation2 + $0x918] ss:$48 sps:$4 sm:$0xff]  }
  0xd1   : > { %2746 = vmatprep.subr.bf16.mxu0 %v3842_v52  ;;  %2828 = vmatprep.subr.bf16.mxu1 %v3845_v53  ;;  %v3932_v52 = vld [vmem:[#allocation2 + $0x974] ss:$48 sps:$4 sm:$0xff]   ;;  %v3935_v53 = vld [vmem:[#allocation2 + $0x97c] ss:$48 sps:$4 sm:$0xff]  }
  0xd4   : > { %2747 = vmatpush1.bf16.msra.mxu0 %v3840_v54  ;;  %2829 = vmatpush1.bf16.msra.mxu1 %v3843_v55  ;;  %v3930_v54 = vld [vmem:[#allocation2 + $0x970] ss:$48 sps:$4 sm:$0xff]   ;;  %v3933_v55 = vld [vmem:[#allocation2 + $0x978] ss:$48 sps:$4 sm:$0xff]  }
  0xd5   : > { %2748 = vmatprep.subr.bf16.mxu0 %v3848_v56  ;;  %2830 = vmatprep.subr.bf16.mxu1 %v3851_v57  ;;  %v3938_v56 = vld [vmem:[#allocation2 + $0x9d4] ss:$48 sps:$4 sm:$0xff]   ;;  %v3941_v57 = vld [vmem:[#allocation2 + $0x9dc] ss:$48 sps:$4 sm:$0xff]  }
  0xd8   : > { %2749 = vmatpush1.bf16.msra.mxu0 %v3846_v58  ;;  %2831 = vmatpush1.bf16.msra.mxu1 %v3849_v59  ;;  %v3936_v58 = vld [vmem:[#allocation2 + $0x9d0] ss:$48 sps:$4 sm:$0xff]   ;;  %v3939_v59 = vld [vmem:[#allocation2 + $0x9d8] ss:$48 sps:$4 sm:$0xff]  }
  0xd9   : > { %2750 = vmatprep.subr.bf16.mxu0 %v3854_v60  ;;  %2832 = vmatprep.subr.bf16.mxu1 %v3857_v61  ;;  %v3944_v60 = vld [vmem:[#allocation2 + $0xa34] ss:$48 sps:$4 sm:$0xff]   ;;  %v3947_v61 = vld [vmem:[#allocation2 + $0xa3c] ss:$48 sps:$4 sm:$0xff]  }
  0xdc   : > { %2751 = vmatpush1.bf16.msra.mxu0 %v3852_v62  ;;  %2833 = vmatpush1.bf16.msra.mxu1 %v3855_v63  ;;  %v3942_v62 = vld [vmem:[#allocation2 + $0xa30] ss:$48 sps:$4 sm:$0xff]   ;;  %v3945_v63 = vld [vmem:[#allocation2 + $0xa38] ss:$48 sps:$4 sm:$0xff]  }
  0xdd   : > { %2752 = vmatprep.subr.bf16.mxu0 %v3860_v0  ;;  %2834 = vmatprep.subr.bf16.mxu1 %v3863_v1  ;;  %v3950_v0 = vld [vmem:[#allocation2 + $0xa94] ss:$48 sps:$4 sm:$0xff]   ;;  %v3953_v1 = vld [vmem:[#allocation2 + $0xa9c] ss:$48 sps:$4 sm:$0xff]  }
  0xe0   : > { %2753 = vmatpush1.bf16.msra.mxu0 %v3858_v2  ;;  %2835 = vmatpush1.bf16.msra.mxu1 %v3861_v3  ;;  %v3948_v2 = vld [vmem:[#allocation2 + $0xa90] ss:$48 sps:$4 sm:$0xff]   ;;  %v3951_v3 = vld [vmem:[#allocation2 + $0xa98] ss:$48 sps:$4 sm:$0xff]  }
  0xe1   : > { %2754 = vmatprep.subr.bf16.mxu0 %v3866_v4  ;;  %2836 = vmatprep.subr.bf16.mxu1 %v3869_v6  ;;  %v3956_v4 = vld [vmem:[#allocation2 + $0xaf4] ss:$48 sps:$4 sm:$0xff]   ;;  %v3959_v6 = vld [vmem:[#allocation2 + $0xafc] ss:$48 sps:$4 sm:$0xff]  }
  0xe4   : > { %2755 = vmatpush1.bf16.msra.mxu0 %v3864_v7  ;;  %2837 = vmatpush1.bf16.msra.mxu1 %v3867_v8  ;;  %v3954_v7 = vld [vmem:[#allocation2 + $0xaf0] ss:$48 sps:$4 sm:$0xff]   ;;  %v3957_v8 = vld [vmem:[#allocation2 + $0xaf8] ss:$48 sps:$4 sm:$0xff]  }
  0xe5   : > { %2756 = vmatprep.subr.bf16.mxu0 %v3872_v9  ;;  %2838 = vmatprep.subr.bf16.mxu1 %v3875_v10  ;;  %v3962_v9 = vld [vmem:[#allocation2 + $0xb54] ss:$48 sps:$4 sm:$0xff]   ;;  %v3965_v10 = vld [vmem:[#allocation2 + $0xb5c] ss:$48 sps:$4 sm:$0xff]  }
  0xe8   : > { %2757 = vmatpush1.bf16.msra.mxu0 %v3870_v12  ;;  %2839 = vmatpush1.bf16.msra.mxu1 %v3873_v13  ;;  %v3960_v12 = vld [vmem:[#allocation2 + $0xb50] ss:$48 sps:$4 sm:$0xff]   ;;  %v3963_v13 = vld [vmem:[#allocation2 + $0xb58] ss:$48 sps:$4 sm:$0xff]  }
  0xe9   : > { %2767 = vmatprep.subr.bf16.mxu0 %v3878_v14  ;;  %2849 = vmatprep.subr.bf16.mxu1 %v3881_v15  ;;  %v3968_v14 = vld [vmem:[#allocation2 + $0xbb4] ss:$48 sps:$4 sm:$0xff]   ;;  %v3971_v15 = vld [vmem:[#allocation2 + $0xbbc] ss:$48 sps:$4 sm:$0xff]  }
  0xeb   : > { %2759 = vmatmul.mubr.bf16.vlgmr.msra.gmra.mrb[4].mxu0 %v4288_v5  ;;  %2841 = vmatmul.mubr.bf16.vlgmr.msra.gmra.mrb[4].mxu1 %v4288_v5 }
  0xec   : > { %2768 = vmatpush1.bf16.msra.mxu0 %v3876_v16  ;;  %2850 = vmatpush1.bf16.msra.mxu1 %v3879_v17  ;;  %v3966_v16 = vld [vmem:[#allocation2 + $0xbb0] ss:$48 sps:$4 sm:$0xff]   ;;  %v3969_v17 = vld [vmem:[#allocation2 + $0xbb8] ss:$48 sps:$4 sm:$0xff]  }
  0xed   : > { %2769 = vmatprep.subr.bf16.mxu0 %v3884_v18  ;;  %2851 = vmatprep.subr.bf16.mxu1 %v3887_v19  ;;  %v3974_v18 = vld [vmem:[#allocation2 + $0x24] ss:$48 sps:$4 sm:$0xff]   ;;  %v3977_v19 = vld [vmem:[#allocation2 + $0x2c] ss:$48 sps:$4 sm:$0xff]  }
  0xee   : > { %2799 = vmatprep.mubr.bf16.mxu0 %v4293_v33  ;;  %2881 = vmatprep.mubr.bf16.mxu1 %v4293_v33 }
  0xf0   : > { %2770 = vmatpush1.bf16.msra.mxu0 %v3882_v20  ;;  %2852 = vmatpush1.bf16.msra.mxu1 %v3885_v21  ;;  %v3972_v20 = vld [vmem:[#allocation2 + $0x20] ss:$48 sps:$4 sm:$0xff]   ;;  %v3975_v21 = vld [vmem:[#allocation2 + $0x28] ss:$48 sps:$4 sm:$0xff]  }
  0xf1   : > { %2771 = vmatprep.subr.bf16.mxu0 %v3890_v22  ;;  %2853 = vmatprep.subr.bf16.mxu1 %v3893_v23  ;;  %v3980_v22 = vld [vmem:[#allocation2 + $0x84] ss:$48 sps:$4 sm:$0xff]   ;;  %v3983_v23 = vld [vmem:[#allocation2 + $0x8c] ss:$48 sps:$4 sm:$0xff]  }
  0xf4   : > { %2772 = vmatpush1.bf16.msra.mxu0 %v3888_v24  ;;  %2854 = vmatpush1.bf16.msra.mxu1 %v3891_v25  ;;  %v3978_v24 = vld [vmem:[#allocation2 + $0x80] ss:$48 sps:$4 sm:$0xff]   ;;  %v3981_v25 = vld [vmem:[#allocation2 + $0x88] ss:$48 sps:$4 sm:$0xff]  }
  0xf5   : > { %2773 = vmatprep.subr.bf16.mxu0 %v3896_v26  ;;  %2855 = vmatprep.subr.bf16.mxu1 %v3899_v27  ;;  %v3986_v26 = vld [vmem:[#allocation2 + $0xe4] ss:$48 sps:$4 sm:$0xff]   ;;  %v3989_v27 = vld [vmem:[#allocation2 + $0xec] ss:$48 sps:$4 sm:$0xff]  }
  0xf8   : > { %2774 = vmatpush1.bf16.msra.mxu0 %v3894_v28  ;;  %2856 = vmatpush1.bf16.msra.mxu1 %v3897_v29  ;;  %v3984_v28 = vld [vmem:[#allocation2 + $0xe0] ss:$48 sps:$4 sm:$0xff]   ;;  %v3987_v29 = vld [vmem:[#allocation2 + $0xe8] ss:$48 sps:$4 sm:$0xff]  }
  0xf9   : > { %2775 = vmatprep.subr.bf16.mxu0 %v3902_v30  ;;  %2857 = vmatprep.subr.bf16.mxu1 %v3905_v31  ;;  %v3992_v30 = vld [vmem:[#allocation2 + $0x144] ss:$48 sps:$4 sm:$0xff]   ;;  %v3995_v31 = vld [vmem:[#allocation2 + $0x14c] ss:$48 sps:$4 sm:$0xff]  }
  0xfc   : > { %2776 = vmatpush1.bf16.msra.mxu0 %v3900_v32  ;;  %2858 = vmatpush1.bf16.msra.mxu1 %v3903_v34  ;;  %v3990_v32 = vld [vmem:[#allocation2 + $0x140] ss:$48 sps:$4 sm:$0xff]   ;;  %v3993_v34 = vld [vmem:[#allocation2 + $0x148] ss:$48 sps:$4 sm:$0xff]  }
  0xfd   : > { %2777 = vmatprep.subr.bf16.mxu0 %v3908_v35  ;;  %2859 = vmatprep.subr.bf16.mxu1 %v3911_v36  ;;  %v3998_v35 = vld [vmem:[#allocation2 + $0x1a4] ss:$48 sps:$4 sm:$0xff]   ;;  %v4001_v36 = vld [vmem:[#allocation2 + $0x1ac] ss:$48 sps:$4 sm:$0xff]  }
 0x100   : > { %2778 = vmatpush1.bf16.msra.mxu0 %v3906_v37  ;;  %2860 = vmatpush1.bf16.msra.mxu1 %v3909_v38  ;;  %v3996_v37 = vld [vmem:[#allocation2 + $0x1a0] ss:$48 sps:$4 sm:$0xff]   ;;  %v4004_v38 = vld [vmem:[#allocation2 + $0x204] ss:$48 sps:$4 sm:$0xff]  }
 0x101   : > { %2779 = vmatprep.subr.bf16.mxu0 %v3914_v39  ;;  %2861 = vmatprep.subr.bf16.mxu1 %v3917_v40  ;;  %v4007_v39 = vld [vmem:[#allocation2 + $0x20c] ss:$48 sps:$4 sm:$0xff]   ;;  %v4002_v40 = vld [vmem:[#allocation2 + $0x200] ss:$48 sps:$4 sm:$0xff]  }
 0x104   : > { %2780 = vmatpush1.bf16.msra.mxu0 %v3912_v41  ;;  %2862 = vmatpush1.bf16.msra.mxu1 %v3915_v42  ;;  %v4005_v41 = vld [vmem:[#allocation2 + $0x208] ss:$48 sps:$4 sm:$0xff]   ;;  %v4010_v42 = vld [vmem:[#allocation2 + $0x264] ss:$48 sps:$4 sm:$0xff]  }
 0x105   : > { %2781 = vmatprep.subr.bf16.mxu0 %v3920_v43  ;;  %2863 = vmatprep.subr.bf16.mxu1 %v3923_v44  ;;  %v4013_v43 = vld [vmem:[#allocation2 + $0x26c] ss:$48 sps:$4 sm:$0xff]   ;;  %v4008_v44 = vld [vmem:[#allocation2 + $0x260] ss:$48 sps:$4 sm:$0xff]  }
 0x108   : > { %2782 = vmatpush1.bf16.msra.mxu0 %v3918_v45  ;;  %2864 = vmatpush1.bf16.msra.mxu1 %v3921_v46  ;;  %v4011_v45 = vld [vmem:[#allocation2 + $0x268] ss:$48 sps:$4 sm:$0xff]   ;;  %v4016_v46 = vld [vmem:[#allocation2 + $0x2c4] ss:$48 sps:$4 sm:$0xff]  }
 0x109   : > { %2783 = vmatprep.subr.bf16.mxu0 %v3926_v47  ;;  %2865 = vmatprep.subr.bf16.mxu1 %v3929_v49  ;;  %v4019_v47 = vld [vmem:[#allocation2 + $0x2cc] ss:$48 sps:$4 sm:$0xff]   ;;  %v4014_v49 = vld [vmem:[#allocation2 + $0x2c0] ss:$48 sps:$4 sm:$0xff]  }
 0x10c   : > { %2784 = vmatpush1.bf16.msra.mxu0 %v3924_v50  ;;  %2866 = vmatpush1.bf16.msra.mxu1 %v3927_v51  ;;  %v4017_v50 = vld [vmem:[#allocation2 + $0x2c8] ss:$48 sps:$4 sm:$0xff]   ;;  %v4022_v51 = vld [vmem:[#allocation2 + $0x324] ss:$48 sps:$4 sm:$0xff]  }
 0x10d   : > { %2785 = vmatprep.subr.bf16.mxu0 %v3932_v52  ;;  %2867 = vmatprep.subr.bf16.mxu1 %v3935_v53  ;;  %v4025_v52 = vld [vmem:[#allocation2 + $0x32c] ss:$48 sps:$4 sm:$0xff]   ;;  %v4020_v53 = vld [vmem:[#allocation2 + $0x320] ss:$48 sps:$4 sm:$0xff]  }
 0x110   : > { %2786 = vmatpush1.bf16.msra.mxu0 %v3930_v54  ;;  %2868 = vmatpush1.bf16.msra.mxu1 %v3933_v55  ;;  %v4023_v54 = vld [vmem:[#allocation2 + $0x328] ss:$48 sps:$4 sm:$0xff]   ;;  %v4028_v55 = vld [vmem:[#allocation2 + $0x384] ss:$48 sps:$4 sm:$0xff]  }
 0x111   : > { %2787 = vmatprep.subr.bf16.mxu0 %v3938_v56  ;;  %2869 = vmatprep.subr.bf16.mxu1 %v3941_v57  ;;  %v4031_v56 = vld [vmem:[#allocation2 + $0x38c] ss:$48 sps:$4 sm:$0xff]   ;;  %v4026_v57 = vld [vmem:[#allocation2 + $0x380] ss:$48 sps:$4 sm:$0xff]  }
 0x114   : > { %2788 = vmatpush1.bf16.msra.mxu0 %v3936_v58  ;;  %2870 = vmatpush1.bf16.msra.mxu1 %v3939_v59  ;;  %v4029_v58 = vld [vmem:[#allocation2 + $0x388] ss:$48 sps:$4 sm:$0xff]   ;;  %v4034_v59 = vld [vmem:[#allocation2 + $0x3e4] ss:$48 sps:$4 sm:$0xff]  }
 0x115   : > { %2789 = vmatprep.subr.bf16.mxu0 %v3944_v60  ;;  %2871 = vmatprep.subr.bf16.mxu1 %v3947_v61  ;;  %v4037_v60 = vld [vmem:[#allocation2 + $0x3ec] ss:$48 sps:$4 sm:$0xff]   ;;  %v4032_v61 = vld [vmem:[#allocation2 + $0x3e0] ss:$48 sps:$4 sm:$0xff]  }
 0x118   : > { %2790 = vmatpush1.bf16.msra.mxu0 %v3942_v62  ;;  %2872 = vmatpush1.bf16.msra.mxu1 %v3945_v63  ;;  %v4035_v62 = vld [vmem:[#allocation2 + $0x3e8] ss:$48 sps:$4 sm:$0xff]   ;;  %v4040_v63 = vld [vmem:[#allocation2 + $0x444] ss:$48 sps:$4 sm:$0xff]  }
 0x119   : > { %2791 = vmatprep.subr.bf16.mxu0 %v3950_v0  ;;  %2873 = vmatprep.subr.bf16.mxu1 %v3953_v1  ;;  %v4043_v0 = vld [vmem:[#allocation2 + $0x44c] ss:$48 sps:$4 sm:$0xff]   ;;  %v4038_v1 = vld [vmem:[#allocation2 + $0x440] ss:$48 sps:$4 sm:$0xff]  }
 0x11c   : > { %2792 = vmatpush1.bf16.msra.mxu0 %v3948_v2  ;;  %2874 = vmatpush1.bf16.msra.mxu1 %v3951_v3  ;;  %v4041_v2 = vld [vmem:[#allocation2 + $0x448] ss:$48 sps:$4 sm:$0xff]   ;;  %v4046_v3 = vld [vmem:[#allocation2 + $0x4a4] ss:$48 sps:$4 sm:$0xff]  }
 0x11d   : > { %2793 = vmatprep.subr.bf16.mxu0 %v3956_v4  ;;  %2875 = vmatprep.subr.bf16.mxu1 %v3959_v6  ;;  %v4049_v4 = vld [vmem:[#allocation2 + $0x4ac] ss:$48 sps:$4 sm:$0xff]   ;;  %v4044_v6 = vld [vmem:[#allocation2 + $0x4a0] ss:$48 sps:$4 sm:$0xff]  }
 0x120   : > { %2794 = vmatpush1.bf16.msra.mxu0 %v3954_v7  ;;  %2876 = vmatpush1.bf16.msra.mxu1 %v3957_v8  ;;  %v4047_v7 = vld [vmem:[#allocation2 + $0x4a8] ss:$48 sps:$4 sm:$0xff]   ;;  %v4052_v8 = vld [vmem:[#allocation2 + $0x504] ss:$48 sps:$4 sm:$0xff]  }
 0x121   : > { %2795 = vmatprep.subr.bf16.mxu0 %v3962_v9  ;;  %2877 = vmatprep.subr.bf16.mxu1 %v3965_v10  ;;  %v4055_v9 = vld [vmem:[#allocation2 + $0x50c] ss:$48 sps:$4 sm:$0xff]   ;;  %v4050_v10 = vld [vmem:[#allocation2 + $0x500] ss:$48 sps:$4 sm:$0xff]  }
 0x124   : > { %2796 = vmatpush1.bf16.msra.mxu0 %v3960_v12  ;;  %2878 = vmatpush1.bf16.msra.mxu1 %v3963_v13  ;;  %v4053_v12 = vld [vmem:[#allocation2 + $0x508] ss:$48 sps:$4 sm:$0xff]   ;;  %v4058_v13 = vld [vmem:[#allocation2 + $0x564] ss:$48 sps:$4 sm:$0xff]  }
 0x125   : > { %2797 = vmatprep.subr.bf16.mxu0 %v3968_v14  ;;  %2879 = vmatprep.subr.bf16.mxu1 %v3971_v15  ;;  %v4061_v14 = vld [vmem:[#allocation2 + $0x56c] ss:$48 sps:$4 sm:$0xff]   ;;  %v4056_v15 = vld [vmem:[#allocation2 + $0x560] ss:$48 sps:$4 sm:$0xff]  }
 0x128   : > { %2798 = vmatpush1.bf16.msra.mxu0 %v3966_v16  ;;  %2880 = vmatpush1.bf16.msra.mxu1 %v3969_v17  ;;  %v4059_v16 = vld [vmem:[#allocation2 + $0x568] ss:$48 sps:$4 sm:$0xff]   ;;  %v4064_v17 = vld [vmem:[#allocation2 + $0x5c4] ss:$48 sps:$4 sm:$0xff]  }
 0x129   : > { %2890 = vmatprep.subr.bf16.mxu0 %v3974_v18  ;;  %2972 = vmatprep.subr.bf16.mxu1 %v3977_v19  ;;  %v4067_v18 = vld [vmem:[#allocation2 + $0x5cc] ss:$48 sps:$4 sm:$0xff]   ;;  %v4062_v19 = vld [vmem:[#allocation2 + $0x5c0] ss:$48 sps:$4 sm:$0xff]  }
 0x12b   : > { %2800 = vmatmul.mubr.bf16.vlgmr.msra.gmra.mrb[4].mxu0 %v4298_v11  ;;  %2882 = vmatmul.mubr.bf16.vlgmr.msra.gmra.mrb[4].mxu1 %v4298_v11 }
 0x12c   : > { %2891 = vmatpush1.bf16.msra.mxu0 %v3972_v20  ;;  %2973 = vmatpush1.bf16.msra.mxu1 %v3975_v21  ;;  %v4065_v20 = vld [vmem:[#allocation2 + $0x5c8] ss:$48 sps:$4 sm:$0xff]   ;;  %v4070_v21 = vld [vmem:[#allocation2 + $0x624] ss:$48 sps:$4 sm:$0xff]  }
 0x12d   : > { %2892 = vmatprep.subr.bf16.mxu0 %v3980_v22  ;;  %2974 = vmatprep.subr.bf16.mxu1 %v3983_v23  ;;  %v4073_v22 = vld [vmem:[#allocation2 + $0x62c] ss:$48 sps:$4 sm:$0xff]   ;;  %v4068_v23 = vld [vmem:[#allocation2 + $0x620] ss:$48 sps:$4 sm:$0xff]  }
 0x12e   : > { %2922 = vmatprep.mubr.bf16.mxu0 %v4283_v48  ;;  %3004 = vmatprep.mubr.bf16.mxu1 %v4283_v48  ;;  %v3999_v48 = vld [vmem:[#allocation2 + $0x1a8] ss:$48 sps:$4 sm:$0xff]  }
 0x130   : > { %2893 = vmatpush1.bf16.msra.mxu0 %v3978_v24  ;;  %2975 = vmatpush1.bf16.msra.mxu1 %v3981_v25  ;;  %v4071_v24 = vld [vmem:[#allocation2 + $0x628] ss:$48 sps:$4 sm:$0xff]   ;;  %v4076_v25 = vld [vmem:[#allocation2 + $0x684] ss:$48 sps:$4 sm:$0xff]  }
 0x131   : > { %2894 = vmatprep.subr.bf16.mxu0 %v3986_v26  ;;  %2976 = vmatprep.subr.bf16.mxu1 %v3989_v27  ;;  %v4079_v26 = vld [vmem:[#allocation2 + $0x68c] ss:$48 sps:$4 sm:$0xff]   ;;  %v4074_v27 = vld [vmem:[#allocation2 + $0x680] ss:$48 sps:$4 sm:$0xff]  }
 0x134   : > { %2895 = vmatpush1.bf16.msra.mxu0 %v3984_v28  ;;  %2977 = vmatpush1.bf16.msra.mxu1 %v3987_v29  ;;  %v4077_v28 = vld [vmem:[#allocation2 + $0x688] ss:$48 sps:$4 sm:$0xff]   ;;  %v4082_v29 = vld [vmem:[#allocation2 + $0x6e4] ss:$48 sps:$4 sm:$0xff]  }
 0x135   : > { %2896 = vmatprep.subr.bf16.mxu0 %v3992_v30  ;;  %2978 = vmatprep.subr.bf16.mxu1 %v3995_v31  ;;  %v4085_v30 = vld [vmem:[#allocation2 + $0x6ec] ss:$48 sps:$4 sm:$0xff]   ;;  %v582_v31 = vlaneseq }
 0x138   : > { %2897 = vmatpush1.bf16.msra.mxu0 %v3990_v32  ;;  %2979 = vmatpush1.bf16.msra.mxu1 %v3993_v34  ;;  %v4080_v32 = vld [vmem:[#allocation2 + $0x6e0] ss:$48 sps:$4 sm:$0xff]   ;;  %v4083_v34 = vld [vmem:[#allocation2 + $0x6e8] ss:$48 sps:$4 sm:$0xff]  }
 0x139   : > { %2898 = vmatprep.subr.bf16.mxu0 %v3998_v35  ;;  %2980 = vmatprep.subr.bf16.mxu1 %v4001_v36  ;;  %v4091_v35 = vld [vmem:[#allocation2 + $0x74c] ss:$48 sps:$4 sm:$0xff]   ;;  %v4316_v36 = vshrl.u32 %v582_v31, 7  ;;  %v4140_v31 = vld [vmem:[#allocation2 + $0xaa0] ss:$48 sps:$4 sm:$0xff]  }
 0x13c   : > { %2899 = vmatpush1.bf16.msra.mxu0 %v3996_v37  ;;  %2981 = vmatpush1.bf16.msra.mxu1 %v3999_v48  ;;  %v4086_v37 = vld [vmem:[#allocation2 + $0x740] ss:$48 sps:$4 sm:$0xff]   ;;  %v4089_v48 = vld [vmem:[#allocation2 + $0x748] ss:$48 sps:$4 sm:$0xff]  }
 0x13d   : > { %2900 = vmatprep.subr.bf16.mxu0 %v4004_v38  ;;  %2982 = vmatprep.subr.bf16.mxu1 %v4007_v39  ;;  %v4094_v38 = vld [vmem:[#allocation2 + $0x7a4] ss:$48 sps:$4 sm:$0xff]   ;;  %v584_v39 = vsub.s32 0, %v4316_v36 }
 0x140   : > { %2901 = vmatpush1.bf16.msra.mxu0 %v4002_v40  ;;  %2983 = vmatpush1.bf16.msra.mxu1 %v4005_v41  ;;  %v592_v40 = vsub.s32 2, %v4316_v36  ;;  %v588_v41 = vsub.s32 1, %v4316_v36 }
 0x141   : > { %2902 = vmatprep.subr.bf16.mxu0 %v4010_v42  ;;  %2984 = vmatprep.subr.bf16.mxu1 %v4013_v43  ;;  %v4092_v42 = vld [vmem:[#allocation2 + $0x7a0] ss:$48 sps:$4 sm:$0xff]   ;;  %v4095_v43 = vld [vmem:[#allocation2 + $0x7a8] ss:$48 sps:$4 sm:$0xff]  }
 0x144   : > { %2903 = vmatpush1.bf16.msra.mxu0 %v4008_v44  ;;  %2985 = vmatpush1.bf16.msra.mxu1 %v4011_v45  ;;  %v4324_v44 = vld [vmem:[%s4383_s2] sm:$0xff]  ;;  %v596_v45 = vsub.s32 3, %v4316_v36 }
 0x145   : > { %2904 = vmatprep.subr.bf16.mxu0 %v4016_v46  ;;  %2986 = vmatprep.subr.bf16.mxu1 %v4019_v47  ;;  %v4100_v46 = vld [vmem:[#allocation2 + $0x804] ss:$48 sps:$4 sm:$0xff]   ;;  %v4103_v47 = vld [vmem:[#allocation2 + $0x80c] ss:$48 sps:$4 sm:$0xff]  }
 0x148   : > { %2905 = vmatpush1.bf16.msra.mxu0 %v4014_v49  ;;  %2987 = vmatpush1.bf16.msra.mxu1 %v4017_v50  ;;  %v585_v49 = vrot.slane %v4324_v44, %v584_v39  ;;  %v593_v50 = vrot.slane %v4324_v44, %v592_v40 }
 0x149   : > { %2906 = vmatprep.subr.bf16.mxu0 %v4022_v51  ;;  %2988 = vmatprep.subr.bf16.mxu1 %v4025_v52  ;;  %v589_v51 = vrot.slane %v4324_v44, %v588_v41  ;;  %v597_v52 = vrot.slane %v4324_v44, %v596_v45 }
 0x14c   : > { %2907 = vmatpush1.bf16.msra.mxu0 %v4020_v53  ;;  %2989 = vmatpush1.bf16.msra.mxu1 %v4023_v54  ;;  %v4098_v53 = vld [vmem:[#allocation2 + $0x800] ss:$48 sps:$4 sm:$0xff]   ;;  %v4101_v54 = vld [vmem:[#allocation2 + $0x808] ss:$48 sps:$4 sm:$0xff]  }
 0x14d   : > { %2908 = vmatprep.subr.bf16.mxu0 %v4028_v55  ;;  %2990 = vmatprep.subr.bf16.mxu1 %v4031_v56  ;;  %v4106_v55 = vld [vmem:[#allocation2 + $0x864] ss:$48 sps:$4 sm:$0xff]   ;;  %v4109_v56 = vld [vmem:[#allocation2 + $0x86c] ss:$48 sps:$4 sm:$0xff]  }
 0x150   : > { %2909 = vmatpush1.bf16.msra.mxu0 %v4026_v57  ;;  %2991 = vmatpush1.bf16.msra.mxu1 %v4029_v58 }
 0x151   : > { %2910 = vmatprep.subr.bf16.mxu0 %v4034_v59  ;;  %2992 = vmatprep.subr.bf16.mxu1 %v4037_v60 }
 0x154   : > { %2911 = vmatpush1.bf16.msra.mxu0 %v4032_v61  ;;  %2993 = vmatpush1.bf16.msra.mxu1 %v4035_v62 }
 0x155   : > { %2912 = vmatprep.subr.bf16.mxu0 %v4040_v63  ;;  %2994 = vmatprep.subr.bf16.mxu1 %v4043_v0 }
 0x158   : > { %2913 = vmatpush1.bf16.msra.mxu0 %v4038_v1  ;;  %2995 = vmatpush1.bf16.msra.mxu1 %v4041_v2 }
 0x159   : > { %2914 = vmatprep.subr.bf16.mxu0 %v4046_v3  ;;  %2996 = vmatprep.subr.bf16.mxu1 %v4049_v4  ;;  %v4104_v3 = vld [vmem:[#allocation2 + $0x860] ss:$48 sps:$4 sm:$0xff]   ;;  %v4107_v4 = vld [vmem:[#allocation2 + $0x868] ss:$48 sps:$4 sm:$0xff]  }
 0x15c   : > { %2915 = vmatpush1.bf16.msra.mxu0 %v4044_v6  ;;  %2997 = vmatpush1.bf16.msra.mxu1 %v4047_v7 }
 0x15d   : > { %2916 = vmatprep.subr.bf16.mxu0 %v4052_v8  ;;  %2998 = vmatprep.subr.bf16.mxu1 %v4055_v9  ;;  %v4112_v8 = vld [vmem:[#allocation2 + $0x8c4] ss:$48 sps:$4 sm:$0xff]   ;;  %v4115_v9 = vld [vmem:[#allocation2 + $0x8cc] ss:$48 sps:$4 sm:$0xff]  }
 0x160   : > { %2917 = vmatpush1.bf16.msra.mxu0 %v4050_v10  ;;  %2999 = vmatpush1.bf16.msra.mxu1 %v4053_v12  ;;  %v4110_v10 = vld [vmem:[#allocation2 + $0x8c0] ss:$48 sps:$4 sm:$0xff]   ;;  %v4113_v12 = vld [vmem:[#allocation2 + $0x8c8] ss:$48 sps:$4 sm:$0xff]  }
 0x161   : > { %2918 = vmatprep.subr.bf16.mxu0 %v4058_v13  ;;  %3000 = vmatprep.subr.bf16.mxu1 %v4061_v14  ;;  %v4118_v13 = vld [vmem:[#allocation2 + $0x924] ss:$48 sps:$4 sm:$0xff]   ;;  %v4121_v14 = vld [vmem:[#allocation2 + $0x92c] ss:$48 sps:$4 sm:$0xff]  }
 0x164   : > { %2919 = vmatpush1.bf16.msra.mxu0 %v4056_v15  ;;  %3001 = vmatpush1.bf16.msra.mxu1 %v4059_v16  ;;  %v4116_v15 = vld [vmem:[#allocation2 + $0x920] ss:$48 sps:$4 sm:$0xff]   ;;  %v4119_v16 = vld [vmem:[#allocation2 + $0x928] ss:$48 sps:$4 sm:$0xff]  }
 0x165   : > { %2920 = vmatprep.subr.bf16.mxu0 %v4064_v17  ;;  %3002 = vmatprep.subr.bf16.mxu1 %v4067_v18  ;;  %v4124_v17 = vld [vmem:[#allocation2 + $0x984] ss:$48 sps:$4 sm:$0xff]   ;;  %v4127_v18 = vld [vmem:[#allocation2 + $0x98c] ss:$48 sps:$4 sm:$0xff]  }
 0x168   : > { %2921 = vmatpush1.bf16.msra.mxu0 %v4062_v19  ;;  %3003 = vmatpush1.bf16.msra.mxu1 %v4065_v20  ;;  %v4122_v19 = vld [vmem:[#allocation2 + $0x980] ss:$48 sps:$4 sm:$0xff]   ;;  %v4125_v20 = vld [vmem:[#allocation2 + $0x988] ss:$48 sps:$4 sm:$0xff]  }
 0x169   : > { %2931 = vmatprep.subr.bf16.mxu0 %v4070_v21  ;;  %3013 = vmatprep.subr.bf16.mxu1 %v4073_v22  ;;  %v4130_v21 = vld [vmem:[#allocation2 + $0x9e4] ss:$48 sps:$4 sm:$0xff]   ;;  %v4133_v22 = vld [vmem:[#allocation2 + $0x9ec] ss:$48 sps:$4 sm:$0xff]  }
 0x16b   : > { %2923 = vmatmul.mubr.bf16.vlgmr.msra.gmra.mrb[8].mxu0 %v4288_v5  ;;  %3005 = vmatmul.mubr.bf16.vlgmr.msra.gmra.mrb[8].mxu1 %v4288_v5  ;;  %v4088_v5 = vld [vmem:[#allocation2 + $0x744] ss:$48 sps:$4 sm:$0xff]  }
 0x16c   : > { %2932 = vmatpush1.bf16.msra.mxu0 %v4068_v23  ;;  %3014 = vmatpush1.bf16.msra.mxu1 %v4071_v24  ;;  %v4128_v23 = vld [vmem:[#allocation2 + $0x9e0] ss:$48 sps:$4 sm:$0xff]   ;;  %v4131_v24 = vld [vmem:[#allocation2 + $0x9e8] ss:$48 sps:$4 sm:$0xff]  }
 0x16d   : > { %2933 = vmatprep.subr.bf16.mxu0 %v4076_v25  ;;  %3015 = vmatprep.subr.bf16.mxu1 %v4079_v26  ;;  %v4136_v25 = vld [vmem:[#allocation2 + $0xa44] ss:$48 sps:$4 sm:$0xff]   ;;  %v4139_v26 = vld [vmem:[#allocation2 + $0xa4c] ss:$48 sps:$4 sm:$0xff]  }
 0x16e   : > { %2963 = vmatprep.mubr.bf16.mxu0 %v4293_v33  ;;  %3045 = vmatprep.mubr.bf16.mxu1 %v4293_v33  ;;  %v4097_v33 = vld [vmem:[#allocation2 + $0x7ac] ss:$48 sps:$4 sm:$0xff]  }
 0x170   : > { %2934 = vmatpush1.bf16.msra.mxu0 %v4074_v27  ;;  %3016 = vmatpush1.bf16.msra.mxu1 %v4077_v28  ;;  %v4134_v27 = vld [vmem:[#allocation2 + $0xa40] ss:$48 sps:$4 sm:$0xff]   ;;  %v4137_v28 = vld [vmem:[#allocation2 + $0xa48] ss:$48 sps:$4 sm:$0xff]  }
 0x171   : > { %2935 = vmatprep.subr.bf16.mxu0 %v4082_v29  ;;  %3017 = vmatprep.subr.bf16.mxu1 %v4085_v30  ;;  %v4142_v29 = vld [vmem:[#allocation2 + $0xaa4] ss:$48 sps:$4 sm:$0xff]   ;;  %v4145_v30 = vld [vmem:[#allocation2 + $0xaac] ss:$48 sps:$4 sm:$0xff]  }
 0x174   : > { %2936 = vmatpush1.bf16.msra.mxu0 %v4080_v32  ;;  %3018 = vmatpush1.bf16.msra.mxu1 %v4083_v34  ;;  %v4143_v32 = vld [vmem:[#allocation2 + $0xaa8] ss:$48 sps:$4 sm:$0xff]   ;;  %v4148_v34 = vld [vmem:[#allocation2 + $0xb04] ss:$48 sps:$4 sm:$0xff]  }
 0x175   : > { %2937 = vmatprep.subr.bf16.mxu0 %v4088_v5  ;;  %3019 = vmatprep.subr.bf16.mxu1 %v4091_v35  ;;  %v4151_v5 = vld [vmem:[#allocation2 + $0xb0c] ss:$48 sps:$4 sm:$0xff]   ;;  %v4146_v35 = vld [vmem:[#allocation2 + $0xb00] ss:$48 sps:$4 sm:$0xff]  }
 0x178   : > { %2938 = vmatpush1.bf16.msra.mxu0 %v4086_v37  ;;  %3020 = vmatpush1.bf16.msra.mxu1 %v4089_v48  ;;  %v4149_v37 = vld [vmem:[#allocation2 + $0xb08] ss:$48 sps:$4 sm:$0xff]   ;;  %v4154_v48 = vld [vmem:[#allocation2 + $0xb64] ss:$48 sps:$4 sm:$0xff]  }
 0x179   : > { %2939 = vmatprep.subr.bf16.mxu0 %v4094_v38  ;;  %3021 = vmatprep.subr.bf16.mxu1 %v4097_v33  ;;  %v4157_v38 = vld [vmem:[#allocation2 + $0xb6c] ss:$48 sps:$4 sm:$0xff]   ;;  %v4152_v33 = vld [vmem:[#allocation2 + $0xb60] ss:$48 sps:$4 sm:$0xff]  }
 0x17c   : > { %2940 = vmatpush1.bf16.msra.mxu0 %v4092_v42  ;;  %3022 = vmatpush1.bf16.msra.mxu1 %v4095_v43  ;;  %v4155_v42 = vld [vmem:[#allocation2 + $0xb68] ss:$48 sps:$4 sm:$0xff]   ;;  %v4160_v43 = vld [vmem:[#allocation2 + $0xbc4] ss:$48 sps:$4 sm:$0xff]  }
 0x17d   : > { %2941 = vmatprep.subr.bf16.mxu0 %v4100_v46  ;;  %3023 = vmatprep.subr.bf16.mxu1 %v4103_v47  ;;  %v4163_v46 = vld [vmem:[#allocation2 + $0xbcc] ss:$48 sps:$4 sm:$0xff]   ;;  %v4158_v47 = vld [vmem:[#allocation2 + $0xbc0] ss:$48 sps:$4 sm:$0xff]  }
 0x17e   : > { %v2637_v57 = vpop.f32.mrb[0].mxu0  ;;  %v2719_v58 = vpop.f32.mrb[0].mxu1 }
 0x17f   : > { %v3530_v59 = vadd.f32 %v2637_v57, %v585_v49  ;;  %v3532_v60 = vadd.f32 %v2719_v58, %v593_v50  ;;  %v2639_v61 = vpop.f32.mrb[1].mxu0  ;;  %v2721_v62 = vpop.f32.mrb[1].mxu1  ;;  %v4161_v49 = vld [vmem:[#allocation2 + $0xbc8] ss:$48 sps:$4 sm:$0xff]   ;;  %v600_v50 = vsub.s32 4, %v4316_v36 }
 0x180   : > { %v3531_v63 = vadd.f32 %v2639_v61, %v589_v51  ;;  %v3533_v0 = vadd.f32 %v2721_v62, %v597_v52  ;;  %v2641_v1 = vpop.f32.mrb[2].mxu0  ;;  %v2723_v2 = vpop.f32.mrb[2].mxu1  ;;  %2942 = vmatpush1.bf16.msra.mxu0 %v4098_v53  ;;  %3024 = vmatpush1.bf16.msra.mxu1 %v4101_v54  ;;  %v608_v51 = vsub.s32 6, %v4316_v36  ;;  %v604_v52 = vsub.s32 5, %v4316_v36 }
 0x181   : > { %3054 = vst [vmem:[%s4343_s13] sm:$0xff] %v3530_v59  ;;  %3056 = vst [vmem:[%s4343_s13 + $0x10] sm:$0xff] %v3532_v60  ;;  %v2642_v6 = vpop.f32.mrb[3].mxu0  ;;  %v2724_v7 = vpop.f32.mrb[3].mxu1  ;;  %2943 = vmatprep.subr.bf16.mxu0 %v4106_v55  ;;  %3025 = vmatprep.subr.bf16.mxu1 %v4109_v56  ;;  %v612_v53 = vsub.s32 7, %v4316_v36  ;;  %v601_v54 = vrot.slane %v4324_v44, %v600_v50 }
 0x182   : > { %3055 = vst [vmem:[%s4343_s13 + $0x8] sm:$0xff] %v3531_v63  ;;  %3057 = vst [vmem:[%s4343_s13 + $0x18] sm:$0xff] %v3533_v0  ;;  %v609_v55 = vrot.slane %v4324_v44, %v608_v51  ;;  %v605_v56 = vrot.slane %v4324_v44, %v604_v52 }
 0x183   : > { %v613_v57 = vrot.slane %v4324_v44, %v612_v53  ;;  %v579_v44 = vld [vmem:[%s4383_s2 + $0x8] sm:$0xf] }
 0x184   : > { %2944 = vmatpush1.bf16.msra.mxu0 %v4104_v3  ;;  %3026 = vmatpush1.bf16.msra.mxu1 %v4107_v4  ;;  %v617_v6 = vrot.slane %v579_v44, %v584_v39  ;;  %v625_v7 = vrot.slane %v579_v44, %v592_v40 }
 0x185   : > { %2945 = vmatprep.subr.bf16.mxu0 %v4112_v8  ;;  %3027 = vmatprep.subr.bf16.mxu1 %v4115_v9  ;;  %v621_v8 = vrot.slane %v579_v44, %v588_v41  ;;  %v629_v9 = vrot.slane %v579_v44, %v596_v45 }
 0x188   : > { %2946 = vmatpush1.bf16.msra.mxu0 %v4110_v10  ;;  %3028 = vmatpush1.bf16.msra.mxu1 %v4113_v12 }
 0x189   : > { %2947 = vmatprep.subr.bf16.mxu0 %v4118_v13  ;;  %3029 = vmatprep.subr.bf16.mxu1 %v4121_v14 }
 0x18c   : > { %2948 = vmatpush1.bf16.msra.mxu0 %v4116_v15  ;;  %3030 = vmatpush1.bf16.msra.mxu1 %v4119_v16 }
 0x18d   : > { %2949 = vmatprep.subr.bf16.mxu0 %v4124_v17  ;;  %3031 = vmatprep.subr.bf16.mxu1 %v4127_v18 }
 0x190   : > { %2950 = vmatpush1.bf16.msra.mxu0 %v4122_v19  ;;  %3032 = vmatpush1.bf16.msra.mxu1 %v4125_v20 }
 0x191   : > { %2951 = vmatprep.subr.bf16.mxu0 %v4130_v21  ;;  %3033 = vmatprep.subr.bf16.mxu1 %v4133_v22 }
 0x194   : > { %2952 = vmatpush1.bf16.msra.mxu0 %v4128_v23  ;;  %3034 = vmatpush1.bf16.msra.mxu1 %v4131_v24 }
 0x195   : > { %2953 = vmatprep.subr.bf16.mxu0 %v4136_v25  ;;  %3035 = vmatprep.subr.bf16.mxu1 %v4139_v26 }
 0x198   : > { %2954 = vmatpush1.bf16.msra.mxu0 %v4134_v27  ;;  %3036 = vmatpush1.bf16.msra.mxu1 %v4137_v28 }
 0x199   : > { %2955 = vmatprep.subr.bf16.mxu0 %v4142_v29  ;;  %3037 = vmatprep.subr.bf16.mxu1 %v4145_v30 }
 0x19c   : > { %2956 = vmatpush1.bf16.msra.mxu0 %v4140_v31  ;;  %3038 = vmatpush1.bf16.msra.mxu1 %v4143_v32 }
 0x19d   : > { %2957 = vmatprep.subr.bf16.mxu0 %v4148_v34  ;;  %3039 = vmatprep.subr.bf16.mxu1 %v4151_v5 }
 0x1a0   : > { %2958 = vmatpush1.bf16.msra.mxu0 %v4146_v35  ;;  %3040 = vmatpush1.bf16.msra.mxu1 %v4149_v37 }
 0x1a1   : > { %2959 = vmatprep.subr.bf16.mxu0 %v4154_v48  ;;  %3041 = vmatprep.subr.bf16.mxu1 %v4157_v38 }
 0x1a4   : > { %2960 = vmatpush1.bf16.msra.mxu0 %v4152_v33  ;;  %3042 = vmatpush1.bf16.msra.mxu1 %v4155_v42 }
 0x1a5   : > { %2961 = vmatprep.subr.bf16.mxu0 %v4160_v43  ;;  %3043 = vmatprep.subr.bf16.mxu1 %v4163_v46 }
 0x1a8   : > { %2962 = vmatpush1.bf16.msra.mxu0 %v4158_v47  ;;  %3044 = vmatpush1.bf16.msra.mxu1 %v4161_v49 }
 0x1ab   : > { %2964 = vmatmul.mubr.bf16.vlgmr.msra.gmra.mrb[8].mxu0 %v4298_v11  ;;  %3046 = vmatmul.mubr.bf16.vlgmr.msra.gmra.mrb[8].mxu1 %v4298_v11 }
 0x1fe   : > { %v2801_v11 = vpop.f32.mrb[4].mxu0  ;;  %v2883_v58 = vpop.f32.mrb[4].mxu1 }
 0x1ff   : > { %v3534_v59 = vadd.f32 %v2801_v11, %v601_v54  ;;  %v3536_v60 = vadd.f32 %v2883_v58, %v609_v55  ;;  %v2803_v61 = vpop.f32.mrb[5].mxu0  ;;  %v2885_v62 = vpop.f32.mrb[5].mxu1 }
 0x200   : > { %v3535_v63 = vadd.f32 %v2803_v61, %v605_v56  ;;  %v3537_v0 = vadd.f32 %v2885_v62, %v613_v57  ;;  %v2805_v1 = vpop.f32.mrb[6].mxu0  ;;  %v2887_v2 = vpop.f32.mrb[6].mxu1 }
 0x201   : > { %3058 = vst [vmem:[%s4343_s13 + $0x20] sm:$0xff] %v3534_v59  ;;  %3060 = vst [vmem:[%s4343_s13 + $0x30] sm:$0xff] %v3536_v60  ;;  %v2806_v3 = vpop.f32.mrb[7].mxu0  ;;  %v2888_v4 = vpop.f32.mrb[7].mxu1 }
 0x202   : > { %3059 = vst [vmem:[%s4343_s13 + $0x28] sm:$0xff] %v3535_v63  ;;  %3061 = vst [vmem:[%s4343_s13 + $0x38] sm:$0xff] %v3537_v0 }
 0x27e   : > { %v2965_v10 = vpop.f32.mrb[8].mxu0  ;;  %v3047_v12 = vpop.f32.mrb[8].mxu1 }
 0x27f   : > { %v3538_v13 = vadd.f32 %v2965_v10, %v617_v6  ;;  %v3540_v14 = vadd.f32 %v3047_v12, %v625_v7  ;;  %v2967_v15 = vpop.f32.mrb[9].mxu0  ;;  %v3049_v16 = vpop.f32.mrb[9].mxu1 }
 0x280   : > { %v3539_v17 = vadd.f32 %v2967_v15, %v621_v8  ;;  %v3541_v18 = vadd.f32 %v3049_v16, %v629_v9  ;;  %v2969_v39 = vpop.f32.mrb[10].mxu0  ;;  %v3051_v19 = vpop.f32.mrb[10].mxu1 }
 0x281   : > { %3062 = vst [vmem:[%s4343_s13 + $0x40] sm:$0xff] %v3538_v13  ;;  %3064 = vst [vmem:[%s4343_s13 + $0x50] sm:$0xff] %v3540_v14  ;;  %v2970_v40 = vpop.f32.mrb[11].mxu0  ;;  %v3052_v20 = vpop.f32.mrb[11].mxu1 }
 0x282   : > { %3063 = vst [vmem:[%s4343_s13 + $0x48] sm:$0xff] %v3539_v17  ;;  %3065 = vst [vmem:[%s4343_s13 + $0x58] sm:$0xff] %v3541_v18 }
 0x283 PF: > { %s14_s12 = sadd.s32 1, %s4202_s12  }
 0x284   : > { %p11_p3 = scmp.ge.s32.totalorder %s14_s12, 4  }
 0x286   :  { %13 = sbr.rel (!%p11_p3) target bundleno = 1 (0x1), region = 67 }
 0x28d   :  { %3087 = vsyncpa [#allocation3], 1 }
 0x28e   :  { %3089 = vsyncpa [#allocation3 + $0x1], 1 }

// kernel: encoder_forward.8
= control target key start
LH: loop header
LB: loop body
LE: loop exit
PB: predicated region body
PF: predicated region fallthrough
CT: control target
= control target key end

     0   :  { %s4003_s0 = inlined_call_operand.vmem [shape: f32[2,8,512], index: 0, kind: input, shape index: {}]   ;;  %s4004_s1 = inlined_call_operand.vmem [shape: bf16[3,8,512,64], index: 1, kind: input, shape index: {}]   ;;  %s4005_s2 = inlined_call_operand.vmem [shape: bf16[8,64,512], index: 2, kind: input, shape index: {}]   ;;  %s4006_s3 = inlined_call_operand.vmem [shape: f32[2,1,8], index: 3, kind: input, shape index: {}]   ;;  %s4007_s4 = inlined_call_operand.vmem [shape: f32[2,8,512], index: 4, kind: output, shape index: {0}]   ;;  %s4008_s5 = inlined_call_operand.hbm [shape: f32[2,8,8,8], index: 5, kind: output, shape index: {1}]  }
   0x1   :  { %4009 = sst [smem:[#allocation7_spill]] %s4003_s0 }
   0x2   :  { %4010 = sst [smem:[#allocation8_spill]] %s4004_s1 }
   0x3   :  { %11 = vsyncpa [#allocation5], 0 }
   0x4   :  { %13 = vsyncpa [#allocation5 + $0x1], 0  ;;  %s3438_s18 = smov 0   ;;  %s3440_s19 = smov 0  }
   0x5   :  { %s3442_s20 = smov 0   ;;  %s3444_s21 = smov 0  }
   0x6   :  { %s3446_s22 = smov 0   ;;  %s3448_s23 = smov 0  }
   0x7   :  { %s3450_s24 = smov 0   ;;  %s3452_s25 = smov 0  }
   0x8   :  { %s3454_s26 = smov 0   ;;  %s3456_s27 = smov 0  }
   0x9 LB: > { %s2655_s28 = sadd.s32 4294967295, %s3401_s27   ;;  %s2656_s29 = sadd.s32 4294967294, %s3401_s27   ;;  %s3401_s27 = sphi %s3456_s27, %s19_s27   ;;  %s3397_s26 = sphi %s3454_s26, %s4024_s26   ;;  %s3393_s25 = sphi %s3452_s25, %s4023_s25   ;;  %s3389_s24 = sphi %s3450_s24, %s4022_s24   ;;  %s3385_s23 = sphi %s3448_s23, %s4021_s23   ;;  %s3381_s22 = sphi %s3446_s22, %s4020_s22   ;;  %s3377_s21 = sphi %s3444_s21, %s4019_s21   ;;  %s3373_s20 = sphi %s3442_s20, %s4018_s20   ;;  %s3369_s19 = sphi %s3440_s19, %s4017_s19   ;;  %s3365_s18 = sphi %s3438_s18, %s4016_s18  }
   0xa   : > { %s28_s30 = sadd.s32 1, %s3393_s25  ;;  %s31_s6 = sadd.s32 1, %s3397_s26 }
   0xb   : > { %p29_p0 = scmp.ge.s32.totalorder %s28_s30, 8  ;;  %s64_s7 = sadd.s32 1, %s3381_s22 }
   0xc   : > { %p71_p1 = scmp.ne.s32.totalorder %s3381_s22, %s3377_s21  ;;  %p72_p2 = scmp.eq.s32.totalorder %s3401_s27, 0 }
   0xd   : > { %s4026_s30 = smov (%p29_p0, %s28_s30), 0  ;;  %s4028_s6 = smov (!%p29_p0, %s31_s6), %s3397_s26 }
   0xe   : > { %s61_s8 = ssub.s32 %s3393_s25, %s4026_s30  ;;  %p3501_p3 = por %p72_p2, %p71_p1 }
   0xf   : > { %p33_p4 = scmp.ge.s32.totalorder %s4028_s6, 2  ;;  %p62_p5 = scmp.eq.s32.totalorder %s61_s8, 0 }
  0x10   : > { %s170_s10 = sadd.s32 1, %s3373_s20  ;;  %p180_p6 = scmp.ne.s32.totalorder %s3373_s20, %s3369_s19 }
  0x11   : > { %s4030_s6 = smov (%p33_p4, %s4028_s6), 0  ;;  %p181_p7 = scmp.eq.s32.totalorder %s2655_s28, 15 }
  0x12   : > { %s3511_s11 = scalar_select %p62_p5, %s3381_s22, %s64_s7  }
  0x13   : > { %s165_s12 = ssub.s32 %s3397_s26, %s4030_s6  ;;  %p186_p8 = scmp.ne.s32.totalorder %s3369_s19, %s3365_s18 }
  0x14   : > { %s167_s13 = sor.u32 %s165_s12, %s61_s8  ;;  %p3517_p10 = por %p181_p7, %p180_p6 }
  0x15   : > { %p168_p9 = scmp.eq.s32.totalorder %s167_s13, 0  ;;  %p187_p11 = scmp.eq.s32.totalorder %s2656_s29, 15 }
  0x16   : > { %p2658_p13 = scmp.ge.s32.totalorder %s3401_s27, 16 }
  0x17   : > { %s3522_s15 = scalar_select %p168_p9, %s3373_s20, %s170_s10  }
  0x18   : > { %p3524_p12 = por %p187_p11, %p186_p8  ;;  %203 = sbr.rel (%p2658_p13) target bundleno = 90 (0x5a), region = 16 }
  0x1f   : > { %214 = sbr.rel (!%p3501_p3) target bundleno = 90 (0x5a), region = 24  ;;  %s216_s17 = sand.u32 (%p3501_p3), 1, %s3381_s22  }
  0x20   : > { %s2920_s28 = sshll.u32 (%p3501_p3), %s3393_s25, 8  ;;  %s3072_s7 = smul.u32 (%p3501_p3), 768, %s216_s17 }
  0x21   : > { %s4014_s1 = sld [smem:[#allocation8_spill]] (%p3501_p3) }
  0x22   : > { %s3544_s9 = scalar_lea.vmem (%p3501_p3), [#allocation3], %s3072_s7 }
  0x27   : > { %s3536_s29 = scalar_lea.vmem %s4014_s1, %s2920_s28 }
  0x28   : > { %v237_v0 = vld [vmem:[%s3536_s29] sm:$0xff]   ;;  %v241_v1 = vld [vmem:[%s3536_s29 + $0x8] sm:$0xff]   ;;  %v245_v2 = vld [vmem:[%s3536_s29 + $0x10] sm:$0xff]  }
  0x29   : > { %v249_v3 = vld [vmem:[%s3536_s29 + $0x18] sm:$0xff]   ;;  %v253_v4 = vld [vmem:[%s3536_s29 + $0x20] sm:$0xff]   ;;  %v257_v5 = vld [vmem:[%s3536_s29 + $0x28] sm:$0xff]   ;;  %238 = vst [vmem:[%s3544_s9] sm:$0xff] %v237_v0  }
  0x2a   : > { %242 = vst [vmem:[%s3544_s9 + $0x8] sm:$0xff] %v241_v1   ;;  %246 = vst [vmem:[%s3544_s9 + $0x10] sm:$0xff] %v245_v2   ;;  %v261_v6 = vld [vmem:[%s3536_s29 + $0x30] sm:$0xff]   ;;  %v265_v7 = vld [vmem:[%s3536_s29 + $0x38] sm:$0xff]  }
  0x2b   : > { %250 = vst [vmem:[%s3544_s9 + $0x18] sm:$0xff] %v249_v3   ;;  %254 = vst [vmem:[%s3544_s9 + $0x20] sm:$0xff] %v253_v4   ;;  %v269_v8 = vld [vmem:[%s3536_s29 + $0x40] sm:$0xff]   ;;  %v273_v9 = vld [vmem:[%s3536_s29 + $0x48] sm:$0xff]  }
  0x2c   : > { %258 = vst [vmem:[%s3544_s9 + $0x28] sm:$0xff] %v257_v5   ;;  %262 = vst [vmem:[%s3544_s9 + $0x30] sm:$0xff] %v261_v6   ;;  %v277_v10 = vld [vmem:[%s3536_s29 + $0x50] sm:$0xff]   ;;  %v281_v11 = vld [vmem:[%s3536_s29 + $0x58] sm:$0xff]  }
  0x2d   : > { %266 = vst [vmem:[%s3544_s9 + $0x38] sm:$0xff] %v265_v7   ;;  %270 = vst [vmem:[%s3544_s9 + $0x40] sm:$0xff] %v269_v8   ;;  %v285_v12 = vld [vmem:[%s3536_s29 + $0x60] sm:$0xff]   ;;  %v289_v13 = vld [vmem:[%s3536_s29 + $0x68] sm:$0xff]  }
  0x2e   : > { %274 = vst [vmem:[%s3544_s9 + $0x48] sm:$0xff] %v273_v9   ;;  %278 = vst [vmem:[%s3544_s9 + $0x50] sm:$0xff] %v277_v10   ;;  %v293_v14 = vld [vmem:[%s3536_s29 + $0x70] sm:$0xff]   ;;  %v297_v15 = vld [vmem:[%s3536_s29 + $0x78] sm:$0xff]  }
  0x2f   : > { %282 = vst [vmem:[%s3544_s9 + $0x58] sm:$0xff] %v281_v11   ;;  %286 = vst [vmem:[%s3544_s9 + $0x60] sm:$0xff] %v285_v12   ;;  %v301_v16 = vld [vmem:[%s3536_s29 + $0x80] sm:$0xff]   ;;  %v305_v17 = vld [vmem:[%s3536_s29 + $0x88] sm:$0xff]  }
  0x30   : > { %290 = vst [vmem:[%s3544_s9 + $0x68] sm:$0xff] %v289_v13   ;;  %294 = vst [vmem:[%s3544_s9 + $0x70] sm:$0xff] %v293_v14   ;;  %v309_v18 = vld [vmem:[%s3536_s29 + $0x90] sm:$0xff]   ;;  %v313_v19 = vld [vmem:[%s3536_s29 + $0x98] sm:$0xff]  }
  0x31   : > { %298 = vst [vmem:[%s3544_s9 + $0x78] sm:$0xff] %v297_v15   ;;  %302 = vst [vmem:[%s3544_s9 + $0x80] sm:$0xff] %v301_v16   ;;  %v317_v20 = vld [vmem:[%s3536_s29 + $0xa0] sm:$0xff]   ;;  %v321_v21 = vld [vmem:[%s3536_s29 + $0xa8] sm:$0xff]  }
  0x32   : > { %306 = vst [vmem:[%s3544_s9 + $0x88] sm:$0xff] %v305_v17   ;;  %310 = vst [vmem:[%s3544_s9 + $0x90] sm:$0xff] %v309_v18   ;;  %v325_v22 = vld [vmem:[%s3536_s29 + $0xb0] sm:$0xff]   ;;  %v329_v23 = vld [vmem:[%s3536_s29 + $0xb8] sm:$0xff]  }
  0x33   : > { %314 = vst [vmem:[%s3544_s9 + $0x98] sm:$0xff] %v313_v19   ;;  %318 = vst [vmem:[%s3544_s9 + $0xa0] sm:$0xff] %v317_v20   ;;  %v333_v24 = vld [vmem:[%s3536_s29 + $0xc0] sm:$0xff]   ;;  %v337_v25 = vld [vmem:[%s3536_s29 + $0xc8] sm:$0xff]  }
  0x34   : > { %322 = vst [vmem:[%s3544_s9 + $0xa8] sm:$0xff] %v321_v21   ;;  %326 = vst [vmem:[%s3544_s9 + $0xb0] sm:$0xff] %v325_v22   ;;  %v341_v26 = vld [vmem:[%s3536_s29 + $0xd0] sm:$0xff]   ;;  %v345_v27 = vld [vmem:[%s3536_s29 + $0xd8] sm:$0xff]  }
  0x35   : > { %330 = vst [vmem:[%s3544_s9 + $0xb8] sm:$0xff] %v329_v23   ;;  %334 = vst [vmem:[%s3544_s9 + $0xc0] sm:$0xff] %v333_v24   ;;  %v349_v28 = vld [vmem:[%s3536_s29 + $0xe0] sm:$0xff]   ;;  %v353_v29 = vld [vmem:[%s3536_s29 + $0xe8] sm:$0xff]  }
  0x36   : > { %338 = vst [vmem:[%s3544_s9 + $0xc8] sm:$0xff] %v337_v25   ;;  %342 = vst [vmem:[%s3544_s9 + $0xd0] sm:$0xff] %v341_v26   ;;  %v357_v30 = vld [vmem:[%s3536_s29 + $0xf0] sm:$0xff]   ;;  %v361_v31 = vld [vmem:[%s3536_s29 + $0xf8] sm:$0xff]  }
  0x37   : > { %346 = vst [vmem:[%s3544_s9 + $0xd8] sm:$0xff] %v345_v27   ;;  %350 = vst [vmem:[%s3544_s9 + $0xe0] sm:$0xff] %v349_v28   ;;  %v365_v32 = vld [vmem:[%s3536_s29 + $0x800] sm:$0xff]   ;;  %v369_v33 = vld [vmem:[%s3536_s29 + $0x808] sm:$0xff]  }
  0x38   : > { %354 = vst [vmem:[%s3544_s9 + $0xe8] sm:$0xff] %v353_v29   ;;  %358 = vst [vmem:[%s3544_s9 + $0xf0] sm:$0xff] %v357_v30   ;;  %v373_v34 = vld [vmem:[%s3536_s29 + $0x810] sm:$0xff]   ;;  %v377_v35 = vld [vmem:[%s3536_s29 + $0x818] sm:$0xff]  }
  0x39   : > { %362 = vst [vmem:[%s3544_s9 + $0xf8] sm:$0xff] %v361_v31   ;;  %366 = vst [vmem:[%s3544_s9 + $0x100] sm:$0xff] %v365_v32   ;;  %v381_v36 = vld [vmem:[%s3536_s29 + $0x820] sm:$0xff]   ;;  %v385_v37 = vld [vmem:[%s3536_s29 + $0x828] sm:$0xff]  }
  0x3a   : > { %370 = vst [vmem:[%s3544_s9 + $0x108] sm:$0xff] %v369_v33   ;;  %374 = vst [vmem:[%s3544_s9 + $0x110] sm:$0xff] %v373_v34   ;;  %v389_v38 = vld [vmem:[%s3536_s29 + $0x830] sm:$0xff]   ;;  %v393_v39 = vld [vmem:[%s3536_s29 + $0x838] sm:$0xff]  }
  0x3b   : > { %378 = vst [vmem:[%s3544_s9 + $0x118] sm:$0xff] %v377_v35   ;;  %382 = vst [vmem:[%s3544_s9 + $0x120] sm:$0xff] %v381_v36   ;;  %v397_v40 = vld [vmem:[%s3536_s29 + $0x840] sm:$0xff]   ;;  %v401_v41 = vld [vmem:[%s3536_s29 + $0x848] sm:$0xff]  }
  0x3c   : > { %386 = vst [vmem:[%s3544_s9 + $0x128] sm:$0xff] %v385_v37   ;;  %390 = vst [vmem:[%s3544_s9 + $0x130] sm:$0xff] %v389_v38   ;;  %v405_v42 = vld [vmem:[%s3536_s29 + $0x850] sm:$0xff]   ;;  %v409_v43 = vld [vmem:[%s3536_s29 + $0x858] sm:$0xff]  }
  0x3d   : > { %394 = vst [vmem:[%s3544_s9 + $0x138] sm:$0xff] %v393_v39   ;;  %398 = vst [vmem:[%s3544_s9 + $0x140] sm:$0xff] %v397_v40   ;;  %v413_v44 = vld [vmem:[%s3536_s29 + $0x860] sm:$0xff]   ;;  %v417_v45 = vld [vmem:[%s3536_s29 + $0x868] sm:$0xff]  }
  0x3e   : > { %402 = vst [vmem:[%s3544_s9 + $0x148] sm:$0xff] %v401_v41   ;;  %406 = vst [vmem:[%s3544_s9 + $0x150] sm:$0xff] %v405_v42   ;;  %v421_v46 = vld [vmem:[%s3536_s29 + $0x870] sm:$0xff]   ;;  %v425_v47 = vld [vmem:[%s3536_s29 + $0x878] sm:$0xff]  }
  0x3f   : > { %410 = vst [vmem:[%s3544_s9 + $0x158] sm:$0xff] %v409_v43   ;;  %414 = vst [vmem:[%s3544_s9 + $0x160] sm:$0xff] %v413_v44   ;;  %v429_v48 = vld [vmem:[%s3536_s29 + $0x880] sm:$0xff]   ;;  %v433_v49 = vld [vmem:[%s3536_s29 + $0x888] sm:$0xff]  }
  0x40   : > { %418 = vst [vmem:[%s3544_s9 + $0x168] sm:$0xff] %v417_v45   ;;  %422 = vst [vmem:[%s3544_s9 + $0x170] sm:$0xff] %v421_v46   ;;  %v437_v50 = vld [vmem:[%s3536_s29 + $0x890] sm:$0xff]   ;;  %v441_v51 = vld [vmem:[%s3536_s29 + $0x898] sm:$0xff]  }
  0x41   : > { %426 = vst [vmem:[%s3544_s9 + $0x178] sm:$0xff] %v425_v47   ;;  %430 = vst [vmem:[%s3544_s9 + $0x180] sm:$0xff] %v429_v48   ;;  %v445_v52 = vld [vmem:[%s3536_s29 + $0x8a0] sm:$0xff]   ;;  %v449_v53 = vld [vmem:[%s3536_s29 + $0x8a8] sm:$0xff]  }
  0x42   : > { %434 = vst [vmem:[%s3544_s9 + $0x188] sm:$0xff] %v433_v49   ;;  %438 = vst [vmem:[%s3544_s9 + $0x190] sm:$0xff] %v437_v50   ;;  %v453_v54 = vld [vmem:[%s3536_s29 + $0x8b0] sm:$0xff]   ;;  %v457_v55 = vld [vmem:[%s3536_s29 + $0x8b8] sm:$0xff]  }
  0x43   : > { %442 = vst [vmem:[%s3544_s9 + $0x198] sm:$0xff] %v441_v51   ;;  %446 = vst [vmem:[%s3544_s9 + $0x1a0] sm:$0xff] %v445_v52   ;;  %v461_v56 = vld [vmem:[%s3536_s29 + $0x8c0] sm:$0xff]   ;;  %v465_v57 = vld [vmem:[%s3536_s29 + $0x8c8] sm:$0xff]  }
  0x44   : > { %450 = vst [vmem:[%s3544_s9 + $0x1a8] sm:$0xff] %v449_v53   ;;  %454 = vst [vmem:[%s3544_s9 + $0x1b0] sm:$0xff] %v453_v54   ;;  %v469_v58 = vld [vmem:[%s3536_s29 + $0x8d0] sm:$0xff]   ;;  %v473_v59 = vld [vmem:[%s3536_s29 + $0x8d8] sm:$0xff]  }
  0x45   : > { %458 = vst [vmem:[%s3544_s9 + $0x1b8] sm:$0xff] %v457_v55   ;;  %462 = vst [vmem:[%s3544_s9 + $0x1c0] sm:$0xff] %v461_v56   ;;  %v477_v60 = vld [vmem:[%s3536_s29 + $0x8e0] sm:$0xff]   ;;  %v481_v61 = vld [vmem:[%s3536_s29 + $0x8e8] sm:$0xff]  }
  0x46   : > { %466 = vst [vmem:[%s3544_s9 + $0x1c8] sm:$0xff] %v465_v57   ;;  %470 = vst [vmem:[%s3544_s9 + $0x1d0] sm:$0xff] %v469_v58   ;;  %v485_v62 = vld [vmem:[%s3536_s29 + $0x8f0] sm:$0xff]   ;;  %v489_v63 = vld [vmem:[%s3536_s29 + $0x8f8] sm:$0xff]  }
  0x47   : > { %474 = vst [vmem:[%s3544_s9 + $0x1d8] sm:$0xff] %v473_v59   ;;  %478 = vst [vmem:[%s3544_s9 + $0x1e0] sm:$0xff] %v477_v60   ;;  %v493_v0 = vld [vmem:[%s3536_s29 + $0x1000] sm:$0xff]   ;;  %v497_v1 = vld [vmem:[%s3536_s29 + $0x1008] sm:$0xff]  }
  0x48   : > { %482 = vst [vmem:[%s3544_s9 + $0x1e8] sm:$0xff] %v481_v61   ;;  %486 = vst [vmem:[%s3544_s9 + $0x1f0] sm:$0xff] %v485_v62   ;;  %v501_v2 = vld [vmem:[%s3536_s29 + $0x1010] sm:$0xff]   ;;  %v505_v3 = vld [vmem:[%s3536_s29 + $0x1018] sm:$0xff]  }
  0x49   : > { %490 = vst [vmem:[%s3544_s9 + $0x1f8] sm:$0xff] %v489_v63   ;;  %494 = vst [vmem:[%s3544_s9 + $0x200] sm:$0xff] %v493_v0   ;;  %v509_v4 = vld [vmem:[%s3536_s29 + $0x1020] sm:$0xff]   ;;  %v513_v5 = vld [vmem:[%s3536_s29 + $0x1028] sm:$0xff]  }
  0x4a   : > { %498 = vst [vmem:[%s3544_s9 + $0x208] sm:$0xff] %v497_v1   ;;  %502 = vst [vmem:[%s3544_s9 + $0x210] sm:$0xff] %v501_v2   ;;  %v517_v6 = vld [vmem:[%s3536_s29 + $0x1030] sm:$0xff]   ;;  %v521_v7 = vld [vmem:[%s3536_s29 + $0x1038] sm:$0xff]  }
  0x4b   : > { %506 = vst [vmem:[%s3544_s9 + $0x218] sm:$0xff] %v505_v3   ;;  %510 = vst [vmem:[%s3544_s9 + $0x220] sm:$0xff] %v509_v4   ;;  %v525_v8 = vld [vmem:[%s3536_s29 + $0x1040] sm:$0xff]   ;;  %v529_v9 = vld [vmem:[%s3536_s29 + $0x1048] sm:$0xff]  }
  0x4c   : > { %514 = vst [vmem:[%s3544_s9 + $0x228] sm:$0xff] %v513_v5   ;;  %518 = vst [vmem:[%s3544_s9 + $0x230] sm:$0xff] %v517_v6   ;;  %v533_v10 = vld [vmem:[%s3536_s29 + $0x1050] sm:$0xff]   ;;  %v537_v11 = vld [vmem:[%s3536_s29 + $0x1058] sm:$0xff]  }
  0x4d   : > { %522 = vst [vmem:[%s3544_s9 + $0x238] sm:$0xff] %v521_v7   ;;  %526 = vst [vmem:[%s3544_s9 + $0x240] sm:$0xff] %v525_v8   ;;  %v541_v12 = vld [vmem:[%s3536_s29 + $0x1060] sm:$0xff]   ;;  %v545_v13 = vld [vmem:[%s3536_s29 + $0x1068] sm:$0xff]  }
  0x4e   : > { %530 = vst [vmem:[%s3544_s9 + $0x248] sm:$0xff] %v529_v9   ;;  %534 = vst [vmem:[%s3544_s9 + $0x250] sm:$0xff] %v533_v10   ;;  %v549_v14 = vld [vmem:[%s3536_s29 + $0x1070] sm:$0xff]   ;;  %v553_v15 = vld [vmem:[%s3536_s29 + $0x1078] sm:$0xff]  }
  0x4f   : > { %538 = vst [vmem:[%s3544_s9 + $0x258] sm:$0xff] %v537_v11   ;;  %542 = vst [vmem:[%s3544_s9 + $0x260] sm:$0xff] %v541_v12   ;;  %v557_v16 = vld [vmem:[%s3536_s29 + $0x1080] sm:$0xff]   ;;  %v561_v17 = vld [vmem:[%s3536_s29 + $0x1088] sm:$0xff]  }
  0x50   : > { %546 = vst [vmem:[%s3544_s9 + $0x268] sm:$0xff] %v545_v13   ;;  %550 = vst [vmem:[%s3544_s9 + $0x270] sm:$0xff] %v549_v14   ;;  %v565_v18 = vld [vmem:[%s3536_s29 + $0x1090] sm:$0xff]   ;;  %v569_v19 = vld [vmem:[%s3536_s29 + $0x1098] sm:$0xff]  }
  0x51   : > { %554 = vst [vmem:[%s3544_s9 + $0x278] sm:$0xff] %v553_v15   ;;  %558 = vst [vmem:[%s3544_s9 + $0x280] sm:$0xff] %v557_v16   ;;  %v573_v20 = vld [vmem:[%s3536_s29 + $0x10a0] sm:$0xff]   ;;  %v577_v21 = vld [vmem:[%s3536_s29 + $0x10a8] sm:$0xff]  }
  0x52   : > { %562 = vst [vmem:[%s3544_s9 + $0x288] sm:$0xff] %v561_v17   ;;  %566 = vst [vmem:[%s3544_s9 + $0x290] sm:$0xff] %v565_v18   ;;  %v581_v22 = vld [vmem:[%s3536_s29 + $0x10b0] sm:$0xff]   ;;  %v585_v23 = vld [vmem:[%s3536_s29 + $0x10b8] sm:$0xff]  }
  0x53   : > { %570 = vst [vmem:[%s3544_s9 + $0x298] sm:$0xff] %v569_v19   ;;  %574 = vst [vmem:[%s3544_s9 + $0x2a0] sm:$0xff] %v573_v20   ;;  %v589_v24 = vld [vmem:[%s3536_s29 + $0x10c0] sm:$0xff]   ;;  %v593_v25 = vld [vmem:[%s3536_s29 + $0x10c8] sm:$0xff]  }
  0x54   : > { %578 = vst [vmem:[%s3544_s9 + $0x2a8] sm:$0xff] %v577_v21   ;;  %582 = vst [vmem:[%s3544_s9 + $0x2b0] sm:$0xff] %v581_v22   ;;  %v597_v26 = vld [vmem:[%s3536_s29 + $0x10d0] sm:$0xff]   ;;  %v601_v27 = vld [vmem:[%s3536_s29 + $0x10d8] sm:$0xff]  }
  0x55   : > { %586 = vst [vmem:[%s3544_s9 + $0x2b8] sm:$0xff] %v585_v23   ;;  %590 = vst [vmem:[%s3544_s9 + $0x2c0] sm:$0xff] %v589_v24   ;;  %v605_v28 = vld [vmem:[%s3536_s29 + $0x10e0] sm:$0xff]   ;;  %v609_v29 = vld [vmem:[%s3536_s29 + $0x10e8] sm:$0xff]  }
  0x56   : > { %594 = vst [vmem:[%s3544_s9 + $0x2c8] sm:$0xff] %v593_v25   ;;  %598 = vst [vmem:[%s3544_s9 + $0x2d0] sm:$0xff] %v597_v26   ;;  %v613_v30 = vld [vmem:[%s3536_s29 + $0x10f0] sm:$0xff]   ;;  %v617_v31 = vld [vmem:[%s3536_s29 + $0x10f8] sm:$0xff]  }
  0x57   : > { %602 = vst [vmem:[%s3544_s9 + $0x2d8] sm:$0xff] %v601_v27   ;;  %606 = vst [vmem:[%s3544_s9 + $0x2e0] sm:$0xff] %v605_v28  }
  0x58   : > { %610 = vst [vmem:[%s3544_s9 + $0x2e8] sm:$0xff] %v609_v29   ;;  %614 = vst [vmem:[%s3544_s9 + $0x2f0] sm:$0xff] %v613_v30  }
  0x59   : > { %618 = vst [vmem:[%s3544_s9 + $0x2f8] sm:$0xff] %v617_v31  }
  0x5a PF: > { %p2661_p0 = scmp.ge.s32.totalorder %s3401_s27, 1  ;;  %p1040_p1 = scmp.lt.s32.totalorder %s3401_s27, 17 }
  0x5c   : > { %p1041_p2 = pnand %p2661_p0, %p1040_p1 }
  0x5d   : > { %s1047_s10 = sand.u32 (!%p1041_p2), 1, %s3377_s21   ;;  %p1092_p3 = scmp.lt.s32.totalorder (!%p1041_p2), %s3389_s24, 1  ;;  %vm3404_vm0 = vmmov (!%p1041_p2), 0   ;;  %vm2131_vm1 = vcmask (!%p1041_p2), 523264   ;;  %vm2206_vm2 = vcmask (!%p1041_p2), 1043456   ;;  %vm2188_vm5 = vcmask (!%p1041_p2), 64512  }
  0x5e   : > { %1044 = sbr.rel (%p1041_p2) target bundleno = 1712 (0x6b0), region = 73  ;;  %s4015_s0 = sld [smem:[#allocation7_spill]] (!%p1041_p2) }
  0x5f   : > { %s3073_s13 = smul.u32 (!%p1041_p2), 768, %s1047_s10  ;;  %p1097_p4 = scmp.lt.s32.totalorder (!%p1041_p2), %s3385_s23, 7 }
  0x60   : > { %p2913_p5 = scmp.ne.s32.totalorder (!%p1041_p2), %s3385_s23, 0 }
  0x61   : > { %s3739_s28 = scalar_lea.vmem (!%p1041_p2), [#allocation3], %s3073_s13 }
  0x62   : > { %v3165_v32 = vld [vmem:[%s3739_s28 + $0x40] sm:$0xff] (!%p1041_p2)   ;;  %v3169_v36 = vld [vmem:[%s3739_s28 + $0x48] sm:$0xff] (!%p1041_p2)   ;;  %v3173_v40 = vld [vmem:[%s3739_s28 + $0x50] sm:$0xff] (!%p1041_p2)  }
  0x63   : > { %v3166_v33 = vld [vmem:[%s3739_s28 + $0xc0] sm:$0xff] (!%p1041_p2)   ;;  %2924 = vmatprep.subr.bf16.mxu0 (!%p1041_p2), %v3165_v32  ;;  %v3170_v37 = vld [vmem:[%s3739_s28 + $0xc8] sm:$0xff] (!%p1041_p2)   ;;  %v3174_v41 = vld [vmem:[%s3739_s28 + $0xd0] sm:$0xff] (!%p1041_p2)  }
  0x64   : > { %v3167_v34 = vld [vmem:[%s3739_s28] sm:$0xff] (!%p1041_p2)   ;;  %2946 = vmatprep.subr.bf16.mxu1 (!%p1041_p2), %v3166_v33  ;;  %v3171_v38 = vld [vmem:[%s3739_s28 + $0x8] sm:$0xff] (!%p1041_p2)   ;;  %v3175_v42 = vld [vmem:[%s3739_s28 + $0x10] sm:$0xff] (!%p1041_p2)  }
  0x65   : > { %s3737_s17 = scalar_select %p1092_p3, %s3389_s24, 1  ;;  %v3168_v35 = vld [vmem:[%s3739_s28 + $0x80] sm:$0xff]   ;;  %2925 = vmatpush3.bf16.msra.mxu0 %v3167_v34  ;;  %v3172_v39 = vld [vmem:[%s3739_s28 + $0x88] sm:$0xff]   ;;  %v3176_v43 = vld [vmem:[%s3739_s28 + $0x90] sm:$0xff]  }
  0x66   : > { %2947 = vmatpush3.bf16.msra.mxu1 %v3168_v35  ;;  %2926 = vmatprep.subr.bf16.mxu0 %v3169_v36  ;;  %v3177_v44 = vld [vmem:[%s3739_s28 + $0x58] sm:$0xff]   ;;  %v3181_v48 = vld [vmem:[%s3739_s28 + $0x60] sm:$0xff]   ;;  %v3185_v52 = vld [vmem:[%s3739_s28 + $0x68] sm:$0xff]  }
  0x67   : > { %s2921_s7 = sshll.u32 %s3737_s17, 5  ;;  %2948 = vmatprep.subr.bf16.mxu1 %v3170_v37  ;;  %v3178_v45 = vld [vmem:[%s3739_s28 + $0xd8] sm:$0xff]   ;;  %v3182_v49 = vld [vmem:[%s3739_s28 + $0xe0] sm:$0xff]   ;;  %v3186_v53 = vld [vmem:[%s3739_s28 + $0xe8] sm:$0xff]  }
  0x68   : > { %s3749_s12 = scalar_lea.vmem %s4007_s4, %s2921_s7  ;;  %v3179_v46 = vld [vmem:[%s3739_s28 + $0x18] sm:$0xff]   ;;  %v3183_v50 = vld [vmem:[%s3739_s28 + $0x20] sm:$0xff]   ;;  %v3187_v54 = vld [vmem:[%s3739_s28 + $0x28] sm:$0xff]   ;;  %s1096_s10 = scalar_lea.vmem %s4015_s0, %s2921_s7 }
  0x69   : > { %2927 = vmatpush3.bf16.msra.mxu0 %v3171_v38  ;;  %v3180_v47 = vld [vmem:[%s3739_s28 + $0x98] sm:$0xff]   ;;  %v3184_v51 = vld [vmem:[%s3739_s28 + $0xa0] sm:$0xff]   ;;  %v3188_v55 = vld [vmem:[%s3739_s28 + $0xa8] sm:$0xff]   ;;  %s1104_s7 = scalar_lea.vmem %s4006_s3, %s3737_s17 }
  0x6a   : > { %2949 = vmatpush3.bf16.msra.mxu1 %v3172_v39  ;;  %2928 = vmatprep.subr.bf16.mxu0 %v3173_v40  ;;  %v3189_v56 = vld [vmem:[%s3739_s28 + $0x70] sm:$0xff]   ;;  %v3193_v60 = vld [vmem:[%s3739_s28 + $0x78] sm:$0xff]   ;;  %v3786_v0 = vld [vmem:[%s1096_s10 + $0x8] sm:$0xff]  ;;  %s1098_s17 = scalar_select %p1097_p4, %s3385_s23, 7 }
  0x6b   : > { %2950 = vmatprep.subr.bf16.mxu1 %v3174_v41  ;;  %v3190_v57 = vld [vmem:[%s3739_s28 + $0xf0] sm:$0xff]   ;;  %v3194_v61 = vld [vmem:[%s3739_s28 + $0xf8] sm:$0xff]   ;;  %v3790_v2 = vld [vmem:[%s1096_s10] sm:$0xff]  ;;  %v3794_v3 = vpack.c.bf16 %v3786_v0, %v3786_v0 }
  0x6c   : > { %v3191_v58 = vld [vmem:[%s3739_s28 + $0x30] sm:$0xff]   ;;  %v3195_v62 = vld [vmem:[%s3739_s28 + $0x38] sm:$0xff]   ;;  %v3802_v5 = vpack.c.bf16 %v3790_v2, %v3790_v2  ;;  %v3197_v8 = vld [vmem:[%s3739_s28 + $0x140] sm:$0xff]   ;;  %s2922_s21 = sshll.u32 %s1098_s17, 7 }
  0x6d   : > { %2929 = vmatpush3.bf16.msra.mxu0 %v3175_v42  ;;  %v3192_v59 = vld [vmem:[%s3739_s28 + $0xb0] sm:$0xff]   ;;  %v3196_v63 = vld [vmem:[%s3739_s28 + $0xb8] sm:$0xff]   ;;  %1407 = vmatprep.mubr.bf16.mxu0 %v3794_v3  ;;  %v3198_v9 = vld [vmem:[%s3739_s28 + $0x1c0] sm:$0xff]   ;;  %s3901_s9 = scalar_lea.vmem %s4005_s2, %s2922_s21 }
  0x6e   : > { %2951 = vmatpush3.bf16.msra.mxu1 %v3176_v43  ;;  %2930 = vmatprep.subr.bf16.mxu0 %v3177_v44  ;;  %v3788_v1 = vld [vmem:[%s1096_s10 + $0x18] sm:$0xff]  ;;  %v3804_v6 = vld [vmem:[%s1096_s10 + $0x10] sm:$0xff]  ;;  %v3199_v10 = vld [vmem:[%s3739_s28 + $0x100] sm:$0xff]   ;;  %s1089_s10 = sand.u32 1, %s3369_s19  }
  0x6f   : > { %2952 = vmatprep.subr.bf16.mxu1 %v3178_v45  ;;  %v3798_v4 = vpack.c.bf16 %v3788_v1, %v3788_v1  ;;  %v3808_v7 = vpack.c.bf16 %v3804_v6, %v3804_v6  ;;  %v3200_v11 = vld [vmem:[%s3739_s28 + $0x180] sm:$0xff]   ;;  %v3201_v12 = vld [vmem:[%s3739_s28 + $0x148] sm:$0xff]   ;;  %v3205_v16 = vld [vmem:[%s3739_s28 + $0x150] sm:$0xff]   ;;  %s3915_s13 = sshll.u32 %s1089_s10, 3 }
  0x70   : > { %v3202_v13 = vld [vmem:[%s3739_s28 + $0x1c8] sm:$0xff]   ;;  %v3206_v17 = vld [vmem:[%s3739_s28 + $0x1d0] sm:$0xff]   ;;  %v3209_v20 = vld [vmem:[%s3739_s28 + $0x158] sm:$0xff]  }
  0x71   : > { %2931 = vmatpush3.bf16.msra.mxu0 %v3179_v46  ;;  %1447 = vmatprep.mubr.bf16.mxu1 %v3798_v4  ;;  %v3203_v14 = vld [vmem:[%s3739_s28 + $0x108] sm:$0xff]   ;;  %v3207_v18 = vld [vmem:[%s3739_s28 + $0x110] sm:$0xff]   ;;  %v3210_v21 = vld [vmem:[%s3739_s28 + $0x1d8] sm:$0xff]  }
  0x72   : > { %2953 = vmatpush3.bf16.msra.mxu1 %v3180_v47  ;;  %2932 = vmatprep.subr.bf16.mxu0 %v3181_v48  ;;  %v3204_v15 = vld [vmem:[%s3739_s28 + $0x188] sm:$0xff]   ;;  %v3208_v19 = vld [vmem:[%s3739_s28 + $0x190] sm:$0xff]   ;;  %v3211_v22 = vld [vmem:[%s3739_s28 + $0x118] sm:$0xff]  }
  0x73   : > { %2954 = vmatprep.subr.bf16.mxu1 %v3182_v49  ;;  %v3212_v23 = vld [vmem:[%s3739_s28 + $0x198] sm:$0xff]   ;;  %v3213_v24 = vld [vmem:[%s3739_s28 + $0x160] sm:$0xff]   ;;  %v3217_v28 = vld [vmem:[%s3739_s28 + $0x168] sm:$0xff]  }
  0x74   : > { %v3214_v25 = vld [vmem:[%s3739_s28 + $0x1e0] sm:$0xff]   ;;  %v3218_v29 = vld [vmem:[%s3739_s28 + $0x1e8] sm:$0xff]   ;;  %v3221_v32 = vld [vmem:[%s3739_s28 + $0x170] sm:$0xff]  }
  0x75   : > { %2933 = vmatpush3.bf16.msra.mxu0 %v3183_v50  ;;  %v3215_v26 = vld [vmem:[%s3739_s28 + $0x120] sm:$0xff]   ;;  %v3219_v30 = vld [vmem:[%s3739_s28 + $0x128] sm:$0xff]   ;;  %v3222_v33 = vld [vmem:[%s3739_s28 + $0x1f0] sm:$0xff]  }
  0x76   : > { %2955 = vmatpush3.bf16.msra.mxu1 %v3184_v51  ;;  %2934 = vmatprep.subr.bf16.mxu0 %v3185_v52  ;;  %v3216_v27 = vld [vmem:[%s3739_s28 + $0x1a0] sm:$0xff]   ;;  %v3220_v31 = vld [vmem:[%s3739_s28 + $0x1a8] sm:$0xff]   ;;  %v3223_v34 = vld [vmem:[%s3739_s28 + $0x130] sm:$0xff]  }
  0x77   : > { %2956 = vmatprep.subr.bf16.mxu1 %v3186_v53  ;;  %v3224_v35 = vld [vmem:[%s3739_s28 + $0x1b0] sm:$0xff]   ;;  %v3225_v36 = vld [vmem:[%s3739_s28 + $0x178] sm:$0xff]   ;;  %v3229_v40 = vld [vmem:[%s3739_s28 + $0x240] sm:$0xff]  }
  0x78   : > { %v3226_v37 = vld [vmem:[%s3739_s28 + $0x1f8] sm:$0xff]   ;;  %v3230_v41 = vld [vmem:[%s3739_s28 + $0x200] sm:$0xff]   ;;  %v3231_v42 = vld [vmem:[%s3739_s28 + $0x248] sm:$0xff]  }
  0x79   : > { %2935 = vmatpush3.bf16.msra.mxu0 %v3187_v54  ;;  %v3227_v38 = vld [vmem:[%s3739_s28 + $0x138] sm:$0xff]   ;;  %v3232_v43 = vld [vmem:[%s3739_s28 + $0x208] sm:$0xff]   ;;  %v3233_v44 = vld [vmem:[%s3739_s28 + $0x2c0] sm:$0xff]  }
  0x7a   : > { %2957 = vmatpush3.bf16.msra.mxu1 %v3188_v55  ;;  %2936 = vmatprep.subr.bf16.mxu0 %v3189_v56  ;;  %v3228_v39 = vld [vmem:[%s3739_s28 + $0x1b8] sm:$0xff]   ;;  %v3234_v45 = vld [vmem:[%s3739_s28 + $0x280] sm:$0xff]   ;;  %v3235_v46 = vld [vmem:[%s3739_s28 + $0x250] sm:$0xff]  }
  0x7b   : > { %2958 = vmatprep.subr.bf16.mxu1 %v3190_v57  ;;  %v3237_v47 = vld [vmem:[%s3739_s28 + $0x2c8] sm:$0xff]   ;;  %v3236_v49 = vld [vmem:[%s3739_s28 + $0x210] sm:$0xff]   ;;  %v3239_v51 = vld [vmem:[%s3739_s28 + $0x258] sm:$0xff]  }
  0x7c   : > { %v3238_v48 = vld [vmem:[%s3739_s28 + $0x288] sm:$0xff]   ;;  %v3241_v50 = vld [vmem:[%s3739_s28 + $0x2d0] sm:$0xff]   ;;  %v3240_v53 = vld [vmem:[%s3739_s28 + $0x218] sm:$0xff]  }
  0x7d   : > { %2937 = vmatpush3.bf16.msra.mxu0 %v3191_v58  ;;  %v3242_v52 = vld [vmem:[%s3739_s28 + $0x290] sm:$0xff]   ;;  %v3245_v54 = vld [vmem:[%s3739_s28 + $0x2d8] sm:$0xff]   ;;  %v3243_v55 = vld [vmem:[%s3739_s28 + $0x260] sm:$0xff]  }
  0x7e   : > { %2959 = vmatpush3.bf16.msra.mxu1 %v3192_v59  ;;  %2938 = vmatprep.subr.bf16.mxu0 %v3193_v60  ;;  %v3246_v56 = vld [vmem:[%s3739_s28 + $0x298] sm:$0xff]   ;;  %v3244_v57 = vld [vmem:[%s3739_s28 + $0x220] sm:$0xff]   ;;  %v3247_v59 = vld [vmem:[%s3739_s28 + $0x268] sm:$0xff]  }
  0x7f   : > { %2960 = vmatprep.subr.bf16.mxu1 %v3194_v61  ;;  %v3249_v58 = vld [vmem:[%s3739_s28 + $0x2e0] sm:$0xff]   ;;  %v3248_v61 = vld [vmem:[%s3739_s28 + $0x228] sm:$0xff]  }
  0x80   : > { %v3250_v60 = vld [vmem:[%s3739_s28 + $0x2a0] sm:$0xff]  }
  0x81   : > { %2939 = vmatpush3.bf16.msra.mxu0 %v3195_v62  ;;  %v3253_v62 = vld [vmem:[%s3739_s28 + $0x2e8] sm:$0xff]  }
  0x82   : > { %2961 = vmatpush3.bf16.msra.mxu1 %v3196_v63  ;;  %2968 = vmatprep.subr.bf16.mxu0 %v3197_v8  ;;  %v3251_v63 = vld [vmem:[%s3739_s28 + $0x270] sm:$0xff]   ;;  %v3255_v8 = vld [vmem:[%s3739_s28 + $0x278] sm:$0xff]  }
  0x83   : > { %2990 = vmatprep.subr.bf16.mxu1 %v3198_v9  ;;  %v3257_v9 = vld [vmem:[%s3739_s28 + $0x2f0] sm:$0xff]  }
  0x84   : > { %1408 = vmatmul.mubr.bf16.vlgmr.msra.gmra.mrb[0].mxu0 %v3802_v5 }
  0x85   : > { %1448 = vmatmul.mubr.bf16.vlgmr.msra.gmra.mrb[0].mxu1 %v3808_v7  ;;  %2969 = vmatpush3.bf16.msra.mxu0 %v3199_v10  ;;  %v3256_v10 = vld [vmem:[%s3739_s28 + $0x238] sm:$0xff]  }
  0x86   : > { %1744 = vmatprep.mubr.bf16.mxu0 %v3794_v3  ;;  %2991 = vmatpush3.bf16.msra.mxu1 %v3200_v11  ;;  %v3258_v11 = vld [vmem:[%s3739_s28 + $0x2b0] sm:$0xff]  }
  0x87   : > { %1784 = vmatprep.mubr.bf16.mxu1 %v3798_v4  ;;  %2970 = vmatprep.subr.bf16.mxu0 %v3201_v12  ;;  %v3259_v12 = vld [vmem:[%s3739_s28 + $0x2f8] sm:$0xff]  }
  0x88   : > { %2992 = vmatprep.subr.bf16.mxu1 %v3202_v13  ;;  %v3260_v13 = vld [vmem:[%s3739_s28 + $0x2b8] sm:$0xff]  }
  0x89   : > { %2971 = vmatpush3.bf16.msra.mxu0 %v3203_v14  ;;  %v3403_v14 = vmov 0.0  }
  0x8a   : > { %2993 = vmatpush3.bf16.msra.mxu1 %v3204_v15  ;;  %2972 = vmatprep.subr.bf16.mxu0 %v3205_v16 }
  0x8b   : > { %2994 = vmatprep.subr.bf16.mxu1 %v3206_v17 }
  0x8d   : > { %2973 = vmatpush3.bf16.msra.mxu0 %v3207_v18 }
  0x8e   : > { %2995 = vmatpush3.bf16.msra.mxu1 %v3208_v19  ;;  %2974 = vmatprep.subr.bf16.mxu0 %v3209_v20 }
  0x8f   : > { %2996 = vmatprep.subr.bf16.mxu1 %v3210_v21 }
  0x91   : > { %2975 = vmatpush3.bf16.msra.mxu0 %v3211_v22 }
  0x92   : > { %2997 = vmatpush3.bf16.msra.mxu1 %v3212_v23  ;;  %2976 = vmatprep.subr.bf16.mxu0 %v3213_v24 }
  0x93   : > { %2998 = vmatprep.subr.bf16.mxu1 %v3214_v25 }
  0x95   : > { %2977 = vmatpush3.bf16.msra.mxu0 %v3215_v26 }
  0x96   : > { %2999 = vmatpush3.bf16.msra.mxu1 %v3216_v27  ;;  %2978 = vmatprep.subr.bf16.mxu0 %v3217_v28 }
  0x97   : > { %3000 = vmatprep.subr.bf16.mxu1 %v3218_v29 }
  0x99   : > { %2979 = vmatpush3.bf16.msra.mxu0 %v3219_v30 }
  0x9a   : > { %3001 = vmatpush3.bf16.msra.mxu1 %v3220_v31  ;;  %2980 = vmatprep.subr.bf16.mxu0 %v3221_v32 }
  0x9b   : > { %3002 = vmatprep.subr.bf16.mxu1 %v3222_v33 }
  0x9d   : > { %2981 = vmatpush3.bf16.msra.mxu0 %v3223_v34 }
  0x9e   : > { %3003 = vmatpush3.bf16.msra.mxu1 %v3224_v35  ;;  %2982 = vmatprep.subr.bf16.mxu0 %v3225_v36 }
  0x9f   : > { %3004 = vmatprep.subr.bf16.mxu1 %v3226_v37 }
  0xa1   : > { %2983 = vmatpush3.bf16.msra.mxu0 %v3227_v38 }
  0xa2   : > { %3005 = vmatpush3.bf16.msra.mxu1 %v3228_v39  ;;  %3012 = vmatprep.subr.bf16.mxu0 %v3229_v40 }
  0xa3   : > { %3034 = vmatprep.subr.bf16.mxu1 %v3233_v44 }
  0xa4   : > { %1745 = vmatmul.mubr.bf16.vlgmr.msra.gmra.mrb[4].mxu0 %v3802_v5 }
  0xa5   : > { %1785 = vmatmul.mubr.bf16.vlgmr.msra.gmra.mrb[4].mxu1 %v3808_v7  ;;  %2081 = vmatprep.mubr.bf16.mxu0 %v3794_v3  ;;  %v3254_v3 = vld [vmem:[%s3739_s28 + $0x2a8] sm:$0xff]  }
  0xa6   : > { %2121 = vmatprep.mubr.bf16.mxu1 %v3798_v4  ;;  %3013 = vmatpush3.bf16.msra.mxu0 %v3230_v41  ;;  %v3252_v4 = vld [vmem:[%s3739_s28 + $0x230] sm:$0xff]   ;;  %s1091_s28 = scalar_lea.vmem [#allocation4], %s3915_s13 }
  0xa7   : > { %3014 = vmatprep.subr.bf16.mxu0 %v3231_v42  ;;  %3035 = vmatpush3.bf16.msra.mxu1 %v3234_v45 }
  0xa8   : > { %3036 = vmatprep.subr.bf16.mxu1 %v3237_v47 }
  0xaa   : > { %3015 = vmatpush3.bf16.msra.mxu0 %v3232_v43 }
  0xab   : > { %3016 = vmatprep.subr.bf16.mxu0 %v3235_v46  ;;  %3037 = vmatpush3.bf16.msra.mxu1 %v3238_v48 }
  0xac   : > { %3038 = vmatprep.subr.bf16.mxu1 %v3241_v50 }
  0xae   : > { %3017 = vmatpush3.bf16.msra.mxu0 %v3236_v49 }
  0xaf   : > { %3018 = vmatprep.subr.bf16.mxu0 %v3239_v51  ;;  %3039 = vmatpush3.bf16.msra.mxu1 %v3242_v52  ;;  %v3405_v51 = vmov 0   ;;  %v2182_v52 = vlaneseq }
  0xb0   : > { %3040 = vmatprep.subr.bf16.mxu1 %v3245_v54 }
  0xb1   : > { %v2183_v54 = vshrl.u32 %v2182_v52, 7 }
  0xb2   : > { %3019 = vmatpush3.bf16.msra.mxu0 %v3240_v53  ;;  %v2179_v53 = vld [vmem:[%s1104_s7] sm:$0x1] }
  0xb3   : > { %3020 = vmatprep.subr.bf16.mxu0 %v3243_v55  ;;  %3041 = vmatpush3.bf16.msra.mxu1 %v3246_v56  ;;  %vm2180_vm3 = vcmp.gt.f32.partialorder %v2179_v53, 0.0  ;;  %v2184_v55 = vsub.s32 0, %v2183_v54 }
  0xb4   : > { %3042 = vmatprep.subr.bf16.mxu1 %v3249_v58  ;;  %v2181_v56 = vsel %vm2180_vm3, 1, %v3405_v51 }
  0xb6   : > { %3021 = vmatpush3.bf16.msra.mxu0 %v3244_v57  ;;  %v2185_v57 = vrot.slane %v2181_v56, %v2184_v55 }
  0xb7   : > { %3022 = vmatprep.subr.bf16.mxu0 %v3247_v59  ;;  %3043 = vmatpush3.bf16.msra.mxu1 %v3250_v60 }
  0xb8   : > { %3044 = vmatprep.subr.bf16.mxu1 %v3253_v62  ;;  %vm2186_vm4 = vcmp.eq.s32.totalorder %v2185_v57, 1 }
  0xba   : > { %3023 = vmatpush3.bf16.msra.mxu0 %v3248_v61 }
  0xbb   : > { %3024 = vmatprep.subr.bf16.mxu0 %v3251_v63  ;;  %3045 = vmatpush3.bf16.msra.mxu1 %v3254_v3 }
  0xbc   : > { %3046 = vmatprep.subr.bf16.mxu1 %v3257_v9 }
  0xbe   : > { %3025 = vmatpush3.bf16.msra.mxu0 %v3252_v4 }
  0xbf   : > { %3026 = vmatprep.subr.bf16.mxu0 %v3255_v8  ;;  %3047 = vmatpush3.bf16.msra.mxu1 %v3258_v11 }
  0xc0   : > { %3048 = vmatprep.subr.bf16.mxu1 %v3259_v12  ;;  %v3261_v12 = vld [vmem:[%s3901_s9] ss:$16 sps:$4 sm:$0xff]  }
  0xc2   : > { %3027 = vmatpush3.bf16.msra.mxu0 %v3256_v10 }
  0xc3   : > { %3049 = vmatpush3.bf16.msra.mxu1 %v3260_v13  ;;  %3060 = vmatprep.subr.bf16.mxu0 %v3403_v14  ;;  %v3263_v13 = vld [vmem:[%s3901_s9 + $0x4] ss:$16 sps:$4 sm:$0xff]  }
  0xc4   : > { %3066 = vmatprep.subr.bf16.mxu1 %v3403_v14 }
  0xc5   : > { %2082 = vmatmul.mubr.bf16.vlgmr.msra.gmra.mrb[8].mxu0 %v3802_v5 }
  0xc6   : > { %2122 = vmatmul.mubr.bf16.vlgmr.msra.gmra.mrb[8].mxu1 %v3808_v7  ;;  %3062 = vmatprep.mubr.msk.bf16.mxu0 %vm3404_vm0, %v3403_v14 }
  0xc7   : > { %3068 = vmatprep.mubr.msk.bf16.mxu1 %vm3404_vm0, %v3403_v14  ;;  %v3266_v14 = vld [vmem:[%s3901_s9 + $0xc] ss:$16 sps:$4 sm:$0xff]  }
 0x157   : > { %v2940_v15 = vpop.f32.mrb[0].mxu0 }
 0x158   : > { %v2962_v16 = vpop.f32.mrb[0].mxu1  ;;  %v2941_v17 = vpop.f32.mrb[1].mxu0 }
 0x159   : > { %v2963_v18 = vpop.f32.mrb[1].mxu1  ;;  %v2942_v19 = vadd.f32 %v2941_v17, %v2940_v15  ;;  %v2943_v21 = vpop.f32.mrb[2].mxu0  ;;  %v3269_v15 = vld [vmem:[%s3901_s9 + $0x24] ss:$16 sps:$4 sm:$0xff]  }
 0x15a   : > { %v2964_v20 = vadd.f32 %v2963_v18, %v2962_v16  ;;  %v2965_v22 = vpop.f32.mrb[2].mxu1  ;;  %v2944_v23 = vpop.f32.mrb[3].mxu0  ;;  %v3267_v16 = vld [vmem:[%s3901_s9 + $0x20] ss:$16 sps:$4 sm:$0xff]   ;;  %v3275_v17 = vld [vmem:[%s3901_s9 + $0x44] ss:$16 sps:$4 sm:$0xff]  }
 0x15b   : > { %v2966_v24 = vpop.f32.mrb[3].mxu1  ;;  %v3273_v18 = vld [vmem:[%s3901_s9 + $0x40] ss:$16 sps:$4 sm:$0xff]  }
 0x15c   : > { %v1450_v5 = vadd.f32 %v2964_v20, %v2942_v19  ;;  %v3281_v19 = vld [vmem:[%s3901_s9 + $0x64] ss:$16 sps:$4 sm:$0xff]   ;;  %v3279_v20 = vld [vmem:[%s3901_s9 + $0x60] ss:$16 sps:$4 sm:$0xff]   ;;  %v3264_v24 = vld [vmem:[%s3901_s9 + $0x8] ss:$16 sps:$4 sm:$0xff]  }
 0x15e   : > { %v2129_v37 = vpack.c.bf16 %v1450_v5, %v1450_v5 }
 0x177   : > { %v2984_v25 = vpop.f32.mrb[4].mxu0 }
 0x178   : > { %v3006_v26 = vpop.f32.mrb[4].mxu1  ;;  %v2985_v7 = vpop.f32.mrb[5].mxu0 }
 0x179   : > { %v2986_v27 = vadd.f32 %v2985_v7, %v2984_v25  ;;  %v3007_v28 = vpop.f32.mrb[5].mxu1  ;;  %v2987_v29 = vpop.f32.mrb[6].mxu0  ;;  %v3272_v25 = vld [vmem:[%s3901_s9 + $0x2c] ss:$16 sps:$4 sm:$0xff]  }
 0x17a   : > { %v3008_v30 = vadd.f32 %v3007_v28, %v3006_v26  ;;  %v3009_v31 = vpop.f32.mrb[6].mxu1  ;;  %v2988_v32 = vpop.f32.mrb[7].mxu0  ;;  %v3270_v26 = vld [vmem:[%s3901_s9 + $0x28] ss:$16 sps:$4 sm:$0xff]   ;;  %v3278_v7 = vld [vmem:[%s3901_s9 + $0x4c] ss:$16 sps:$4 sm:$0xff]  }
 0x17b   : > { %v3010_v33 = vpop.f32.mrb[7].mxu1  ;;  %v3284_v28 = vld [vmem:[%s3901_s9 + $0x6c] ss:$16 sps:$4 sm:$0xff]   ;;  %v3282_v29 = vld [vmem:[%s3901_s9 + $0x68] ss:$16 sps:$4 sm:$0xff]  }
 0x17c   : > { %v1787_v34 = vadd.f32 %v3008_v30, %v2986_v27  ;;  %v3276_v27 = vld [vmem:[%s3901_s9 + $0x48] ss:$16 sps:$4 sm:$0xff]  }
 0x17e   : > { %v2130_v35 = vpack.c.bf16 %v1787_v34, %v1787_v34 }
 0x180   : > { %v2136_v36 = vsel %vm2131_vm1, %v2130_v35, 0 }
 0x181   : > { %3061 = vmatpush3.bf16.xpose.msra.mxu0 %v2136_v36 }
 0x182   : > { %2350 = vmatprep.subr.bf16.mxu0 %v3263_v13 }
 0x188   : > { %3063 = vmatmul.mubr.msk.bf16.vlgmr.msra.gmra.mrb[12].mxu0 %vm2131_vm1, %v2129_v37 }
 0x189   : > { %2382 = vmatprep.mubr.bf16.mxu0 %v3405_v51  ;;  %2351 = vmatpush1.bf16.msra.mxu0 %v3261_v12 }
 0x18a   : > { %2352 = vmatprep.subr.bf16.mxu0 %v3269_v15 }
 0x18d   : > { %2353 = vmatpush1.bf16.msra.mxu0 %v3267_v16 }
 0x18e   : > { %2354 = vmatprep.subr.bf16.mxu0 %v3275_v17 }
 0x191   : > { %2355 = vmatpush1.bf16.msra.mxu0 %v3273_v18 }
 0x192   : > { %2356 = vmatprep.subr.bf16.mxu0 %v3281_v19 }
 0x195   : > { %2357 = vmatpush1.bf16.msra.mxu0 %v3279_v20 }
 0x198   : > { %v3028_v38 = vpop.f32.mrb[8].mxu0 }
 0x199   : > { %v3029_v39 = vpop.f32.mrb[9].mxu0  ;;  %v3050_v43 = vpop.f32.mrb[8].mxu1 }
 0x19a   : > { %v3030_v40 = vadd.f32 %v3029_v39, %v3028_v38  ;;  %v3031_v41 = vpop.f32.mrb[10].mxu0  ;;  %v3051_v44 = vpop.f32.mrb[9].mxu1 }
 0x19b   : > { %v3032_v42 = vpop.f32.mrb[11].mxu0  ;;  %v3052_v45 = vadd.f32 %v3051_v44, %v3050_v43  ;;  %v3053_v46 = vpop.f32.mrb[10].mxu1  ;;  %v3406_v43 = vmov (!%p2913_p5), 0.0  }
 0x19c   : > { %v3054_v47 = vpop.f32.mrb[11].mxu1  ;;  %2436 = vst [vmem:[#allocation2] sm:$0xff] (!%p2913_p5), %v3406_v43  ;;  %2437 = vst [vmem:[#allocation2 + $0x8] sm:$0xff] (!%p2913_p5), %v3406_v43 }
 0x19d   : > { %v2124_v48 = vadd.f32 %v3052_v45, %v3030_v40  ;;  %2438 = vst [vmem:[#allocation2 + $0x10] sm:$0xff] (!%p2913_p5), %v3406_v43  ;;  %2439 = vst [vmem:[#allocation2 + $0x18] sm:$0xff] (!%p2913_p5), %v3406_v43 }
 0x19f   : > { %v2202_v49 = vpack.c.bf16 %v2124_v48, %v2124_v48 }
 0x1a1   : > { %v2208_v50 = vsel %vm2206_vm2, %v2202_v49, 0 }
 0x1a2   : > { %3067 = vmatpush3.bf16.msra.mxu1 %v2208_v50 }
 0x1a3   : > { %2391 = vmatprep.subr.bf16.mxu1 %v3266_v14 }
 0x25b   : > { %v2172_v58 = vpop.f32.mrb[12].mxu0 }
 0x25c   : > { %v2178_v59 = vmul.f32 0.125, %v2172_v58  ;;  %v3064_v60 = vpop.f32.mrb[13].mxu0 }
 0x25d   : > { %v2175_v61 = vpop.f32.mrb[14].mxu0 }
 0x25e   : > { %v3065_v62 = vpop.f32.mrb[15].mxu0  ;;  %v2187_v63 = vsel %vm2186_vm4, -1e+09, %v2178_v59 }
 0x25f   : > { %v2189_v3 = vsel %vm2188_vm5, %v2187_v63, -inf }
 0x260   : > { %2190 = vmax.xlane.f32.xlu0 %v2189_v3 }
 0x2ed   : > { %v2191_v4 = vpop.xlane.xlu0 %2190 }
 0x2ee   : > { %v2192_v8 = vsub.f32 %v2187_v63, %v2191_v4 }
 0x2f0   : > { %v2193_v9 = vmul.f32 1.442695, %v2192_v8 }
 0x2f2   : > { %3285 = vpow2.f32 %v2193_v9 }
 0x2fc   : > { %v3286_v10 = vpop.eup %3285 }
 0x2fd   : > { %v2195_v11 = vsel %vm2188_vm5, %v3286_v10, 0.0 }
 0x2fe   : > { %2196 = vadd.xlane.f32.xlu0 %v2195_v11 }
 0x38b   : > { %v2197_v21 = vpop.xlane.xlu0 %2196 }
 0x38c   : > { %3287 = vrcp.f32 %v2197_v21 }
 0x396   : > { %v3288_v22 = vpop.eup %3287 }
 0x397   : > { %v2199_v23 = vmul.f32 %v3288_v22, %v3286_v10 }
 0x399   : > { %2200 = vst.msk [vmem:[%s1091_s28] sm:$0xff] %vm2188_vm5, %v2199_v23  ;;  %v2201_v5 = vpack.c.bf16 %v2199_v23, %v2199_v23 }
 0x39b   : > { %3069 = vmatmul.mubr.msk.bf16.vlgmr.msra.gmra.mrb[12].mxu1 %vm2188_vm5, %v2201_v5 }
 0x39c   : > { %2392 = vmatpush1.bf16.msra.mxu1 %v3264_v24  ;;  %2423 = vmatprep.mubr.bf16.mxu1 %v3405_v51 }
 0x39d   : > { %2393 = vmatprep.subr.bf16.mxu1 %v3272_v25 }
 0x3a0   : > { %2394 = vmatpush1.bf16.msra.mxu1 %v3270_v26 }
 0x3a1   : > { %2395 = vmatprep.subr.bf16.mxu1 %v3278_v7 }
 0x3a4   : > { %2396 = vmatpush1.bf16.msra.mxu1 %v3276_v27 }
 0x3a5   : > { %2397 = vmatprep.subr.bf16.mxu1 %v3284_v28 }
 0x3a8   : > { %2398 = vmatpush1.bf16.msra.mxu1 %v3282_v29 }
 0x46e   : > { %v2244_v30 = vpop.f32.mrb[12].mxu1 }
 0x46f   : > { %v2250_v31 = vpack.c.bf16 %v2244_v30, %v2244_v30  ;;  %v3070_v32 = vpop.f32.mrb[13].mxu1 }
 0x470   : > { %v2247_v33 = vpop.f32.mrb[14].mxu1 }
 0x471   : > { %v3071_v34 = vpop.f32.mrb[15].mxu1  ;;  %2911 = vmatmul.mubr.msk.bf16.vlgmr.msra.gmra.mrb[16].mxu0 %vm2131_vm1, %v2250_v31  ;;  %2912 = vmatmul.mubr.msk.bf16.vlgmr.msra.gmra.mrb[16].mxu1 %vm2131_vm1, %v2250_v31 }
 0x541   : > { %2435 = sbr.rel (%p2913_p5) target bundleno = 1352 (0x548), region = 81 }
 0x544   : > { %v2384_v35 = vpop.f32.mrb[16].mxu0  ;;  %v2425_v36 = vpop.f32.mrb[16].mxu1 }
 0x545   : > { %v2386_v37 = vpop.f32.mrb[17].mxu0  ;;  %v2427_v38 = vpop.f32.mrb[17].mxu1 }
 0x546   : > { %v2388_v39 = vpop.f32.mrb[18].mxu0  ;;  %v2429_v40 = vpop.f32.mrb[18].mxu1 }
 0x547   : > { %v2389_v41 = vpop.f32.mrb[19].mxu0  ;;  %v2430_v42 = vpop.f32.mrb[19].mxu1 }
 0x548 PF: > { %v2440_v44 = vld [vmem:[#allocation2] sm:$0xff]  ;;  %v2441_v45 = vld [vmem:[#allocation2 + $0x8] sm:$0xff]  ;;  %v2442_v46 = vld [vmem:[#allocation2 + $0x10] sm:$0xff]  ;;  %p2914_p6 = scmp.ne.s32.totalorder %s3385_s23, 7 }
 0x549   : > { %v2444_v47 = vadd.f32 %v2440_v44, %v2384_v35  ;;  %v2445_v48 = vadd.f32 %v2441_v45, %v2386_v37  ;;  %v2446_v49 = vadd.f32 %v2442_v46, %v2425_v36  ;;  %v2443_v50 = vld [vmem:[#allocation2 + $0x18] sm:$0xff] }
 0x54a   : > { %v2447_v51 = vadd.f32 %v2443_v50, %v2427_v38  ;;  %2455 = sbr.rel (%p2914_p6) target bundleno = 1686 (0x696), region = 85 }
 0x54b   : > { %2448 = vst [vmem:[#allocation2] sm:$0xff] %v2444_v47  ;;  %2449 = vst [vmem:[#allocation2 + $0x8] sm:$0xff] %v2445_v48 }
 0x54c   : > { %2450 = vst [vmem:[#allocation2 + $0x10] sm:$0xff] %v2446_v49  ;;  %2451 = vst [vmem:[#allocation2 + $0x18] sm:$0xff] %v2447_v51 }
 0x552   : > { %v2456_v52 = vld [vmem:[#allocation2] sm:$0xff]  ;;  %v2457_v53 = vld [vmem:[#allocation2 + $0x8] sm:$0xff] }
 0x553   : > { %v2458_v54 = vld [vmem:[#allocation2 + $0x10] sm:$0xff]  ;;  %v2459_v55 = vld [vmem:[#allocation2 + $0x18] sm:$0xff]  ;;  %v2460_v56 = vadd.f32 %v2456_v52, %v3790_v2  ;;  %v2461_v57 = vadd.f32 %v2457_v53, %v3786_v0 }
 0x554   : > { %v2462_v58 = vadd.f32 %v2458_v54, %v3804_v6  ;;  %v2463_v59 = vadd.f32 %v2459_v55, %v3788_v1 }
 0x555   : > { %v2464_v60 = vadd.f32 %v2461_v57, %v2460_v56 }
 0x557   : > { %v2465_v61 = vadd.f32 %v2464_v60, %v2462_v58 }
 0x559   : > { %v2466_v62 = vadd.f32 %v2465_v61, %v2463_v59 }
 0x55b   : > { %2467 = vadd.xlane.f32.xlu0 %v2466_v62 }
 0x5e8   : > { %v2468_v63 = vpop.xlane.xlu0 %2467 }
 0x5e9   : > { %v2470_v3 = vmul.f32 0.001953125, %v2468_v63 }
 0x5eb   : > { %v2471_v4 = vsub.f32 %v2460_v56, %v2470_v3  ;;  %v2472_v8 = vsub.f32 %v2461_v57, %v2470_v3  ;;  %v2473_v9 = vsub.f32 %v2462_v58, %v2470_v3  ;;  %v2474_v10 = vsub.f32 %v2463_v59, %v2470_v3 }
 0x5ed   : > { %v2475_v11 = vmul.f32 %v2471_v4, %v2471_v4  ;;  %v2476_v12 = vmul.f32 %v2472_v8, %v2472_v8  ;;  %v2477_v2 = vmul.f32 %v2473_v9, %v2473_v9  ;;  %v2478_v6 = vmul.f32 %v2474_v10, %v2474_v10 }
 0x5ef   : > { %v2479_v0 = vadd.f32 %v2476_v12, %v2475_v11 }
 0x5f1   : > { %v2480_v1 = vadd.f32 %v2479_v0, %v2477_v2 }
 0x5f3   : > { %v2481_v13 = vadd.f32 %v2480_v1, %v2478_v6 }
 0x5f5   : > { %2482 = vadd.xlane.f32.xlu0 %v2481_v13 }
 0x682   : > { %v2483_v14 = vpop.xlane.xlu0 %2482 }
 0x683   : > { %v2484_v15 = vmul.f32 0.001953125, %v2483_v14 }
 0x685   : > { %v2485_v16 = vadd.f32 1e-05, %v2484_v15 }
 0x687   : > { %3289 = vrsqrt.f32 %v2485_v16 }
 0x691   : > { %v3290_v17 = vpop.eup %3289 }
 0x692   : > { %v2487_v18 = vmul.f32 %v3290_v17, %v2471_v4  ;;  %v2488_v19 = vmul.f32 %v3290_v17, %v2472_v8  ;;  %v2489_v20 = vmul.f32 %v3290_v17, %v2473_v9  ;;  %v2490_v21 = vmul.f32 %v3290_v17, %v2474_v10 }
 0x694   : > { %2491 = vst [vmem:[%s3749_s12] sm:$0xff] %v2487_v18  ;;  %2492 = vst [vmem:[%s3749_s12 + $0x8] sm:$0xff] %v2488_v19 }
 0x695   : > { %2493 = vst [vmem:[%s3749_s12 + $0x10] sm:$0xff] %v2489_v20  ;;  %2494 = vst [vmem:[%s3749_s12 + $0x18] sm:$0xff] %v2490_v21 }
 0x696 PF: > { %s2916_s7 = sshll.u32 %s3389_s24, 3  ;;  %s2519_s21 = sshll.u32 %s1091_s28, 4  ;;  %s3946_s21 = int_to_ptr.vmem [resolvable:$true] %s2519_s21 }
 0x697   : > { %s2515_s17 = sadd.s32 %s3385_s23, %s2916_s7  ;;  %s2501_s0 = scalar_lea.sflag [#allocation5], %s1089_s10 }
 0x698   : > { %s2917_s8 = sshll.u32 %s2515_s17, 7  ;;  %s3291_s1 = scalar_lea.vmem %s3946_s21, 128 }
 0x699   : > { %s2517_s12 = scalar_lea.hbm %s4008_s5, %s2917_s8  ;;  %p3292_p7 = scmp.ne.s32.totalorder %s3946_s21, %s3291_s1 }
 0x69a   : > { %s3407_s23 = smov [#allocation4]  }
 0x69b   : > { %p3293_p8 = pnand %p3292_p7, %p3517_p10  ;;  %s3295_s24 = sshll.u32 %s3407_s23, 4  ;;  %s3296_s24 = int_to_ptr.vmem [resolvable:$false] %s3295_s24 }
 0x69c   : > { %s3297_s13 = scalar_lea.vmem %s3296_s24, 256  ;;  %p3298_p11 = scmp.lt.s32.totalorder %s3946_s21, %s3296_s24 }
 0x69d   : > { %p3294_p9 = pneg %p3293_p8  ;;  %p3299_p13 = scmp.lt.s32.totalorder %s3297_s13, %s3291_s1 }
 0x69f   : > { %p3300_p0 = por %p3299_p13, %p3298_p11 }
 0x6a1   : > { %p3301_p1 = pnand %p3300_p0, %p3294_p9 }
 0x6a3   : > { %3304 = shalt.err (!%p3301_p1)
}
 0x6a4   : > { %s3305_s28 = scalar_lea.hbm %s2517_s12, 128  ;;  %s3309_s17 = scalar_lea.hbm %s4008_s5, 2048 }
 0x6a5   : > { %p3306_p2 = scmp.ne.s32.totalorder %s2517_s12, %s3305_s28  ;;  %p3310_p5 = scmp.lt.u32.totalorder %s2517_s12, %s4008_s5 }
 0x6a6   : > { %p3311_p6 = scmp.lt.u32.totalorder %s3309_s17, %s3305_s28  ;;  %p3313_p8 = scmp.lt.u32.totalorder %s3305_s28, %s2517_s12 }
 0x6a7   : > { %p3307_p3 = pnand %p3306_p2, %p3517_p10 }
 0x6a8   : > { %p3312_p7 = por %p3311_p6, %p3310_p5 }
 0x6a9   : > { %p3308_p4 = pneg %p3307_p3 }
 0x6aa   : > { %p3314_p11 = por %p3313_p8, %p3312_p7 }
 0x6ac   : > { %p3315_p9 = pnand %p3314_p11, %p3308_p4 }
 0x6ae   : > { %3318 = shalt.err (!%p3315_p9)
}
 0x6af   : > { %3074 = dma.vmem_to_hbm [thread:$0]  (%p3517_p10), %s3946_s21, 128, %s2517_s12, %s2501_s0  }
 0x6b0 PF: > { %p3080_p13 = scmp.ge.s32.totalorder %s3401_s27, 2  ;;  %s2539_s1 = sand.u32 1, %s3365_s18  }
 0x6b1   : > { %s2540_s9 = scalar_lea.sflag [#allocation5], %s2539_s1 }
 0x6b2   : > { %p3077_p0 = pnand %p3080_p13, %p3524_p12 }
 0x6b4   : > { %3360 = dma.done.wait (!%p3077_p0), %s2540_s9, 128  }
 0x6b5   : > { %3362 = vsyncadd (!%p3077_p0), %s2540_s9, 4294967168  ;;  %s19_s27 = sadd.s32 1, %s3401_s27   ;;  %s4016_s18 = smov %s3369_s19 }
 0x6b6   : > { %p16_p1 = scmp.ge.s32.totalorder %s19_s27, 18   ;;  %s4017_s19 = smov %s3373_s20 }
 0x6b7   : > { %s4018_s20 = smov %s3522_s15  ;;  %s4019_s21 = smov %s3381_s22 }
 0x6b8   : > { %s4020_s22 = smov %s3511_s11  ;;  %s4021_s23 = smov %s3393_s25 }
 0x6b9   : > { %s4022_s24 = smov %s3397_s26  ;;  %s4023_s25 = smov %s4026_s30 }
 0x6ba   : > { %s4024_s26 = smov %s4030_s6  ;;  %18 = sbr.rel (!%p16_p1) target bundleno = 9 (0x9), region = 148 }
 0x6c1   :  { %2545 = vsyncpa [#allocation5], 1 }
 0x6c2   :  { %2547 = vsyncpa [#allocation5 + $0x1], 1 }

// kernel: encoder_forward.9
= control target key start
LH: loop header
LB: loop body
LE: loop exit
PB: predicated region body
PF: predicated region fallthrough
CT: control target
= control target key end

     0   :  { %s9692_s12 = smov 0   ;;  %s12890_s0 = inlined_call_operand.vmem [shape: f32[16,512], index: 0, kind: input, shape index: {}]   ;;  %s12891_s1 = inlined_call_operand.vmem [shape: bf16[512,2048], index: 1, kind: input, shape index: {}]   ;;  %s12892_s2 = inlined_call_operand.vmem [shape: bf16[2048,512], index: 2, kind: input, shape index: {}]   ;;  %s12893_s3 = inlined_call_operand.vmem [shape: f32[16,512], index: 3, kind: output, shape index: {}]  }
   0x1 LB: > { %s7753_s13 = sadd.s32 4294967295, %s9670_s12   ;;  %p7757_p0 = scmp.ge.s32.totalorder %s9670_s12, 1  ;;  %s9670_s12 = sphi %s9692_s12, %s13_s12  }
   0x2   : > { %p137_p1 = scmp.lt.s32.totalorder %s9670_s12, 3 }
   0x4   : > { %p138_p2 = pnand %p7757_p0, %p137_p1 }
   0x5   : > { %v179_v0 = vld [vmem:[%s12891_s1] sm:$0xff] (!%p138_p2)  ;;  %v180_v2 = vld [vmem:[%s12891_s1 + $0x8] sm:$0xff] (!%p138_p2)  ;;  %p161_p3 = scmp.lt.s32.totalorder (!%p138_p2), %s7753_s13, 1 }
   0x6   : > { %141 = sbr.rel (%p138_p2) target bundleno = 1569 (0x621), region = 32  ;;  %v187_v1 = vld [vmem:[%s12891_s1 + $0x40] sm:$0xff] (!%p138_p2)  ;;  %v188_v4 = vld [vmem:[%s12891_s1 + $0x48] sm:$0xff] (!%p138_p2) }
   0x7   : > { %v7763_v3 = vcombine.high (!%p138_p2), %v179_v0, %v187_v1  ;;  %v7762_v5 = vcombine.low (!%p138_p2), %v179_v0, %v187_v1  ;;  %v195_v6 = vld [vmem:[%s12891_s1 + $0x80] sm:$0xff] (!%p138_p2)  ;;  %v7765_v8 = vcombine.high (!%p138_p2), %v180_v2, %v188_v4  ;;  %v7764_v9 = vcombine.low (!%p138_p2), %v180_v2, %v188_v4  ;;  %v196_v11 = vld [vmem:[%s12891_s1 + $0x88] sm:$0xff] (!%p138_p2) }
   0x8   : > { %v203_v7 = vld [vmem:[%s12891_s1 + $0xc0] sm:$0xff] (!%p138_p2)  ;;  %v204_v12 = vld [vmem:[%s12891_s1 + $0xc8] sm:$0xff] (!%p138_p2) }
   0x9   : > { %v7779_v10 = vcombine.high (!%p138_p2), %v195_v6, %v203_v7  ;;  %v211_v13 = vld [vmem:[%s12891_s1 + $0x100] sm:$0xff] (!%p138_p2)  ;;  %3251 = vmatprep.subr.bf16.mxu0 (!%p138_p2), %v7763_v3  ;;  %v7781_v14 = vcombine.high (!%p138_p2), %v196_v11, %v204_v12  ;;  %v212_v16 = vld [vmem:[%s12891_s1 + $0x108] sm:$0xff] (!%p138_p2)  ;;  %3333 = vmatprep.subr.bf16.mxu1 (!%p138_p2), %v7765_v8  ;;  %v7778_v18 = vcombine.low (!%p138_p2), %v195_v6, %v203_v7 }
   0xa   : > { %v219_v15 = vld [vmem:[%s12891_s1 + $0x140] sm:$0xff] (!%p138_p2)  ;;  %v220_v17 = vld [vmem:[%s12891_s1 + $0x148] sm:$0xff] (!%p138_p2)  ;;  %3252 = vmatpush1.bf16.msra.mxu0 (!%p138_p2), %v7762_v5  ;;  %3334 = vmatpush1.bf16.msra.mxu1 (!%p138_p2), %v7764_v9  ;;  %v7780_v19 = vcombine.low (!%p138_p2), %v196_v11, %v204_v12 }
   0xb   : > { %3253 = vmatprep.subr.bf16.mxu0 (!%p138_p2), %v7779_v10  ;;  %v7795_v20 = vcombine.high (!%p138_p2), %v211_v13, %v219_v15  ;;  %3335 = vmatprep.subr.bf16.mxu1 (!%p138_p2), %v7781_v14  ;;  %v7797_v21 = vcombine.high (!%p138_p2), %v212_v16, %v220_v17  ;;  %v227_v22 = vld [vmem:[%s12891_s1 + $0x180] sm:$0xff] (!%p138_p2)  ;;  %v228_v24 = vld [vmem:[%s12891_s1 + $0x188] sm:$0xff] (!%p138_p2)  ;;  %v7794_v26 = vcombine.low (!%p138_p2), %v211_v13, %v219_v15 }
   0xc   : > { %v235_v23 = vld [vmem:[%s12891_s1 + $0x1c0] sm:$0xff] (!%p138_p2)  ;;  %v236_v25 = vld [vmem:[%s12891_s1 + $0x1c8] sm:$0xff] (!%p138_p2)  ;;  %v7796_v27 = vcombine.low (!%p138_p2), %v212_v16, %v220_v17 }
   0xd   : > { %v7811_v28 = vcombine.high %v227_v22, %v235_v23  ;;  %v7813_v29 = vcombine.high %v228_v24, %v236_v25  ;;  %v243_v30 = vld [vmem:[%s12891_s1 + $0x200] sm:$0xff]  ;;  %v244_v32 = vld [vmem:[%s12891_s1 + $0x208] sm:$0xff]  ;;  %s12895_s13 = smov (!%p161_p3, %s7753_s13), 1  ;;  %v7810_v34 = vcombine.low %v227_v22, %v235_v23  ;;  %v7812_v35 = vcombine.low %v228_v24, %v236_v25 }
   0xe   : > { %3254 = vmatpush1.bf16.msra.mxu0 %v7778_v18  ;;  %3336 = vmatpush1.bf16.msra.mxu1 %v7780_v19  ;;  %v251_v31 = vld [vmem:[%s12891_s1 + $0x240] sm:$0xff]  ;;  %v252_v33 = vld [vmem:[%s12891_s1 + $0x248] sm:$0xff]  ;;  %s8788_s10 = sshll.u32 %s12895_s13, 5 }
   0xf   : > { %3255 = vmatprep.subr.bf16.mxu0 %v7795_v20  ;;  %3337 = vmatprep.subr.bf16.mxu1 %v7797_v21  ;;  %v7827_v36 = vcombine.high %v243_v30, %v251_v31  ;;  %v7829_v37 = vcombine.high %v244_v32, %v252_v33  ;;  %v259_v38 = vld [vmem:[%s12891_s1 + $0x280] sm:$0xff]  ;;  %v260_v40 = vld [vmem:[%s12891_s1 + $0x288] sm:$0xff]  ;;  %v7826_v42 = vcombine.low %v243_v30, %v251_v31  ;;  %s9790_s19 = scalar_lea.vmem %s12890_s0, %s8788_s10  ;;  %s170_s15 = scalar_lea.vmem %s12893_s3, %s8788_s10 }
  0x10   : > { %v267_v39 = vld [vmem:[%s12891_s1 + $0x2c0] sm:$0xff]  ;;  %v268_v41 = vld [vmem:[%s12891_s1 + $0x2c8] sm:$0xff]  ;;  %v7828_v43 = vcombine.low %v244_v32, %v252_v33 }
  0x11   : > { %v7843_v44 = vcombine.high %v259_v38, %v267_v39  ;;  %v7845_v45 = vcombine.high %v260_v40, %v268_v41  ;;  %v275_v46 = vld [vmem:[%s12891_s1 + $0x300] sm:$0xff]  ;;  %v276_v48 = vld [vmem:[%s12891_s1 + $0x308] sm:$0xff]  ;;  %v7842_v50 = vcombine.low %v259_v38, %v267_v39  ;;  %v7844_v51 = vcombine.low %v260_v40, %v268_v41 }
  0x12   : > { %3256 = vmatpush1.bf16.msra.mxu0 %v7794_v26  ;;  %3338 = vmatpush1.bf16.msra.mxu1 %v7796_v27  ;;  %v283_v47 = vld [vmem:[%s12891_s1 + $0x340] sm:$0xff]  ;;  %v284_v49 = vld [vmem:[%s12891_s1 + $0x348] sm:$0xff] }
  0x13   : > { %3257 = vmatprep.subr.bf16.mxu0 %v7811_v28  ;;  %3339 = vmatprep.subr.bf16.mxu1 %v7813_v29  ;;  %v7859_v52 = vcombine.high %v275_v46, %v283_v47  ;;  %v172_v53 = vld [vmem:[%s9790_s19 + $0x8] sm:$0xff]  ;;  %v7861_v54 = vcombine.high %v276_v48, %v284_v49  ;;  %v291_v55 = vld [vmem:[%s12891_s1 + $0x380] sm:$0xff]  ;;  %v7858_v60 = vcombine.low %v275_v46, %v283_v47 }
  0x14   : > { %v299_v56 = vld [vmem:[%s12891_s1 + $0x3c0] sm:$0xff]  ;;  %v9805_v57 = vpack.c.bf16 %v172_v53, %v172_v53  ;;  %v292_v58 = vld [vmem:[%s12891_s1 + $0x388] sm:$0xff]  ;;  %v7860_v61 = vcombine.low %v276_v48, %v284_v49 }
  0x15   : > { %v300_v59 = vld [vmem:[%s12891_s1 + $0x3c8] sm:$0xff]  ;;  %v7875_v62 = vcombine.high %v291_v55, %v299_v56  ;;  %v307_v0 = vld [vmem:[%s12891_s1 + $0x400] sm:$0xff]  ;;  %v7874_v4 = vcombine.low %v291_v55, %v299_v56 }
  0x16   : > { %3258 = vmatpush1.bf16.msra.mxu0 %v7810_v34  ;;  %3340 = vmatpush1.bf16.msra.mxu1 %v7812_v35  ;;  %v7877_v63 = vcombine.high %v292_v58, %v300_v59  ;;  %v315_v1 = vld [vmem:[%s12891_s1 + $0x440] sm:$0xff]  ;;  %v308_v2 = vld [vmem:[%s12891_s1 + $0x408] sm:$0xff]  ;;  %v7876_v5 = vcombine.low %v292_v58, %v300_v59 }
  0x17   : > { %3259 = vmatprep.subr.bf16.mxu0 %v7827_v36  ;;  %3341 = vmatprep.subr.bf16.mxu1 %v7829_v37  ;;  %v316_v3 = vld [vmem:[%s12891_s1 + $0x448] sm:$0xff]  ;;  %v7891_v6 = vcombine.high %v307_v0, %v315_v1  ;;  %v323_v8 = vld [vmem:[%s12891_s1 + $0x480] sm:$0xff]  ;;  %v7890_v12 = vcombine.low %v307_v0, %v315_v1 }
  0x18   : > { %3283 = vmatprep.mubr.bf16.mxu0 %v9805_v57  ;;  %3365 = vmatprep.mubr.bf16.mxu1 %v9805_v57  ;;  %v7893_v7 = vcombine.high %v308_v2, %v316_v3  ;;  %v331_v9 = vld [vmem:[%s12891_s1 + $0x4c0] sm:$0xff]  ;;  %v324_v10 = vld [vmem:[%s12891_s1 + $0x488] sm:$0xff]  ;;  %v7892_v13 = vcombine.low %v308_v2, %v316_v3 }
  0x19   : > { %v332_v11 = vld [vmem:[%s12891_s1 + $0x4c8] sm:$0xff]  ;;  %v7907_v14 = vcombine.high %v323_v8, %v331_v9  ;;  %v339_v16 = vld [vmem:[%s12891_s1 + $0x500] sm:$0xff]  ;;  %v7906_v20 = vcombine.low %v323_v8, %v331_v9 }
  0x1a   : > { %3260 = vmatpush1.bf16.msra.mxu0 %v7826_v42  ;;  %3342 = vmatpush1.bf16.msra.mxu1 %v7828_v43  ;;  %v7909_v15 = vcombine.high %v324_v10, %v332_v11  ;;  %v347_v17 = vld [vmem:[%s12891_s1 + $0x540] sm:$0xff]  ;;  %v340_v18 = vld [vmem:[%s12891_s1 + $0x508] sm:$0xff]  ;;  %v7908_v21 = vcombine.low %v324_v10, %v332_v11 }
  0x1b   : > { %3261 = vmatprep.subr.bf16.mxu0 %v7843_v44  ;;  %3343 = vmatprep.subr.bf16.mxu1 %v7845_v45  ;;  %v348_v19 = vld [vmem:[%s12891_s1 + $0x548] sm:$0xff]  ;;  %v7923_v22 = vcombine.high %v339_v16, %v347_v17  ;;  %v355_v24 = vld [vmem:[%s12891_s1 + $0x580] sm:$0xff]  ;;  %v7922_v28 = vcombine.low %v339_v16, %v347_v17 }
  0x1c   : > { %v7925_v23 = vcombine.high %v340_v18, %v348_v19  ;;  %v363_v25 = vld [vmem:[%s12891_s1 + $0x5c0] sm:$0xff]  ;;  %v356_v26 = vld [vmem:[%s12891_s1 + $0x588] sm:$0xff]  ;;  %v7924_v29 = vcombine.low %v340_v18, %v348_v19 }
  0x1d   : > { %v364_v27 = vld [vmem:[%s12891_s1 + $0x5c8] sm:$0xff]  ;;  %v7939_v30 = vcombine.high %v355_v24, %v363_v25  ;;  %v371_v32 = vld [vmem:[%s12891_s1 + $0x600] sm:$0xff]  ;;  %v7938_v36 = vcombine.low %v355_v24, %v363_v25 }
  0x1e   : > { %3262 = vmatpush1.bf16.msra.mxu0 %v7842_v50  ;;  %3344 = vmatpush1.bf16.msra.mxu1 %v7844_v51  ;;  %v7941_v31 = vcombine.high %v356_v26, %v364_v27  ;;  %v379_v33 = vld [vmem:[%s12891_s1 + $0x640] sm:$0xff]  ;;  %v372_v34 = vld [vmem:[%s12891_s1 + $0x608] sm:$0xff]  ;;  %v7940_v37 = vcombine.low %v356_v26, %v364_v27 }
  0x1f   : > { %3263 = vmatprep.subr.bf16.mxu0 %v7859_v52  ;;  %3345 = vmatprep.subr.bf16.mxu1 %v7861_v54  ;;  %v380_v35 = vld [vmem:[%s12891_s1 + $0x648] sm:$0xff]  ;;  %v7955_v38 = vcombine.high %v371_v32, %v379_v33  ;;  %v387_v40 = vld [vmem:[%s12891_s1 + $0x680] sm:$0xff]  ;;  %v7954_v44 = vcombine.low %v371_v32, %v379_v33 }
  0x20   : > { %v7957_v39 = vcombine.high %v372_v34, %v380_v35  ;;  %v395_v41 = vld [vmem:[%s12891_s1 + $0x6c0] sm:$0xff]  ;;  %v388_v42 = vld [vmem:[%s12891_s1 + $0x688] sm:$0xff]  ;;  %v7956_v45 = vcombine.low %v372_v34, %v380_v35 }
  0x21   : > { %v396_v43 = vld [vmem:[%s12891_s1 + $0x6c8] sm:$0xff]  ;;  %v7971_v46 = vcombine.high %v387_v40, %v395_v41  ;;  %v403_v48 = vld [vmem:[%s12891_s1 + $0x700] sm:$0xff]  ;;  %v7970_v52 = vcombine.low %v387_v40, %v395_v41 }
  0x22   : > { %3264 = vmatpush1.bf16.msra.mxu0 %v7858_v60  ;;  %3346 = vmatpush1.bf16.msra.mxu1 %v7860_v61  ;;  %v7973_v47 = vcombine.high %v388_v42, %v396_v43  ;;  %v411_v49 = vld [vmem:[%s12891_s1 + $0x740] sm:$0xff]  ;;  %v404_v50 = vld [vmem:[%s12891_s1 + $0x708] sm:$0xff]  ;;  %v7972_v53 = vcombine.low %v388_v42, %v396_v43 }
  0x23   : > { %3265 = vmatprep.subr.bf16.mxu0 %v7875_v62  ;;  %3347 = vmatprep.subr.bf16.mxu1 %v7877_v63  ;;  %v412_v51 = vld [vmem:[%s12891_s1 + $0x748] sm:$0xff]  ;;  %v7987_v54 = vcombine.high %v403_v48, %v411_v49  ;;  %v419_v56 = vld [vmem:[%s12891_s1 + $0x780] sm:$0xff]  ;;  %v7986_v61 = vcombine.low %v403_v48, %v411_v49 }
  0x24   : > { %v7989_v55 = vcombine.high %v404_v50, %v412_v51  ;;  %v427_v58 = vld [vmem:[%s12891_s1 + $0x7c0] sm:$0xff]  ;;  %v420_v59 = vld [vmem:[%s12891_s1 + $0x788] sm:$0xff]  ;;  %v7988_v62 = vcombine.low %v404_v50, %v412_v51 }
  0x25   : > { %v428_v60 = vld [vmem:[%s12891_s1 + $0x7c8] sm:$0xff]  ;;  %v8003_v63 = vcombine.high %v419_v56, %v427_v58  ;;  %v435_v1 = vld [vmem:[%s12891_s1 + $0x800] sm:$0xff] }
  0x26   : > { %3266 = vmatpush1.bf16.msra.mxu0 %v7874_v4  ;;  %3348 = vmatpush1.bf16.msra.mxu1 %v7876_v5  ;;  %v8005_v0 = vcombine.high %v420_v59, %v428_v60  ;;  %v443_v2 = vld [vmem:[%s12891_s1 + $0x840] sm:$0xff]  ;;  %v436_v3 = vld [vmem:[%s12891_s1 + $0x808] sm:$0xff]  ;;  %v8002_v5 = vcombine.low %v419_v56, %v427_v58 }
  0x27   : > { %3267 = vmatprep.subr.bf16.mxu0 %v7891_v6  ;;  %3349 = vmatprep.subr.bf16.mxu1 %v7893_v7  ;;  %v444_v4 = vld [vmem:[%s12891_s1 + $0x848] sm:$0xff]  ;;  %v171_v6 = vld [vmem:[%s9790_s19] sm:$0xff]  ;;  %v8004_v7 = vcombine.low %v420_v59, %v428_v60  ;;  %v8019_v8 = vcombine.high %v435_v1, %v443_v2  ;;  %v8018_v16 = vcombine.low %v435_v1, %v443_v2 }
  0x28   : > { %v8021_v9 = vcombine.high %v436_v3, %v444_v4  ;;  %v451_v10 = vld [vmem:[%s12891_s1 + $0x880] sm:$0xff]  ;;  %v8020_v17 = vcombine.low %v436_v3, %v444_v4  ;;  %v492_v32 = vld [vmem:[%s12891_s1 + $0x9c8] sm:$0xff] }
  0x29   : > { %v459_v11 = vld [vmem:[%s12891_s1 + $0x8c0] sm:$0xff]  ;;  %v508_v40 = vld [vmem:[%s12891_s1 + $0xa48] sm:$0xff] }
  0x2a   : > { %3268 = vmatpush1.bf16.msra.mxu0 %v7890_v12  ;;  %3350 = vmatpush1.bf16.msra.mxu1 %v7892_v13  ;;  %v9930_v12 = vpack.c.bf16 %v171_v6, %v171_v6  ;;  %v452_v13 = vld [vmem:[%s12891_s1 + $0x888] sm:$0xff]  ;;  %v8035_v18 = vcombine.high %v451_v10, %v459_v11  ;;  %v467_v19 = vld [vmem:[%s12891_s1 + $0x900] sm:$0xff]  ;;  %v8034_v25 = vcombine.low %v451_v10, %v459_v11 }
  0x2b   : > { %3269 = vmatprep.subr.bf16.mxu0 %v7907_v14  ;;  %3351 = vmatprep.subr.bf16.mxu1 %v7909_v15  ;;  %v460_v14 = vld [vmem:[%s12891_s1 + $0x8c8] sm:$0xff]  ;;  %v174_v15 = vld [vmem:[%s9790_s19 + $0x18] sm:$0xff]  ;;  %v571_v6 = vld [vmem:[%s12891_s1 + $0xc40] sm:$0xff] }
  0x2c   : > { %v9951_v24 = vpack.c.bf16 %v174_v15, %v174_v15  ;;  %v8036_v26 = vcombine.low %v452_v13, %v460_v14  ;;  %v524_v48 = vld [vmem:[%s12891_s1 + $0xac8] sm:$0xff]  ;;  %v587_v15 = vld [vmem:[%s12891_s1 + $0xcc0] sm:$0xff] }
  0x2d   : > { %v540_v56 = vld [vmem:[%s12891_s1 + $0xb48] sm:$0xff] }
  0x2e   : > { %3270 = vmatpush1.bf16.msra.mxu0 %v7906_v20  ;;  %3352 = vmatpush1.bf16.msra.mxu1 %v7908_v21  ;;  %v475_v20 = vld [vmem:[%s12891_s1 + $0x940] sm:$0xff]  ;;  %v8037_v21 = vcombine.high %v452_v13, %v460_v14  ;;  %v556_v1 = vld [vmem:[%s12891_s1 + $0xbc8] sm:$0xff] }
  0x2f   : > { %3271 = vmatprep.subr.bf16.mxu0 %v7923_v22  ;;  %3353 = vmatprep.subr.bf16.mxu1 %v7925_v23  ;;  %v468_v22 = vld [vmem:[%s12891_s1 + $0x908] sm:$0xff]  ;;  %v8051_v27 = vcombine.high %v467_v19, %v475_v20  ;;  %v8050_v33 = vcombine.low %v467_v19, %v475_v20  ;;  %v579_v14 = vld [vmem:[%s12891_s1 + $0xc80] sm:$0xff] }
  0x30   : > { %v476_v23 = vld [vmem:[%s12891_s1 + $0x948] sm:$0xff] }
  0x31   : > { %v8052_v34 = vcombine.low %v468_v22, %v476_v23 }
  0x32   : > { %3272 = vmatpush1.bf16.msra.mxu0 %v7922_v28  ;;  %3354 = vmatpush1.bf16.msra.mxu1 %v7924_v29  ;;  %v483_v28 = vld [vmem:[%s12891_s1 + $0x980] sm:$0xff] }
  0x33   : > { %3273 = vmatprep.subr.bf16.mxu0 %v7939_v30  ;;  %3355 = vmatprep.subr.bf16.mxu1 %v7941_v31  ;;  %v491_v29 = vld [vmem:[%s12891_s1 + $0x9c0] sm:$0xff]  ;;  %v484_v30 = vld [vmem:[%s12891_s1 + $0x988] sm:$0xff]  ;;  %v8053_v31 = vcombine.high %v468_v22, %v476_v23 }
  0x34   : > { %v8067_v35 = vcombine.high %v483_v28, %v491_v29  ;;  %v8066_v41 = vcombine.low %v483_v28, %v491_v29  ;;  %v8068_v42 = vcombine.low %v484_v30, %v492_v32  ;;  %v595_v22 = vld [vmem:[%s12891_s1 + $0xd00] sm:$0xff]  ;;  %v8162_v28 = vcombine.low %v579_v14, %v587_v15 }
  0x35   : > { %v603_v23 = vld [vmem:[%s12891_s1 + $0xd40] sm:$0xff] }
  0x36   : > { %3274 = vmatpush1.bf16.msra.mxu0 %v7938_v36  ;;  %3356 = vmatpush1.bf16.msra.mxu1 %v7940_v37  ;;  %v499_v36 = vld [vmem:[%s12891_s1 + $0xa00] sm:$0xff] }
  0x37   : > { %3275 = vmatprep.subr.bf16.mxu0 %v7955_v38  ;;  %3357 = vmatprep.subr.bf16.mxu1 %v7957_v39  ;;  %v507_v37 = vld [vmem:[%s12891_s1 + $0xa40] sm:$0xff]  ;;  %v500_v38 = vld [vmem:[%s12891_s1 + $0xa08] sm:$0xff]  ;;  %v8069_v39 = vcombine.high %v484_v30, %v492_v32  ;;  %v8179_v30 = vcombine.high %v595_v22, %v603_v23 }
  0x38   : > { %v8083_v43 = vcombine.high %v499_v36, %v507_v37  ;;  %v8082_v49 = vcombine.low %v499_v36, %v507_v37  ;;  %v8084_v50 = vcombine.low %v500_v38, %v508_v40  ;;  %v619_v32 = vld [vmem:[%s12891_s1 + $0xdc0] sm:$0xff]  ;;  %v8178_v36 = vcombine.low %v595_v22, %v603_v23  ;;  %v206_v22 = vld [vmem:[%s12891_s1 + $0xd8] sm:$0xff] }
  0x3a   : > { %3276 = vmatpush1.bf16.msra.mxu0 %v7954_v44  ;;  %3358 = vmatpush1.bf16.msra.mxu1 %v7956_v45  ;;  %v515_v44 = vld [vmem:[%s12891_s1 + $0xa80] sm:$0xff] }
  0x3b   : > { %3277 = vmatprep.subr.bf16.mxu0 %v7971_v46  ;;  %3359 = vmatprep.subr.bf16.mxu1 %v7973_v47  ;;  %v523_v45 = vld [vmem:[%s12891_s1 + $0xac0] sm:$0xff]  ;;  %v516_v46 = vld [vmem:[%s12891_s1 + $0xa88] sm:$0xff]  ;;  %v8085_v47 = vcombine.high %v500_v38, %v508_v40 }
  0x3c   : > { %v8099_v51 = vcombine.high %v515_v44, %v523_v45  ;;  %v8098_v58 = vcombine.low %v515_v44, %v523_v45  ;;  %v8100_v59 = vcombine.low %v516_v46, %v524_v48  ;;  %v635_v40 = vld [vmem:[%s12891_s1 + $0xe40] sm:$0xff] }
  0x3e   : > { %3278 = vmatpush1.bf16.msra.mxu0 %v7970_v52  ;;  %3360 = vmatpush1.bf16.msra.mxu1 %v7972_v53  ;;  %v531_v52 = vld [vmem:[%s12891_s1 + $0xb00] sm:$0xff] }
  0x3f   : > { %3279 = vmatprep.subr.bf16.mxu0 %v7987_v54  ;;  %3361 = vmatprep.subr.bf16.mxu1 %v7989_v55  ;;  %v539_v53 = vld [vmem:[%s12891_s1 + $0xb40] sm:$0xff]  ;;  %v532_v54 = vld [vmem:[%s12891_s1 + $0xb08] sm:$0xff]  ;;  %v8101_v55 = vcombine.high %v516_v46, %v524_v48 }
  0x40   : > { %v8115_v60 = vcombine.high %v531_v52, %v539_v53  ;;  %v8114_v2 = vcombine.low %v531_v52, %v539_v53  ;;  %v8116_v3 = vcombine.low %v532_v54, %v540_v56  ;;  %v651_v48 = vld [vmem:[%s12891_s1 + $0xec0] sm:$0xff] }
  0x42   : > { %3280 = vmatpush1.bf16.msra.mxu0 %v7986_v61  ;;  %3362 = vmatpush1.bf16.msra.mxu1 %v7988_v62  ;;  %v547_v61 = vld [vmem:[%s12891_s1 + $0xb80] sm:$0xff] }
  0x43   : > { %3281 = vmatprep.subr.bf16.mxu0 %v8003_v63  ;;  %3363 = vmatprep.subr.bf16.mxu1 %v8005_v0  ;;  %v555_v62 = vld [vmem:[%s12891_s1 + $0xbc0] sm:$0xff]  ;;  %v548_v63 = vld [vmem:[%s12891_s1 + $0xb88] sm:$0xff]  ;;  %v8117_v0 = vcombine.high %v532_v54, %v540_v56 }
  0x44   : > { %v8131_v4 = vcombine.high %v547_v61, %v555_v62  ;;  %v8130_v10 = vcombine.low %v547_v61, %v555_v62  ;;  %v8132_v11 = vcombine.low %v548_v63, %v556_v1  ;;  %v667_v56 = vld [vmem:[%s12891_s1 + $0xf40] sm:$0xff] }
  0x46   : > { %3282 = vmatpush1.bf16.msra.mxu0 %v8002_v5  ;;  %3364 = vmatpush1.bf16.msra.mxu1 %v8004_v7  ;;  %v563_v5 = vld [vmem:[%s12891_s1 + $0xc00] sm:$0xff]  ;;  %v564_v7 = vld [vmem:[%s12891_s1 + $0xc08] sm:$0xff] }
  0x47   : > { %3292 = vmatprep.subr.bf16.mxu0 %v8019_v8  ;;  %3374 = vmatprep.subr.bf16.mxu1 %v8021_v9  ;;  %v8133_v8 = vcombine.high %v548_v63, %v556_v1  ;;  %v572_v9 = vld [vmem:[%s12891_s1 + $0xc48] sm:$0xff]  ;;  %v8147_v13 = vcombine.high %v563_v5, %v571_v6  ;;  %v8146_v19 = vcombine.low %v563_v5, %v571_v6  ;;  %v683_v1 = vld [vmem:[%s12891_s1 + $0xfc0] sm:$0xff] }
  0x48   : > { %v8148_v20 = vcombine.low %v564_v7, %v572_v9 }
  0x49   : > { %3284 = vmatmul.mubr.bf16.vlgmr.msra.gmra.mrb[0].mxu0 %v9930_v12  ;;  %3366 = vmatmul.mubr.bf16.vlgmr.msra.gmra.mrb[0].mxu1 %v9930_v12 }
  0x4a   : > { %3293 = vmatpush1.bf16.msra.mxu0 %v8018_v16  ;;  %3375 = vmatpush1.bf16.msra.mxu1 %v8020_v17  ;;  %v580_v16 = vld [vmem:[%s12891_s1 + $0xc88] sm:$0xff]  ;;  %v8149_v17 = vcombine.high %v564_v7, %v572_v9  ;;  %v189_v9 = vld [vmem:[%s12891_s1 + $0x50] sm:$0xff] }
  0x4b   : > { %3294 = vmatprep.subr.bf16.mxu0 %v8035_v18  ;;  %3376 = vmatprep.subr.bf16.mxu1 %v8037_v21  ;;  %v588_v18 = vld [vmem:[%s12891_s1 + $0xcc8] sm:$0xff]  ;;  %v8163_v21 = vcombine.high %v579_v14, %v587_v15  ;;  %v190_v14 = vld [vmem:[%s12891_s1 + $0x58] sm:$0xff] }
  0x4c   : > { %3324 = vmatprep.mubr.bf16.mxu0 %v9951_v24  ;;  %3406 = vmatprep.mubr.bf16.mxu1 %v9951_v24  ;;  %v8164_v29 = vcombine.low %v580_v16, %v588_v18 }
  0x4e   : > { %3295 = vmatpush1.bf16.msra.mxu0 %v8034_v25  ;;  %3377 = vmatpush1.bf16.msra.mxu1 %v8036_v26  ;;  %v596_v25 = vld [vmem:[%s12891_s1 + $0xd08] sm:$0xff]  ;;  %v8165_v26 = vcombine.high %v580_v16, %v588_v18  ;;  %v197_v18 = vld [vmem:[%s12891_s1 + $0x90] sm:$0xff] }
  0x4f   : > { %3296 = vmatprep.subr.bf16.mxu0 %v8051_v27  ;;  %3378 = vmatprep.subr.bf16.mxu1 %v8053_v31  ;;  %v604_v27 = vld [vmem:[%s12891_s1 + $0xd48] sm:$0xff]  ;;  %v611_v31 = vld [vmem:[%s12891_s1 + $0xd80] sm:$0xff] }
  0x50   : > { %v8180_v37 = vcombine.low %v596_v25, %v604_v27  ;;  %v8195_v38 = vcombine.high %v611_v31, %v619_v32  ;;  %v8194_v44 = vcombine.low %v611_v31, %v619_v32  ;;  %v222_v32 = vld [vmem:[%s12891_s1 + $0x158] sm:$0xff] }
  0x52   : > { %3297 = vmatpush1.bf16.msra.mxu0 %v8050_v33  ;;  %3379 = vmatpush1.bf16.msra.mxu1 %v8052_v34  ;;  %v612_v33 = vld [vmem:[%s12891_s1 + $0xd88] sm:$0xff]  ;;  %v8181_v34 = vcombine.high %v596_v25, %v604_v27 }
  0x53   : > { %3298 = vmatprep.subr.bf16.mxu0 %v8067_v35  ;;  %3380 = vmatprep.subr.bf16.mxu1 %v8069_v39  ;;  %v620_v35 = vld [vmem:[%s12891_s1 + $0xdc8] sm:$0xff]  ;;  %v627_v39 = vld [vmem:[%s12891_s1 + $0xe00] sm:$0xff] }
  0x54   : > { %v8196_v45 = vcombine.low %v612_v33, %v620_v35  ;;  %v8211_v46 = vcombine.high %v627_v39, %v635_v40  ;;  %v8210_v52 = vcombine.low %v627_v39, %v635_v40  ;;  %v238_v40 = vld [vmem:[%s12891_s1 + $0x1d8] sm:$0xff] }
  0x56   : > { %3299 = vmatpush1.bf16.msra.mxu0 %v8066_v41  ;;  %3381 = vmatpush1.bf16.msra.mxu1 %v8068_v42  ;;  %v628_v41 = vld [vmem:[%s12891_s1 + $0xe08] sm:$0xff]  ;;  %v8197_v42 = vcombine.high %v612_v33, %v620_v35 }
  0x57   : > { %3300 = vmatprep.subr.bf16.mxu0 %v8083_v43  ;;  %3382 = vmatprep.subr.bf16.mxu1 %v8085_v47  ;;  %v636_v43 = vld [vmem:[%s12891_s1 + $0xe48] sm:$0xff]  ;;  %v643_v47 = vld [vmem:[%s12891_s1 + $0xe80] sm:$0xff] }
  0x58   : > { %v8212_v53 = vcombine.low %v628_v41, %v636_v43  ;;  %v8227_v54 = vcombine.high %v643_v47, %v651_v48  ;;  %v8226_v61 = vcombine.low %v643_v47, %v651_v48  ;;  %v254_v48 = vld [vmem:[%s12891_s1 + $0x258] sm:$0xff] }
  0x5a   : > { %3301 = vmatpush1.bf16.msra.mxu0 %v8082_v49  ;;  %3383 = vmatpush1.bf16.msra.mxu1 %v8084_v50  ;;  %v644_v49 = vld [vmem:[%s12891_s1 + $0xe88] sm:$0xff]  ;;  %v8213_v50 = vcombine.high %v628_v41, %v636_v43 }
  0x5b   : > { %3302 = vmatprep.subr.bf16.mxu0 %v8099_v51  ;;  %3384 = vmatprep.subr.bf16.mxu1 %v8101_v55  ;;  %v652_v51 = vld [vmem:[%s12891_s1 + $0xec8] sm:$0xff]  ;;  %v659_v55 = vld [vmem:[%s12891_s1 + $0xf00] sm:$0xff] }
  0x5c   : > { %v8228_v62 = vcombine.low %v644_v49, %v652_v51  ;;  %v8243_v63 = vcombine.high %v659_v55, %v667_v56  ;;  %v8242_v5 = vcombine.low %v659_v55, %v667_v56  ;;  %v270_v56 = vld [vmem:[%s12891_s1 + $0x2d8] sm:$0xff] }
  0x5e   : > { %3303 = vmatpush1.bf16.msra.mxu0 %v8098_v58  ;;  %3385 = vmatpush1.bf16.msra.mxu1 %v8100_v59  ;;  %v660_v58 = vld [vmem:[%s12891_s1 + $0xf08] sm:$0xff]  ;;  %v8229_v59 = vcombine.high %v644_v49, %v652_v51 }
  0x5f   : > { %3304 = vmatprep.subr.bf16.mxu0 %v8115_v60  ;;  %3386 = vmatprep.subr.bf16.mxu1 %v8117_v0  ;;  %v668_v60 = vld [vmem:[%s12891_s1 + $0xf48] sm:$0xff]  ;;  %v675_v0 = vld [vmem:[%s12891_s1 + $0xf80] sm:$0xff] }
  0x60   : > { %v8244_v6 = vcombine.low %v660_v58, %v668_v60  ;;  %v8259_v7 = vcombine.high %v675_v0, %v683_v1  ;;  %v8258_v15 = vcombine.low %v675_v0, %v683_v1  ;;  %v286_v1 = vld [vmem:[%s12891_s1 + $0x358] sm:$0xff] }
  0x62   : > { %3305 = vmatpush1.bf16.msra.mxu0 %v8114_v2  ;;  %3387 = vmatpush1.bf16.msra.mxu1 %v8116_v3  ;;  %v676_v2 = vld [vmem:[%s12891_s1 + $0xf88] sm:$0xff]  ;;  %v8245_v3 = vcombine.high %v660_v58, %v668_v60 }
  0x63   : > { %3306 = vmatprep.subr.bf16.mxu0 %v8131_v4  ;;  %3388 = vmatprep.subr.bf16.mxu1 %v8133_v8  ;;  %v684_v4 = vld [vmem:[%s12891_s1 + $0xfc8] sm:$0xff]  ;;  %v181_v8 = vld [vmem:[%s12891_s1 + $0x10] sm:$0xff] }
  0x64   : > { %v8260_v16 = vcombine.low %v676_v2, %v684_v4  ;;  %v7766_v25 = vcombine.low %v181_v8, %v189_v9 }
  0x66   : > { %3307 = vmatpush1.bf16.msra.mxu0 %v8130_v10  ;;  %3389 = vmatpush1.bf16.msra.mxu1 %v8132_v11  ;;  %v182_v10 = vld [vmem:[%s12891_s1 + $0x18] sm:$0xff]  ;;  %v8261_v11 = vcombine.high %v676_v2, %v684_v4 }
  0x67   : > { %3308 = vmatprep.subr.bf16.mxu0 %v8147_v13  ;;  %3390 = vmatprep.subr.bf16.mxu1 %v8149_v17  ;;  %v173_v13 = vld [vmem:[%s9790_s19 + $0x10] sm:$0xff]  ;;  %v7767_v17 = vcombine.high %v181_v8, %v189_v9  ;;  %v302_v9 = vld [vmem:[%s12891_s1 + $0x3d8] sm:$0xff] }
  0x68   : > { %v10138_v23 = vpack.c.bf16 %v173_v13, %v173_v13 }
  0x6a   : > { %3309 = vmatpush1.bf16.msra.mxu0 %v8146_v19  ;;  %3391 = vmatpush1.bf16.msra.mxu1 %v8148_v20  ;;  %v205_v19 = vld [vmem:[%s12891_s1 + $0xd0] sm:$0xff]  ;;  %v198_v20 = vld [vmem:[%s12891_s1 + $0x98] sm:$0xff] }
  0x6b   : > { %3310 = vmatprep.subr.bf16.mxu0 %v8163_v21  ;;  %3392 = vmatprep.subr.bf16.mxu1 %v8165_v26  ;;  %v7769_v21 = vcombine.high %v182_v10, %v190_v14  ;;  %v7768_v26 = vcombine.low %v182_v10, %v190_v14  ;;  %v7783_v27 = vcombine.high %v197_v18, %v205_v19  ;;  %v309_v14 = vld [vmem:[%s12891_s1 + $0x410] sm:$0xff] }
  0x6c   : > { %v7785_v31 = vcombine.high %v198_v20, %v206_v22  ;;  %v7782_v33 = vcombine.low %v197_v18, %v205_v19  ;;  %v318_v18 = vld [vmem:[%s12891_s1 + $0x458] sm:$0xff] }
  0x6e   : > { %3311 = vmatpush1.bf16.msra.mxu0 %v8162_v28  ;;  %3393 = vmatpush1.bf16.msra.mxu1 %v8164_v29  ;;  %v213_v28 = vld [vmem:[%s12891_s1 + $0x110] sm:$0xff] }
  0x6f   : > { %3312 = vmatprep.subr.bf16.mxu0 %v8179_v30  ;;  %3394 = vmatprep.subr.bf16.mxu1 %v8181_v34  ;;  %v221_v29 = vld [vmem:[%s12891_s1 + $0x150] sm:$0xff]  ;;  %v214_v30 = vld [vmem:[%s12891_s1 + $0x118] sm:$0xff]  ;;  %v7784_v34 = vcombine.low %v198_v20, %v206_v22 }
  0x70   : > { %v7799_v35 = vcombine.high %v213_v28, %v221_v29  ;;  %v7801_v39 = vcombine.high %v214_v30, %v222_v32  ;;  %v7798_v41 = vcombine.low %v213_v28, %v221_v29  ;;  %v325_v22 = vld [vmem:[%s12891_s1 + $0x490] sm:$0xff]  ;;  %v334_v28 = vld [vmem:[%s12891_s1 + $0x4d8] sm:$0xff] }
  0x72   : > { %3313 = vmatpush1.bf16.msra.mxu0 %v8178_v36  ;;  %3395 = vmatpush1.bf16.msra.mxu1 %v8180_v37  ;;  %v229_v36 = vld [vmem:[%s12891_s1 + $0x190] sm:$0xff] }
  0x73   : > { %3314 = vmatprep.subr.bf16.mxu0 %v8195_v38  ;;  %3396 = vmatprep.subr.bf16.mxu1 %v8197_v42  ;;  %v237_v37 = vld [vmem:[%s12891_s1 + $0x1d0] sm:$0xff]  ;;  %v230_v38 = vld [vmem:[%s12891_s1 + $0x198] sm:$0xff]  ;;  %v7800_v42 = vcombine.low %v214_v30, %v222_v32 }
  0x74   : > { %v7815_v43 = vcombine.high %v229_v36, %v237_v37  ;;  %v7817_v47 = vcombine.high %v230_v38, %v238_v40  ;;  %v7814_v49 = vcombine.low %v229_v36, %v237_v37  ;;  %v341_v32 = vld [vmem:[%s12891_s1 + $0x510] sm:$0xff]  ;;  %v350_v36 = vld [vmem:[%s12891_s1 + $0x558] sm:$0xff] }
  0x76   : > { %3315 = vmatpush1.bf16.msra.mxu0 %v8194_v44  ;;  %3397 = vmatpush1.bf16.msra.mxu1 %v8196_v45  ;;  %v245_v44 = vld [vmem:[%s12891_s1 + $0x210] sm:$0xff] }
  0x77   : > { %3316 = vmatprep.subr.bf16.mxu0 %v8211_v46  ;;  %3398 = vmatprep.subr.bf16.mxu1 %v8213_v50  ;;  %v253_v45 = vld [vmem:[%s12891_s1 + $0x250] sm:$0xff]  ;;  %v246_v46 = vld [vmem:[%s12891_s1 + $0x218] sm:$0xff]  ;;  %v7816_v50 = vcombine.low %v230_v38, %v238_v40 }
  0x78   : > { %v7831_v51 = vcombine.high %v245_v44, %v253_v45  ;;  %v7833_v55 = vcombine.high %v246_v46, %v254_v48  ;;  %v7830_v58 = vcombine.low %v245_v44, %v253_v45  ;;  %v357_v40 = vld [vmem:[%s12891_s1 + $0x590] sm:$0xff]  ;;  %v366_v44 = vld [vmem:[%s12891_s1 + $0x5d8] sm:$0xff] }
  0x7a   : > { %3317 = vmatpush1.bf16.msra.mxu0 %v8210_v52  ;;  %3399 = vmatpush1.bf16.msra.mxu1 %v8212_v53  ;;  %v261_v52 = vld [vmem:[%s12891_s1 + $0x290] sm:$0xff] }
  0x7b   : > { %3318 = vmatprep.subr.bf16.mxu0 %v8227_v54  ;;  %3400 = vmatprep.subr.bf16.mxu1 %v8229_v59  ;;  %v269_v53 = vld [vmem:[%s12891_s1 + $0x2d0] sm:$0xff]  ;;  %v262_v54 = vld [vmem:[%s12891_s1 + $0x298] sm:$0xff]  ;;  %v7832_v59 = vcombine.low %v246_v46, %v254_v48 }
  0x7c   : > { %v7847_v60 = vcombine.high %v261_v52, %v269_v53  ;;  %v7849_v0 = vcombine.high %v262_v54, %v270_v56  ;;  %v7846_v2 = vcombine.low %v261_v52, %v269_v53  ;;  %v373_v48 = vld [vmem:[%s12891_s1 + $0x610] sm:$0xff]  ;;  %v382_v52 = vld [vmem:[%s12891_s1 + $0x658] sm:$0xff] }
  0x7e   : > { %3319 = vmatpush1.bf16.msra.mxu0 %v8226_v61  ;;  %3401 = vmatpush1.bf16.msra.mxu1 %v8228_v62  ;;  %v277_v61 = vld [vmem:[%s12891_s1 + $0x310] sm:$0xff] }
  0x7f   : > { %3320 = vmatprep.subr.bf16.mxu0 %v8243_v63  ;;  %3402 = vmatprep.subr.bf16.mxu1 %v8245_v3  ;;  %v285_v62 = vld [vmem:[%s12891_s1 + $0x350] sm:$0xff]  ;;  %v278_v63 = vld [vmem:[%s12891_s1 + $0x318] sm:$0xff]  ;;  %v7848_v3 = vcombine.low %v262_v54, %v270_v56 }
  0x80   : > { %v7863_v4 = vcombine.high %v277_v61, %v285_v62  ;;  %v7865_v8 = vcombine.high %v278_v63, %v286_v1  ;;  %v7862_v10 = vcombine.low %v277_v61, %v285_v62  ;;  %v389_v56 = vld [vmem:[%s12891_s1 + $0x690] sm:$0xff]  ;;  %v398_v61 = vld [vmem:[%s12891_s1 + $0x6d8] sm:$0xff] }
  0x82   : > { %3321 = vmatpush1.bf16.msra.mxu0 %v8242_v5  ;;  %3403 = vmatpush1.bf16.msra.mxu1 %v8244_v6  ;;  %v293_v5 = vld [vmem:[%s12891_s1 + $0x390] sm:$0xff] }
  0x83   : > { %3322 = vmatprep.subr.bf16.mxu0 %v8259_v7  ;;  %3404 = vmatprep.subr.bf16.mxu1 %v8261_v11  ;;  %v301_v6 = vld [vmem:[%s12891_s1 + $0x3d0] sm:$0xff]  ;;  %v294_v7 = vld [vmem:[%s12891_s1 + $0x398] sm:$0xff]  ;;  %v7864_v11 = vcombine.low %v278_v63, %v286_v1 }
  0x84   : > { %v7879_v13 = vcombine.high %v293_v5, %v301_v6  ;;  %v7878_v19 = vcombine.low %v293_v5, %v301_v6  ;;  %v7880_v20 = vcombine.low %v294_v7, %v302_v9  ;;  %v405_v1 = vld [vmem:[%s12891_s1 + $0x710] sm:$0xff]  ;;  %v414_v5 = vld [vmem:[%s12891_s1 + $0x758] sm:$0xff] }
  0x86   : > { %3323 = vmatpush1.bf16.msra.mxu0 %v8258_v15  ;;  %3405 = vmatpush1.bf16.msra.mxu1 %v8260_v16  ;;  %v317_v15 = vld [vmem:[%s12891_s1 + $0x450] sm:$0xff]  ;;  %v310_v16 = vld [vmem:[%s12891_s1 + $0x418] sm:$0xff] }
  0x87   : > { %3415 = vmatprep.subr.bf16.mxu0 %v7767_v17  ;;  %3497 = vmatprep.subr.bf16.mxu1 %v7769_v21  ;;  %v7881_v17 = vcombine.high %v294_v7, %v302_v9  ;;  %v7895_v21 = vcombine.high %v309_v14, %v317_v15  ;;  %v7894_v29 = vcombine.low %v309_v14, %v317_v15  ;;  %v421_v9 = vld [vmem:[%s12891_s1 + $0x790] sm:$0xff]  ;;  %v430_v14 = vld [vmem:[%s12891_s1 + $0x7d8] sm:$0xff] }
  0x88   : > { %v7896_v30 = vcombine.low %v310_v16, %v318_v18 }
  0x89   : > { %3325 = vmatmul.mubr.bf16.vlgmr.msra.gmra.mrb[0].mxu0 %v10138_v23  ;;  %3407 = vmatmul.mubr.bf16.vlgmr.msra.gmra.mrb[0].mxu1 %v10138_v23 }
  0x8a   : > { %3416 = vmatpush1.bf16.msra.mxu0 %v7766_v25  ;;  %3498 = vmatpush1.bf16.msra.mxu1 %v7768_v26  ;;  %v333_v25 = vld [vmem:[%s12891_s1 + $0x4d0] sm:$0xff]  ;;  %v326_v26 = vld [vmem:[%s12891_s1 + $0x498] sm:$0xff] }
  0x8b   : > { %3417 = vmatprep.subr.bf16.mxu0 %v7783_v27  ;;  %3499 = vmatprep.subr.bf16.mxu1 %v7785_v31  ;;  %v7897_v27 = vcombine.high %v310_v16, %v318_v18  ;;  %v7911_v31 = vcombine.high %v325_v22, %v333_v25  ;;  %v7910_v37 = vcombine.low %v325_v22, %v333_v25  ;;  %v437_v18 = vld [vmem:[%s12891_s1 + $0x810] sm:$0xff]  ;;  %v446_v22 = vld [vmem:[%s12891_s1 + $0x858] sm:$0xff] }
  0x8c   : > { %3447 = vmatprep.mubr.bf16.mxu0 %v9805_v57  ;;  %3529 = vmatprep.mubr.bf16.mxu1 %v9805_v57  ;;  %v7912_v38 = vcombine.low %v326_v26, %v334_v28 }
  0x8e   : > { %3418 = vmatpush1.bf16.msra.mxu0 %v7782_v33  ;;  %3500 = vmatpush1.bf16.msra.mxu1 %v7784_v34  ;;  %v349_v33 = vld [vmem:[%s12891_s1 + $0x550] sm:$0xff]  ;;  %v342_v34 = vld [vmem:[%s12891_s1 + $0x518] sm:$0xff] }
  0x8f   : > { %3419 = vmatprep.subr.bf16.mxu0 %v7799_v35  ;;  %3501 = vmatprep.subr.bf16.mxu1 %v7801_v39  ;;  %v7913_v35 = vcombine.high %v326_v26, %v334_v28  ;;  %v7927_v39 = vcombine.high %v341_v32, %v349_v33  ;;  %v7926_v45 = vcombine.low %v341_v32, %v349_v33  ;;  %v453_v28 = vld [vmem:[%s12891_s1 + $0x890] sm:$0xff]  ;;  %v462_v32 = vld [vmem:[%s12891_s1 + $0x8d8] sm:$0xff] }
  0x90   : > { %v7928_v46 = vcombine.low %v342_v34, %v350_v36 }
  0x92   : > { %3420 = vmatpush1.bf16.msra.mxu0 %v7798_v41  ;;  %3502 = vmatpush1.bf16.msra.mxu1 %v7800_v42  ;;  %v365_v41 = vld [vmem:[%s12891_s1 + $0x5d0] sm:$0xff]  ;;  %v358_v42 = vld [vmem:[%s12891_s1 + $0x598] sm:$0xff] }
  0x93   : > { %3421 = vmatprep.subr.bf16.mxu0 %v7815_v43  ;;  %3503 = vmatprep.subr.bf16.mxu1 %v7817_v47  ;;  %v7929_v43 = vcombine.high %v342_v34, %v350_v36  ;;  %v7943_v47 = vcombine.high %v357_v40, %v365_v41  ;;  %v7942_v53 = vcombine.low %v357_v40, %v365_v41  ;;  %v469_v36 = vld [vmem:[%s12891_s1 + $0x910] sm:$0xff]  ;;  %v478_v40 = vld [vmem:[%s12891_s1 + $0x958] sm:$0xff] }
  0x94   : > { %v7944_v54 = vcombine.low %v358_v42, %v366_v44 }
  0x96   : > { %3422 = vmatpush1.bf16.msra.mxu0 %v7814_v49  ;;  %3504 = vmatpush1.bf16.msra.mxu1 %v7816_v50  ;;  %v381_v49 = vld [vmem:[%s12891_s1 + $0x650] sm:$0xff]  ;;  %v374_v50 = vld [vmem:[%s12891_s1 + $0x618] sm:$0xff] }
  0x97   : > { %3423 = vmatprep.subr.bf16.mxu0 %v7831_v51  ;;  %3505 = vmatprep.subr.bf16.mxu1 %v7833_v55  ;;  %v7945_v51 = vcombine.high %v358_v42, %v366_v44  ;;  %v7959_v55 = vcombine.high %v373_v48, %v381_v49  ;;  %v7958_v62 = vcombine.low %v373_v48, %v381_v49  ;;  %v485_v44 = vld [vmem:[%s12891_s1 + $0x990] sm:$0xff]  ;;  %v494_v48 = vld [vmem:[%s12891_s1 + $0x9d8] sm:$0xff] }
  0x98   : > { %v7960_v63 = vcombine.low %v374_v50, %v382_v52 }
  0x9a   : > { %3424 = vmatpush1.bf16.msra.mxu0 %v7830_v58  ;;  %3506 = vmatpush1.bf16.msra.mxu1 %v7832_v59  ;;  %v397_v58 = vld [vmem:[%s12891_s1 + $0x6d0] sm:$0xff]  ;;  %v390_v59 = vld [vmem:[%s12891_s1 + $0x698] sm:$0xff] }
  0x9b   : > { %3425 = vmatprep.subr.bf16.mxu0 %v7847_v60  ;;  %3507 = vmatprep.subr.bf16.mxu1 %v7849_v0  ;;  %v7961_v60 = vcombine.high %v374_v50, %v382_v52  ;;  %v7975_v0 = vcombine.high %v389_v56, %v397_v58  ;;  %v7974_v6 = vcombine.low %v389_v56, %v397_v58  ;;  %v501_v52 = vld [vmem:[%s12891_s1 + $0xa10] sm:$0xff]  ;;  %v510_v56 = vld [vmem:[%s12891_s1 + $0xa58] sm:$0xff] }
  0x9c   : > { %v7976_v7 = vcombine.low %v390_v59, %v398_v61 }
  0x9e   : > { %3426 = vmatpush1.bf16.msra.mxu0 %v7846_v2  ;;  %3508 = vmatpush1.bf16.msra.mxu1 %v7848_v3  ;;  %v413_v2 = vld [vmem:[%s12891_s1 + $0x750] sm:$0xff]  ;;  %v406_v3 = vld [vmem:[%s12891_s1 + $0x718] sm:$0xff] }
  0x9f   : > { %3427 = vmatprep.subr.bf16.mxu0 %v7863_v4  ;;  %3509 = vmatprep.subr.bf16.mxu1 %v7865_v8  ;;  %v7977_v4 = vcombine.high %v390_v59, %v398_v61  ;;  %v7991_v8 = vcombine.high %v405_v1, %v413_v2  ;;  %v7990_v15 = vcombine.low %v405_v1, %v413_v2  ;;  %v517_v61 = vld [vmem:[%s12891_s1 + $0xa90] sm:$0xff]  ;;  %v526_v1 = vld [vmem:[%s12891_s1 + $0xad8] sm:$0xff] }
  0xa0   : > { %v7992_v16 = vcombine.low %v406_v3, %v414_v5 }
  0xa2   : > { %3428 = vmatpush1.bf16.msra.mxu0 %v7862_v10  ;;  %3510 = vmatpush1.bf16.msra.mxu1 %v7864_v11  ;;  %v429_v10 = vld [vmem:[%s12891_s1 + $0x7d0] sm:$0xff]  ;;  %v422_v11 = vld [vmem:[%s12891_s1 + $0x798] sm:$0xff] }
  0xa3   : > { %3429 = vmatprep.subr.bf16.mxu0 %v7879_v13  ;;  %3511 = vmatprep.subr.bf16.mxu1 %v7881_v17  ;;  %v7993_v13 = vcombine.high %v406_v3, %v414_v5  ;;  %v8007_v17 = vcombine.high %v421_v9, %v429_v10  ;;  %v8006_v25 = vcombine.low %v421_v9, %v429_v10  ;;  %v533_v5 = vld [vmem:[%s12891_s1 + $0xb10] sm:$0xff]  ;;  %v542_v9 = vld [vmem:[%s12891_s1 + $0xb58] sm:$0xff] }
  0xa4   : > { %v8008_v26 = vcombine.low %v422_v11, %v430_v14 }
  0xa6   : > { %3430 = vmatpush1.bf16.msra.mxu0 %v7878_v19  ;;  %3512 = vmatpush1.bf16.msra.mxu1 %v7880_v20  ;;  %v445_v19 = vld [vmem:[%s12891_s1 + $0x850] sm:$0xff]  ;;  %v438_v20 = vld [vmem:[%s12891_s1 + $0x818] sm:$0xff] }
  0xa7   : > { %3431 = vmatprep.subr.bf16.mxu0 %v7895_v21  ;;  %3513 = vmatprep.subr.bf16.mxu1 %v7897_v27  ;;  %v8009_v21 = vcombine.high %v422_v11, %v430_v14  ;;  %v8023_v27 = vcombine.high %v437_v18, %v445_v19  ;;  %v8022_v33 = vcombine.low %v437_v18, %v445_v19  ;;  %v549_v14 = vld [vmem:[%s12891_s1 + $0xb90] sm:$0xff]  ;;  %v558_v18 = vld [vmem:[%s12891_s1 + $0xbd8] sm:$0xff] }
  0xa8   : > { %v8024_v34 = vcombine.low %v438_v20, %v446_v22 }
  0xaa   : > { %3432 = vmatpush1.bf16.msra.mxu0 %v7894_v29  ;;  %3514 = vmatpush1.bf16.msra.mxu1 %v7896_v30  ;;  %v461_v29 = vld [vmem:[%s12891_s1 + $0x8d0] sm:$0xff]  ;;  %v454_v30 = vld [vmem:[%s12891_s1 + $0x898] sm:$0xff] }
  0xab   : > { %3433 = vmatprep.subr.bf16.mxu0 %v7911_v31  ;;  %3515 = vmatprep.subr.bf16.mxu1 %v7913_v35  ;;  %v8025_v31 = vcombine.high %v438_v20, %v446_v22  ;;  %v8039_v35 = vcombine.high %v453_v28, %v461_v29  ;;  %v8038_v41 = vcombine.low %v453_v28, %v461_v29  ;;  %v565_v22 = vld [vmem:[%s12891_s1 + $0xc10] sm:$0xff]  ;;  %v574_v28 = vld [vmem:[%s12891_s1 + $0xc58] sm:$0xff] }
  0xac   : > { %v8040_v42 = vcombine.low %v454_v30, %v462_v32 }
  0xae   : > { %3434 = vmatpush1.bf16.msra.mxu0 %v7910_v37  ;;  %3516 = vmatpush1.bf16.msra.mxu1 %v7912_v38  ;;  %v477_v37 = vld [vmem:[%s12891_s1 + $0x950] sm:$0xff]  ;;  %v470_v38 = vld [vmem:[%s12891_s1 + $0x918] sm:$0xff] }
  0xaf   : > { %3435 = vmatprep.subr.bf16.mxu0 %v7927_v39  ;;  %3517 = vmatprep.subr.bf16.mxu1 %v7929_v43  ;;  %v8041_v39 = vcombine.high %v454_v30, %v462_v32  ;;  %v8055_v43 = vcombine.high %v469_v36, %v477_v37  ;;  %v8054_v49 = vcombine.low %v469_v36, %v477_v37  ;;  %v581_v32 = vld [vmem:[%s12891_s1 + $0xc90] sm:$0xff]  ;;  %v590_v36 = vld [vmem:[%s12891_s1 + $0xcd8] sm:$0xff] }
  0xb0   : > { %v8056_v50 = vcombine.low %v470_v38, %v478_v40 }
  0xb2   : > { %3436 = vmatpush1.bf16.msra.mxu0 %v7926_v45  ;;  %3518 = vmatpush1.bf16.msra.mxu1 %v7928_v46  ;;  %v493_v45 = vld [vmem:[%s12891_s1 + $0x9d0] sm:$0xff]  ;;  %v486_v46 = vld [vmem:[%s12891_s1 + $0x998] sm:$0xff] }
  0xb3   : > { %3437 = vmatprep.subr.bf16.mxu0 %v7943_v47  ;;  %3519 = vmatprep.subr.bf16.mxu1 %v7945_v51  ;;  %v8057_v47 = vcombine.high %v470_v38, %v478_v40  ;;  %v8071_v51 = vcombine.high %v485_v44, %v493_v45  ;;  %v8070_v58 = vcombine.low %v485_v44, %v493_v45  ;;  %v597_v40 = vld [vmem:[%s12891_s1 + $0xd10] sm:$0xff]  ;;  %v606_v44 = vld [vmem:[%s12891_s1 + $0xd58] sm:$0xff] }
  0xb4   : > { %v8072_v59 = vcombine.low %v486_v46, %v494_v48 }
  0xb6   : > { %3438 = vmatpush1.bf16.msra.mxu0 %v7942_v53  ;;  %3520 = vmatpush1.bf16.msra.mxu1 %v7944_v54  ;;  %v509_v53 = vld [vmem:[%s12891_s1 + $0xa50] sm:$0xff]  ;;  %v502_v54 = vld [vmem:[%s12891_s1 + $0xa18] sm:$0xff] }
  0xb7   : > { %3439 = vmatprep.subr.bf16.mxu0 %v7959_v55  ;;  %3521 = vmatprep.subr.bf16.mxu1 %v7961_v60  ;;  %v8073_v55 = vcombine.high %v486_v46, %v494_v48  ;;  %v8087_v60 = vcombine.high %v501_v52, %v509_v53  ;;  %v8086_v2 = vcombine.low %v501_v52, %v509_v53  ;;  %v613_v48 = vld [vmem:[%s12891_s1 + $0xd90] sm:$0xff]  ;;  %v622_v52 = vld [vmem:[%s12891_s1 + $0xdd8] sm:$0xff] }
  0xb8   : > { %v8088_v3 = vcombine.low %v502_v54, %v510_v56 }
  0xba   : > { %3440 = vmatpush1.bf16.msra.mxu0 %v7958_v62  ;;  %3522 = vmatpush1.bf16.msra.mxu1 %v7960_v63  ;;  %v525_v62 = vld [vmem:[%s12891_s1 + $0xad0] sm:$0xff]  ;;  %v518_v63 = vld [vmem:[%s12891_s1 + $0xa98] sm:$0xff] }
  0xbb   : > { %3441 = vmatprep.subr.bf16.mxu0 %v7975_v0  ;;  %3523 = vmatprep.subr.bf16.mxu1 %v7977_v4  ;;  %v8089_v0 = vcombine.high %v502_v54, %v510_v56  ;;  %v8103_v4 = vcombine.high %v517_v61, %v525_v62  ;;  %v8102_v10 = vcombine.low %v517_v61, %v525_v62  ;;  %v629_v56 = vld [vmem:[%s12891_s1 + $0xe10] sm:$0xff]  ;;  %v638_v61 = vld [vmem:[%s12891_s1 + $0xe58] sm:$0xff] }
  0xbc   : > { %v8104_v11 = vcombine.low %v518_v63, %v526_v1 }
  0xbe   : > { %3442 = vmatpush1.bf16.msra.mxu0 %v7974_v6  ;;  %3524 = vmatpush1.bf16.msra.mxu1 %v7976_v7  ;;  %v541_v6 = vld [vmem:[%s12891_s1 + $0xb50] sm:$0xff]  ;;  %v534_v7 = vld [vmem:[%s12891_s1 + $0xb18] sm:$0xff] }
  0xbf   : > { %3443 = vmatprep.subr.bf16.mxu0 %v7991_v8  ;;  %3525 = vmatprep.subr.bf16.mxu1 %v7993_v13  ;;  %v8105_v8 = vcombine.high %v518_v63, %v526_v1  ;;  %v8119_v13 = vcombine.high %v533_v5, %v541_v6  ;;  %v8118_v19 = vcombine.low %v533_v5, %v541_v6  ;;  %v645_v1 = vld [vmem:[%s12891_s1 + $0xe90] sm:$0xff]  ;;  %v654_v5 = vld [vmem:[%s12891_s1 + $0xed8] sm:$0xff] }
  0xc0   : > { %v8120_v20 = vcombine.low %v534_v7, %v542_v9 }
  0xc2   : > { %3444 = vmatpush1.bf16.msra.mxu0 %v7990_v15  ;;  %3526 = vmatpush1.bf16.msra.mxu1 %v7992_v16  ;;  %v557_v15 = vld [vmem:[%s12891_s1 + $0xbd0] sm:$0xff]  ;;  %v550_v16 = vld [vmem:[%s12891_s1 + $0xb98] sm:$0xff] }
  0xc3   : > { %3445 = vmatprep.subr.bf16.mxu0 %v8007_v17  ;;  %3527 = vmatprep.subr.bf16.mxu1 %v8009_v21  ;;  %v8121_v17 = vcombine.high %v534_v7, %v542_v9  ;;  %v8135_v21 = vcombine.high %v549_v14, %v557_v15  ;;  %v8134_v29 = vcombine.low %v549_v14, %v557_v15  ;;  %v661_v9 = vld [vmem:[%s12891_s1 + $0xf10] sm:$0xff]  ;;  %v670_v14 = vld [vmem:[%s12891_s1 + $0xf58] sm:$0xff] }
  0xc4   : > { %v8136_v30 = vcombine.low %v550_v16, %v558_v18 }
  0xc6   : > { %3446 = vmatpush1.bf16.msra.mxu0 %v8006_v25  ;;  %3528 = vmatpush1.bf16.msra.mxu1 %v8008_v26  ;;  %v573_v25 = vld [vmem:[%s12891_s1 + $0xc50] sm:$0xff]  ;;  %v566_v26 = vld [vmem:[%s12891_s1 + $0xc18] sm:$0xff] }
  0xc7   : > { %3456 = vmatprep.subr.bf16.mxu0 %v8023_v27  ;;  %3538 = vmatprep.subr.bf16.mxu1 %v8025_v31  ;;  %v8137_v27 = vcombine.high %v550_v16, %v558_v18  ;;  %v8151_v31 = vcombine.high %v565_v22, %v573_v25  ;;  %v8150_v37 = vcombine.low %v565_v22, %v573_v25  ;;  %v677_v18 = vld [vmem:[%s12891_s1 + $0xf90] sm:$0xff]  ;;  %v686_v22 = vld [vmem:[%s12891_s1 + $0xfd8] sm:$0xff] }
  0xc8   : > { %v8152_v38 = vcombine.low %v566_v26, %v574_v28 }
  0xc9   : > { %3448 = vmatmul.mubr.bf16.vlgmr.msra.gmra.mrb[4].mxu0 %v9930_v12  ;;  %3530 = vmatmul.mubr.bf16.vlgmr.msra.gmra.mrb[4].mxu1 %v9930_v12 }
  0xca   : > { %3457 = vmatpush1.bf16.msra.mxu0 %v8022_v33  ;;  %3539 = vmatpush1.bf16.msra.mxu1 %v8024_v34  ;;  %v589_v33 = vld [vmem:[%s12891_s1 + $0xcd0] sm:$0xff]  ;;  %v582_v34 = vld [vmem:[%s12891_s1 + $0xc98] sm:$0xff] }
  0xcb   : > { %3458 = vmatprep.subr.bf16.mxu0 %v8039_v35  ;;  %3540 = vmatprep.subr.bf16.mxu1 %v8041_v39  ;;  %v8153_v35 = vcombine.high %v566_v26, %v574_v28  ;;  %v8167_v39 = vcombine.high %v581_v32, %v589_v33  ;;  %v8166_v45 = vcombine.low %v581_v32, %v589_v33  ;;  %v183_v28 = vld [vmem:[%s12891_s1 + $0x20] sm:$0xff]  ;;  %v192_v32 = vld [vmem:[%s12891_s1 + $0x68] sm:$0xff] }
  0xcc   : > { %3488 = vmatprep.mubr.bf16.mxu0 %v9951_v24  ;;  %3570 = vmatprep.mubr.bf16.mxu1 %v9951_v24  ;;  %v8168_v46 = vcombine.low %v582_v34, %v590_v36 }
  0xce   : > { %3459 = vmatpush1.bf16.msra.mxu0 %v8038_v41  ;;  %3541 = vmatpush1.bf16.msra.mxu1 %v8040_v42  ;;  %v605_v41 = vld [vmem:[%s12891_s1 + $0xd50] sm:$0xff]  ;;  %v598_v42 = vld [vmem:[%s12891_s1 + $0xd18] sm:$0xff] }
  0xcf   : > { %3460 = vmatprep.subr.bf16.mxu0 %v8055_v43  ;;  %3542 = vmatprep.subr.bf16.mxu1 %v8057_v47  ;;  %v8169_v43 = vcombine.high %v582_v34, %v590_v36  ;;  %v8183_v47 = vcombine.high %v597_v40, %v605_v41  ;;  %v8182_v53 = vcombine.low %v597_v40, %v605_v41  ;;  %v199_v36 = vld [vmem:[%s12891_s1 + $0xa0] sm:$0xff]  ;;  %v208_v40 = vld [vmem:[%s12891_s1 + $0xe8] sm:$0xff] }
  0xd0   : > { %v8184_v54 = vcombine.low %v598_v42, %v606_v44 }
  0xd2   : > { %3461 = vmatpush1.bf16.msra.mxu0 %v8054_v49  ;;  %3543 = vmatpush1.bf16.msra.mxu1 %v8056_v50  ;;  %v621_v49 = vld [vmem:[%s12891_s1 + $0xdd0] sm:$0xff]  ;;  %v614_v50 = vld [vmem:[%s12891_s1 + $0xd98] sm:$0xff] }
  0xd3   : > { %3462 = vmatprep.subr.bf16.mxu0 %v8071_v51  ;;  %3544 = vmatprep.subr.bf16.mxu1 %v8073_v55  ;;  %v8185_v51 = vcombine.high %v598_v42, %v606_v44  ;;  %v8199_v55 = vcombine.high %v613_v48, %v621_v49  ;;  %v8198_v62 = vcombine.low %v613_v48, %v621_v49  ;;  %v215_v44 = vld [vmem:[%s12891_s1 + $0x120] sm:$0xff]  ;;  %v224_v48 = vld [vmem:[%s12891_s1 + $0x168] sm:$0xff] }
  0xd4   : > { %v8200_v63 = vcombine.low %v614_v50, %v622_v52 }
  0xd6   : > { %3463 = vmatpush1.bf16.msra.mxu0 %v8070_v58  ;;  %3545 = vmatpush1.bf16.msra.mxu1 %v8072_v59  ;;  %v637_v58 = vld [vmem:[%s12891_s1 + $0xe50] sm:$0xff]  ;;  %v630_v59 = vld [vmem:[%s12891_s1 + $0xe18] sm:$0xff] }
  0xd7   : > { %3464 = vmatprep.subr.bf16.mxu0 %v8087_v60  ;;  %3546 = vmatprep.subr.bf16.mxu1 %v8089_v0  ;;  %v8201_v60 = vcombine.high %v614_v50, %v622_v52  ;;  %v8215_v0 = vcombine.high %v629_v56, %v637_v58  ;;  %v8214_v6 = vcombine.low %v629_v56, %v637_v58  ;;  %v231_v52 = vld [vmem:[%s12891_s1 + $0x1a0] sm:$0xff]  ;;  %v240_v56 = vld [vmem:[%s12891_s1 + $0x1e8] sm:$0xff] }
  0xd8   : > { %v8216_v7 = vcombine.low %v630_v59, %v638_v61 }
  0xda   : > { %3465 = vmatpush1.bf16.msra.mxu0 %v8086_v2  ;;  %3547 = vmatpush1.bf16.msra.mxu1 %v8088_v3  ;;  %v653_v2 = vld [vmem:[%s12891_s1 + $0xed0] sm:$0xff]  ;;  %v646_v3 = vld [vmem:[%s12891_s1 + $0xe98] sm:$0xff] }
  0xdb   : > { %3466 = vmatprep.subr.bf16.mxu0 %v8103_v4  ;;  %3548 = vmatprep.subr.bf16.mxu1 %v8105_v8  ;;  %v8217_v4 = vcombine.high %v630_v59, %v638_v61  ;;  %v8231_v8 = vcombine.high %v645_v1, %v653_v2  ;;  %v8230_v15 = vcombine.low %v645_v1, %v653_v2  ;;  %v247_v61 = vld [vmem:[%s12891_s1 + $0x220] sm:$0xff]  ;;  %v256_v1 = vld [vmem:[%s12891_s1 + $0x268] sm:$0xff] }
  0xdc   : > { %v8232_v16 = vcombine.low %v646_v3, %v654_v5 }
  0xde   : > { %3467 = vmatpush1.bf16.msra.mxu0 %v8102_v10  ;;  %3549 = vmatpush1.bf16.msra.mxu1 %v8104_v11  ;;  %v669_v10 = vld [vmem:[%s12891_s1 + $0xf50] sm:$0xff]  ;;  %v662_v11 = vld [vmem:[%s12891_s1 + $0xf18] sm:$0xff] }
  0xdf   : > { %3468 = vmatprep.subr.bf16.mxu0 %v8119_v13  ;;  %3550 = vmatprep.subr.bf16.mxu1 %v8121_v17  ;;  %v8233_v13 = vcombine.high %v646_v3, %v654_v5  ;;  %v8247_v17 = vcombine.high %v661_v9, %v669_v10  ;;  %v8246_v25 = vcombine.low %v661_v9, %v669_v10  ;;  %v263_v5 = vld [vmem:[%s12891_s1 + $0x2a0] sm:$0xff]  ;;  %v272_v9 = vld [vmem:[%s12891_s1 + $0x2e8] sm:$0xff] }
  0xe0   : > { %v8248_v26 = vcombine.low %v662_v11, %v670_v14 }
  0xe2   : > { %3469 = vmatpush1.bf16.msra.mxu0 %v8118_v19  ;;  %3551 = vmatpush1.bf16.msra.mxu1 %v8120_v20  ;;  %v685_v19 = vld [vmem:[%s12891_s1 + $0xfd0] sm:$0xff]  ;;  %v678_v20 = vld [vmem:[%s12891_s1 + $0xf98] sm:$0xff] }
  0xe3   : > { %3470 = vmatprep.subr.bf16.mxu0 %v8135_v21  ;;  %3552 = vmatprep.subr.bf16.mxu1 %v8137_v27  ;;  %v8249_v21 = vcombine.high %v662_v11, %v670_v14  ;;  %v8263_v27 = vcombine.high %v677_v18, %v685_v19  ;;  %v8262_v33 = vcombine.low %v677_v18, %v685_v19  ;;  %v279_v14 = vld [vmem:[%s12891_s1 + $0x320] sm:$0xff]  ;;  %v288_v18 = vld [vmem:[%s12891_s1 + $0x368] sm:$0xff] }
  0xe4   : > { %v8264_v34 = vcombine.low %v678_v20, %v686_v22 }
  0xe6   : > { %3471 = vmatpush1.bf16.msra.mxu0 %v8134_v29  ;;  %3553 = vmatpush1.bf16.msra.mxu1 %v8136_v30  ;;  %v191_v29 = vld [vmem:[%s12891_s1 + $0x60] sm:$0xff]  ;;  %v184_v30 = vld [vmem:[%s12891_s1 + $0x28] sm:$0xff] }
  0xe7   : > { %3472 = vmatprep.subr.bf16.mxu0 %v8151_v31  ;;  %3554 = vmatprep.subr.bf16.mxu1 %v8153_v35  ;;  %v8265_v31 = vcombine.high %v678_v20, %v686_v22  ;;  %v7771_v35 = vcombine.high %v183_v28, %v191_v29  ;;  %v7770_v41 = vcombine.low %v183_v28, %v191_v29  ;;  %v295_v22 = vld [vmem:[%s12891_s1 + $0x3a0] sm:$0xff]  ;;  %v304_v28 = vld [vmem:[%s12891_s1 + $0x3e8] sm:$0xff] }
  0xe8   : > { %v7772_v42 = vcombine.low %v184_v30, %v192_v32 }
  0xea   : > { %3473 = vmatpush1.bf16.msra.mxu0 %v8150_v37  ;;  %3555 = vmatpush1.bf16.msra.mxu1 %v8152_v38  ;;  %v207_v37 = vld [vmem:[%s12891_s1 + $0xe0] sm:$0xff]  ;;  %v200_v38 = vld [vmem:[%s12891_s1 + $0xa8] sm:$0xff] }
  0xeb   : > { %3474 = vmatprep.subr.bf16.mxu0 %v8167_v39  ;;  %3556 = vmatprep.subr.bf16.mxu1 %v8169_v43  ;;  %v7773_v39 = vcombine.high %v184_v30, %v192_v32  ;;  %v7787_v43 = vcombine.high %v199_v36, %v207_v37  ;;  %v7786_v49 = vcombine.low %v199_v36, %v207_v37  ;;  %v311_v32 = vld [vmem:[%s12891_s1 + $0x420] sm:$0xff]  ;;  %v320_v36 = vld [vmem:[%s12891_s1 + $0x468] sm:$0xff] }
  0xec   : > { %v7788_v50 = vcombine.low %v200_v38, %v208_v40 }
  0xee   : > { %3475 = vmatpush1.bf16.msra.mxu0 %v8166_v45  ;;  %3557 = vmatpush1.bf16.msra.mxu1 %v8168_v46  ;;  %v223_v45 = vld [vmem:[%s12891_s1 + $0x160] sm:$0xff]  ;;  %v216_v46 = vld [vmem:[%s12891_s1 + $0x128] sm:$0xff] }
  0xef   : > { %3476 = vmatprep.subr.bf16.mxu0 %v8183_v47  ;;  %3558 = vmatprep.subr.bf16.mxu1 %v8185_v51  ;;  %v7789_v47 = vcombine.high %v200_v38, %v208_v40  ;;  %v7803_v51 = vcombine.high %v215_v44, %v223_v45  ;;  %v7802_v58 = vcombine.low %v215_v44, %v223_v45  ;;  %v327_v40 = vld [vmem:[%s12891_s1 + $0x4a0] sm:$0xff]  ;;  %v336_v44 = vld [vmem:[%s12891_s1 + $0x4e8] sm:$0xff] }
  0xf0   : > { %v7804_v59 = vcombine.low %v216_v46, %v224_v48 }
  0xf2   : > { %3477 = vmatpush1.bf16.msra.mxu0 %v8182_v53  ;;  %3559 = vmatpush1.bf16.msra.mxu1 %v8184_v54  ;;  %v239_v53 = vld [vmem:[%s12891_s1 + $0x1e0] sm:$0xff]  ;;  %v232_v54 = vld [vmem:[%s12891_s1 + $0x1a8] sm:$0xff] }
  0xf3   : > { %3478 = vmatprep.subr.bf16.mxu0 %v8199_v55  ;;  %3560 = vmatprep.subr.bf16.mxu1 %v8201_v60  ;;  %v7805_v55 = vcombine.high %v216_v46, %v224_v48  ;;  %v7819_v60 = vcombine.high %v231_v52, %v239_v53  ;;  %v7818_v2 = vcombine.low %v231_v52, %v239_v53  ;;  %v343_v48 = vld [vmem:[%s12891_s1 + $0x520] sm:$0xff]  ;;  %v352_v52 = vld [vmem:[%s12891_s1 + $0x568] sm:$0xff] }
  0xf4   : > { %v7820_v3 = vcombine.low %v232_v54, %v240_v56 }
  0xf6   : > { %3479 = vmatpush1.bf16.msra.mxu0 %v8198_v62  ;;  %3561 = vmatpush1.bf16.msra.mxu1 %v8200_v63  ;;  %v255_v62 = vld [vmem:[%s12891_s1 + $0x260] sm:$0xff]  ;;  %v248_v63 = vld [vmem:[%s12891_s1 + $0x228] sm:$0xff] }
  0xf7   : > { %3480 = vmatprep.subr.bf16.mxu0 %v8215_v0  ;;  %3562 = vmatprep.subr.bf16.mxu1 %v8217_v4  ;;  %v7821_v0 = vcombine.high %v232_v54, %v240_v56  ;;  %v7835_v4 = vcombine.high %v247_v61, %v255_v62  ;;  %v7834_v10 = vcombine.low %v247_v61, %v255_v62  ;;  %v359_v56 = vld [vmem:[%s12891_s1 + $0x5a0] sm:$0xff]  ;;  %v368_v61 = vld [vmem:[%s12891_s1 + $0x5e8] sm:$0xff] }
  0xf8   : > { %v7836_v11 = vcombine.low %v248_v63, %v256_v1 }
  0xfa   : > { %3481 = vmatpush1.bf16.msra.mxu0 %v8214_v6  ;;  %3563 = vmatpush1.bf16.msra.mxu1 %v8216_v7  ;;  %v271_v6 = vld [vmem:[%s12891_s1 + $0x2e0] sm:$0xff]  ;;  %v264_v7 = vld [vmem:[%s12891_s1 + $0x2a8] sm:$0xff] }
  0xfb   : > { %3482 = vmatprep.subr.bf16.mxu0 %v8231_v8  ;;  %3564 = vmatprep.subr.bf16.mxu1 %v8233_v13  ;;  %v7837_v8 = vcombine.high %v248_v63, %v256_v1  ;;  %v7851_v13 = vcombine.high %v263_v5, %v271_v6  ;;  %v7850_v19 = vcombine.low %v263_v5, %v271_v6  ;;  %v375_v1 = vld [vmem:[%s12891_s1 + $0x620] sm:$0xff]  ;;  %v384_v5 = vld [vmem:[%s12891_s1 + $0x668] sm:$0xff] }
  0xfc   : > { %v7852_v20 = vcombine.low %v264_v7, %v272_v9 }
  0xfe   : > { %3483 = vmatpush1.bf16.msra.mxu0 %v8230_v15  ;;  %3565 = vmatpush1.bf16.msra.mxu1 %v8232_v16  ;;  %v287_v15 = vld [vmem:[%s12891_s1 + $0x360] sm:$0xff]  ;;  %v280_v16 = vld [vmem:[%s12891_s1 + $0x328] sm:$0xff] }
  0xff   : > { %3484 = vmatprep.subr.bf16.mxu0 %v8247_v17  ;;  %3566 = vmatprep.subr.bf16.mxu1 %v8249_v21  ;;  %v7853_v17 = vcombine.high %v264_v7, %v272_v9  ;;  %v7867_v21 = vcombine.high %v279_v14, %v287_v15  ;;  %v7866_v29 = vcombine.low %v279_v14, %v287_v15  ;;  %v391_v9 = vld [vmem:[%s12891_s1 + $0x6a0] sm:$0xff]  ;;  %v400_v14 = vld [vmem:[%s12891_s1 + $0x6e8] sm:$0xff] }
 0x100   : > { %v7868_v30 = vcombine.low %v280_v16, %v288_v18 }
 0x102   : > { %3485 = vmatpush1.bf16.msra.mxu0 %v8246_v25  ;;  %3567 = vmatpush1.bf16.msra.mxu1 %v8248_v26  ;;  %v303_v25 = vld [vmem:[%s12891_s1 + $0x3e0] sm:$0xff]  ;;  %v296_v26 = vld [vmem:[%s12891_s1 + $0x3a8] sm:$0xff] }
 0x103   : > { %3486 = vmatprep.subr.bf16.mxu0 %v8263_v27  ;;  %3568 = vmatprep.subr.bf16.mxu1 %v8265_v31  ;;  %v7869_v27 = vcombine.high %v280_v16, %v288_v18  ;;  %v7883_v31 = vcombine.high %v295_v22, %v303_v25  ;;  %v7882_v37 = vcombine.low %v295_v22, %v303_v25  ;;  %v407_v18 = vld [vmem:[%s12891_s1 + $0x720] sm:$0xff]  ;;  %v416_v22 = vld [vmem:[%s12891_s1 + $0x768] sm:$0xff] }
 0x104   : > { %v7884_v38 = vcombine.low %v296_v26, %v304_v28 }
 0x106   : > { %3487 = vmatpush1.bf16.msra.mxu0 %v8262_v33  ;;  %3569 = vmatpush1.bf16.msra.mxu1 %v8264_v34  ;;  %v319_v33 = vld [vmem:[%s12891_s1 + $0x460] sm:$0xff]  ;;  %v312_v34 = vld [vmem:[%s12891_s1 + $0x428] sm:$0xff] }
 0x107   : > { %3579 = vmatprep.subr.bf16.mxu0 %v7771_v35  ;;  %3661 = vmatprep.subr.bf16.mxu1 %v7773_v39  ;;  %v7885_v35 = vcombine.high %v296_v26, %v304_v28  ;;  %v7899_v39 = vcombine.high %v311_v32, %v319_v33  ;;  %v7898_v45 = vcombine.low %v311_v32, %v319_v33  ;;  %v423_v28 = vld [vmem:[%s12891_s1 + $0x7a0] sm:$0xff]  ;;  %v432_v32 = vld [vmem:[%s12891_s1 + $0x7e8] sm:$0xff] }
 0x108   : > { %v7900_v46 = vcombine.low %v312_v34, %v320_v36 }
 0x109   : > { %3489 = vmatmul.mubr.bf16.vlgmr.msra.gmra.mrb[4].mxu0 %v10138_v23  ;;  %3571 = vmatmul.mubr.bf16.vlgmr.msra.gmra.mrb[4].mxu1 %v10138_v23 }
 0x10a   : > { %3580 = vmatpush1.bf16.msra.mxu0 %v7770_v41  ;;  %3662 = vmatpush1.bf16.msra.mxu1 %v7772_v42  ;;  %v335_v41 = vld [vmem:[%s12891_s1 + $0x4e0] sm:$0xff]  ;;  %v328_v42 = vld [vmem:[%s12891_s1 + $0x4a8] sm:$0xff] }
 0x10b   : > { %3581 = vmatprep.subr.bf16.mxu0 %v7787_v43  ;;  %3663 = vmatprep.subr.bf16.mxu1 %v7789_v47  ;;  %v7901_v43 = vcombine.high %v312_v34, %v320_v36  ;;  %v7915_v47 = vcombine.high %v327_v40, %v335_v41  ;;  %v7914_v53 = vcombine.low %v327_v40, %v335_v41  ;;  %v439_v36 = vld [vmem:[%s12891_s1 + $0x820] sm:$0xff]  ;;  %v448_v40 = vld [vmem:[%s12891_s1 + $0x868] sm:$0xff] }
 0x10c   : > { %3611 = vmatprep.mubr.bf16.mxu0 %v9805_v57  ;;  %3693 = vmatprep.mubr.bf16.mxu1 %v9805_v57  ;;  %v7916_v54 = vcombine.low %v328_v42, %v336_v44 }
 0x10e   : > { %3582 = vmatpush1.bf16.msra.mxu0 %v7786_v49  ;;  %3664 = vmatpush1.bf16.msra.mxu1 %v7788_v50  ;;  %v351_v49 = vld [vmem:[%s12891_s1 + $0x560] sm:$0xff]  ;;  %v344_v50 = vld [vmem:[%s12891_s1 + $0x528] sm:$0xff] }
 0x10f   : > { %3583 = vmatprep.subr.bf16.mxu0 %v7803_v51  ;;  %3665 = vmatprep.subr.bf16.mxu1 %v7805_v55  ;;  %v7917_v51 = vcombine.high %v328_v42, %v336_v44  ;;  %v7931_v55 = vcombine.high %v343_v48, %v351_v49  ;;  %v7930_v62 = vcombine.low %v343_v48, %v351_v49  ;;  %v455_v44 = vld [vmem:[%s12891_s1 + $0x8a0] sm:$0xff]  ;;  %v464_v48 = vld [vmem:[%s12891_s1 + $0x8e8] sm:$0xff] }
 0x110   : > { %v7932_v63 = vcombine.low %v344_v50, %v352_v52 }
 0x112   : > { %3584 = vmatpush1.bf16.msra.mxu0 %v7802_v58  ;;  %3666 = vmatpush1.bf16.msra.mxu1 %v7804_v59  ;;  %v367_v58 = vld [vmem:[%s12891_s1 + $0x5e0] sm:$0xff]  ;;  %v360_v59 = vld [vmem:[%s12891_s1 + $0x5a8] sm:$0xff] }
 0x113   : > { %3585 = vmatprep.subr.bf16.mxu0 %v7819_v60  ;;  %3667 = vmatprep.subr.bf16.mxu1 %v7821_v0  ;;  %v7933_v60 = vcombine.high %v344_v50, %v352_v52  ;;  %v7947_v0 = vcombine.high %v359_v56, %v367_v58  ;;  %v7946_v6 = vcombine.low %v359_v56, %v367_v58  ;;  %v480_v56 = vld [vmem:[%s12891_s1 + $0x968] sm:$0xff] }
 0x114   : > { %v7948_v7 = vcombine.low %v360_v59, %v368_v61 }
 0x116   : > { %3586 = vmatpush1.bf16.msra.mxu0 %v7818_v2  ;;  %3668 = vmatpush1.bf16.msra.mxu1 %v7820_v3  ;;  %v383_v2 = vld [vmem:[%s12891_s1 + $0x660] sm:$0xff]  ;;  %v376_v3 = vld [vmem:[%s12891_s1 + $0x628] sm:$0xff] }
 0x117   : > { %3587 = vmatprep.subr.bf16.mxu0 %v7835_v4  ;;  %3669 = vmatprep.subr.bf16.mxu1 %v7837_v8  ;;  %v7949_v4 = vcombine.high %v360_v59, %v368_v61  ;;  %v7963_v8 = vcombine.high %v375_v1, %v383_v2  ;;  %v7962_v15 = vcombine.low %v375_v1, %v383_v2  ;;  %v496_v1 = vld [vmem:[%s12891_s1 + $0x9e8] sm:$0xff] }
 0x118   : > { %v7964_v16 = vcombine.low %v376_v3, %v384_v5 }
 0x11a   : > { %3588 = vmatpush1.bf16.msra.mxu0 %v7834_v10  ;;  %3670 = vmatpush1.bf16.msra.mxu1 %v7836_v11  ;;  %v399_v10 = vld [vmem:[%s12891_s1 + $0x6e0] sm:$0xff]  ;;  %v392_v11 = vld [vmem:[%s12891_s1 + $0x6a8] sm:$0xff] }
 0x11b   : > { %3589 = vmatprep.subr.bf16.mxu0 %v7851_v13  ;;  %3671 = vmatprep.subr.bf16.mxu1 %v7853_v17  ;;  %v7965_v13 = vcombine.high %v376_v3, %v384_v5  ;;  %v7979_v17 = vcombine.high %v391_v9, %v399_v10  ;;  %v7978_v25 = vcombine.low %v391_v9, %v399_v10  ;;  %v512_v9 = vld [vmem:[%s12891_s1 + $0xa68] sm:$0xff] }
 0x11c   : > { %v7980_v26 = vcombine.low %v392_v11, %v400_v14 }
 0x11e   : > { %3590 = vmatpush1.bf16.msra.mxu0 %v7850_v19  ;;  %3672 = vmatpush1.bf16.msra.mxu1 %v7852_v20  ;;  %v415_v19 = vld [vmem:[%s12891_s1 + $0x760] sm:$0xff]  ;;  %v408_v20 = vld [vmem:[%s12891_s1 + $0x728] sm:$0xff] }
 0x11f   : > { %3591 = vmatprep.subr.bf16.mxu0 %v7867_v21  ;;  %3673 = vmatprep.subr.bf16.mxu1 %v7869_v27  ;;  %v7981_v21 = vcombine.high %v392_v11, %v400_v14  ;;  %v7995_v27 = vcombine.high %v407_v18, %v415_v19  ;;  %v7994_v33 = vcombine.low %v407_v18, %v415_v19  ;;  %v528_v18 = vld [vmem:[%s12891_s1 + $0xae8] sm:$0xff] }
 0x120   : > { %v7996_v34 = vcombine.low %v408_v20, %v416_v22 }
 0x122   : > { %3592 = vmatpush1.bf16.msra.mxu0 %v7866_v29  ;;  %3674 = vmatpush1.bf16.msra.mxu1 %v7868_v30  ;;  %v431_v29 = vld [vmem:[%s12891_s1 + $0x7e0] sm:$0xff]  ;;  %v424_v30 = vld [vmem:[%s12891_s1 + $0x7a8] sm:$0xff] }
 0x123   : > { %3593 = vmatprep.subr.bf16.mxu0 %v7883_v31  ;;  %3675 = vmatprep.subr.bf16.mxu1 %v7885_v35  ;;  %v7997_v31 = vcombine.high %v408_v20, %v416_v22  ;;  %v8011_v35 = vcombine.high %v423_v28, %v431_v29  ;;  %v8010_v41 = vcombine.low %v423_v28, %v431_v29  ;;  %v544_v28 = vld [vmem:[%s12891_s1 + $0xb68] sm:$0xff] }
 0x124   : > { %v8012_v42 = vcombine.low %v424_v30, %v432_v32 }
 0x126   : > { %3594 = vmatpush1.bf16.msra.mxu0 %v7882_v37  ;;  %3676 = vmatpush1.bf16.msra.mxu1 %v7884_v38  ;;  %v447_v37 = vld [vmem:[%s12891_s1 + $0x860] sm:$0xff]  ;;  %v440_v38 = vld [vmem:[%s12891_s1 + $0x828] sm:$0xff] }
 0x127   : > { %3595 = vmatprep.subr.bf16.mxu0 %v7899_v39  ;;  %3677 = vmatprep.subr.bf16.mxu1 %v7901_v43  ;;  %v8013_v39 = vcombine.high %v424_v30, %v432_v32  ;;  %v8027_v43 = vcombine.high %v439_v36, %v447_v37  ;;  %v8026_v49 = vcombine.low %v439_v36, %v447_v37 }
 0x128   : > { %v8028_v50 = vcombine.low %v440_v38, %v448_v40 }
 0x12a   : > { %3596 = vmatpush1.bf16.msra.mxu0 %v7898_v45  ;;  %3678 = vmatpush1.bf16.msra.mxu1 %v7900_v46  ;;  %v463_v45 = vld [vmem:[%s12891_s1 + $0x8e0] sm:$0xff]  ;;  %v456_v46 = vld [vmem:[%s12891_s1 + $0x8a8] sm:$0xff] }
 0x12b   : > { %3597 = vmatprep.subr.bf16.mxu0 %v7915_v47  ;;  %3679 = vmatprep.subr.bf16.mxu1 %v7917_v51  ;;  %v8029_v47 = vcombine.high %v440_v38, %v448_v40  ;;  %v8043_v51 = vcombine.high %v455_v44, %v463_v45  ;;  %v8045_v52 = vcombine.high %v456_v46, %v464_v48  ;;  %v552_v38 = vld [vmem:[%s12891_s1 + $0xba8] sm:$0xff] }
 0x12c   : > { %v8042_v58 = vcombine.low %v455_v44, %v463_v45  ;;  %v8044_v59 = vcombine.low %v456_v46, %v464_v48 }
 0x12e   : > { %3598 = vmatpush1.bf16.msra.mxu0 %v7914_v53  ;;  %3680 = vmatpush1.bf16.msra.mxu1 %v7916_v54  ;;  %v471_v53 = vld [vmem:[%s12891_s1 + $0x920] sm:$0xff] }
 0x12f   : > { %3599 = vmatprep.subr.bf16.mxu0 %v7931_v55  ;;  %3681 = vmatprep.subr.bf16.mxu1 %v7933_v60  ;;  %v479_v54 = vld [vmem:[%s12891_s1 + $0x960] sm:$0xff]  ;;  %v472_v55 = vld [vmem:[%s12891_s1 + $0x928] sm:$0xff] }
 0x130   : > { %v8059_v60 = vcombine.high %v471_v53, %v479_v54  ;;  %v8061_v61 = vcombine.high %v472_v55, %v480_v56  ;;  %v8058_v2 = vcombine.low %v471_v53, %v479_v54  ;;  %v8060_v3 = vcombine.low %v472_v55, %v480_v56 }
 0x132   : > { %3600 = vmatpush1.bf16.msra.mxu0 %v7930_v62  ;;  %3682 = vmatpush1.bf16.msra.mxu1 %v7932_v63  ;;  %v487_v62 = vld [vmem:[%s12891_s1 + $0x9a0] sm:$0xff] }
 0x133   : > { %3601 = vmatprep.subr.bf16.mxu0 %v7947_v0  ;;  %3683 = vmatprep.subr.bf16.mxu1 %v7949_v4  ;;  %v495_v63 = vld [vmem:[%s12891_s1 + $0x9e0] sm:$0xff]  ;;  %v488_v0 = vld [vmem:[%s12891_s1 + $0x9a8] sm:$0xff] }
 0x134   : > { %v8075_v4 = vcombine.high %v487_v62, %v495_v63  ;;  %v8077_v5 = vcombine.high %v488_v0, %v496_v1  ;;  %v8074_v10 = vcombine.low %v487_v62, %v495_v63  ;;  %v8076_v11 = vcombine.low %v488_v0, %v496_v1 }
 0x136   : > { %3602 = vmatpush1.bf16.msra.mxu0 %v7946_v6  ;;  %3684 = vmatpush1.bf16.msra.mxu1 %v7948_v7  ;;  %v503_v6 = vld [vmem:[%s12891_s1 + $0xa20] sm:$0xff] }
 0x137   : > { %3603 = vmatprep.subr.bf16.mxu0 %v7963_v8  ;;  %3685 = vmatprep.subr.bf16.mxu1 %v7965_v13  ;;  %v511_v7 = vld [vmem:[%s12891_s1 + $0xa60] sm:$0xff]  ;;  %v504_v8 = vld [vmem:[%s12891_s1 + $0xa28] sm:$0xff] }
 0x138   : > { %v8091_v13 = vcombine.high %v503_v6, %v511_v7  ;;  %v8093_v14 = vcombine.high %v504_v8, %v512_v9  ;;  %v8090_v19 = vcombine.low %v503_v6, %v511_v7  ;;  %v8092_v20 = vcombine.low %v504_v8, %v512_v9 }
 0x13a   : > { %3604 = vmatpush1.bf16.msra.mxu0 %v7962_v15  ;;  %3686 = vmatpush1.bf16.msra.mxu1 %v7964_v16  ;;  %v519_v15 = vld [vmem:[%s12891_s1 + $0xaa0] sm:$0xff] }
 0x13b   : > { %3605 = vmatprep.subr.bf16.mxu0 %v7979_v17  ;;  %3687 = vmatprep.subr.bf16.mxu1 %v7981_v21  ;;  %v527_v16 = vld [vmem:[%s12891_s1 + $0xae0] sm:$0xff]  ;;  %v520_v17 = vld [vmem:[%s12891_s1 + $0xaa8] sm:$0xff] }
 0x13c   : > { %v8107_v21 = vcombine.high %v519_v15, %v527_v16  ;;  %v8109_v22 = vcombine.high %v520_v17, %v528_v18  ;;  %v8106_v29 = vcombine.low %v519_v15, %v527_v16  ;;  %v8108_v30 = vcombine.low %v520_v17, %v528_v18 }
 0x13e   : > { %3606 = vmatpush1.bf16.msra.mxu0 %v7978_v25  ;;  %3688 = vmatpush1.bf16.msra.mxu1 %v7980_v26  ;;  %v535_v25 = vld [vmem:[%s12891_s1 + $0xb20] sm:$0xff] }
 0x13f   : > { %3607 = vmatprep.subr.bf16.mxu0 %v7995_v27  ;;  %3689 = vmatprep.subr.bf16.mxu1 %v7997_v31  ;;  %v543_v26 = vld [vmem:[%s12891_s1 + $0xb60] sm:$0xff]  ;;  %v536_v27 = vld [vmem:[%s12891_s1 + $0xb28] sm:$0xff] }
 0x140   : > { %v8123_v31 = vcombine.high %v535_v25, %v543_v26  ;;  %v8124_v45 = vcombine.low %v536_v27, %v544_v28 }
 0x142   : > { %3608 = vmatpush1.bf16.msra.mxu0 %v7994_v33  ;;  %3690 = vmatpush1.bf16.msra.mxu1 %v7996_v34  ;;  %v8125_v33 = vcombine.high %v536_v27, %v544_v28  ;;  %v551_v34 = vld [vmem:[%s12891_s1 + $0xba0] sm:$0xff] }
 0x143   : > { %3609 = vmatprep.subr.bf16.mxu0 %v8011_v35  ;;  %3691 = vmatprep.subr.bf16.mxu1 %v8013_v39  ;;  %v559_v35 = vld [vmem:[%s12891_s1 + $0xbe0] sm:$0xff]  ;;  %v560_v39 = vld [vmem:[%s12891_s1 + $0xbe8] sm:$0xff] }
 0x144   : > { %v8139_v46 = vcombine.high %v551_v34, %v559_v35  ;;  %v8141_v48 = vcombine.high %v552_v38, %v560_v39  ;;  %v8138_v53 = vcombine.low %v551_v34, %v559_v35  ;;  %v8140_v54 = vcombine.low %v552_v38, %v560_v39 }
 0x146   : > { %3610 = vmatpush1.bf16.msra.mxu0 %v8010_v41  ;;  %3692 = vmatpush1.bf16.msra.mxu1 %v8012_v42  ;;  %v8122_v42 = vcombine.low %v535_v25, %v543_v26 }
 0x147   : > { %3620 = vmatprep.subr.bf16.mxu0 %v8027_v43  ;;  %3702 = vmatprep.subr.bf16.mxu1 %v8029_v47 }
 0x149   : > { %3612 = vmatmul.mubr.bf16.vlgmr.msra.gmra.mrb[8].mxu0 %v9930_v12  ;;  %3694 = vmatmul.mubr.bf16.vlgmr.msra.gmra.mrb[8].mxu1 %v9930_v12 }
 0x14a   : > { %3621 = vmatpush1.bf16.msra.mxu0 %v8026_v49  ;;  %3703 = vmatpush1.bf16.msra.mxu1 %v8028_v50  ;;  %v567_v49 = vld [vmem:[%s12891_s1 + $0xc20] sm:$0xff] }
 0x14b   : > { %3622 = vmatprep.subr.bf16.mxu0 %v8043_v51  ;;  %3704 = vmatprep.subr.bf16.mxu1 %v8045_v52  ;;  %v575_v50 = vld [vmem:[%s12891_s1 + $0xc60] sm:$0xff]  ;;  %v568_v51 = vld [vmem:[%s12891_s1 + $0xc28] sm:$0xff] }
 0x14c   : > { %3652 = vmatprep.mubr.bf16.mxu0 %v9951_v24  ;;  %3734 = vmatprep.mubr.bf16.mxu1 %v9951_v24  ;;  %v576_v52 = vld [vmem:[%s12891_s1 + $0xc68] sm:$0xff]  ;;  %v8155_v55 = vcombine.high %v567_v49, %v575_v50  ;;  %v8154_v62 = vcombine.low %v567_v49, %v575_v50  ;;  %v679_v49 = vld [vmem:[%s12891_s1 + $0xfa0] sm:$0xff] }
 0x14d   : > { %v8157_v56 = vcombine.high %v568_v51, %v576_v52  ;;  %v8156_v63 = vcombine.low %v568_v51, %v576_v52  ;;  %v687_v50 = vld [vmem:[%s12891_s1 + $0xfe0] sm:$0xff]  ;;  %v680_v51 = vld [vmem:[%s12891_s1 + $0xfa8] sm:$0xff] }
 0x14e   : > { %3623 = vmatpush1.bf16.msra.mxu0 %v8042_v58  ;;  %3705 = vmatpush1.bf16.msra.mxu1 %v8044_v59  ;;  %v583_v58 = vld [vmem:[%s12891_s1 + $0xca0] sm:$0xff]  ;;  %v688_v52 = vld [vmem:[%s12891_s1 + $0xfe8] sm:$0xff] }
 0x14f   : > { %3624 = vmatprep.subr.bf16.mxu0 %v8059_v60  ;;  %3706 = vmatprep.subr.bf16.mxu1 %v8061_v61  ;;  %v591_v59 = vld [vmem:[%s12891_s1 + $0xce0] sm:$0xff]  ;;  %v584_v60 = vld [vmem:[%s12891_s1 + $0xca8] sm:$0xff] }
 0x150   : > { %v592_v61 = vld [vmem:[%s12891_s1 + $0xce8] sm:$0xff]  ;;  %v8171_v0 = vcombine.high %v583_v58, %v591_v59  ;;  %v8170_v6 = vcombine.low %v583_v58, %v591_v59  ;;  %v185_v58 = vld [vmem:[%s12891_s1 + $0x30] sm:$0xff] }
 0x151   : > { %v8173_v1 = vcombine.high %v584_v60, %v592_v61  ;;  %v8172_v7 = vcombine.low %v584_v60, %v592_v61  ;;  %v193_v59 = vld [vmem:[%s12891_s1 + $0x70] sm:$0xff]  ;;  %v186_v60 = vld [vmem:[%s12891_s1 + $0x38] sm:$0xff] }
 0x152   : > { %3625 = vmatpush1.bf16.msra.mxu0 %v8058_v2  ;;  %3707 = vmatpush1.bf16.msra.mxu1 %v8060_v3  ;;  %v599_v2 = vld [vmem:[%s12891_s1 + $0xd20] sm:$0xff]  ;;  %v194_v61 = vld [vmem:[%s12891_s1 + $0x78] sm:$0xff] }
 0x153   : > { %3626 = vmatprep.subr.bf16.mxu0 %v8075_v4  ;;  %3708 = vmatprep.subr.bf16.mxu1 %v8077_v5  ;;  %v607_v3 = vld [vmem:[%s12891_s1 + $0xd60] sm:$0xff]  ;;  %v600_v4 = vld [vmem:[%s12891_s1 + $0xd28] sm:$0xff] }
 0x154   : > { %v608_v5 = vld [vmem:[%s12891_s1 + $0xd68] sm:$0xff]  ;;  %v8187_v8 = vcombine.high %v599_v2, %v607_v3  ;;  %v8186_v15 = vcombine.low %v599_v2, %v607_v3  ;;  %v201_v2 = vld [vmem:[%s12891_s1 + $0xb0] sm:$0xff] }
 0x155   : > { %v8189_v9 = vcombine.high %v600_v4, %v608_v5  ;;  %v8188_v16 = vcombine.low %v600_v4, %v608_v5  ;;  %v209_v3 = vld [vmem:[%s12891_s1 + $0xf0] sm:$0xff]  ;;  %v202_v4 = vld [vmem:[%s12891_s1 + $0xb8] sm:$0xff] }
 0x156   : > { %3627 = vmatpush1.bf16.msra.mxu0 %v8074_v10  ;;  %3709 = vmatpush1.bf16.msra.mxu1 %v8076_v11  ;;  %v615_v10 = vld [vmem:[%s12891_s1 + $0xda0] sm:$0xff]  ;;  %v210_v5 = vld [vmem:[%s12891_s1 + $0xf8] sm:$0xff] }
 0x157   : > { %3628 = vmatprep.subr.bf16.mxu0 %v8091_v13  ;;  %3710 = vmatprep.subr.bf16.mxu1 %v8093_v14  ;;  %v623_v11 = vld [vmem:[%s12891_s1 + $0xde0] sm:$0xff]  ;;  %v616_v13 = vld [vmem:[%s12891_s1 + $0xda8] sm:$0xff] }
 0x158   : > { %v624_v14 = vld [vmem:[%s12891_s1 + $0xde8] sm:$0xff]  ;;  %v8203_v17 = vcombine.high %v615_v10, %v623_v11  ;;  %v8202_v25 = vcombine.low %v615_v10, %v623_v11  ;;  %v217_v10 = vld [vmem:[%s12891_s1 + $0x130] sm:$0xff] }
 0x159   : > { %v8205_v18 = vcombine.high %v616_v13, %v624_v14  ;;  %v8204_v26 = vcombine.low %v616_v13, %v624_v14  ;;  %v225_v11 = vld [vmem:[%s12891_s1 + $0x170] sm:$0xff]  ;;  %v218_v13 = vld [vmem:[%s12891_s1 + $0x138] sm:$0xff] }
 0x15a   : > { %3629 = vmatpush1.bf16.msra.mxu0 %v8090_v19  ;;  %3711 = vmatpush1.bf16.msra.mxu1 %v8092_v20  ;;  %v631_v19 = vld [vmem:[%s12891_s1 + $0xe20] sm:$0xff]  ;;  %v226_v14 = vld [vmem:[%s12891_s1 + $0x178] sm:$0xff] }
 0x15b   : > { %3630 = vmatprep.subr.bf16.mxu0 %v8107_v21  ;;  %3712 = vmatprep.subr.bf16.mxu1 %v8109_v22  ;;  %v639_v20 = vld [vmem:[%s12891_s1 + $0xe60] sm:$0xff]  ;;  %v632_v21 = vld [vmem:[%s12891_s1 + $0xe28] sm:$0xff] }
 0x15c   : > { %v10792_v32 = vpop.f32.mrb[0].mxu0  ;;  %v10800_v36 = vpop.f32.mrb[0].mxu1  ;;  %v640_v22 = vld [vmem:[%s12891_s1 + $0xe68] sm:$0xff]  ;;  %v8219_v27 = vcombine.high %v631_v19, %v639_v20  ;;  %v8218_v34 = vcombine.low %v631_v19, %v639_v20  ;;  %v233_v19 = vld [vmem:[%s12891_s1 + $0x1b0] sm:$0xff] }
 0x15d   : > { %v10802_v37 = vpop.f32.mrb[1].mxu0  ;;  %v10810_v40 = vpop.f32.mrb[1].mxu1  ;;  %v8221_v28 = vcombine.high %v632_v21, %v640_v22  ;;  %v8220_v35 = vcombine.low %v632_v21, %v640_v22  ;;  %v241_v20 = vld [vmem:[%s12891_s1 + $0x1f0] sm:$0xff]  ;;  %v234_v21 = vld [vmem:[%s12891_s1 + $0x1b8] sm:$0xff] }
 0x15e   : > { %v3330_v41 = vpop.f32.mrb[2].mxu0  ;;  %3631 = vmatpush1.bf16.msra.mxu0 %v8106_v29  ;;  %v3412_v43 = vpop.f32.mrb[2].mxu1  ;;  %3713 = vmatpush1.bf16.msra.mxu1 %v8108_v30  ;;  %v647_v29 = vld [vmem:[%s12891_s1 + $0xea0] sm:$0xff]  ;;  %v242_v22 = vld [vmem:[%s12891_s1 + $0x1f8] sm:$0xff] }
 0x15f   : > { %v3331_v44 = vpop.f32.mrb[3].mxu0  ;;  %3632 = vmatprep.subr.bf16.mxu0 %v8123_v31  ;;  %v3413_v47 = vpop.f32.mrb[3].mxu1  ;;  %3714 = vmatprep.subr.bf16.mxu1 %v8125_v33  ;;  %v655_v30 = vld [vmem:[%s12891_s1 + $0xee0] sm:$0xff]  ;;  %v648_v31 = vld [vmem:[%s12891_s1 + $0xea8] sm:$0xff] }
 0x160   : > { %v656_v33 = vld [vmem:[%s12891_s1 + $0xee8] sm:$0xff]  ;;  %v8235_v38 = vcombine.high %v647_v29, %v655_v30  ;;  %v663_v41 = vld [vmem:[%s12891_s1 + $0xf20] sm:$0xff] }
 0x161   : > { %v8237_v39 = vcombine.high %v648_v31, %v656_v33  ;;  %v664_v43 = vld [vmem:[%s12891_s1 + $0xf28] sm:$0xff] }
 0x162   : > { %3633 = vmatpush1.bf16.msra.mxu0 %v8122_v42  ;;  %3715 = vmatpush1.bf16.msra.mxu1 %v8124_v45  ;;  %v671_v42 = vld [vmem:[%s12891_s1 + $0xf60] sm:$0xff]  ;;  %v672_v44 = vld [vmem:[%s12891_s1 + $0xf68] sm:$0xff]  ;;  %v8234_v45 = vcombine.low %v647_v29, %v655_v30  ;;  %v249_v29 = vld [vmem:[%s12891_s1 + $0x230] sm:$0xff] }
 0x163   : > { %3634 = vmatprep.subr.bf16.mxu0 %v8139_v46  ;;  %3716 = vmatprep.subr.bf16.mxu1 %v8141_v48  ;;  %v8236_v46 = vcombine.low %v648_v31, %v656_v33  ;;  %v8251_v47 = vcombine.high %v663_v41, %v671_v42  ;;  %v8253_v48 = vcombine.high %v664_v43, %v672_v44  ;;  %v257_v30 = vld [vmem:[%s12891_s1 + $0x270] sm:$0xff]  ;;  %v258_v31 = vld [vmem:[%s12891_s1 + $0x278] sm:$0xff] }
 0x164   : > { %v7822_v33 = vcombine.low %v233_v19, %v241_v20 }
 0x166   : > { %3635 = vmatpush1.bf16.msra.mxu0 %v8138_v53  ;;  %3717 = vmatpush1.bf16.msra.mxu1 %v8140_v54  ;;  %v8250_v53 = vcombine.low %v663_v41, %v671_v42  ;;  %v8252_v54 = vcombine.low %v664_v43, %v672_v44  ;;  %v273_v41 = vld [vmem:[%s12891_s1 + $0x2f0] sm:$0xff]  ;;  %v266_v42 = vld [vmem:[%s12891_s1 + $0x2b8] sm:$0xff]  ;;  %v7838_v44 = vcombine.low %v249_v29, %v257_v30 }
 0x167   : > { %3636 = vmatprep.subr.bf16.mxu0 %v8155_v55  ;;  %3718 = vmatprep.subr.bf16.mxu1 %v8157_v56  ;;  %v8267_v55 = vcombine.high %v679_v49, %v687_v50  ;;  %v8269_v56 = vcombine.high %v680_v51, %v688_v52  ;;  %v274_v43 = vld [vmem:[%s12891_s1 + $0x2f8] sm:$0xff] }
 0x16a   : > { %3637 = vmatpush1.bf16.msra.mxu0 %v8154_v62  ;;  %3719 = vmatpush1.bf16.msra.mxu1 %v8156_v63  ;;  %v8266_v62 = vcombine.low %v679_v49, %v687_v50  ;;  %v8268_v63 = vcombine.low %v680_v51, %v688_v52  ;;  %v289_v49 = vld [vmem:[%s12891_s1 + $0x370] sm:$0xff]  ;;  %v282_v50 = vld [vmem:[%s12891_s1 + $0x338] sm:$0xff] }
 0x16b   : > { %3638 = vmatprep.subr.bf16.mxu0 %v8171_v0  ;;  %3720 = vmatprep.subr.bf16.mxu1 %v8173_v1  ;;  %v7775_v0 = vcombine.high %v185_v58, %v193_v59  ;;  %v7777_v1 = vcombine.high %v186_v60, %v194_v61  ;;  %v290_v51 = vld [vmem:[%s12891_s1 + $0x378] sm:$0xff] }
 0x16e   : > { %3639 = vmatpush1.bf16.msra.mxu0 %v8170_v6  ;;  %3721 = vmatpush1.bf16.msra.mxu1 %v8172_v7  ;;  %v7774_v6 = vcombine.low %v185_v58, %v193_v59  ;;  %v7776_v7 = vcombine.low %v186_v60, %v194_v61  ;;  %v305_v58 = vld [vmem:[%s12891_s1 + $0x3f0] sm:$0xff]  ;;  %v298_v59 = vld [vmem:[%s12891_s1 + $0x3b8] sm:$0xff] }
 0x16f   : > { %3640 = vmatprep.subr.bf16.mxu0 %v8187_v8  ;;  %3722 = vmatprep.subr.bf16.mxu1 %v8189_v9  ;;  %v7791_v8 = vcombine.high %v201_v2, %v209_v3  ;;  %v7793_v9 = vcombine.high %v202_v4, %v210_v5  ;;  %v306_v60 = vld [vmem:[%s12891_s1 + $0x3f8] sm:$0xff] }
 0x172   : > { %3641 = vmatpush1.bf16.msra.mxu0 %v8186_v15  ;;  %3723 = vmatpush1.bf16.msra.mxu1 %v8188_v16  ;;  %v7790_v15 = vcombine.low %v201_v2, %v209_v3  ;;  %v7792_v16 = vcombine.low %v202_v4, %v210_v5  ;;  %v321_v2 = vld [vmem:[%s12891_s1 + $0x470] sm:$0xff]  ;;  %v314_v3 = vld [vmem:[%s12891_s1 + $0x438] sm:$0xff] }
 0x173   : > { %3642 = vmatprep.subr.bf16.mxu0 %v8203_v17  ;;  %3724 = vmatprep.subr.bf16.mxu1 %v8205_v18  ;;  %v7807_v17 = vcombine.high %v217_v10, %v225_v11  ;;  %v7809_v18 = vcombine.high %v218_v13, %v226_v14  ;;  %v322_v4 = vld [vmem:[%s12891_s1 + $0x478] sm:$0xff] }
 0x176   : > { %3643 = vmatpush1.bf16.msra.mxu0 %v8202_v25  ;;  %3725 = vmatpush1.bf16.msra.mxu1 %v8204_v26  ;;  %v7806_v25 = vcombine.low %v217_v10, %v225_v11  ;;  %v7808_v26 = vcombine.low %v218_v13, %v226_v14  ;;  %v337_v10 = vld [vmem:[%s12891_s1 + $0x4f0] sm:$0xff]  ;;  %v330_v11 = vld [vmem:[%s12891_s1 + $0x4b8] sm:$0xff] }
 0x177   : > { %3644 = vmatprep.subr.bf16.mxu0 %v8219_v27  ;;  %3726 = vmatprep.subr.bf16.mxu1 %v8221_v28  ;;  %v7823_v27 = vcombine.high %v233_v19, %v241_v20  ;;  %v7825_v28 = vcombine.high %v234_v21, %v242_v22  ;;  %v338_v13 = vld [vmem:[%s12891_s1 + $0x4f8] sm:$0xff]  ;;  %v353_v19 = vld [vmem:[%s12891_s1 + $0x570] sm:$0xff] }
 0x178   : > { %v346_v20 = vld [vmem:[%s12891_s1 + $0x538] sm:$0xff] }
 0x17a   : > { %3645 = vmatpush1.bf16.msra.mxu0 %v8218_v34  ;;  %3727 = vmatpush1.bf16.msra.mxu1 %v8220_v35  ;;  %v7824_v34 = vcombine.low %v234_v21, %v242_v22  ;;  %v7839_v35 = vcombine.high %v249_v29, %v257_v30  ;;  %v354_v21 = vld [vmem:[%s12891_s1 + $0x578] sm:$0xff]  ;;  %v369_v29 = vld [vmem:[%s12891_s1 + $0x5f0] sm:$0xff] }
 0x17b   : > { %3646 = vmatprep.subr.bf16.mxu0 %v8235_v38  ;;  %3728 = vmatprep.subr.bf16.mxu1 %v8237_v39  ;;  %v265_v39 = vld [vmem:[%s12891_s1 + $0x2b0] sm:$0xff]  ;;  %v362_v30 = vld [vmem:[%s12891_s1 + $0x5b8] sm:$0xff] }
 0x17c   : > { %v7854_v52 = vcombine.low %v265_v39, %v273_v41 }
 0x17e   : > { %3647 = vmatpush1.bf16.msra.mxu0 %v8234_v45  ;;  %3729 = vmatpush1.bf16.msra.mxu1 %v8236_v46  ;;  %v7855_v46 = vcombine.high %v265_v39, %v273_v41  ;;  %v385_v39 = vld [vmem:[%s12891_s1 + $0x670] sm:$0xff]  ;;  %v378_v41 = vld [vmem:[%s12891_s1 + $0x638] sm:$0xff] }
 0x17f   : > { %3648 = vmatprep.subr.bf16.mxu0 %v8251_v47  ;;  %3730 = vmatprep.subr.bf16.mxu1 %v8253_v48  ;;  %v7857_v47 = vcombine.high %v266_v42, %v274_v43  ;;  %v281_v48 = vld [vmem:[%s12891_s1 + $0x330] sm:$0xff] }
 0x180   : > { %v7870_v61 = vcombine.low %v281_v48, %v289_v49 }
 0x182   : > { %3649 = vmatpush1.bf16.msra.mxu0 %v8250_v53  ;;  %3731 = vmatpush1.bf16.msra.mxu1 %v8252_v54  ;;  %v7856_v53 = vcombine.low %v266_v42, %v274_v43  ;;  %v7871_v54 = vcombine.high %v281_v48, %v289_v49  ;;  %v386_v42 = vld [vmem:[%s12891_s1 + $0x678] sm:$0xff]  ;;  %v401_v48 = vld [vmem:[%s12891_s1 + $0x6f0] sm:$0xff] }
 0x183   : > { %3650 = vmatprep.subr.bf16.mxu0 %v8267_v55  ;;  %3732 = vmatprep.subr.bf16.mxu1 %v8269_v56  ;;  %v7873_v55 = vcombine.high %v282_v50, %v290_v51  ;;  %v297_v56 = vld [vmem:[%s12891_s1 + $0x3b0] sm:$0xff]  ;;  %v394_v49 = vld [vmem:[%s12891_s1 + $0x6b8] sm:$0xff] }
 0x184   : > { %v7886_v5 = vcombine.low %v297_v56, %v305_v58 }
 0x186   : > { %3651 = vmatpush1.bf16.msra.mxu0 %v8266_v62  ;;  %3733 = vmatpush1.bf16.msra.mxu1 %v8268_v63  ;;  %v7872_v62 = vcombine.low %v282_v50, %v290_v51  ;;  %v7887_v63 = vcombine.high %v297_v56, %v305_v58  ;;  %v402_v50 = vld [vmem:[%s12891_s1 + $0x6f8] sm:$0xff]  ;;  %v417_v56 = vld [vmem:[%s12891_s1 + $0x770] sm:$0xff] }
 0x187   : > { %3743 = vmatprep.subr.bf16.mxu0 %v7775_v0  ;;  %3825 = vmatprep.subr.bf16.mxu1 %v7777_v1  ;;  %v7889_v0 = vcombine.high %v298_v59, %v306_v60  ;;  %v313_v1 = vld [vmem:[%s12891_s1 + $0x430] sm:$0xff]  ;;  %v410_v58 = vld [vmem:[%s12891_s1 + $0x738] sm:$0xff] }
 0x188   : > { %v7902_v14 = vcombine.low %v313_v1, %v321_v2 }
 0x189   : > { %3653 = vmatmul.mubr.bf16.vlgmr.msra.gmra.mrb[8].mxu0 %v10138_v23  ;;  %3735 = vmatmul.mubr.bf16.vlgmr.msra.gmra.mrb[8].mxu1 %v10138_v23 }
 0x18a   : > { %3744 = vmatpush1.bf16.msra.mxu0 %v7774_v6  ;;  %3826 = vmatpush1.bf16.msra.mxu1 %v7776_v7  ;;  %v7888_v6 = vcombine.low %v298_v59, %v306_v60  ;;  %v7903_v7 = vcombine.high %v313_v1, %v321_v2  ;;  %v418_v59 = vld [vmem:[%s12891_s1 + $0x778] sm:$0xff]  ;;  %v433_v1 = vld [vmem:[%s12891_s1 + $0x7f0] sm:$0xff] }
 0x18b   : > { %3745 = vmatprep.subr.bf16.mxu0 %v7791_v8  ;;  %3827 = vmatprep.subr.bf16.mxu1 %v7793_v9  ;;  %v7905_v8 = vcombine.high %v314_v3, %v322_v4  ;;  %v329_v9 = vld [vmem:[%s12891_s1 + $0x4b0] sm:$0xff]  ;;  %v426_v2 = vld [vmem:[%s12891_s1 + $0x7b8] sm:$0xff] }
 0x18c   : > { %3775 = vmatprep.mubr.bf16.mxu0 %v9805_v57  ;;  %3857 = vmatprep.mubr.bf16.mxu1 %v9805_v57  ;;  %v250_v57 = vld [vmem:[%s12891_s1 + $0x238] sm:$0xff]  ;;  %v7918_v22 = vcombine.low %v329_v9, %v337_v10 }
 0x18d   : > { %v7841_v38 = vcombine.high %v250_v57, %v258_v31  ;;  %v7840_v45 = vcombine.low %v250_v57, %v258_v31  ;;  %v370_v57 = vld [vmem:[%s12891_s1 + $0x5f8] sm:$0xff] }
 0x18e   : > { %3746 = vmatpush1.bf16.msra.mxu0 %v7790_v15  ;;  %3828 = vmatpush1.bf16.msra.mxu1 %v7792_v16  ;;  %v7904_v15 = vcombine.low %v314_v3, %v322_v4  ;;  %v7919_v16 = vcombine.high %v329_v9, %v337_v10  ;;  %v434_v3 = vld [vmem:[%s12891_s1 + $0x7f8] sm:$0xff]  ;;  %v449_v9 = vld [vmem:[%s12891_s1 + $0x870] sm:$0xff] }
 0x18f   : > { %3747 = vmatprep.subr.bf16.mxu0 %v7807_v17  ;;  %3829 = vmatprep.subr.bf16.mxu1 %v7809_v18  ;;  %v7921_v17 = vcombine.high %v330_v11, %v338_v13  ;;  %v345_v18 = vld [vmem:[%s12891_s1 + $0x530] sm:$0xff]  ;;  %v442_v10 = vld [vmem:[%s12891_s1 + $0x838] sm:$0xff] }
 0x190   : > { %v7934_v31 = vcombine.low %v345_v18, %v353_v19 }
 0x192   : > { %3748 = vmatpush1.bf16.msra.mxu0 %v7806_v25  ;;  %3830 = vmatpush1.bf16.msra.mxu1 %v7808_v26  ;;  %v7920_v25 = vcombine.low %v330_v11, %v338_v13  ;;  %v7935_v26 = vcombine.high %v345_v18, %v353_v19  ;;  %v450_v11 = vld [vmem:[%s12891_s1 + $0x878] sm:$0xff]  ;;  %v465_v18 = vld [vmem:[%s12891_s1 + $0x8f0] sm:$0xff] }
 0x193   : > { %3749 = vmatprep.subr.bf16.mxu0 %v7823_v27  ;;  %3831 = vmatprep.subr.bf16.mxu1 %v7825_v28  ;;  %v7937_v27 = vcombine.high %v346_v20, %v354_v21  ;;  %v361_v28 = vld [vmem:[%s12891_s1 + $0x5b0] sm:$0xff]  ;;  %v458_v19 = vld [vmem:[%s12891_s1 + $0x8b8] sm:$0xff] }
 0x194   : > { %v7950_v43 = vcombine.low %v361_v28, %v369_v29 }
 0x196   : > { %3750 = vmatpush1.bf16.msra.mxu0 %v7822_v33  ;;  %3832 = vmatpush1.bf16.msra.mxu1 %v7824_v34  ;;  %v7936_v33 = vcombine.low %v346_v20, %v354_v21  ;;  %v7951_v34 = vcombine.high %v361_v28, %v369_v29  ;;  %v466_v20 = vld [vmem:[%s12891_s1 + $0x8f8] sm:$0xff]  ;;  %v481_v28 = vld [vmem:[%s12891_s1 + $0x970] sm:$0xff] }
 0x197   : > { %3751 = vmatprep.subr.bf16.mxu0 %v7839_v35  ;;  %3833 = vmatprep.subr.bf16.mxu1 %v7841_v38  ;;  %v7953_v35 = vcombine.high %v362_v30, %v370_v57  ;;  %v377_v38 = vld [vmem:[%s12891_s1 + $0x630] sm:$0xff]  ;;  %v474_v29 = vld [vmem:[%s12891_s1 + $0x938] sm:$0xff] }
 0x198   : > { %v7966_v51 = vcombine.low %v377_v38, %v385_v39 }
 0x19a   : > { %3752 = vmatpush1.bf16.msra.mxu0 %v7838_v44  ;;  %3834 = vmatpush1.bf16.msra.mxu1 %v7840_v45  ;;  %v7952_v44 = vcombine.low %v362_v30, %v370_v57  ;;  %v7967_v45 = vcombine.high %v377_v38, %v385_v39  ;;  %v482_v30 = vld [vmem:[%s12891_s1 + $0x978] sm:$0xff]  ;;  %v497_v38 = vld [vmem:[%s12891_s1 + $0x9f0] sm:$0xff] }
 0x19b   : > { %3753 = vmatprep.subr.bf16.mxu0 %v7855_v46  ;;  %3835 = vmatprep.subr.bf16.mxu1 %v7857_v47  ;;  %v7969_v46 = vcombine.high %v378_v41, %v386_v42  ;;  %v393_v47 = vld [vmem:[%s12891_s1 + $0x6b0] sm:$0xff]  ;;  %v498_v39 = vld [vmem:[%s12891_s1 + $0x9f8] sm:$0xff] }
 0x19c   : > { %v7982_v60 = vcombine.low %v393_v47, %v401_v48 }
 0x19e   : > { %3754 = vmatpush1.bf16.msra.mxu0 %v7854_v52  ;;  %3836 = vmatpush1.bf16.msra.mxu1 %v7856_v53  ;;  %v7968_v52 = vcombine.low %v378_v41, %v386_v42  ;;  %v7983_v53 = vcombine.high %v393_v47, %v401_v48  ;;  %v8064_v42 = vcombine.low %v474_v29, %v482_v30  ;;  %v514_v47 = vld [vmem:[%s12891_s1 + $0xa78] sm:$0xff] }
 0x19f   : > { %3755 = vmatprep.subr.bf16.mxu0 %v7871_v54  ;;  %3837 = vmatprep.subr.bf16.mxu1 %v7873_v55  ;;  %v7985_v54 = vcombine.high %v394_v49, %v402_v50  ;;  %v409_v55 = vld [vmem:[%s12891_s1 + $0x730] sm:$0xff] }
 0x1a0   : > { %v7998_v4 = vcombine.low %v409_v55, %v417_v56 }
 0x1a2   : > { %3756 = vmatpush1.bf16.msra.mxu0 %v7870_v61  ;;  %3838 = vmatpush1.bf16.msra.mxu1 %v7872_v62  ;;  %v7984_v61 = vcombine.low %v394_v49, %v402_v50  ;;  %v7999_v62 = vcombine.high %v409_v55, %v417_v56  ;;  %v530_v55 = vld [vmem:[%s12891_s1 + $0xaf8] sm:$0xff] }
 0x1a3   : > { %3757 = vmatprep.subr.bf16.mxu0 %v7887_v63  ;;  %3839 = vmatprep.subr.bf16.mxu1 %v7889_v0  ;;  %v8001_v63 = vcombine.high %v410_v58, %v418_v59  ;;  %v425_v0 = vld [vmem:[%s12891_s1 + $0x7b0] sm:$0xff] }
 0x1a4   : > { %v8014_v13 = vcombine.low %v425_v0, %v433_v1 }
 0x1a6   : > { %3758 = vmatpush1.bf16.msra.mxu0 %v7886_v5  ;;  %3840 = vmatpush1.bf16.msra.mxu1 %v7888_v6  ;;  %v8000_v5 = vcombine.low %v410_v58, %v418_v59  ;;  %v8015_v6 = vcombine.high %v425_v0, %v433_v1  ;;  %v546_v0 = vld [vmem:[%s12891_s1 + $0xb78] sm:$0xff] }
 0x1a7   : > { %3759 = vmatprep.subr.bf16.mxu0 %v7903_v7  ;;  %3841 = vmatprep.subr.bf16.mxu1 %v7905_v8  ;;  %v8017_v7 = vcombine.high %v426_v2, %v434_v3  ;;  %v441_v8 = vld [vmem:[%s12891_s1 + $0x830] sm:$0xff] }
 0x1a8   : > { %v8030_v21 = vcombine.low %v441_v8, %v449_v9 }
 0x1aa   : > { %3760 = vmatpush1.bf16.msra.mxu0 %v7902_v14  ;;  %3842 = vmatpush1.bf16.msra.mxu1 %v7904_v15  ;;  %v8016_v14 = vcombine.low %v426_v2, %v434_v3  ;;  %v8031_v15 = vcombine.high %v441_v8, %v449_v9 }
 0x1ab   : > { %3761 = vmatprep.subr.bf16.mxu0 %v7919_v16  ;;  %3843 = vmatprep.subr.bf16.mxu1 %v7921_v17  ;;  %v8033_v16 = vcombine.high %v442_v10, %v450_v11  ;;  %v457_v17 = vld [vmem:[%s12891_s1 + $0x8b0] sm:$0xff] }
 0x1ac   : > { %v8046_v57 = vcombine.low %v457_v17, %v465_v18 }
 0x1ae   : > { %3762 = vmatpush1.bf16.msra.mxu0 %v7918_v22  ;;  %3844 = vmatpush1.bf16.msra.mxu1 %v7920_v25  ;;  %v8032_v22 = vcombine.low %v442_v10, %v450_v11  ;;  %v8047_v25 = vcombine.high %v457_v17, %v465_v18  ;;  %v554_v10 = vld [vmem:[%s12891_s1 + $0xbb8] sm:$0xff] }
 0x1af   : > { %3763 = vmatprep.subr.bf16.mxu0 %v7935_v26  ;;  %3845 = vmatprep.subr.bf16.mxu1 %v7937_v27  ;;  %v8049_v26 = vcombine.high %v458_v19, %v466_v20  ;;  %v473_v27 = vld [vmem:[%s12891_s1 + $0x930] sm:$0xff]  ;;  %v562_v11 = vld [vmem:[%s12891_s1 + $0xbf8] sm:$0xff] }
 0x1b0   : > { %v8062_v41 = vcombine.low %v473_v27, %v481_v28 }
 0x1b2   : > { %3764 = vmatpush1.bf16.msra.mxu0 %v7934_v31  ;;  %3846 = vmatpush1.bf16.msra.mxu1 %v7936_v33  ;;  %v8048_v31 = vcombine.low %v458_v19, %v466_v20  ;;  %v8063_v33 = vcombine.high %v473_v27, %v481_v28  ;;  %v578_v27 = vld [vmem:[%s12891_s1 + $0xc78] sm:$0xff] }
 0x1b3   : > { %3765 = vmatprep.subr.bf16.mxu0 %v7951_v34  ;;  %3847 = vmatprep.subr.bf16.mxu1 %v7953_v35  ;;  %v8065_v34 = vcombine.high %v474_v29, %v482_v30  ;;  %v489_v35 = vld [vmem:[%s12891_s1 + $0x9b0] sm:$0xff]  ;;  %v8144_v29 = vcombine.low %v554_v10, %v562_v11 }
 0x1b4   : > { %v8078_v48 = vcombine.low %v489_v35, %v497_v38 }
 0x1b6   : > { %3766 = vmatpush1.bf16.msra.mxu0 %v7950_v43  ;;  %3848 = vmatpush1.bf16.msra.mxu1 %v7952_v44  ;;  %v8079_v43 = vcombine.high %v489_v35, %v497_v38  ;;  %v594_v35 = vld [vmem:[%s12891_s1 + $0xcf8] sm:$0xff] }
 0x1b7   : > { %3767 = vmatprep.subr.bf16.mxu0 %v7967_v45  ;;  %3849 = vmatprep.subr.bf16.mxu1 %v7969_v46  ;;  %v505_v45 = vld [vmem:[%s12891_s1 + $0xa30] sm:$0xff] }
 0x1b8   : > { %v513_v46 = vld [vmem:[%s12891_s1 + $0xa70] sm:$0xff] }
 0x1b9   : > { %v8095_v50 = vcombine.high %v505_v45, %v513_v46  ;;  %v8094_v56 = vcombine.low %v505_v45, %v513_v46  ;;  %v610_v45 = vld [vmem:[%s12891_s1 + $0xd78] sm:$0xff] }
 0x1ba   : > { %3768 = vmatpush1.bf16.msra.mxu0 %v7966_v51  ;;  %3850 = vmatpush1.bf16.msra.mxu1 %v7968_v52  ;;  %v521_v52 = vld [vmem:[%s12891_s1 + $0xab0] sm:$0xff] }
 0x1bb   : > { %3769 = vmatprep.subr.bf16.mxu0 %v7983_v53  ;;  %3851 = vmatprep.subr.bf16.mxu1 %v7985_v54  ;;  %v529_v53 = vld [vmem:[%s12891_s1 + $0xaf0] sm:$0xff]  ;;  %v522_v54 = vld [vmem:[%s12891_s1 + $0xab8] sm:$0xff] }
 0x1bc   : > { %v8111_v59 = vcombine.high %v521_v52, %v529_v53  ;;  %v8110_v1 = vcombine.low %v521_v52, %v529_v53  ;;  %v8112_v2 = vcombine.low %v522_v54, %v530_v55  ;;  %v626_v52 = vld [vmem:[%s12891_s1 + $0xdf8] sm:$0xff] }
 0x1be   : > { %3770 = vmatpush1.bf16.msra.mxu0 %v7982_v60  ;;  %3852 = vmatpush1.bf16.msra.mxu1 %v7984_v61  ;;  %v8113_v60 = vcombine.high %v522_v54, %v530_v55  ;;  %v537_v61 = vld [vmem:[%s12891_s1 + $0xb30] sm:$0xff] }
 0x1bf   : > { %3771 = vmatprep.subr.bf16.mxu0 %v7999_v62  ;;  %3853 = vmatprep.subr.bf16.mxu1 %v8001_v63  ;;  %v545_v62 = vld [vmem:[%s12891_s1 + $0xb70] sm:$0xff]  ;;  %v538_v63 = vld [vmem:[%s12891_s1 + $0xb38] sm:$0xff] }
 0x1c0   : > { %v8127_v3 = vcombine.high %v537_v61, %v545_v62  ;;  %v8128_v18 = vcombine.low %v538_v63, %v546_v0 }
 0x1c2   : > { %3772 = vmatpush1.bf16.msra.mxu0 %v7998_v4  ;;  %3854 = vmatpush1.bf16.msra.mxu1 %v8000_v5  ;;  %v8129_v5 = vcombine.high %v538_v63, %v546_v0 }
 0x1c3   : > { %3773 = vmatprep.subr.bf16.mxu0 %v8015_v6  ;;  %3855 = vmatprep.subr.bf16.mxu1 %v8017_v7  ;;  %v553_v6 = vld [vmem:[%s12891_s1 + $0xbb0] sm:$0xff] }
 0x1c4   : > { %v561_v7 = vld [vmem:[%s12891_s1 + $0xbf0] sm:$0xff] }
 0x1c5   : > { %v8143_v19 = vcombine.high %v553_v6, %v561_v7  ;;  %v8142_v28 = vcombine.low %v553_v6, %v561_v7  ;;  %v658_v6 = vld [vmem:[%s12891_s1 + $0xef8] sm:$0xff] }
 0x1c6   : > { %3774 = vmatpush1.bf16.msra.mxu0 %v8014_v13  ;;  %3856 = vmatpush1.bf16.msra.mxu1 %v8016_v14 }
 0x1c7   : > { %3784 = vmatprep.subr.bf16.mxu0 %v8031_v15  ;;  %3866 = vmatprep.subr.bf16.mxu1 %v8033_v16  ;;  %v8126_v15 = vcombine.low %v537_v61, %v545_v62  ;;  %v642_v61 = vld [vmem:[%s12891_s1 + $0xe78] sm:$0xff] }
 0x1c9   : > { %3776 = vmatmul.mubr.bf16.vlgmr.msra.gmra.mrb[12].mxu0 %v9930_v12  ;;  %3858 = vmatmul.mubr.bf16.vlgmr.msra.gmra.mrb[12].mxu1 %v9930_v12  ;;  %v490_v12 = vld [vmem:[%s12891_s1 + $0x9b8] sm:$0xff] }
 0x1ca   : > { %3785 = vmatpush1.bf16.msra.mxu0 %v8030_v21  ;;  %3867 = vmatpush1.bf16.msra.mxu1 %v8032_v22  ;;  %v8081_v44 = vcombine.high %v490_v12, %v498_v39  ;;  %v8080_v49 = vcombine.low %v490_v12, %v498_v39  ;;  %v8145_v21 = vcombine.high %v554_v10, %v562_v11  ;;  %v569_v22 = vld [vmem:[%s12891_s1 + $0xc30] sm:$0xff] }
 0x1cb   : > { %3786 = vmatprep.subr.bf16.mxu0 %v8047_v25  ;;  %3868 = vmatprep.subr.bf16.mxu1 %v8049_v26  ;;  %v577_v25 = vld [vmem:[%s12891_s1 + $0xc70] sm:$0xff]  ;;  %v570_v26 = vld [vmem:[%s12891_s1 + $0xc38] sm:$0xff] }
 0x1cc   : > { %3816 = vmatprep.mubr.bf16.mxu0 %v9951_v24  ;;  %3898 = vmatprep.mubr.bf16.mxu1 %v9951_v24  ;;  %v506_v24 = vld [vmem:[%s12891_s1 + $0xa38] sm:$0xff]  ;;  %v8159_v30 = vcombine.high %v569_v22, %v577_v25  ;;  %v8158_v38 = vcombine.low %v569_v22, %v577_v25  ;;  %v8160_v12 = vcombine.low %v570_v26, %v578_v27  ;;  %v681_v25 = vld [vmem:[%s12891_s1 + $0xfb0] sm:$0xff] }
 0x1cd   : > { %v8097_v51 = vcombine.high %v506_v24, %v514_v47  ;;  %v8096_v58 = vcombine.low %v506_v24, %v514_v47 }
 0x1ce   : > { %3787 = vmatpush1.bf16.msra.mxu0 %v8046_v57  ;;  %3869 = vmatpush1.bf16.msra.mxu1 %v8048_v31  ;;  %v8161_v57 = vcombine.high %v570_v26, %v578_v27  ;;  %v585_v31 = vld [vmem:[%s12891_s1 + $0xcb0] sm:$0xff]  ;;  %v682_v27 = vld [vmem:[%s12891_s1 + $0xfb8] sm:$0xff] }
 0x1cf   : > { %3788 = vmatprep.subr.bf16.mxu0 %v8063_v33  ;;  %3870 = vmatprep.subr.bf16.mxu1 %v8065_v34  ;;  %v593_v33 = vld [vmem:[%s12891_s1 + $0xcf0] sm:$0xff]  ;;  %v586_v34 = vld [vmem:[%s12891_s1 + $0xcb8] sm:$0xff] }
 0x1d0   : > { %v8175_v39 = vcombine.high %v585_v31, %v593_v33  ;;  %v8174_v46 = vcombine.low %v585_v31, %v593_v33  ;;  %v8176_v24 = vcombine.low %v586_v34, %v594_v35  ;;  %v689_v26 = vld [vmem:[%s12891_s1 + $0xff0] sm:$0xff] }
 0x1d1   : > { %v8270_v33 = vcombine.low %v681_v25, %v689_v26 }
 0x1d2   : > { %3789 = vmatpush1.bf16.msra.mxu0 %v8062_v41  ;;  %3871 = vmatpush1.bf16.msra.mxu1 %v8064_v42  ;;  %v8177_v41 = vcombine.high %v586_v34, %v594_v35  ;;  %v601_v42 = vld [vmem:[%s12891_s1 + $0xd30] sm:$0xff] }
 0x1d3   : > { %3790 = vmatprep.subr.bf16.mxu0 %v8079_v43  ;;  %3872 = vmatprep.subr.bf16.mxu1 %v8081_v44  ;;  %v609_v43 = vld [vmem:[%s12891_s1 + $0xd70] sm:$0xff]  ;;  %v602_v44 = vld [vmem:[%s12891_s1 + $0xd38] sm:$0xff] }
 0x1d4   : > { %v8191_v47 = vcombine.high %v601_v42, %v609_v43  ;;  %v8190_v53 = vcombine.low %v601_v42, %v609_v43  ;;  %v8192_v54 = vcombine.low %v602_v44, %v610_v45  ;;  %v8892_v35 = vld [vmem:[%s12892_s2 + $0x4] ss:$16 sps:$4 sm:$0xff]  }
 0x1d5   : > { %v8898_v42 = vld [vmem:[%s12892_s2 + $0x24] ss:$16 sps:$4 sm:$0xff]  }
 0x1d6   : > { %3791 = vmatpush1.bf16.msra.mxu0 %v8078_v48  ;;  %3873 = vmatpush1.bf16.msra.mxu1 %v8080_v49  ;;  %v8193_v48 = vcombine.high %v602_v44, %v610_v45  ;;  %v617_v49 = vld [vmem:[%s12891_s1 + $0xdb0] sm:$0xff]  ;;  %v8899_v45 = vld [vmem:[%s12892_s2 + $0x28] ss:$16 sps:$4 sm:$0xff]  }
 0x1d7   : > { %3792 = vmatprep.subr.bf16.mxu0 %v8095_v50  ;;  %3874 = vmatprep.subr.bf16.mxu1 %v8097_v51  ;;  %v625_v50 = vld [vmem:[%s12891_s1 + $0xdf0] sm:$0xff]  ;;  %v618_v51 = vld [vmem:[%s12891_s1 + $0xdb8] sm:$0xff] }
 0x1d8   : > { %v8207_v55 = vcombine.high %v617_v49, %v625_v50  ;;  %v8206_v62 = vcombine.low %v617_v49, %v625_v50  ;;  %v8208_v63 = vcombine.low %v618_v51, %v626_v52  ;;  %v8896_v44 = vld [vmem:[%s12892_s2 + $0x20] ss:$16 sps:$4 sm:$0xff]   ;;  %v8913_v49 = vld [vmem:[%s12892_s2 + $0x6c] ss:$16 sps:$4 sm:$0xff]  }
 0x1d9   : > { %v8908_v50 = vld [vmem:[%s12892_s2 + $0x60] ss:$16 sps:$4 sm:$0xff]  }
 0x1da   : > { %3793 = vmatpush1.bf16.msra.mxu0 %v8094_v56  ;;  %3875 = vmatpush1.bf16.msra.mxu1 %v8096_v58  ;;  %v8209_v56 = vcombine.high %v618_v51, %v626_v52  ;;  %v633_v58 = vld [vmem:[%s12891_s1 + $0xe30] sm:$0xff]  ;;  %v8911_v51 = vld [vmem:[%s12892_s2 + $0x68] ss:$16 sps:$4 sm:$0xff]  }
 0x1db   : > { %3794 = vmatprep.subr.bf16.mxu0 %v8111_v59  ;;  %3876 = vmatprep.subr.bf16.mxu1 %v8113_v60  ;;  %v641_v59 = vld [vmem:[%s12891_s1 + $0xe70] sm:$0xff]  ;;  %v634_v60 = vld [vmem:[%s12891_s1 + $0xe38] sm:$0xff] }
 0x1dc   : > { %v11192_v4 = vpop.f32.mrb[4].mxu0  ;;  %v11200_v8 = vpop.f32.mrb[4].mxu1  ;;  %v8223_v0 = vcombine.high %v633_v58, %v641_v59  ;;  %v8222_v7 = vcombine.low %v633_v58, %v641_v59  ;;  %v8224_v10 = vcombine.low %v634_v60, %v642_v61  ;;  %v8916_v52 = vld [vmem:[%s12892_s2 + $0x84] ss:$16 sps:$4 sm:$0xff]   ;;  %v8925_v58 = vld [vmem:[%s12892_s2 + $0xac] ss:$16 sps:$4 sm:$0xff]  }
 0x1dd   : > { %v11202_v9 = vpop.f32.mrb[5].mxu0  ;;  %v11210_v13 = vpop.f32.mrb[5].mxu1  ;;  %v8920_v59 = vld [vmem:[%s12892_s2 + $0xa0] ss:$16 sps:$4 sm:$0xff]  }
 0x1de   : > { %v3494_v14 = vpop.f32.mrb[6].mxu0  ;;  %3795 = vmatpush1.bf16.msra.mxu0 %v8110_v1  ;;  %v3576_v16 = vpop.f32.mrb[6].mxu1  ;;  %3877 = vmatpush1.bf16.msra.mxu1 %v8112_v2  ;;  %v8225_v1 = vcombine.high %v634_v60, %v642_v61  ;;  %v649_v2 = vld [vmem:[%s12891_s1 + $0xeb0] sm:$0xff]  ;;  %v8923_v60 = vld [vmem:[%s12892_s2 + $0xa8] ss:$16 sps:$4 sm:$0xff]  }
 0x1df   : > { %v3495_v17 = vpop.f32.mrb[7].mxu0  ;;  %3796 = vmatprep.subr.bf16.mxu0 %v8127_v3  ;;  %v3577_v20 = vpop.f32.mrb[7].mxu1  ;;  %3878 = vmatprep.subr.bf16.mxu1 %v8129_v5  ;;  %v657_v3 = vld [vmem:[%s12891_s1 + $0xef0] sm:$0xff]  ;;  %v650_v5 = vld [vmem:[%s12891_s1 + $0xeb8] sm:$0xff] }
 0x1e0   : > { %v8239_v11 = vcombine.high %v649_v2, %v657_v3  ;;  %v8241_v14 = vcombine.high %v650_v5, %v658_v6  ;;  %v673_v16 = vld [vmem:[%s12891_s1 + $0xf70] sm:$0xff]  ;;  %v666_v17 = vld [vmem:[%s12891_s1 + $0xf38] sm:$0xff]  ;;  %v8240_v20 = vcombine.low %v650_v5, %v658_v6 }
 0x1e1   : > { %v8928_v61 = vld [vmem:[%s12892_s2 + $0xc4] ss:$16 sps:$4 sm:$0xff]   ;;  %v8935_v5 = vld [vmem:[%s12892_s2 + $0xe8] ss:$16 sps:$4 sm:$0xff]  }
 0x1e2   : > { %3797 = vmatpush1.bf16.msra.mxu0 %v8126_v15  ;;  %3879 = vmatpush1.bf16.msra.mxu1 %v8128_v18  ;;  %v665_v15 = vld [vmem:[%s12891_s1 + $0xf30] sm:$0xff]  ;;  %v674_v18 = vld [vmem:[%s12891_s1 + $0xf78] sm:$0xff] }
 0x1e3   : > { %3798 = vmatprep.subr.bf16.mxu0 %v8143_v19  ;;  %3880 = vmatprep.subr.bf16.mxu1 %v8145_v21  ;;  %v8238_v19 = vcombine.low %v649_v2, %v657_v3  ;;  %v8255_v21 = vcombine.high %v665_v15, %v673_v16  ;;  %v8257_v22 = vcombine.high %v666_v17, %v674_v18  ;;  %v8937_v2 = vld [vmem:[%s12892_s2 + $0xec] ss:$16 sps:$4 sm:$0xff]   ;;  %v8932_v3 = vld [vmem:[%s12892_s2 + $0xe0] ss:$16 sps:$4 sm:$0xff]   ;;  %v8940_v6 = vld [vmem:[%s12892_s2 + $0x104] ss:$16 sps:$4 sm:$0xff]  }
 0x1e6   : > { %3799 = vmatpush1.bf16.msra.mxu0 %v8142_v28  ;;  %3881 = vmatpush1.bf16.msra.mxu1 %v8144_v29  ;;  %v690_v28 = vld [vmem:[%s12891_s1 + $0xff8] sm:$0xff]  ;;  %v8254_v29 = vcombine.low %v665_v15, %v673_v16  ;;  %v8944_v16 = vld [vmem:[%s12892_s2 + $0x120] ss:$16 sps:$4 sm:$0xff]  }
 0x1e7   : > { %3800 = vmatprep.subr.bf16.mxu0 %v8159_v30  ;;  %3882 = vmatprep.subr.bf16.mxu1 %v8161_v57  ;;  %v8256_v30 = vcombine.low %v666_v17, %v674_v18  ;;  %v8271_v57 = vcombine.high %v681_v25, %v689_v26  ;;  %v8273_v31 = vcombine.high %v682_v27, %v690_v28  ;;  %v8949_v15 = vld [vmem:[%s12892_s2 + $0x12c] ss:$16 sps:$4 sm:$0xff]   ;;  %v8947_v17 = vld [vmem:[%s12892_s2 + $0x128] ss:$16 sps:$4 sm:$0xff]   ;;  %v8952_v18 = vld [vmem:[%s12892_s2 + $0x144] ss:$16 sps:$4 sm:$0xff]  }
 0x1e8   : > { %v8272_v34 = vcombine.low %v682_v27, %v690_v28  ;;  %v8961_v25 = vld [vmem:[%s12892_s2 + $0x16c] ss:$16 sps:$4 sm:$0xff]   ;;  %v8956_v26 = vld [vmem:[%s12892_s2 + $0x160] ss:$16 sps:$4 sm:$0xff]   ;;  %v8959_v27 = vld [vmem:[%s12892_s2 + $0x168] ss:$16 sps:$4 sm:$0xff]  }
 0x1e9   : > { %v8964_v28 = vld [vmem:[%s12892_s2 + $0x184] ss:$16 sps:$4 sm:$0xff]  }
 0x1ea   : > { %3801 = vmatpush1.bf16.msra.mxu0 %v8158_v38  ;;  %3883 = vmatpush1.bf16.msra.mxu1 %v8160_v12  ;;  %v8895_v38 = vld [vmem:[%s12892_s2 + $0xc] ss:$16 sps:$4 sm:$0xff]   ;;  %v3908_v12 = vmax.f32 %v10802_v37, 0.0 }
 0x1eb   : > { %3802 = vmatprep.subr.bf16.mxu0 %v8175_v39  ;;  %3884 = vmatprep.subr.bf16.mxu1 %v8177_v41  ;;  %v8890_v39 = vld [vmem:[%s12892_s2] ss:$16 sps:$4 sm:$0xff]   ;;  %v8893_v41 = vld [vmem:[%s12892_s2 + $0x8] ss:$16 sps:$4 sm:$0xff]   ;;  %v8901_v37 = vld [vmem:[%s12892_s2 + $0x2c] ss:$16 sps:$4 sm:$0xff]  }
 0x1ec   : > { %v3924_v43 = vpack.c.bf16 %v3908_v12, %v3908_v12  ;;  %v8979_v12 = vld [vmem:[%s12892_s2 + $0x1cc] ss:$16 sps:$4 sm:$0xff]  }
 0x1ee   : > { %3803 = vmatpush1.bf16.msra.mxu0 %v8174_v46  ;;  %3885 = vmatpush1.bf16.msra.mxu1 %v8176_v24  ;;  %v8904_v46 = vld [vmem:[%s12892_s2 + $0x44] ss:$16 sps:$4 sm:$0xff]   ;;  %v8902_v24 = vld [vmem:[%s12892_s2 + $0x40] ss:$16 sps:$4 sm:$0xff]  }
 0x1ef   : > { %3804 = vmatprep.subr.bf16.mxu0 %v8191_v47  ;;  %3886 = vmatprep.subr.bf16.mxu1 %v8193_v48  ;;  %v8905_v47 = vld [vmem:[%s12892_s2 + $0x48] ss:$16 sps:$4 sm:$0xff]   ;;  %v8910_v48 = vld [vmem:[%s12892_s2 + $0x64] ss:$16 sps:$4 sm:$0xff]  }
 0x1f2   : > { %3805 = vmatpush1.bf16.msra.mxu0 %v8190_v53  ;;  %3887 = vmatpush1.bf16.msra.mxu1 %v8192_v54  ;;  %v8919_v53 = vld [vmem:[%s12892_s2 + $0x8c] ss:$16 sps:$4 sm:$0xff]   ;;  %v8914_v54 = vld [vmem:[%s12892_s2 + $0x80] ss:$16 sps:$4 sm:$0xff]  }
 0x1f3   : > { %3806 = vmatprep.subr.bf16.mxu0 %v8207_v55  ;;  %3888 = vmatprep.subr.bf16.mxu1 %v8209_v56  ;;  %v8917_v55 = vld [vmem:[%s12892_s2 + $0x88] ss:$16 sps:$4 sm:$0xff]   ;;  %v8922_v56 = vld [vmem:[%s12892_s2 + $0xa4] ss:$16 sps:$4 sm:$0xff]  }
 0x1f6   : > { %3807 = vmatpush1.bf16.msra.mxu0 %v8206_v62  ;;  %3889 = vmatpush1.bf16.msra.mxu1 %v8208_v63  ;;  %v8931_v62 = vld [vmem:[%s12892_s2 + $0xcc] ss:$16 sps:$4 sm:$0xff]   ;;  %v8926_v63 = vld [vmem:[%s12892_s2 + $0xc0] ss:$16 sps:$4 sm:$0xff]  }
 0x1f7   : > { %3808 = vmatprep.subr.bf16.mxu0 %v8223_v0  ;;  %3890 = vmatprep.subr.bf16.mxu1 %v8225_v1  ;;  %v8929_v0 = vld [vmem:[%s12892_s2 + $0xc8] ss:$16 sps:$4 sm:$0xff]   ;;  %v8934_v1 = vld [vmem:[%s12892_s2 + $0xe4] ss:$16 sps:$4 sm:$0xff]  }
 0x1fa   : > { %3809 = vmatpush1.bf16.msra.mxu0 %v8222_v7  ;;  %3891 = vmatpush1.bf16.msra.mxu1 %v8224_v10  ;;  %v8943_v7 = vld [vmem:[%s12892_s2 + $0x10c] ss:$16 sps:$4 sm:$0xff]   ;;  %v8938_v10 = vld [vmem:[%s12892_s2 + $0x100] ss:$16 sps:$4 sm:$0xff]  }
 0x1fb   : > { %3810 = vmatprep.subr.bf16.mxu0 %v8239_v11  ;;  %3892 = vmatprep.subr.bf16.mxu1 %v8241_v14  ;;  %v8941_v11 = vld [vmem:[%s12892_s2 + $0x108] ss:$16 sps:$4 sm:$0xff]   ;;  %v8946_v14 = vld [vmem:[%s12892_s2 + $0x124] ss:$16 sps:$4 sm:$0xff]  }
 0x1fe   : > { %3811 = vmatpush1.bf16.msra.mxu0 %v8238_v19  ;;  %3893 = vmatpush1.bf16.msra.mxu1 %v8240_v20  ;;  %v8955_v19 = vld [vmem:[%s12892_s2 + $0x14c] ss:$16 sps:$4 sm:$0xff]   ;;  %v8950_v20 = vld [vmem:[%s12892_s2 + $0x140] ss:$16 sps:$4 sm:$0xff]  }
 0x1ff   : > { %3812 = vmatprep.subr.bf16.mxu0 %v8255_v21  ;;  %3894 = vmatprep.subr.bf16.mxu1 %v8257_v22  ;;  %v8953_v21 = vld [vmem:[%s12892_s2 + $0x148] ss:$16 sps:$4 sm:$0xff]   ;;  %v8958_v22 = vld [vmem:[%s12892_s2 + $0x164] ss:$16 sps:$4 sm:$0xff]  }
 0x202   : > { %3813 = vmatpush1.bf16.msra.mxu0 %v8254_v29  ;;  %3895 = vmatpush1.bf16.msra.mxu1 %v8256_v30  ;;  %v8967_v29 = vld [vmem:[%s12892_s2 + $0x18c] ss:$16 sps:$4 sm:$0xff]   ;;  %v8962_v30 = vld [vmem:[%s12892_s2 + $0x180] ss:$16 sps:$4 sm:$0xff]  }
 0x203   : > { %3814 = vmatprep.subr.bf16.mxu0 %v8271_v57  ;;  %3896 = vmatprep.subr.bf16.mxu1 %v8273_v31  ;;  %v8965_v57 = vld [vmem:[%s12892_s2 + $0x188] ss:$16 sps:$4 sm:$0xff]   ;;  %v8970_v31 = vld [vmem:[%s12892_s2 + $0x1a4] ss:$16 sps:$4 sm:$0xff]  }
 0x206   : > { %3815 = vmatpush1.bf16.msra.mxu0 %v8270_v33  ;;  %3897 = vmatpush1.bf16.msra.mxu1 %v8272_v34  ;;  %v8973_v33 = vld [vmem:[%s12892_s2 + $0x1ac] ss:$16 sps:$4 sm:$0xff]   ;;  %v8968_v34 = vld [vmem:[%s12892_s2 + $0x1a0] ss:$16 sps:$4 sm:$0xff]  }
 0x207   : > { %7011 = vmatprep.subr.bf16.mxu0 %v8892_v35  ;;  %7339 = vmatprep.subr.bf16.mxu1 %v8895_v38  ;;  %v8971_v35 = vld [vmem:[%s12892_s2 + $0x1a8] ss:$16 sps:$4 sm:$0xff]   ;;  %v8976_v38 = vld [vmem:[%s12892_s2 + $0x1c4] ss:$16 sps:$4 sm:$0xff]  }
 0x209   : > { %3817 = vmatmul.mubr.bf16.vlgmr.msra.gmra.mrb[12].mxu0 %v10138_v23  ;;  %3899 = vmatmul.mubr.bf16.vlgmr.msra.gmra.mrb[12].mxu1 %v10138_v23  ;;  %v8907_v23 = vld [vmem:[%s12892_s2 + $0x4c] ss:$16 sps:$4 sm:$0xff]  }
 0x20a   : > { %7012 = vmatpush1.bf16.msra.mxu0 %v8890_v39  ;;  %7043 = vmatprep.mubr.bf16.mxu0 %v3924_v43  ;;  %v8974_v39 = vld [vmem:[%s12892_s2 + $0x1c0] ss:$16 sps:$4 sm:$0xff]  }
 0x20b   : > { %7340 = vmatpush1.bf16.msra.mxu1 %v8893_v41  ;;  %7371 = vmatprep.mubr.bf16.mxu1 %v3924_v43  ;;  %v8977_v41 = vld [vmem:[%s12892_s2 + $0x1c8] ss:$16 sps:$4 sm:$0xff]   ;;  %v8985_v43 = vld [vmem:[%s12892_s2 + $0x1ec] ss:$16 sps:$4 sm:$0xff]  }
 0x20c   : > { %7013 = vmatprep.subr.bf16.mxu0 %v8898_v42  ;;  %7341 = vmatprep.subr.bf16.mxu1 %v8901_v37  ;;  %v8982_v42 = vld [vmem:[%s12892_s2 + $0x1e4] ss:$16 sps:$4 sm:$0xff]   ;;  %v8980_v37 = vld [vmem:[%s12892_s2 + $0x1e0] ss:$16 sps:$4 sm:$0xff]  }
 0x20e   : > { %7014 = vmatpush1.bf16.msra.mxu0 %v8896_v44  ;;  %v3907_v44 = vmax.f32 %v10792_v32, 0.0  ;;  %v8986_v32 = vld [vmem:[%s12892_s2 + $0x200] ss:$16 sps:$4 sm:$0xff]  }
 0x20f   : > { %7342 = vmatpush1.bf16.msra.mxu1 %v8899_v45  ;;  %7015 = vmatprep.subr.bf16.mxu0 %v8904_v46  ;;  %v8983_v45 = vld [vmem:[%s12892_s2 + $0x1e8] ss:$16 sps:$4 sm:$0xff]   ;;  %v8988_v46 = vld [vmem:[%s12892_s2 + $0x204] ss:$16 sps:$4 sm:$0xff]  }
 0x210   : > { %7343 = vmatprep.subr.bf16.mxu1 %v8907_v23  ;;  %v8991_v23 = vld [vmem:[%s12892_s2 + $0x20c] ss:$16 sps:$4 sm:$0xff]  }
 0x212   : > { %7016 = vmatpush1.bf16.msra.mxu0 %v8902_v24  ;;  %v3910_v24 = vmax.f32 %v10810_v40, 0.0  ;;  %v8997_v40 = vld [vmem:[%s12892_s2 + $0x22c] ss:$16 sps:$4 sm:$0xff]  }
 0x213   : > { %7344 = vmatpush1.bf16.msra.mxu1 %v8905_v47  ;;  %7017 = vmatprep.subr.bf16.mxu0 %v8910_v48  ;;  %v3923_v47 = vpack.c.bf16 %v3907_v44, %v3907_v44  ;;  %v8989_v48 = vld [vmem:[%s12892_s2 + $0x208] ss:$16 sps:$4 sm:$0xff]   ;;  %v9052_v44 = vld [vmem:[%s12892_s2 + $0x360] ss:$16 sps:$4 sm:$0xff]  }
 0x214   : > { %7345 = vmatprep.subr.bf16.mxu1 %v8913_v49  ;;  %v8994_v49 = vld [vmem:[%s12892_s2 + $0x224] ss:$16 sps:$4 sm:$0xff]  }
 0x216   : > { %7018 = vmatpush1.bf16.msra.mxu0 %v8908_v50  ;;  %v3926_v50 = vpack.c.bf16 %v3910_v24, %v3910_v24  ;;  %v9058_v24 = vld [vmem:[%s12892_s2 + $0x380] ss:$16 sps:$4 sm:$0xff]  }
 0x217   : > { %7346 = vmatpush1.bf16.msra.mxu1 %v8911_v51  ;;  %7019 = vmatprep.subr.bf16.mxu0 %v8916_v52  ;;  %v8992_v51 = vld [vmem:[%s12892_s2 + $0x220] ss:$16 sps:$4 sm:$0xff]   ;;  %v8995_v52 = vld [vmem:[%s12892_s2 + $0x228] ss:$16 sps:$4 sm:$0xff]  }
 0x218   : > { %7347 = vmatprep.subr.bf16.mxu1 %v8919_v53  ;;  %v9000_v53 = vld [vmem:[%s12892_s2 + $0x244] ss:$16 sps:$4 sm:$0xff]  }
 0x21a   : > { %7020 = vmatpush1.bf16.msra.mxu0 %v8914_v54  ;;  %v9003_v54 = vld [vmem:[%s12892_s2 + $0x24c] ss:$16 sps:$4 sm:$0xff]  }
 0x21b   : > { %7348 = vmatpush1.bf16.msra.mxu1 %v8917_v55  ;;  %7021 = vmatprep.subr.bf16.mxu0 %v8922_v56  ;;  %v8998_v55 = vld [vmem:[%s12892_s2 + $0x240] ss:$16 sps:$4 sm:$0xff]   ;;  %v9001_v56 = vld [vmem:[%s12892_s2 + $0x248] ss:$16 sps:$4 sm:$0xff]  }
 0x21c   : > { %7349 = vmatprep.subr.bf16.mxu1 %v8925_v58  ;;  %v9006_v58 = vld [vmem:[%s12892_s2 + $0x264] ss:$16 sps:$4 sm:$0xff]  }
 0x21e   : > { %7022 = vmatpush1.bf16.msra.mxu0 %v8920_v59  ;;  %v9009_v59 = vld [vmem:[%s12892_s2 + $0x26c] ss:$16 sps:$4 sm:$0xff]  }
 0x21f   : > { %7350 = vmatpush1.bf16.msra.mxu1 %v8923_v60  ;;  %7023 = vmatprep.subr.bf16.mxu0 %v8928_v61  ;;  %v9004_v60 = vld [vmem:[%s12892_s2 + $0x260] ss:$16 sps:$4 sm:$0xff]   ;;  %v9007_v61 = vld [vmem:[%s12892_s2 + $0x268] ss:$16 sps:$4 sm:$0xff]  }
 0x220   : > { %7351 = vmatprep.subr.bf16.mxu1 %v8931_v62  ;;  %v9012_v62 = vld [vmem:[%s12892_s2 + $0x284] ss:$16 sps:$4 sm:$0xff]  }
 0x222   : > { %7024 = vmatpush1.bf16.msra.mxu0 %v8926_v63  ;;  %v9015_v63 = vld [vmem:[%s12892_s2 + $0x28c] ss:$16 sps:$4 sm:$0xff]  }
 0x223   : > { %7352 = vmatpush1.bf16.msra.mxu1 %v8929_v0  ;;  %7025 = vmatprep.subr.bf16.mxu0 %v8934_v1  ;;  %v9010_v0 = vld [vmem:[%s12892_s2 + $0x280] ss:$16 sps:$4 sm:$0xff]   ;;  %v9013_v1 = vld [vmem:[%s12892_s2 + $0x288] ss:$16 sps:$4 sm:$0xff]  }
 0x224   : > { %7353 = vmatprep.subr.bf16.mxu1 %v8937_v2  ;;  %v9018_v2 = vld [vmem:[%s12892_s2 + $0x2a4] ss:$16 sps:$4 sm:$0xff]  }
 0x226   : > { %7026 = vmatpush1.bf16.msra.mxu0 %v8932_v3  ;;  %v9021_v3 = vld [vmem:[%s12892_s2 + $0x2ac] ss:$16 sps:$4 sm:$0xff]  }
 0x227   : > { %7354 = vmatpush1.bf16.msra.mxu1 %v8935_v5  ;;  %7027 = vmatprep.subr.bf16.mxu0 %v8940_v6  ;;  %v9016_v5 = vld [vmem:[%s12892_s2 + $0x2a0] ss:$16 sps:$4 sm:$0xff]   ;;  %v9019_v6 = vld [vmem:[%s12892_s2 + $0x2a8] ss:$16 sps:$4 sm:$0xff]  }
 0x228   : > { %7355 = vmatprep.subr.bf16.mxu1 %v8943_v7  ;;  %v9024_v7 = vld [vmem:[%s12892_s2 + $0x2c4] ss:$16 sps:$4 sm:$0xff]  }
 0x22a   : > { %7028 = vmatpush1.bf16.msra.mxu0 %v8938_v10 }
 0x22b   : > { %7356 = vmatpush1.bf16.msra.mxu1 %v8941_v11  ;;  %7029 = vmatprep.subr.bf16.mxu0 %v8946_v14  ;;  %v9027_v11 = vld [vmem:[%s12892_s2 + $0x2cc] ss:$16 sps:$4 sm:$0xff]  }
 0x22c   : > { %7357 = vmatprep.subr.bf16.mxu1 %v8949_v15 }
 0x22e   : > { %7030 = vmatpush1.bf16.msra.mxu0 %v8944_v16 }
 0x22f   : > { %7358 = vmatpush1.bf16.msra.mxu1 %v8947_v17  ;;  %7031 = vmatprep.subr.bf16.mxu0 %v8952_v18  ;;  %v9022_v18 = vld [vmem:[%s12892_s2 + $0x2c0] ss:$16 sps:$4 sm:$0xff]  }
 0x230   : > { %7359 = vmatprep.subr.bf16.mxu1 %v8955_v19 }
 0x232   : > { %7032 = vmatpush1.bf16.msra.mxu0 %v8950_v20 }
 0x233   : > { %7360 = vmatpush1.bf16.msra.mxu1 %v8953_v21  ;;  %7033 = vmatprep.subr.bf16.mxu0 %v8958_v22  ;;  %v9025_v21 = vld [vmem:[%s12892_s2 + $0x2c8] ss:$16 sps:$4 sm:$0xff]   ;;  %v9030_v22 = vld [vmem:[%s12892_s2 + $0x2e4] ss:$16 sps:$4 sm:$0xff]  }
 0x234   : > { %7361 = vmatprep.subr.bf16.mxu1 %v8961_v25 }
 0x236   : > { %7034 = vmatpush1.bf16.msra.mxu0 %v8956_v26  ;;  %v9033_v26 = vld [vmem:[%s12892_s2 + $0x2ec] ss:$16 sps:$4 sm:$0xff]  }
 0x237   : > { %7362 = vmatpush1.bf16.msra.mxu1 %v8959_v27  ;;  %7035 = vmatprep.subr.bf16.mxu0 %v8964_v28  ;;  %v9028_v27 = vld [vmem:[%s12892_s2 + $0x2e0] ss:$16 sps:$4 sm:$0xff]   ;;  %v9031_v28 = vld [vmem:[%s12892_s2 + $0x2e8] ss:$16 sps:$4 sm:$0xff]  }
 0x238   : > { %7363 = vmatprep.subr.bf16.mxu1 %v8967_v29  ;;  %v9036_v29 = vld [vmem:[%s12892_s2 + $0x304] ss:$16 sps:$4 sm:$0xff]  }
 0x23a   : > { %7036 = vmatpush1.bf16.msra.mxu0 %v8962_v30  ;;  %v9039_v30 = vld [vmem:[%s12892_s2 + $0x30c] ss:$16 sps:$4 sm:$0xff]  }
 0x23b   : > { %7364 = vmatpush1.bf16.msra.mxu1 %v8965_v57  ;;  %7037 = vmatprep.subr.bf16.mxu0 %v8970_v31  ;;  %v9034_v57 = vld [vmem:[%s12892_s2 + $0x300] ss:$16 sps:$4 sm:$0xff]   ;;  %v9037_v31 = vld [vmem:[%s12892_s2 + $0x308] ss:$16 sps:$4 sm:$0xff]  }
 0x23c   : > { %7365 = vmatprep.subr.bf16.mxu1 %v8973_v33  ;;  %v9042_v33 = vld [vmem:[%s12892_s2 + $0x324] ss:$16 sps:$4 sm:$0xff]  }
 0x23e   : > { %7038 = vmatpush1.bf16.msra.mxu0 %v8968_v34  ;;  %v9045_v34 = vld [vmem:[%s12892_s2 + $0x32c] ss:$16 sps:$4 sm:$0xff]  }
 0x23f   : > { %7366 = vmatpush1.bf16.msra.mxu1 %v8971_v35  ;;  %7039 = vmatprep.subr.bf16.mxu0 %v8976_v38  ;;  %v9040_v35 = vld [vmem:[%s12892_s2 + $0x320] ss:$16 sps:$4 sm:$0xff]   ;;  %v9043_v38 = vld [vmem:[%s12892_s2 + $0x328] ss:$16 sps:$4 sm:$0xff]  }
 0x240   : > { %7367 = vmatprep.subr.bf16.mxu1 %v8979_v12  ;;  %v9048_v12 = vld [vmem:[%s12892_s2 + $0x344] ss:$16 sps:$4 sm:$0xff]  }
 0x242   : > { %7040 = vmatpush1.bf16.msra.mxu0 %v8974_v39  ;;  %v9051_v39 = vld [vmem:[%s12892_s2 + $0x34c] ss:$16 sps:$4 sm:$0xff]  }
 0x243   : > { %7368 = vmatpush1.bf16.msra.mxu1 %v8977_v41  ;;  %7041 = vmatprep.subr.bf16.mxu0 %v8982_v42  ;;  %v9046_v41 = vld [vmem:[%s12892_s2 + $0x340] ss:$16 sps:$4 sm:$0xff]   ;;  %v9049_v42 = vld [vmem:[%s12892_s2 + $0x348] ss:$16 sps:$4 sm:$0xff]  }
 0x244   : > { %7369 = vmatprep.subr.bf16.mxu1 %v8985_v43  ;;  %v9054_v43 = vld [vmem:[%s12892_s2 + $0x364] ss:$16 sps:$4 sm:$0xff]  }
 0x246   : > { %7042 = vmatpush1.bf16.msra.mxu0 %v8980_v37  ;;  %v9057_v37 = vld [vmem:[%s12892_s2 + $0x36c] ss:$16 sps:$4 sm:$0xff]  }
 0x247   : > { %7370 = vmatpush1.bf16.msra.mxu1 %v8983_v45  ;;  %7052 = vmatprep.subr.bf16.mxu0 %v8988_v46  ;;  %v9055_v45 = vld [vmem:[%s12892_s2 + $0x368] ss:$16 sps:$4 sm:$0xff]   ;;  %v9060_v46 = vld [vmem:[%s12892_s2 + $0x384] ss:$16 sps:$4 sm:$0xff]  }
 0x248   : > { %7380 = vmatprep.subr.bf16.mxu1 %v8991_v23  ;;  %v9063_v23 = vld [vmem:[%s12892_s2 + $0x38c] ss:$16 sps:$4 sm:$0xff]  }
 0x249   : > { %7044 = vmatmul.mubr.bf16.vlgmr.msra.gmra.mrb[16].mxu0 %v3923_v47 }
 0x24a   : > { %7372 = vmatmul.mubr.bf16.vlgmr.msra.gmra.mrb[16].mxu1 %v3923_v47  ;;  %7053 = vmatpush1.bf16.msra.mxu0 %v8986_v32  ;;  %v9061_v32 = vld [vmem:[%s12892_s2 + $0x388] ss:$16 sps:$4 sm:$0xff]   ;;  %v9066_v47 = vld [vmem:[%s12892_s2 + $0x3a4] ss:$16 sps:$4 sm:$0xff]  }
 0x24b   : > { %7084 = vmatprep.mubr.bf16.mxu0 %v3926_v50  ;;  %7381 = vmatpush1.bf16.msra.mxu1 %v8989_v48  ;;  %v9069_v48 = vld [vmem:[%s12892_s2 + $0x3ac] ss:$16 sps:$4 sm:$0xff]  }
 0x24c   : > { %7412 = vmatprep.mubr.bf16.mxu1 %v3926_v50  ;;  %7054 = vmatprep.subr.bf16.mxu0 %v8994_v49  ;;  %v9064_v49 = vld [vmem:[%s12892_s2 + $0x3a0] ss:$16 sps:$4 sm:$0xff]   ;;  %v9067_v50 = vld [vmem:[%s12892_s2 + $0x3a8] ss:$16 sps:$4 sm:$0xff]  }
 0x24d   : > { %7382 = vmatprep.subr.bf16.mxu1 %v8997_v40  ;;  %v9072_v40 = vld [vmem:[%s12892_s2 + $0x3c4] ss:$16 sps:$4 sm:$0xff]  }
 0x24e   : > { %7055 = vmatpush1.bf16.msra.mxu0 %v8992_v51  ;;  %v9075_v51 = vld [vmem:[%s12892_s2 + $0x3cc] ss:$16 sps:$4 sm:$0xff]  }
 0x24f   : > { %7383 = vmatpush1.bf16.msra.mxu1 %v8995_v52  ;;  %7056 = vmatprep.subr.bf16.mxu0 %v9000_v53  ;;  %v9070_v52 = vld [vmem:[%s12892_s2 + $0x3c0] ss:$16 sps:$4 sm:$0xff]   ;;  %v9073_v53 = vld [vmem:[%s12892_s2 + $0x3c8] ss:$16 sps:$4 sm:$0xff]  }
 0x250   : > { %7384 = vmatprep.subr.bf16.mxu1 %v9003_v54  ;;  %v9078_v54 = vld [vmem:[%s12892_s2 + $0x3e4] ss:$16 sps:$4 sm:$0xff]  }
 0x252   : > { %7057 = vmatpush1.bf16.msra.mxu0 %v8998_v55  ;;  %v9081_v55 = vld [vmem:[%s12892_s2 + $0x3ec] ss:$16 sps:$4 sm:$0xff]  }
 0x253   : > { %7385 = vmatpush1.bf16.msra.mxu1 %v9001_v56  ;;  %7058 = vmatprep.subr.bf16.mxu0 %v9006_v58  ;;  %v9076_v56 = vld [vmem:[%s12892_s2 + $0x3e0] ss:$16 sps:$4 sm:$0xff]   ;;  %v3909_v58 = vmax.f32 %v10800_v36, 0.0 }
 0x254   : > { %7386 = vmatprep.subr.bf16.mxu1 %v9009_v59  ;;  %v9079_v59 = vld [vmem:[%s12892_s2 + $0x3e8] ss:$16 sps:$4 sm:$0xff]   ;;  %v9082_v36 = vld [vmem:[%s12892_s2 + $0x400] ss:$16 sps:$4 sm:$0xff]  }
 0x256   : > { %7059 = vmatpush1.bf16.msra.mxu0 %v9004_v60  ;;  %v9084_v60 = vld [vmem:[%s12892_s2 + $0x404] ss:$16 sps:$4 sm:$0xff]  }
 0x257   : > { %7387 = vmatpush1.bf16.msra.mxu1 %v9007_v61  ;;  %7060 = vmatprep.subr.bf16.mxu0 %v9012_v62  ;;  %v9087_v61 = vld [vmem:[%s12892_s2 + $0x40c] ss:$16 sps:$4 sm:$0xff]   ;;  %v3912_v62 = vmax.f32 %v11202_v9, 0.0 }
 0x258   : > { %7388 = vmatprep.subr.bf16.mxu1 %v9015_v63  ;;  %v3925_v63 = vpack.c.bf16 %v3909_v58, %v3909_v58  ;;  %v9093_v9 = vld [vmem:[%s12892_s2 + $0x42c] ss:$16 sps:$4 sm:$0xff]   ;;  %v9162_v58 = vld [vmem:[%s12892_s2 + $0x5a4] ss:$16 sps:$4 sm:$0xff]  }
 0x25a   : > { %7061 = vmatpush1.bf16.msra.mxu0 %v9010_v0  ;;  %v9085_v0 = vld [vmem:[%s12892_s2 + $0x408] ss:$16 sps:$4 sm:$0xff]  }
 0x25b   : > { %7389 = vmatpush1.bf16.msra.mxu1 %v9013_v1  ;;  %7062 = vmatprep.subr.bf16.mxu0 %v9018_v2  ;;  %v9090_v1 = vld [vmem:[%s12892_s2 + $0x424] ss:$16 sps:$4 sm:$0xff]   ;;  %v3928_v2 = vpack.c.bf16 %v3912_v62, %v3912_v62 }
 0x25c   : > { %v11580_v10 = vpop.f32.mrb[8].mxu0  ;;  %7390 = vmatprep.subr.bf16.mxu1 %v9021_v3  ;;  %v11585_v14 = vpop.f32.mrb[8].mxu1  ;;  %v9088_v3 = vld [vmem:[%s12892_s2 + $0x420] ss:$16 sps:$4 sm:$0xff]   ;;  %v9168_v62 = vld [vmem:[%s12892_s2 + $0x5c4] ss:$16 sps:$4 sm:$0xff]  }
 0x25d   : > { %v11587_v15 = vpop.f32.mrb[9].mxu0  ;;  %v11589_v16 = vpop.f32.mrb[9].mxu1 }
 0x25e   : > { %v3658_v17 = vpop.f32.mrb[10].mxu0  ;;  %7063 = vmatpush1.bf16.msra.mxu0 %v9016_v5  ;;  %v3740_v19 = vpop.f32.mrb[10].mxu1  ;;  %v9091_v5 = vld [vmem:[%s12892_s2 + $0x428] ss:$16 sps:$4 sm:$0xff]  }
 0x25f   : > { %7391 = vmatpush1.bf16.msra.mxu1 %v9019_v6  ;;  %v3659_v20 = vpop.f32.mrb[11].mxu0  ;;  %7064 = vmatprep.subr.bf16.mxu0 %v9024_v7  ;;  %v3741_v25 = vpop.f32.mrb[11].mxu1  ;;  %v9096_v6 = vld [vmem:[%s12892_s2 + $0x444] ss:$16 sps:$4 sm:$0xff]   ;;  %v9099_v7 = vld [vmem:[%s12892_s2 + $0x44c] ss:$16 sps:$4 sm:$0xff]  }
 0x260   : > { %7392 = vmatprep.subr.bf16.mxu1 %v9027_v11  ;;  %v9094_v11 = vld [vmem:[%s12892_s2 + $0x440] ss:$16 sps:$4 sm:$0xff]   ;;  %v9097_v17 = vld [vmem:[%s12892_s2 + $0x448] ss:$16 sps:$4 sm:$0xff]   ;;  %v9105_v19 = vld [vmem:[%s12892_s2 + $0x46c] ss:$16 sps:$4 sm:$0xff]  }
 0x261   : > { %v9100_v20 = vld [vmem:[%s12892_s2 + $0x460] ss:$16 sps:$4 sm:$0xff]   ;;  %v9111_v25 = vld [vmem:[%s12892_s2 + $0x48c] ss:$16 sps:$4 sm:$0xff]  }
 0x262   : > { %7065 = vmatpush1.bf16.msra.mxu0 %v9022_v18  ;;  %v9102_v18 = vld [vmem:[%s12892_s2 + $0x464] ss:$16 sps:$4 sm:$0xff]  }
 0x263   : > { %7393 = vmatpush1.bf16.msra.mxu1 %v9025_v21  ;;  %7066 = vmatprep.subr.bf16.mxu0 %v9030_v22  ;;  %v9103_v21 = vld [vmem:[%s12892_s2 + $0x468] ss:$16 sps:$4 sm:$0xff]   ;;  %v9108_v22 = vld [vmem:[%s12892_s2 + $0x484] ss:$16 sps:$4 sm:$0xff]  }
 0x264   : > { %7394 = vmatprep.subr.bf16.mxu1 %v9033_v26  ;;  %v9106_v26 = vld [vmem:[%s12892_s2 + $0x480] ss:$16 sps:$4 sm:$0xff]  }
 0x266   : > { %7067 = vmatpush1.bf16.msra.mxu0 %v9028_v27  ;;  %v9109_v27 = vld [vmem:[%s12892_s2 + $0x488] ss:$16 sps:$4 sm:$0xff]  }
 0x267   : > { %7395 = vmatpush1.bf16.msra.mxu1 %v9031_v28  ;;  %7068 = vmatprep.subr.bf16.mxu0 %v9036_v29  ;;  %v9114_v28 = vld [vmem:[%s12892_s2 + $0x4a4] ss:$16 sps:$4 sm:$0xff]   ;;  %v9117_v29 = vld [vmem:[%s12892_s2 + $0x4ac] ss:$16 sps:$4 sm:$0xff]  }
 0x268   : > { %7396 = vmatprep.subr.bf16.mxu1 %v9039_v30  ;;  %v9112_v30 = vld [vmem:[%s12892_s2 + $0x4a0] ss:$16 sps:$4 sm:$0xff]  }
 0x26a   : > { %7069 = vmatpush1.bf16.msra.mxu0 %v9034_v57  ;;  %v9115_v57 = vld [vmem:[%s12892_s2 + $0x4a8] ss:$16 sps:$4 sm:$0xff]  }
 0x26b   : > { %7397 = vmatpush1.bf16.msra.mxu1 %v9037_v31  ;;  %7070 = vmatprep.subr.bf16.mxu0 %v9042_v33  ;;  %v9120_v31 = vld [vmem:[%s12892_s2 + $0x4c4] ss:$16 sps:$4 sm:$0xff]   ;;  %v9123_v33 = vld [vmem:[%s12892_s2 + $0x4cc] ss:$16 sps:$4 sm:$0xff]  }
 0x26c   : > { %7398 = vmatprep.subr.bf16.mxu1 %v9045_v34  ;;  %v9118_v34 = vld [vmem:[%s12892_s2 + $0x4c0] ss:$16 sps:$4 sm:$0xff]  }
 0x26e   : > { %7071 = vmatpush1.bf16.msra.mxu0 %v9040_v35  ;;  %v9121_v35 = vld [vmem:[%s12892_s2 + $0x4c8] ss:$16 sps:$4 sm:$0xff]  }
 0x26f   : > { %7399 = vmatpush1.bf16.msra.mxu1 %v9043_v38  ;;  %7072 = vmatprep.subr.bf16.mxu0 %v9048_v12  ;;  %v9126_v38 = vld [vmem:[%s12892_s2 + $0x4e4] ss:$16 sps:$4 sm:$0xff]   ;;  %v9129_v12 = vld [vmem:[%s12892_s2 + $0x4ec] ss:$16 sps:$4 sm:$0xff]  }
 0x270   : > { %7400 = vmatprep.subr.bf16.mxu1 %v9051_v39  ;;  %v9124_v39 = vld [vmem:[%s12892_s2 + $0x4e0] ss:$16 sps:$4 sm:$0xff]  }
 0x272   : > { %7073 = vmatpush1.bf16.msra.mxu0 %v9046_v41  ;;  %v9127_v41 = vld [vmem:[%s12892_s2 + $0x4e8] ss:$16 sps:$4 sm:$0xff]  }
 0x273   : > { %7401 = vmatpush1.bf16.msra.mxu1 %v9049_v42  ;;  %7074 = vmatprep.subr.bf16.mxu0 %v9054_v43  ;;  %v9132_v42 = vld [vmem:[%s12892_s2 + $0x504] ss:$16 sps:$4 sm:$0xff]   ;;  %v9135_v43 = vld [vmem:[%s12892_s2 + $0x50c] ss:$16 sps:$4 sm:$0xff]  }
 0x274   : > { %7402 = vmatprep.subr.bf16.mxu1 %v9057_v37  ;;  %v9130_v37 = vld [vmem:[%s12892_s2 + $0x500] ss:$16 sps:$4 sm:$0xff]  }
 0x276   : > { %7075 = vmatpush1.bf16.msra.mxu0 %v9052_v44  ;;  %v9133_v44 = vld [vmem:[%s12892_s2 + $0x508] ss:$16 sps:$4 sm:$0xff]  }
 0x277   : > { %7403 = vmatpush1.bf16.msra.mxu1 %v9055_v45  ;;  %7076 = vmatprep.subr.bf16.mxu0 %v9060_v46  ;;  %v9138_v45 = vld [vmem:[%s12892_s2 + $0x524] ss:$16 sps:$4 sm:$0xff]   ;;  %v9141_v46 = vld [vmem:[%s12892_s2 + $0x52c] ss:$16 sps:$4 sm:$0xff]  }
 0x278   : > { %7404 = vmatprep.subr.bf16.mxu1 %v9063_v23  ;;  %v9136_v23 = vld [vmem:[%s12892_s2 + $0x520] ss:$16 sps:$4 sm:$0xff]  }
 0x27a   : > { %7077 = vmatpush1.bf16.msra.mxu0 %v9058_v24  ;;  %v9139_v24 = vld [vmem:[%s12892_s2 + $0x528] ss:$16 sps:$4 sm:$0xff]  }
 0x27b   : > { %7405 = vmatpush1.bf16.msra.mxu1 %v9061_v32  ;;  %7078 = vmatprep.subr.bf16.mxu0 %v9066_v47  ;;  %v9144_v32 = vld [vmem:[%s12892_s2 + $0x544] ss:$16 sps:$4 sm:$0xff]   ;;  %v9147_v47 = vld [vmem:[%s12892_s2 + $0x54c] ss:$16 sps:$4 sm:$0xff]  }
 0x27c   : > { %7406 = vmatprep.subr.bf16.mxu1 %v9069_v48  ;;  %v9142_v48 = vld [vmem:[%s12892_s2 + $0x540] ss:$16 sps:$4 sm:$0xff]  }
 0x27e   : > { %7079 = vmatpush1.bf16.msra.mxu0 %v9064_v49  ;;  %v9145_v49 = vld [vmem:[%s12892_s2 + $0x548] ss:$16 sps:$4 sm:$0xff]  }
 0x27f   : > { %7407 = vmatpush1.bf16.msra.mxu1 %v9067_v50  ;;  %7080 = vmatprep.subr.bf16.mxu0 %v9072_v40  ;;  %v9150_v50 = vld [vmem:[%s12892_s2 + $0x564] ss:$16 sps:$4 sm:$0xff]   ;;  %v9153_v40 = vld [vmem:[%s12892_s2 + $0x56c] ss:$16 sps:$4 sm:$0xff]  }
 0x280   : > { %7408 = vmatprep.subr.bf16.mxu1 %v9075_v51  ;;  %v9148_v51 = vld [vmem:[%s12892_s2 + $0x560] ss:$16 sps:$4 sm:$0xff]  }
 0x282   : > { %7081 = vmatpush1.bf16.msra.mxu0 %v9070_v52  ;;  %v9151_v52 = vld [vmem:[%s12892_s2 + $0x568] ss:$16 sps:$4 sm:$0xff]  }
 0x283   : > { %7409 = vmatpush1.bf16.msra.mxu1 %v9073_v53  ;;  %7082 = vmatprep.subr.bf16.mxu0 %v9078_v54  ;;  %v9156_v53 = vld [vmem:[%s12892_s2 + $0x584] ss:$16 sps:$4 sm:$0xff]   ;;  %v9159_v54 = vld [vmem:[%s12892_s2 + $0x58c] ss:$16 sps:$4 sm:$0xff]  }
 0x284   : > { %7410 = vmatprep.subr.bf16.mxu1 %v9081_v55  ;;  %v9154_v55 = vld [vmem:[%s12892_s2 + $0x580] ss:$16 sps:$4 sm:$0xff]  }
 0x286   : > { %7083 = vmatpush1.bf16.msra.mxu0 %v9076_v56  ;;  %v9157_v56 = vld [vmem:[%s12892_s2 + $0x588] ss:$16 sps:$4 sm:$0xff]  }
 0x287   : > { %7411 = vmatpush1.bf16.msra.mxu1 %v9079_v59  ;;  %7093 = vmatprep.subr.bf16.mxu0 %v9084_v60  ;;  %v9165_v59 = vld [vmem:[%s12892_s2 + $0x5ac] ss:$16 sps:$4 sm:$0xff]   ;;  %v9160_v60 = vld [vmem:[%s12892_s2 + $0x5a0] ss:$16 sps:$4 sm:$0xff]  }
 0x288   : > { %7421 = vmatprep.subr.bf16.mxu1 %v9087_v61  ;;  %v9163_v61 = vld [vmem:[%s12892_s2 + $0x5a8] ss:$16 sps:$4 sm:$0xff]  }
 0x289   : > { %7085 = vmatmul.mubr.bf16.vlgmr.msra.gmra.mrb[16].mxu0 %v3925_v63 }
 0x28a   : > { %7413 = vmatmul.mubr.bf16.vlgmr.msra.gmra.mrb[16].mxu1 %v3925_v63  ;;  %7094 = vmatpush1.bf16.msra.mxu0 %v9082_v36  ;;  %v9171_v36 = vld [vmem:[%s12892_s2 + $0x5cc] ss:$16 sps:$4 sm:$0xff]   ;;  %v9166_v63 = vld [vmem:[%s12892_s2 + $0x5c0] ss:$16 sps:$4 sm:$0xff]  }
 0x28b   : > { %7125 = vmatprep.mubr.bf16.mxu0 %v3928_v2  ;;  %7422 = vmatpush1.bf16.msra.mxu1 %v9085_v0  ;;  %v9169_v0 = vld [vmem:[%s12892_s2 + $0x5c8] ss:$16 sps:$4 sm:$0xff]  }
 0x28c   : > { %7453 = vmatprep.mubr.bf16.mxu1 %v3928_v2  ;;  %7095 = vmatprep.subr.bf16.mxu0 %v9090_v1  ;;  %v9174_v1 = vld [vmem:[%s12892_s2 + $0x5e4] ss:$16 sps:$4 sm:$0xff]   ;;  %v9177_v2 = vld [vmem:[%s12892_s2 + $0x5ec] ss:$16 sps:$4 sm:$0xff]  }
 0x28d   : > { %7423 = vmatprep.subr.bf16.mxu1 %v9093_v9  ;;  %v9172_v9 = vld [vmem:[%s12892_s2 + $0x5e0] ss:$16 sps:$4 sm:$0xff]  }
 0x28e   : > { %7096 = vmatpush1.bf16.msra.mxu0 %v9088_v3  ;;  %v3911_v3 = vmax.f32 %v11192_v4, 0.0  ;;  %v9178_v4 = vld [vmem:[%s12892_s2 + $0x600] ss:$16 sps:$4 sm:$0xff]  }
 0x28f   : > { %7424 = vmatpush1.bf16.msra.mxu1 %v9091_v5  ;;  %7097 = vmatprep.subr.bf16.mxu0 %v9096_v6  ;;  %v9175_v5 = vld [vmem:[%s12892_s2 + $0x5e8] ss:$16 sps:$4 sm:$0xff]   ;;  %v9180_v6 = vld [vmem:[%s12892_s2 + $0x604] ss:$16 sps:$4 sm:$0xff]  }
 0x290   : > { %7425 = vmatprep.subr.bf16.mxu1 %v9099_v7  ;;  %v9183_v7 = vld [vmem:[%s12892_s2 + $0x60c] ss:$16 sps:$4 sm:$0xff]  }
 0x292   : > { %7098 = vmatpush1.bf16.msra.mxu0 %v9094_v11  ;;  %v3914_v11 = vmax.f32 %v11210_v13, 0.0  ;;  %v9189_v13 = vld [vmem:[%s12892_s2 + $0x62c] ss:$16 sps:$4 sm:$0xff]  }
 0x293   : > { %7426 = vmatpush1.bf16.msra.mxu1 %v9097_v17  ;;  %7099 = vmatprep.subr.bf16.mxu0 %v9102_v18  ;;  %v3927_v17 = vpack.c.bf16 %v3911_v3, %v3911_v3  ;;  %v9181_v18 = vld [vmem:[%s12892_s2 + $0x608] ss:$16 sps:$4 sm:$0xff]   ;;  %v9244_v3 = vld [vmem:[%s12892_s2 + $0x760] ss:$16 sps:$4 sm:$0xff]  }
 0x294   : > { %7427 = vmatprep.subr.bf16.mxu1 %v9105_v19  ;;  %v9186_v19 = vld [vmem:[%s12892_s2 + $0x624] ss:$16 sps:$4 sm:$0xff]  }
 0x296   : > { %7100 = vmatpush1.bf16.msra.mxu0 %v9100_v20  ;;  %v3930_v20 = vpack.c.bf16 %v3914_v11, %v3914_v11  ;;  %v9250_v11 = vld [vmem:[%s12892_s2 + $0x780] ss:$16 sps:$4 sm:$0xff]  }
 0x297   : > { %7428 = vmatpush1.bf16.msra.mxu1 %v9103_v21  ;;  %7101 = vmatprep.subr.bf16.mxu0 %v9108_v22  ;;  %v9184_v21 = vld [vmem:[%s12892_s2 + $0x620] ss:$16 sps:$4 sm:$0xff]   ;;  %v9187_v22 = vld [vmem:[%s12892_s2 + $0x628] ss:$16 sps:$4 sm:$0xff]  }
 0x298   : > { %7429 = vmatprep.subr.bf16.mxu1 %v9111_v25  ;;  %v9192_v25 = vld [vmem:[%s12892_s2 + $0x644] ss:$16 sps:$4 sm:$0xff]  }
 0x29a   : > { %7102 = vmatpush1.bf16.msra.mxu0 %v9106_v26  ;;  %v9195_v26 = vld [vmem:[%s12892_s2 + $0x64c] ss:$16 sps:$4 sm:$0xff]  }
 0x29b   : > { %7430 = vmatpush1.bf16.msra.mxu1 %v9109_v27  ;;  %7103 = vmatprep.subr.bf16.mxu0 %v9114_v28  ;;  %v9190_v27 = vld [vmem:[%s12892_s2 + $0x640] ss:$16 sps:$4 sm:$0xff]   ;;  %v9193_v28 = vld [vmem:[%s12892_s2 + $0x648] ss:$16 sps:$4 sm:$0xff]  }
 0x29c   : > { %7431 = vmatprep.subr.bf16.mxu1 %v9117_v29  ;;  %v9198_v29 = vld [vmem:[%s12892_s2 + $0x664] ss:$16 sps:$4 sm:$0xff]  }
 0x29e   : > { %7104 = vmatpush1.bf16.msra.mxu0 %v9112_v30  ;;  %v9201_v30 = vld [vmem:[%s12892_s2 + $0x66c] ss:$16 sps:$4 sm:$0xff]  }
 0x29f   : > { %7432 = vmatpush1.bf16.msra.mxu1 %v9115_v57  ;;  %7105 = vmatprep.subr.bf16.mxu0 %v9120_v31  ;;  %v9196_v57 = vld [vmem:[%s12892_s2 + $0x660] ss:$16 sps:$4 sm:$0xff]   ;;  %v9199_v31 = vld [vmem:[%s12892_s2 + $0x668] ss:$16 sps:$4 sm:$0xff]  }
 0x2a0   : > { %7433 = vmatprep.subr.bf16.mxu1 %v9123_v33  ;;  %v9204_v33 = vld [vmem:[%s12892_s2 + $0x684] ss:$16 sps:$4 sm:$0xff]  }
 0x2a2   : > { %7106 = vmatpush1.bf16.msra.mxu0 %v9118_v34  ;;  %v9207_v34 = vld [vmem:[%s12892_s2 + $0x68c] ss:$16 sps:$4 sm:$0xff]  }
 0x2a3   : > { %7434 = vmatpush1.bf16.msra.mxu1 %v9121_v35  ;;  %7107 = vmatprep.subr.bf16.mxu0 %v9126_v38  ;;  %v9202_v35 = vld [vmem:[%s12892_s2 + $0x680] ss:$16 sps:$4 sm:$0xff]   ;;  %v9205_v38 = vld [vmem:[%s12892_s2 + $0x688] ss:$16 sps:$4 sm:$0xff]  }
 0x2a4   : > { %7435 = vmatprep.subr.bf16.mxu1 %v9129_v12  ;;  %v9210_v12 = vld [vmem:[%s12892_s2 + $0x6a4] ss:$16 sps:$4 sm:$0xff]  }
 0x2a6   : > { %7108 = vmatpush1.bf16.msra.mxu0 %v9124_v39  ;;  %v9213_v39 = vld [vmem:[%s12892_s2 + $0x6ac] ss:$16 sps:$4 sm:$0xff]  }
 0x2a7   : > { %7436 = vmatpush1.bf16.msra.mxu1 %v9127_v41  ;;  %7109 = vmatprep.subr.bf16.mxu0 %v9132_v42  ;;  %v9208_v41 = vld [vmem:[%s12892_s2 + $0x6a0] ss:$16 sps:$4 sm:$0xff]   ;;  %v9211_v42 = vld [vmem:[%s12892_s2 + $0x6a8] ss:$16 sps:$4 sm:$0xff]  }
 0x2a8   : > { %7437 = vmatprep.subr.bf16.mxu1 %v9135_v43  ;;  %v9216_v43 = vld [vmem:[%s12892_s2 + $0x6c4] ss:$16 sps:$4 sm:$0xff]  }
 0x2aa   : > { %7110 = vmatpush1.bf16.msra.mxu0 %v9130_v37 }
 0x2ab   : > { %7438 = vmatpush1.bf16.msra.mxu1 %v9133_v44  ;;  %7111 = vmatprep.subr.bf16.mxu0 %v9138_v45  ;;  %v9219_v44 = vld [vmem:[%s12892_s2 + $0x6cc] ss:$16 sps:$4 sm:$0xff]  }
 0x2ac   : > { %7439 = vmatprep.subr.bf16.mxu1 %v9141_v46 }
 0x2ae   : > { %7112 = vmatpush1.bf16.msra.mxu0 %v9136_v23 }
 0x2af   : > { %7440 = vmatpush1.bf16.msra.mxu1 %v9139_v24  ;;  %7113 = vmatprep.subr.bf16.mxu0 %v9144_v32  ;;  %v9214_v32 = vld [vmem:[%s12892_s2 + $0x6c0] ss:$16 sps:$4 sm:$0xff]  }
 0x2b0   : > { %7441 = vmatprep.subr.bf16.mxu1 %v9147_v47 }
 0x2b2   : > { %7114 = vmatpush1.bf16.msra.mxu0 %v9142_v48 }
 0x2b3   : > { %7442 = vmatpush1.bf16.msra.mxu1 %v9145_v49  ;;  %7115 = vmatprep.subr.bf16.mxu0 %v9150_v50  ;;  %v9217_v49 = vld [vmem:[%s12892_s2 + $0x6c8] ss:$16 sps:$4 sm:$0xff]   ;;  %v9222_v50 = vld [vmem:[%s12892_s2 + $0x6e4] ss:$16 sps:$4 sm:$0xff]  }
 0x2b4   : > { %7443 = vmatprep.subr.bf16.mxu1 %v9153_v40 }
 0x2b6   : > { %7116 = vmatpush1.bf16.msra.mxu0 %v9148_v51  ;;  %v9225_v51 = vld [vmem:[%s12892_s2 + $0x6ec] ss:$16 sps:$4 sm:$0xff]  }
 0x2b7   : > { %7444 = vmatpush1.bf16.msra.mxu1 %v9151_v52  ;;  %7117 = vmatprep.subr.bf16.mxu0 %v9156_v53  ;;  %v9220_v52 = vld [vmem:[%s12892_s2 + $0x6e0] ss:$16 sps:$4 sm:$0xff]   ;;  %v9223_v53 = vld [vmem:[%s12892_s2 + $0x6e8] ss:$16 sps:$4 sm:$0xff]  }
 0x2b8   : > { %7445 = vmatprep.subr.bf16.mxu1 %v9159_v54  ;;  %v9228_v54 = vld [vmem:[%s12892_s2 + $0x704] ss:$16 sps:$4 sm:$0xff]  }
 0x2ba   : > { %7118 = vmatpush1.bf16.msra.mxu0 %v9154_v55  ;;  %v9231_v55 = vld [vmem:[%s12892_s2 + $0x70c] ss:$16 sps:$4 sm:$0xff]  }
 0x2bb   : > { %7446 = vmatpush1.bf16.msra.mxu1 %v9157_v56  ;;  %7119 = vmatprep.subr.bf16.mxu0 %v9162_v58  ;;  %v9226_v56 = vld [vmem:[%s12892_s2 + $0x700] ss:$16 sps:$4 sm:$0xff]   ;;  %v9229_v58 = vld [vmem:[%s12892_s2 + $0x708] ss:$16 sps:$4 sm:$0xff]  }
 0x2bc   : > { %7447 = vmatprep.subr.bf16.mxu1 %v9165_v59  ;;  %v9234_v59 = vld [vmem:[%s12892_s2 + $0x724] ss:$16 sps:$4 sm:$0xff]  }
 0x2be   : > { %7120 = vmatpush1.bf16.msra.mxu0 %v9160_v60  ;;  %v9237_v60 = vld [vmem:[%s12892_s2 + $0x72c] ss:$16 sps:$4 sm:$0xff]  }
 0x2bf   : > { %7448 = vmatpush1.bf16.msra.mxu1 %v9163_v61  ;;  %7121 = vmatprep.subr.bf16.mxu0 %v9168_v62  ;;  %v9232_v61 = vld [vmem:[%s12892_s2 + $0x720] ss:$16 sps:$4 sm:$0xff]   ;;  %v9235_v62 = vld [vmem:[%s12892_s2 + $0x728] ss:$16 sps:$4 sm:$0xff]  }
 0x2c0   : > { %7449 = vmatprep.subr.bf16.mxu1 %v9171_v36  ;;  %v9240_v36 = vld [vmem:[%s12892_s2 + $0x744] ss:$16 sps:$4 sm:$0xff]  }
 0x2c2   : > { %7122 = vmatpush1.bf16.msra.mxu0 %v9166_v63  ;;  %v9243_v63 = vld [vmem:[%s12892_s2 + $0x74c] ss:$16 sps:$4 sm:$0xff]  }
 0x2c3   : > { %7450 = vmatpush1.bf16.msra.mxu1 %v9169_v0  ;;  %7123 = vmatprep.subr.bf16.mxu0 %v9174_v1  ;;  %v9238_v0 = vld [vmem:[%s12892_s2 + $0x740] ss:$16 sps:$4 sm:$0xff]   ;;  %v9241_v1 = vld [vmem:[%s12892_s2 + $0x748] ss:$16 sps:$4 sm:$0xff]  }
 0x2c4   : > { %7451 = vmatprep.subr.bf16.mxu1 %v9177_v2  ;;  %v9246_v2 = vld [vmem:[%s12892_s2 + $0x764] ss:$16 sps:$4 sm:$0xff]  }
 0x2c6   : > { %7124 = vmatpush1.bf16.msra.mxu0 %v9172_v9  ;;  %v9249_v9 = vld [vmem:[%s12892_s2 + $0x76c] ss:$16 sps:$4 sm:$0xff]  }
 0x2c7   : > { %7452 = vmatpush1.bf16.msra.mxu1 %v9175_v5  ;;  %7134 = vmatprep.subr.bf16.mxu0 %v9180_v6  ;;  %v9247_v5 = vld [vmem:[%s12892_s2 + $0x768] ss:$16 sps:$4 sm:$0xff]   ;;  %v9252_v6 = vld [vmem:[%s12892_s2 + $0x784] ss:$16 sps:$4 sm:$0xff]  }
 0x2c8   : > { %7462 = vmatprep.subr.bf16.mxu1 %v9183_v7  ;;  %v9255_v7 = vld [vmem:[%s12892_s2 + $0x78c] ss:$16 sps:$4 sm:$0xff]  }
 0x2c9   : > { %7126 = vmatmul.mubr.bf16.vlgmr.msra.gmra.mrb[16].mxu0 %v3927_v17 }
 0x2ca   : > { %7454 = vmatmul.mubr.bf16.vlgmr.msra.gmra.mrb[16].mxu1 %v3927_v17  ;;  %7135 = vmatpush1.bf16.msra.mxu0 %v9178_v4  ;;  %v9253_v4 = vld [vmem:[%s12892_s2 + $0x788] ss:$16 sps:$4 sm:$0xff]   ;;  %v9258_v17 = vld [vmem:[%s12892_s2 + $0x7a4] ss:$16 sps:$4 sm:$0xff]  }
 0x2cb   : > { %7166 = vmatprep.mubr.bf16.mxu0 %v3930_v20  ;;  %7463 = vmatpush1.bf16.msra.mxu1 %v9181_v18  ;;  %v9261_v18 = vld [vmem:[%s12892_s2 + $0x7ac] ss:$16 sps:$4 sm:$0xff]  }
 0x2cc   : > { %7494 = vmatprep.mubr.bf16.mxu1 %v3930_v20  ;;  %7136 = vmatprep.subr.bf16.mxu0 %v9186_v19  ;;  %v9256_v19 = vld [vmem:[%s12892_s2 + $0x7a0] ss:$16 sps:$4 sm:$0xff]   ;;  %v9259_v20 = vld [vmem:[%s12892_s2 + $0x7a8] ss:$16 sps:$4 sm:$0xff]  }
 0x2cd   : > { %7464 = vmatprep.subr.bf16.mxu1 %v9189_v13  ;;  %v9264_v13 = vld [vmem:[%s12892_s2 + $0x7c4] ss:$16 sps:$4 sm:$0xff]  }
 0x2ce   : > { %7137 = vmatpush1.bf16.msra.mxu0 %v9184_v21  ;;  %v9267_v21 = vld [vmem:[%s12892_s2 + $0x7cc] ss:$16 sps:$4 sm:$0xff]  }
 0x2cf   : > { %7465 = vmatpush1.bf16.msra.mxu1 %v9187_v22  ;;  %7138 = vmatprep.subr.bf16.mxu0 %v9192_v25  ;;  %v9262_v22 = vld [vmem:[%s12892_s2 + $0x7c0] ss:$16 sps:$4 sm:$0xff]   ;;  %v9265_v25 = vld [vmem:[%s12892_s2 + $0x7c8] ss:$16 sps:$4 sm:$0xff]  }
 0x2d0   : > { %7466 = vmatprep.subr.bf16.mxu1 %v9195_v26  ;;  %v9270_v26 = vld [vmem:[%s12892_s2 + $0x7e4] ss:$16 sps:$4 sm:$0xff]  }
 0x2d2   : > { %7139 = vmatpush1.bf16.msra.mxu0 %v9190_v27  ;;  %v9273_v27 = vld [vmem:[%s12892_s2 + $0x7ec] ss:$16 sps:$4 sm:$0xff]  }
 0x2d3   : > { %7467 = vmatpush1.bf16.msra.mxu1 %v9193_v28  ;;  %7140 = vmatprep.subr.bf16.mxu0 %v9198_v29  ;;  %v9268_v28 = vld [vmem:[%s12892_s2 + $0x7e0] ss:$16 sps:$4 sm:$0xff]   ;;  %v3913_v29 = vmax.f32 %v11200_v8, 0.0 }
 0x2d4   : > { %7468 = vmatprep.subr.bf16.mxu1 %v9201_v30  ;;  %v9271_v30 = vld [vmem:[%s12892_s2 + $0x7e8] ss:$16 sps:$4 sm:$0xff]   ;;  %v9274_v8 = vld [vmem:[%s12892_s2 + $0x800] ss:$16 sps:$4 sm:$0xff]  }
 0x2d6   : > { %7141 = vmatpush1.bf16.msra.mxu0 %v9196_v57  ;;  %v9276_v57 = vld [vmem:[%s12892_s2 + $0x804] ss:$16 sps:$4 sm:$0xff]  }
 0x2d7   : > { %7469 = vmatpush1.bf16.msra.mxu1 %v9199_v31  ;;  %7142 = vmatprep.subr.bf16.mxu0 %v9204_v33  ;;  %v9279_v31 = vld [vmem:[%s12892_s2 + $0x80c] ss:$16 sps:$4 sm:$0xff]   ;;  %v3916_v33 = vmax.f32 %v11587_v15, 0.0 }
 0x2d8   : > { %7470 = vmatprep.subr.bf16.mxu1 %v9207_v34  ;;  %v3929_v34 = vpack.c.bf16 %v3913_v29, %v3913_v29  ;;  %v9285_v15 = vld [vmem:[%s12892_s2 + $0x82c] ss:$16 sps:$4 sm:$0xff]   ;;  %v9354_v29 = vld [vmem:[%s12892_s2 + $0x9a4] ss:$16 sps:$4 sm:$0xff]  }
 0x2da   : > { %7143 = vmatpush1.bf16.msra.mxu0 %v9202_v35  ;;  %v9277_v35 = vld [vmem:[%s12892_s2 + $0x808] ss:$16 sps:$4 sm:$0xff]  }
 0x2db   : > { %7471 = vmatpush1.bf16.msra.mxu1 %v9205_v38  ;;  %7144 = vmatprep.subr.bf16.mxu0 %v9210_v12  ;;  %v9282_v38 = vld [vmem:[%s12892_s2 + $0x824] ss:$16 sps:$4 sm:$0xff]   ;;  %v3932_v12 = vpack.c.bf16 %v3916_v33, %v3916_v33 }
 0x2dc   : > { %v11976_v37 = vpop.f32.mrb[12].mxu0  ;;  %7472 = vmatprep.subr.bf16.mxu1 %v9213_v39  ;;  %v11981_v45 = vpop.f32.mrb[12].mxu1  ;;  %v9280_v39 = vld [vmem:[%s12892_s2 + $0x820] ss:$16 sps:$4 sm:$0xff]   ;;  %v9360_v33 = vld [vmem:[%s12892_s2 + $0x9c4] ss:$16 sps:$4 sm:$0xff]  }
 0x2dd   : > { %v11983_v46 = vpop.f32.mrb[13].mxu0  ;;  %v11985_v23 = vpop.f32.mrb[13].mxu1 }
 0x2de   : > { %v3822_v24 = vpop.f32.mrb[14].mxu0  ;;  %7145 = vmatpush1.bf16.msra.mxu0 %v9208_v41  ;;  %v3904_v47 = vpop.f32.mrb[14].mxu1  ;;  %v9283_v41 = vld [vmem:[%s12892_s2 + $0x828] ss:$16 sps:$4 sm:$0xff]  }
 0x2df   : > { %7473 = vmatpush1.bf16.msra.mxu1 %v9211_v42  ;;  %v3823_v48 = vpop.f32.mrb[15].mxu0  ;;  %7146 = vmatprep.subr.bf16.mxu0 %v9216_v43  ;;  %v3905_v40 = vpop.f32.mrb[15].mxu1  ;;  %v9288_v42 = vld [vmem:[%s12892_s2 + $0x844] ss:$16 sps:$4 sm:$0xff]   ;;  %v9291_v43 = vld [vmem:[%s12892_s2 + $0x84c] ss:$16 sps:$4 sm:$0xff]  }
 0x2e0   : > { %7474 = vmatprep.subr.bf16.mxu1 %v9219_v44  ;;  %v9286_v44 = vld [vmem:[%s12892_s2 + $0x840] ss:$16 sps:$4 sm:$0xff]   ;;  %v9289_v24 = vld [vmem:[%s12892_s2 + $0x848] ss:$16 sps:$4 sm:$0xff]   ;;  %v9297_v47 = vld [vmem:[%s12892_s2 + $0x86c] ss:$16 sps:$4 sm:$0xff]  }
 0x2e1   : > { %v9292_v48 = vld [vmem:[%s12892_s2 + $0x860] ss:$16 sps:$4 sm:$0xff]   ;;  %v9303_v40 = vld [vmem:[%s12892_s2 + $0x88c] ss:$16 sps:$4 sm:$0xff]  }
 0x2e2   : > { %7147 = vmatpush1.bf16.msra.mxu0 %v9214_v32  ;;  %v9294_v32 = vld [vmem:[%s12892_s2 + $0x864] ss:$16 sps:$4 sm:$0xff]  }
 0x2e3   : > { %7475 = vmatpush1.bf16.msra.mxu1 %v9217_v49  ;;  %7148 = vmatprep.subr.bf16.mxu0 %v9222_v50  ;;  %v9295_v49 = vld [vmem:[%s12892_s2 + $0x868] ss:$16 sps:$4 sm:$0xff]   ;;  %v9300_v50 = vld [vmem:[%s12892_s2 + $0x884] ss:$16 sps:$4 sm:$0xff]  }
 0x2e4   : > { %7476 = vmatprep.subr.bf16.mxu1 %v9225_v51  ;;  %v9298_v51 = vld [vmem:[%s12892_s2 + $0x880] ss:$16 sps:$4 sm:$0xff]  }
 0x2e6   : > { %7149 = vmatpush1.bf16.msra.mxu0 %v9220_v52  ;;  %v9301_v52 = vld [vmem:[%s12892_s2 + $0x888] ss:$16 sps:$4 sm:$0xff]  }
 0x2e7   : > { %7477 = vmatpush1.bf16.msra.mxu1 %v9223_v53  ;;  %7150 = vmatprep.subr.bf16.mxu0 %v9228_v54  ;;  %v9306_v53 = vld [vmem:[%s12892_s2 + $0x8a4] ss:$16 sps:$4 sm:$0xff]   ;;  %v9309_v54 = vld [vmem:[%s12892_s2 + $0x8ac] ss:$16 sps:$4 sm:$0xff]  }
 0x2e8   : > { %7478 = vmatprep.subr.bf16.mxu1 %v9231_v55  ;;  %v9304_v55 = vld [vmem:[%s12892_s2 + $0x8a0] ss:$16 sps:$4 sm:$0xff]  }
 0x2ea   : > { %7151 = vmatpush1.bf16.msra.mxu0 %v9226_v56  ;;  %v9307_v56 = vld [vmem:[%s12892_s2 + $0x8a8] ss:$16 sps:$4 sm:$0xff]  }
 0x2eb   : > { %7479 = vmatpush1.bf16.msra.mxu1 %v9229_v58  ;;  %7152 = vmatprep.subr.bf16.mxu0 %v9234_v59  ;;  %v9312_v58 = vld [vmem:[%s12892_s2 + $0x8c4] ss:$16 sps:$4 sm:$0xff]   ;;  %v9315_v59 = vld [vmem:[%s12892_s2 + $0x8cc] ss:$16 sps:$4 sm:$0xff]  }
 0x2ec   : > { %7480 = vmatprep.subr.bf16.mxu1 %v9237_v60  ;;  %v9310_v60 = vld [vmem:[%s12892_s2 + $0x8c0] ss:$16 sps:$4 sm:$0xff]  }
 0x2ee   : > { %7153 = vmatpush1.bf16.msra.mxu0 %v9232_v61  ;;  %v9313_v61 = vld [vmem:[%s12892_s2 + $0x8c8] ss:$16 sps:$4 sm:$0xff]  }
 0x2ef   : > { %7481 = vmatpush1.bf16.msra.mxu1 %v9235_v62  ;;  %7154 = vmatprep.subr.bf16.mxu0 %v9240_v36  ;;  %v9318_v62 = vld [vmem:[%s12892_s2 + $0x8e4] ss:$16 sps:$4 sm:$0xff]   ;;  %v9321_v36 = vld [vmem:[%s12892_s2 + $0x8ec] ss:$16 sps:$4 sm:$0xff]  }
 0x2f0   : > { %7482 = vmatprep.subr.bf16.mxu1 %v9243_v63  ;;  %v9316_v63 = vld [vmem:[%s12892_s2 + $0x8e0] ss:$16 sps:$4 sm:$0xff]  }
 0x2f2   : > { %7155 = vmatpush1.bf16.msra.mxu0 %v9238_v0  ;;  %v9319_v0 = vld [vmem:[%s12892_s2 + $0x8e8] ss:$16 sps:$4 sm:$0xff]  }
 0x2f3   : > { %7483 = vmatpush1.bf16.msra.mxu1 %v9241_v1  ;;  %7156 = vmatprep.subr.bf16.mxu0 %v9246_v2  ;;  %v9324_v1 = vld [vmem:[%s12892_s2 + $0x904] ss:$16 sps:$4 sm:$0xff]   ;;  %v9327_v2 = vld [vmem:[%s12892_s2 + $0x90c] ss:$16 sps:$4 sm:$0xff]  }
 0x2f4   : > { %7484 = vmatprep.subr.bf16.mxu1 %v9249_v9  ;;  %v9322_v9 = vld [vmem:[%s12892_s2 + $0x900] ss:$16 sps:$4 sm:$0xff]  }
 0x2f6   : > { %7157 = vmatpush1.bf16.msra.mxu0 %v9244_v3  ;;  %v9325_v3 = vld [vmem:[%s12892_s2 + $0x908] ss:$16 sps:$4 sm:$0xff]  }
 0x2f7   : > { %7485 = vmatpush1.bf16.msra.mxu1 %v9247_v5  ;;  %7158 = vmatprep.subr.bf16.mxu0 %v9252_v6  ;;  %v9330_v5 = vld [vmem:[%s12892_s2 + $0x924] ss:$16 sps:$4 sm:$0xff]   ;;  %v9333_v6 = vld [vmem:[%s12892_s2 + $0x92c] ss:$16 sps:$4 sm:$0xff]  }
 0x2f8   : > { %7486 = vmatprep.subr.bf16.mxu1 %v9255_v7  ;;  %v9328_v7 = vld [vmem:[%s12892_s2 + $0x920] ss:$16 sps:$4 sm:$0xff]  }
 0x2fa   : > { %7159 = vmatpush1.bf16.msra.mxu0 %v9250_v11  ;;  %v9331_v11 = vld [vmem:[%s12892_s2 + $0x928] ss:$16 sps:$4 sm:$0xff]  }
 0x2fb   : > { %7487 = vmatpush1.bf16.msra.mxu1 %v9253_v4  ;;  %7160 = vmatprep.subr.bf16.mxu0 %v9258_v17  ;;  %v9336_v4 = vld [vmem:[%s12892_s2 + $0x944] ss:$16 sps:$4 sm:$0xff]   ;;  %v9339_v17 = vld [vmem:[%s12892_s2 + $0x94c] ss:$16 sps:$4 sm:$0xff]  }
 0x2fc   : > { %7488 = vmatprep.subr.bf16.mxu1 %v9261_v18  ;;  %v9334_v18 = vld [vmem:[%s12892_s2 + $0x940] ss:$16 sps:$4 sm:$0xff]  }
 0x2fe   : > { %7161 = vmatpush1.bf16.msra.mxu0 %v9256_v19  ;;  %v9337_v19 = vld [vmem:[%s12892_s2 + $0x948] ss:$16 sps:$4 sm:$0xff]  }
 0x2ff   : > { %7489 = vmatpush1.bf16.msra.mxu1 %v9259_v20  ;;  %7162 = vmatprep.subr.bf16.mxu0 %v9264_v13  ;;  %v9342_v20 = vld [vmem:[%s12892_s2 + $0x964] ss:$16 sps:$4 sm:$0xff]   ;;  %v9345_v13 = vld [vmem:[%s12892_s2 + $0x96c] ss:$16 sps:$4 sm:$0xff]  }
 0x300   : > { %7490 = vmatprep.subr.bf16.mxu1 %v9267_v21  ;;  %v9340_v21 = vld [vmem:[%s12892_s2 + $0x960] ss:$16 sps:$4 sm:$0xff]  }
 0x302   : > { %7163 = vmatpush1.bf16.msra.mxu0 %v9262_v22  ;;  %v9343_v22 = vld [vmem:[%s12892_s2 + $0x968] ss:$16 sps:$4 sm:$0xff]  }
 0x303   : > { %7491 = vmatpush1.bf16.msra.mxu1 %v9265_v25  ;;  %7164 = vmatprep.subr.bf16.mxu0 %v9270_v26  ;;  %v9348_v25 = vld [vmem:[%s12892_s2 + $0x984] ss:$16 sps:$4 sm:$0xff]   ;;  %v9351_v26 = vld [vmem:[%s12892_s2 + $0x98c] ss:$16 sps:$4 sm:$0xff]  }
 0x304   : > { %7492 = vmatprep.subr.bf16.mxu1 %v9273_v27  ;;  %v9346_v27 = vld [vmem:[%s12892_s2 + $0x980] ss:$16 sps:$4 sm:$0xff]  }
 0x306   : > { %7165 = vmatpush1.bf16.msra.mxu0 %v9268_v28  ;;  %v9349_v28 = vld [vmem:[%s12892_s2 + $0x988] ss:$16 sps:$4 sm:$0xff]  }
 0x307   : > { %7493 = vmatpush1.bf16.msra.mxu1 %v9271_v30  ;;  %7175 = vmatprep.subr.bf16.mxu0 %v9276_v57  ;;  %v9357_v30 = vld [vmem:[%s12892_s2 + $0x9ac] ss:$16 sps:$4 sm:$0xff]   ;;  %v9352_v57 = vld [vmem:[%s12892_s2 + $0x9a0] ss:$16 sps:$4 sm:$0xff]  }
 0x308   : > { %7503 = vmatprep.subr.bf16.mxu1 %v9279_v31  ;;  %v9355_v31 = vld [vmem:[%s12892_s2 + $0x9a8] ss:$16 sps:$4 sm:$0xff]  }
 0x309   : > { %7167 = vmatmul.mubr.bf16.vlgmr.msra.gmra.mrb[16].mxu0 %v3929_v34 }
 0x30a   : > { %7495 = vmatmul.mubr.bf16.vlgmr.msra.gmra.mrb[16].mxu1 %v3929_v34  ;;  %7176 = vmatpush1.bf16.msra.mxu0 %v9274_v8  ;;  %v9363_v8 = vld [vmem:[%s12892_s2 + $0x9cc] ss:$16 sps:$4 sm:$0xff]   ;;  %v9358_v34 = vld [vmem:[%s12892_s2 + $0x9c0] ss:$16 sps:$4 sm:$0xff]  }
 0x30b   : > { %7207 = vmatprep.mubr.bf16.mxu0 %v3932_v12  ;;  %7504 = vmatpush1.bf16.msra.mxu1 %v9277_v35  ;;  %v9361_v35 = vld [vmem:[%s12892_s2 + $0x9c8] ss:$16 sps:$4 sm:$0xff]  }
 0x30c   : > { %7535 = vmatprep.mubr.bf16.mxu1 %v3932_v12  ;;  %7177 = vmatprep.subr.bf16.mxu0 %v9282_v38  ;;  %v9366_v38 = vld [vmem:[%s12892_s2 + $0x9e4] ss:$16 sps:$4 sm:$0xff]   ;;  %v9369_v12 = vld [vmem:[%s12892_s2 + $0x9ec] ss:$16 sps:$4 sm:$0xff]  }
 0x30d   : > { %7505 = vmatprep.subr.bf16.mxu1 %v9285_v15  ;;  %v9364_v15 = vld [vmem:[%s12892_s2 + $0x9e0] ss:$16 sps:$4 sm:$0xff]  }
 0x30e   : > { %7178 = vmatpush1.bf16.msra.mxu0 %v9280_v39  ;;  %v3915_v39 = vmax.f32 %v11580_v10, 0.0  ;;  %v9370_v10 = vld [vmem:[%s12892_s2 + $0xa00] ss:$16 sps:$4 sm:$0xff]  }
 0x30f   : > { %7506 = vmatpush1.bf16.msra.mxu1 %v9283_v41  ;;  %7179 = vmatprep.subr.bf16.mxu0 %v9288_v42  ;;  %v9367_v41 = vld [vmem:[%s12892_s2 + $0x9e8] ss:$16 sps:$4 sm:$0xff]   ;;  %v9372_v42 = vld [vmem:[%s12892_s2 + $0xa04] ss:$16 sps:$4 sm:$0xff]  }
 0x310   : > { %7507 = vmatprep.subr.bf16.mxu1 %v9291_v43  ;;  %v9375_v43 = vld [vmem:[%s12892_s2 + $0xa0c] ss:$16 sps:$4 sm:$0xff]  }
 0x312   : > { %7180 = vmatpush1.bf16.msra.mxu0 %v9286_v44  ;;  %v3918_v44 = vmax.f32 %v11589_v16, 0.0  ;;  %v9381_v16 = vld [vmem:[%s12892_s2 + $0xa2c] ss:$16 sps:$4 sm:$0xff]  }
 0x313   : > { %7508 = vmatpush1.bf16.msra.mxu1 %v9289_v24  ;;  %7181 = vmatprep.subr.bf16.mxu0 %v9294_v32  ;;  %v3931_v24 = vpack.c.bf16 %v3915_v39, %v3915_v39  ;;  %v9373_v32 = vld [vmem:[%s12892_s2 + $0xa08] ss:$16 sps:$4 sm:$0xff]   ;;  %v9448_v39 = vld [vmem:[%s12892_s2 + $0xba0] ss:$16 sps:$4 sm:$0xff]  }
 0x314   : > { %7509 = vmatprep.subr.bf16.mxu1 %v9297_v47  ;;  %v9378_v47 = vld [vmem:[%s12892_s2 + $0xa24] ss:$16 sps:$4 sm:$0xff]  }
 0x316   : > { %7182 = vmatpush1.bf16.msra.mxu0 %v9292_v48  ;;  %v3934_v48 = vpack.c.bf16 %v3918_v44, %v3918_v44  ;;  %v9454_v44 = vld [vmem:[%s12892_s2 + $0xbc0] ss:$16 sps:$4 sm:$0xff]  }
 0x317   : > { %7510 = vmatpush1.bf16.msra.mxu1 %v9295_v49  ;;  %7183 = vmatprep.subr.bf16.mxu0 %v9300_v50  ;;  %v9376_v49 = vld [vmem:[%s12892_s2 + $0xa20] ss:$16 sps:$4 sm:$0xff]   ;;  %v9379_v50 = vld [vmem:[%s12892_s2 + $0xa28] ss:$16 sps:$4 sm:$0xff]  }
 0x318   : > { %7511 = vmatprep.subr.bf16.mxu1 %v9303_v40  ;;  %v9384_v40 = vld [vmem:[%s12892_s2 + $0xa44] ss:$16 sps:$4 sm:$0xff]  }
 0x31a   : > { %7184 = vmatpush1.bf16.msra.mxu0 %v9298_v51  ;;  %v9387_v51 = vld [vmem:[%s12892_s2 + $0xa4c] ss:$16 sps:$4 sm:$0xff]  }
 0x31b   : > { %7512 = vmatpush1.bf16.msra.mxu1 %v9301_v52  ;;  %7185 = vmatprep.subr.bf16.mxu0 %v9306_v53  ;;  %v9382_v52 = vld [vmem:[%s12892_s2 + $0xa40] ss:$16 sps:$4 sm:$0xff]   ;;  %v9385_v53 = vld [vmem:[%s12892_s2 + $0xa48] ss:$16 sps:$4 sm:$0xff]  }
 0x31c   : > { %7513 = vmatprep.subr.bf16.mxu1 %v9309_v54  ;;  %v9390_v54 = vld [vmem:[%s12892_s2 + $0xa64] ss:$16 sps:$4 sm:$0xff]  }
 0x31e   : > { %7186 = vmatpush1.bf16.msra.mxu0 %v9304_v55  ;;  %v9393_v55 = vld [vmem:[%s12892_s2 + $0xa6c] ss:$16 sps:$4 sm:$0xff]  }
 0x31f   : > { %7514 = vmatpush1.bf16.msra.mxu1 %v9307_v56  ;;  %7187 = vmatprep.subr.bf16.mxu0 %v9312_v58  ;;  %v9388_v56 = vld [vmem:[%s12892_s2 + $0xa60] ss:$16 sps:$4 sm:$0xff]   ;;  %v9391_v58 = vld [vmem:[%s12892_s2 + $0xa68] ss:$16 sps:$4 sm:$0xff]  }
 0x320   : > { %7515 = vmatprep.subr.bf16.mxu1 %v9315_v59  ;;  %v9396_v59 = vld [vmem:[%s12892_s2 + $0xa84] ss:$16 sps:$4 sm:$0xff]  }
 0x322   : > { %7188 = vmatpush1.bf16.msra.mxu0 %v9310_v60  ;;  %v9399_v60 = vld [vmem:[%s12892_s2 + $0xa8c] ss:$16 sps:$4 sm:$0xff]  }
 0x323   : > { %7516 = vmatpush1.bf16.msra.mxu1 %v9313_v61  ;;  %7189 = vmatprep.subr.bf16.mxu0 %v9318_v62  ;;  %v9394_v61 = vld [vmem:[%s12892_s2 + $0xa80] ss:$16 sps:$4 sm:$0xff]   ;;  %v9397_v62 = vld [vmem:[%s12892_s2 + $0xa88] ss:$16 sps:$4 sm:$0xff]  }
 0x324   : > { %7517 = vmatprep.subr.bf16.mxu1 %v9321_v36  ;;  %v9402_v36 = vld [vmem:[%s12892_s2 + $0xaa4] ss:$16 sps:$4 sm:$0xff]  }
 0x326   : > { %7190 = vmatpush1.bf16.msra.mxu0 %v9316_v63  ;;  %v9405_v63 = vld [vmem:[%s12892_s2 + $0xaac] ss:$16 sps:$4 sm:$0xff]  }
 0x327   : > { %7518 = vmatpush1.bf16.msra.mxu1 %v9319_v0  ;;  %7191 = vmatprep.subr.bf16.mxu0 %v9324_v1  ;;  %v9400_v0 = vld [vmem:[%s12892_s2 + $0xaa0] ss:$16 sps:$4 sm:$0xff]   ;;  %v9403_v1 = vld [vmem:[%s12892_s2 + $0xaa8] ss:$16 sps:$4 sm:$0xff]  }
 0x328   : > { %7519 = vmatprep.subr.bf16.mxu1 %v9327_v2  ;;  %v9408_v2 = vld [vmem:[%s12892_s2 + $0xac4] ss:$16 sps:$4 sm:$0xff]  }
 0x32a   : > { %7192 = vmatpush1.bf16.msra.mxu0 %v9322_v9  ;;  %v9411_v9 = vld [vmem:[%s12892_s2 + $0xacc] ss:$16 sps:$4 sm:$0xff]  }
 0x32b   : > { %7520 = vmatpush1.bf16.msra.mxu1 %v9325_v3  ;;  %7193 = vmatprep.subr.bf16.mxu0 %v9330_v5  ;;  %v9406_v3 = vld [vmem:[%s12892_s2 + $0xac0] ss:$16 sps:$4 sm:$0xff]   ;;  %v9409_v5 = vld [vmem:[%s12892_s2 + $0xac8] ss:$16 sps:$4 sm:$0xff]  }
 0x32c   : > { %7521 = vmatprep.subr.bf16.mxu1 %v9333_v6  ;;  %v9414_v6 = vld [vmem:[%s12892_s2 + $0xae4] ss:$16 sps:$4 sm:$0xff]  }
 0x32e   : > { %7194 = vmatpush1.bf16.msra.mxu0 %v9328_v7  ;;  %v9417_v7 = vld [vmem:[%s12892_s2 + $0xaec] ss:$16 sps:$4 sm:$0xff]  }
 0x32f   : > { %7522 = vmatpush1.bf16.msra.mxu1 %v9331_v11  ;;  %7195 = vmatprep.subr.bf16.mxu0 %v9336_v4  ;;  %v9412_v11 = vld [vmem:[%s12892_s2 + $0xae0] ss:$16 sps:$4 sm:$0xff]   ;;  %v9415_v4 = vld [vmem:[%s12892_s2 + $0xae8] ss:$16 sps:$4 sm:$0xff]  }
 0x330   : > { %7523 = vmatprep.subr.bf16.mxu1 %v9339_v17  ;;  %v9420_v17 = vld [vmem:[%s12892_s2 + $0xb04] ss:$16 sps:$4 sm:$0xff]  }
 0x332   : > { %7196 = vmatpush1.bf16.msra.mxu0 %v9334_v18  ;;  %v9423_v18 = vld [vmem:[%s12892_s2 + $0xb0c] ss:$16 sps:$4 sm:$0xff]  }
 0x333   : > { %7524 = vmatpush1.bf16.msra.mxu1 %v9337_v19  ;;  %7197 = vmatprep.subr.bf16.mxu0 %v9342_v20  ;;  %v9418_v19 = vld [vmem:[%s12892_s2 + $0xb00] ss:$16 sps:$4 sm:$0xff]   ;;  %v9421_v20 = vld [vmem:[%s12892_s2 + $0xb08] ss:$16 sps:$4 sm:$0xff]  }
 0x334   : > { %7525 = vmatprep.subr.bf16.mxu1 %v9345_v13  ;;  %v9426_v13 = vld [vmem:[%s12892_s2 + $0xb24] ss:$16 sps:$4 sm:$0xff]  }
 0x336   : > { %7198 = vmatpush1.bf16.msra.mxu0 %v9340_v21  ;;  %v9429_v21 = vld [vmem:[%s12892_s2 + $0xb2c] ss:$16 sps:$4 sm:$0xff]  }
 0x337   : > { %7526 = vmatpush1.bf16.msra.mxu1 %v9343_v22  ;;  %7199 = vmatprep.subr.bf16.mxu0 %v9348_v25  ;;  %v9424_v22 = vld [vmem:[%s12892_s2 + $0xb20] ss:$16 sps:$4 sm:$0xff]   ;;  %v9427_v25 = vld [vmem:[%s12892_s2 + $0xb28] ss:$16 sps:$4 sm:$0xff]  }
 0x338   : > { %7527 = vmatprep.subr.bf16.mxu1 %v9351_v26  ;;  %v9432_v26 = vld [vmem:[%s12892_s2 + $0xb44] ss:$16 sps:$4 sm:$0xff]  }
 0x33a   : > { %7200 = vmatpush1.bf16.msra.mxu0 %v9346_v27  ;;  %v9435_v27 = vld [vmem:[%s12892_s2 + $0xb4c] ss:$16 sps:$4 sm:$0xff]  }
 0x33b   : > { %7528 = vmatpush1.bf16.msra.mxu1 %v9349_v28  ;;  %7201 = vmatprep.subr.bf16.mxu0 %v9354_v29  ;;  %v9430_v28 = vld [vmem:[%s12892_s2 + $0xb40] ss:$16 sps:$4 sm:$0xff]   ;;  %v9433_v29 = vld [vmem:[%s12892_s2 + $0xb48] ss:$16 sps:$4 sm:$0xff]  }
 0x33c   : > { %7529 = vmatprep.subr.bf16.mxu1 %v9357_v30  ;;  %v9438_v30 = vld [vmem:[%s12892_s2 + $0xb64] ss:$16 sps:$4 sm:$0xff]  }
 0x33e   : > { %7202 = vmatpush1.bf16.msra.mxu0 %v9352_v57  ;;  %v9441_v57 = vld [vmem:[%s12892_s2 + $0xb6c] ss:$16 sps:$4 sm:$0xff]  }
 0x33f   : > { %7530 = vmatpush1.bf16.msra.mxu1 %v9355_v31  ;;  %7203 = vmatprep.subr.bf16.mxu0 %v9360_v33  ;;  %v9436_v31 = vld [vmem:[%s12892_s2 + $0xb60] ss:$16 sps:$4 sm:$0xff]   ;;  %v9439_v33 = vld [vmem:[%s12892_s2 + $0xb68] ss:$16 sps:$4 sm:$0xff]  }
 0x340   : > { %7531 = vmatprep.subr.bf16.mxu1 %v9363_v8  ;;  %v9444_v8 = vld [vmem:[%s12892_s2 + $0xb84] ss:$16 sps:$4 sm:$0xff]  }
 0x342   : > { %7204 = vmatpush1.bf16.msra.mxu0 %v9358_v34  ;;  %v9447_v34 = vld [vmem:[%s12892_s2 + $0xb8c] ss:$16 sps:$4 sm:$0xff]  }
 0x343   : > { %7532 = vmatpush1.bf16.msra.mxu1 %v9361_v35  ;;  %7205 = vmatprep.subr.bf16.mxu0 %v9366_v38  ;;  %v9442_v35 = vld [vmem:[%s12892_s2 + $0xb80] ss:$16 sps:$4 sm:$0xff]   ;;  %v9445_v38 = vld [vmem:[%s12892_s2 + $0xb88] ss:$16 sps:$4 sm:$0xff]  }
 0x344   : > { %7533 = vmatprep.subr.bf16.mxu1 %v9369_v12  ;;  %v9450_v12 = vld [vmem:[%s12892_s2 + $0xba4] ss:$16 sps:$4 sm:$0xff]  }
 0x346   : > { %7206 = vmatpush1.bf16.msra.mxu0 %v9364_v15  ;;  %v9453_v15 = vld [vmem:[%s12892_s2 + $0xbac] ss:$16 sps:$4 sm:$0xff]  }
 0x347   : > { %7534 = vmatpush1.bf16.msra.mxu1 %v9367_v41  ;;  %7216 = vmatprep.subr.bf16.mxu0 %v9372_v42  ;;  %v9451_v41 = vld [vmem:[%s12892_s2 + $0xba8] ss:$16 sps:$4 sm:$0xff]   ;;  %v9456_v42 = vld [vmem:[%s12892_s2 + $0xbc4] ss:$16 sps:$4 sm:$0xff]  }
 0x348   : > { %7544 = vmatprep.subr.bf16.mxu1 %v9375_v43  ;;  %v9459_v43 = vld [vmem:[%s12892_s2 + $0xbcc] ss:$16 sps:$4 sm:$0xff]  }
 0x349   : > { %7208 = vmatmul.mubr.bf16.vlgmr.msra.gmra.mrb[16].mxu0 %v3931_v24 }
 0x34a   : > { %7536 = vmatmul.mubr.bf16.vlgmr.msra.gmra.mrb[16].mxu1 %v3931_v24  ;;  %7217 = vmatpush1.bf16.msra.mxu0 %v9370_v10  ;;  %v9457_v10 = vld [vmem:[%s12892_s2 + $0xbc8] ss:$16 sps:$4 sm:$0xff]   ;;  %v9462_v24 = vld [vmem:[%s12892_s2 + $0xbe4] ss:$16 sps:$4 sm:$0xff]  }
 0x34b   : > { %7248 = vmatprep.mubr.bf16.mxu0 %v3934_v48  ;;  %7545 = vmatpush1.bf16.msra.mxu1 %v9373_v32  ;;  %v9465_v32 = vld [vmem:[%s12892_s2 + $0xbec] ss:$16 sps:$4 sm:$0xff]  }
 0x34c   : > { %7576 = vmatprep.mubr.bf16.mxu1 %v3934_v48  ;;  %7218 = vmatprep.subr.bf16.mxu0 %v9378_v47  ;;  %v9460_v47 = vld [vmem:[%s12892_s2 + $0xbe0] ss:$16 sps:$4 sm:$0xff]   ;;  %v3917_v48 = vmax.f32 %v11585_v14, 0.0 }
 0x34d   : > { %7546 = vmatprep.subr.bf16.mxu1 %v9381_v16  ;;  %v9463_v16 = vld [vmem:[%s12892_s2 + $0xbe8] ss:$16 sps:$4 sm:$0xff]   ;;  %v9466_v14 = vld [vmem:[%s12892_s2 + $0xc00] ss:$16 sps:$4 sm:$0xff]  }
 0x34e   : > { %7219 = vmatpush1.bf16.msra.mxu0 %v9376_v49  ;;  %v9468_v49 = vld [vmem:[%s12892_s2 + $0xc04] ss:$16 sps:$4 sm:$0xff]  }
 0x34f   : > { %7547 = vmatpush1.bf16.msra.mxu1 %v9379_v50  ;;  %7220 = vmatprep.subr.bf16.mxu0 %v9384_v40  ;;  %v9471_v50 = vld [vmem:[%s12892_s2 + $0xc0c] ss:$16 sps:$4 sm:$0xff]   ;;  %v3920_v40 = vmax.f32 %v11983_v46, 0.0 }
 0x350   : > { %7548 = vmatprep.subr.bf16.mxu1 %v9387_v51  ;;  %v3933_v51 = vpack.c.bf16 %v3917_v48, %v3917_v48  ;;  %v9477_v46 = vld [vmem:[%s12892_s2 + $0xc2c] ss:$16 sps:$4 sm:$0xff]   ;;  %v9552_v48 = vld [vmem:[%s12892_s2 + $0xdc4] ss:$16 sps:$4 sm:$0xff]  }
 0x352   : > { %7221 = vmatpush1.bf16.msra.mxu0 %v9382_v52  ;;  %v9469_v52 = vld [vmem:[%s12892_s2 + $0xc08] ss:$16 sps:$4 sm:$0xff]  }
 0x353   : > { %7549 = vmatpush1.bf16.msra.mxu1 %v9385_v53  ;;  %7222 = vmatprep.subr.bf16.mxu0 %v9390_v54  ;;  %v9474_v53 = vld [vmem:[%s12892_s2 + $0xc24] ss:$16 sps:$4 sm:$0xff]   ;;  %v3936_v54 = vpack.c.bf16 %v3920_v40, %v3920_v40 }
 0x354   : > { %7550 = vmatprep.subr.bf16.mxu1 %v9393_v55  ;;  %v9472_v55 = vld [vmem:[%s12892_s2 + $0xc20] ss:$16 sps:$4 sm:$0xff]   ;;  %v9558_v40 = vld [vmem:[%s12892_s2 + $0xde4] ss:$16 sps:$4 sm:$0xff]  }
 0x356   : > { %7223 = vmatpush1.bf16.msra.mxu0 %v9388_v56  ;;  %v9475_v56 = vld [vmem:[%s12892_s2 + $0xc28] ss:$16 sps:$4 sm:$0xff]  }
 0x357   : > { %7551 = vmatpush1.bf16.msra.mxu1 %v9391_v58  ;;  %7224 = vmatprep.subr.bf16.mxu0 %v9396_v59  ;;  %v9480_v58 = vld [vmem:[%s12892_s2 + $0xc44] ss:$16 sps:$4 sm:$0xff]   ;;  %v9483_v59 = vld [vmem:[%s12892_s2 + $0xc4c] ss:$16 sps:$4 sm:$0xff]  }
 0x358   : > { %7552 = vmatprep.subr.bf16.mxu1 %v9399_v60  ;;  %v9478_v60 = vld [vmem:[%s12892_s2 + $0xc40] ss:$16 sps:$4 sm:$0xff]  }
 0x35a   : > { %7225 = vmatpush1.bf16.msra.mxu0 %v9394_v61  ;;  %v9481_v61 = vld [vmem:[%s12892_s2 + $0xc48] ss:$16 sps:$4 sm:$0xff]  }
 0x35b   : > { %7553 = vmatpush1.bf16.msra.mxu1 %v9397_v62  ;;  %7226 = vmatprep.subr.bf16.mxu0 %v9402_v36  ;;  %v9486_v62 = vld [vmem:[%s12892_s2 + $0xc64] ss:$16 sps:$4 sm:$0xff]   ;;  %v9489_v36 = vld [vmem:[%s12892_s2 + $0xc6c] ss:$16 sps:$4 sm:$0xff]  }
 0x35c   : > { %7554 = vmatprep.subr.bf16.mxu1 %v9405_v63  ;;  %v9484_v63 = vld [vmem:[%s12892_s2 + $0xc60] ss:$16 sps:$4 sm:$0xff]  }
 0x35e   : > { %7227 = vmatpush1.bf16.msra.mxu0 %v9400_v0  ;;  %v9487_v0 = vld [vmem:[%s12892_s2 + $0xc68] ss:$16 sps:$4 sm:$0xff]  }
 0x35f   : > { %7555 = vmatpush1.bf16.msra.mxu1 %v9403_v1  ;;  %7228 = vmatprep.subr.bf16.mxu0 %v9408_v2  ;;  %v9492_v1 = vld [vmem:[%s12892_s2 + $0xc84] ss:$16 sps:$4 sm:$0xff]   ;;  %v9495_v2 = vld [vmem:[%s12892_s2 + $0xc8c] ss:$16 sps:$4 sm:$0xff]  }
 0x360   : > { %7556 = vmatprep.subr.bf16.mxu1 %v9411_v9  ;;  %v9490_v9 = vld [vmem:[%s12892_s2 + $0xc80] ss:$16 sps:$4 sm:$0xff]  }
 0x362   : > { %7229 = vmatpush1.bf16.msra.mxu0 %v9406_v3  ;;  %v9493_v3 = vld [vmem:[%s12892_s2 + $0xc88] ss:$16 sps:$4 sm:$0xff]  }
 0x363   : > { %7557 = vmatpush1.bf16.msra.mxu1 %v9409_v5  ;;  %7230 = vmatprep.subr.bf16.mxu0 %v9414_v6  ;;  %v9498_v5 = vld [vmem:[%s12892_s2 + $0xca4] ss:$16 sps:$4 sm:$0xff]   ;;  %v9501_v6 = vld [vmem:[%s12892_s2 + $0xcac] ss:$16 sps:$4 sm:$0xff]  }
 0x364   : > { %7558 = vmatprep.subr.bf16.mxu1 %v9417_v7  ;;  %v9496_v7 = vld [vmem:[%s12892_s2 + $0xca0] ss:$16 sps:$4 sm:$0xff]  }
 0x366   : > { %7231 = vmatpush1.bf16.msra.mxu0 %v9412_v11  ;;  %v9499_v11 = vld [vmem:[%s12892_s2 + $0xca8] ss:$16 sps:$4 sm:$0xff]  }
 0x367   : > { %7559 = vmatpush1.bf16.msra.mxu1 %v9415_v4  ;;  %7232 = vmatprep.subr.bf16.mxu0 %v9420_v17  ;;  %v9504_v4 = vld [vmem:[%s12892_s2 + $0xcc4] ss:$16 sps:$4 sm:$0xff]   ;;  %v9507_v17 = vld [vmem:[%s12892_s2 + $0xccc] ss:$16 sps:$4 sm:$0xff]  }
 0x368   : > { %7560 = vmatprep.subr.bf16.mxu1 %v9423_v18  ;;  %v9502_v18 = vld [vmem:[%s12892_s2 + $0xcc0] ss:$16 sps:$4 sm:$0xff]  }
 0x36a   : > { %7233 = vmatpush1.bf16.msra.mxu0 %v9418_v19  ;;  %v9505_v19 = vld [vmem:[%s12892_s2 + $0xcc8] ss:$16 sps:$4 sm:$0xff]  }
 0x36b   : > { %7561 = vmatpush1.bf16.msra.mxu1 %v9421_v20  ;;  %7234 = vmatprep.subr.bf16.mxu0 %v9426_v13  ;;  %v9510_v20 = vld [vmem:[%s12892_s2 + $0xce4] ss:$16 sps:$4 sm:$0xff]   ;;  %v9513_v13 = vld [vmem:[%s12892_s2 + $0xcec] ss:$16 sps:$4 sm:$0xff]  }
 0x36c   : > { %7562 = vmatprep.subr.bf16.mxu1 %v9429_v21  ;;  %v9508_v21 = vld [vmem:[%s12892_s2 + $0xce0] ss:$16 sps:$4 sm:$0xff]  }
 0x36e   : > { %7235 = vmatpush1.bf16.msra.mxu0 %v9424_v22  ;;  %v9511_v22 = vld [vmem:[%s12892_s2 + $0xce8] ss:$16 sps:$4 sm:$0xff]  }
 0x36f   : > { %7563 = vmatpush1.bf16.msra.mxu1 %v9427_v25  ;;  %7236 = vmatprep.subr.bf16.mxu0 %v9432_v26  ;;  %v9516_v25 = vld [vmem:[%s12892_s2 + $0xd04] ss:$16 sps:$4 sm:$0xff]   ;;  %v9519_v26 = vld [vmem:[%s12892_s2 + $0xd0c] ss:$16 sps:$4 sm:$0xff]  }
 0x370   : > { %7564 = vmatprep.subr.bf16.mxu1 %v9435_v27  ;;  %v9514_v27 = vld [vmem:[%s12892_s2 + $0xd00] ss:$16 sps:$4 sm:$0xff]  }
 0x372   : > { %7237 = vmatpush1.bf16.msra.mxu0 %v9430_v28  ;;  %v9517_v28 = vld [vmem:[%s12892_s2 + $0xd08] ss:$16 sps:$4 sm:$0xff]  }
 0x373   : > { %7565 = vmatpush1.bf16.msra.mxu1 %v9433_v29  ;;  %7238 = vmatprep.subr.bf16.mxu0 %v9438_v30  ;;  %v9522_v29 = vld [vmem:[%s12892_s2 + $0xd24] ss:$16 sps:$4 sm:$0xff]   ;;  %v9525_v30 = vld [vmem:[%s12892_s2 + $0xd2c] ss:$16 sps:$4 sm:$0xff]  }
 0x374   : > { %7566 = vmatprep.subr.bf16.mxu1 %v9441_v57  ;;  %v9520_v57 = vld [vmem:[%s12892_s2 + $0xd20] ss:$16 sps:$4 sm:$0xff]  }
 0x376   : > { %7239 = vmatpush1.bf16.msra.mxu0 %v9436_v31  ;;  %v9523_v31 = vld [vmem:[%s12892_s2 + $0xd28] ss:$16 sps:$4 sm:$0xff]  }
 0x377   : > { %7567 = vmatpush1.bf16.msra.mxu1 %v9439_v33  ;;  %7240 = vmatprep.subr.bf16.mxu0 %v9444_v8  ;;  %v9528_v33 = vld [vmem:[%s12892_s2 + $0xd44] ss:$16 sps:$4 sm:$0xff]   ;;  %v9531_v8 = vld [vmem:[%s12892_s2 + $0xd4c] ss:$16 sps:$4 sm:$0xff]  }
 0x378   : > { %7568 = vmatprep.subr.bf16.mxu1 %v9447_v34  ;;  %v9526_v34 = vld [vmem:[%s12892_s2 + $0xd40] ss:$16 sps:$4 sm:$0xff]  }
 0x37a   : > { %7241 = vmatpush1.bf16.msra.mxu0 %v9442_v35  ;;  %v9529_v35 = vld [vmem:[%s12892_s2 + $0xd48] ss:$16 sps:$4 sm:$0xff]  }
 0x37b   : > { %7569 = vmatpush1.bf16.msra.mxu1 %v9445_v38  ;;  %7242 = vmatprep.subr.bf16.mxu0 %v9450_v12  ;;  %v9534_v38 = vld [vmem:[%s12892_s2 + $0xd64] ss:$16 sps:$4 sm:$0xff]   ;;  %v9537_v12 = vld [vmem:[%s12892_s2 + $0xd6c] ss:$16 sps:$4 sm:$0xff]  }
 0x37c   : > { %7570 = vmatprep.subr.bf16.mxu1 %v9453_v15  ;;  %v9532_v15 = vld [vmem:[%s12892_s2 + $0xd60] ss:$16 sps:$4 sm:$0xff]  }
 0x37e   : > { %7243 = vmatpush1.bf16.msra.mxu0 %v9448_v39  ;;  %v9535_v39 = vld [vmem:[%s12892_s2 + $0xd68] ss:$16 sps:$4 sm:$0xff]  }
 0x37f   : > { %7571 = vmatpush1.bf16.msra.mxu1 %v9451_v41  ;;  %7244 = vmatprep.subr.bf16.mxu0 %v9456_v42  ;;  %v9540_v41 = vld [vmem:[%s12892_s2 + $0xd84] ss:$16 sps:$4 sm:$0xff]   ;;  %v9543_v42 = vld [vmem:[%s12892_s2 + $0xd8c] ss:$16 sps:$4 sm:$0xff]  }
 0x380   : > { %7572 = vmatprep.subr.bf16.mxu1 %v9459_v43  ;;  %v9538_v43 = vld [vmem:[%s12892_s2 + $0xd80] ss:$16 sps:$4 sm:$0xff]  }
 0x382   : > { %7245 = vmatpush1.bf16.msra.mxu0 %v9454_v44  ;;  %v9541_v44 = vld [vmem:[%s12892_s2 + $0xd88] ss:$16 sps:$4 sm:$0xff]  }
 0x383   : > { %7573 = vmatpush1.bf16.msra.mxu1 %v9457_v10  ;;  %7246 = vmatprep.subr.bf16.mxu0 %v9462_v24  ;;  %v9546_v10 = vld [vmem:[%s12892_s2 + $0xda4] ss:$16 sps:$4 sm:$0xff]   ;;  %v9549_v24 = vld [vmem:[%s12892_s2 + $0xdac] ss:$16 sps:$4 sm:$0xff]  }
 0x384   : > { %7574 = vmatprep.subr.bf16.mxu1 %v9465_v32  ;;  %v9544_v32 = vld [vmem:[%s12892_s2 + $0xda0] ss:$16 sps:$4 sm:$0xff]  }
 0x386   : > { %7247 = vmatpush1.bf16.msra.mxu0 %v9460_v47  ;;  %v9547_v47 = vld [vmem:[%s12892_s2 + $0xda8] ss:$16 sps:$4 sm:$0xff]  }
 0x387   : > { %7575 = vmatpush1.bf16.msra.mxu1 %v9463_v16  ;;  %7257 = vmatprep.subr.bf16.mxu0 %v9468_v49  ;;  %v9555_v16 = vld [vmem:[%s12892_s2 + $0xdcc] ss:$16 sps:$4 sm:$0xff]   ;;  %v9550_v49 = vld [vmem:[%s12892_s2 + $0xdc0] ss:$16 sps:$4 sm:$0xff]  }
 0x388   : > { %7585 = vmatprep.subr.bf16.mxu1 %v9471_v50  ;;  %v9553_v50 = vld [vmem:[%s12892_s2 + $0xdc8] ss:$16 sps:$4 sm:$0xff]  }
 0x389   : > { %7249 = vmatmul.mubr.bf16.vlgmr.msra.gmra.mrb[16].mxu0 %v3933_v51 }
 0x38a   : > { %7577 = vmatmul.mubr.bf16.vlgmr.msra.gmra.mrb[16].mxu1 %v3933_v51  ;;  %7258 = vmatpush1.bf16.msra.mxu0 %v9466_v14  ;;  %v9561_v14 = vld [vmem:[%s12892_s2 + $0xdec] ss:$16 sps:$4 sm:$0xff]   ;;  %v9556_v51 = vld [vmem:[%s12892_s2 + $0xde0] ss:$16 sps:$4 sm:$0xff]  }
 0x38b   : > { %7289 = vmatprep.mubr.bf16.mxu0 %v3936_v54  ;;  %7586 = vmatpush1.bf16.msra.mxu1 %v9469_v52  ;;  %v3919_v52 = vmax.f32 %v11976_v37, 0.0  ;;  %v9562_v37 = vld [vmem:[%s12892_s2 + $0xe00] ss:$16 sps:$4 sm:$0xff]  }
 0x38c   : > { %7617 = vmatprep.mubr.bf16.mxu1 %v3936_v54  ;;  %7259 = vmatprep.subr.bf16.mxu0 %v9474_v53  ;;  %v9559_v53 = vld [vmem:[%s12892_s2 + $0xde8] ss:$16 sps:$4 sm:$0xff]   ;;  %v9564_v54 = vld [vmem:[%s12892_s2 + $0xe04] ss:$16 sps:$4 sm:$0xff]  }
 0x38d   : > { %7587 = vmatprep.subr.bf16.mxu1 %v9477_v46  ;;  %v9567_v46 = vld [vmem:[%s12892_s2 + $0xe0c] ss:$16 sps:$4 sm:$0xff]  }
 0x38e   : > { %7260 = vmatpush1.bf16.msra.mxu0 %v9472_v55  ;;  %v3922_v55 = vmax.f32 %v11985_v23, 0.0  ;;  %v9573_v23 = vld [vmem:[%s12892_s2 + $0xe2c] ss:$16 sps:$4 sm:$0xff]  }
 0x38f   : > { %7588 = vmatpush1.bf16.msra.mxu1 %v9475_v56  ;;  %7261 = vmatprep.subr.bf16.mxu0 %v9480_v58  ;;  %v3935_v56 = vpack.c.bf16 %v3919_v52, %v3919_v52  ;;  %v9565_v58 = vld [vmem:[%s12892_s2 + $0xe08] ss:$16 sps:$4 sm:$0xff]   ;;  %v9646_v52 = vld [vmem:[%s12892_s2 + $0xfc0] ss:$16 sps:$4 sm:$0xff]  }
 0x390   : > { %7589 = vmatprep.subr.bf16.mxu1 %v9483_v59  ;;  %v9570_v59 = vld [vmem:[%s12892_s2 + $0xe24] ss:$16 sps:$4 sm:$0xff]  }
 0x392   : > { %7262 = vmatpush1.bf16.msra.mxu0 %v9478_v60  ;;  %v3938_v60 = vpack.c.bf16 %v3922_v55, %v3922_v55  ;;  %v9652_v55 = vld [vmem:[%s12892_s2 + $0xfe0] ss:$16 sps:$4 sm:$0xff]  }
 0x393   : > { %7590 = vmatpush1.bf16.msra.mxu1 %v9481_v61  ;;  %7263 = vmatprep.subr.bf16.mxu0 %v9486_v62  ;;  %v9568_v61 = vld [vmem:[%s12892_s2 + $0xe20] ss:$16 sps:$4 sm:$0xff]   ;;  %v9571_v62 = vld [vmem:[%s12892_s2 + $0xe28] ss:$16 sps:$4 sm:$0xff]  }
 0x394   : > { %7591 = vmatprep.subr.bf16.mxu1 %v9489_v36  ;;  %v9576_v36 = vld [vmem:[%s12892_s2 + $0xe44] ss:$16 sps:$4 sm:$0xff]  }
 0x396   : > { %7264 = vmatpush1.bf16.msra.mxu0 %v9484_v63  ;;  %v9579_v63 = vld [vmem:[%s12892_s2 + $0xe4c] ss:$16 sps:$4 sm:$0xff]  }
 0x397   : > { %7592 = vmatpush1.bf16.msra.mxu1 %v9487_v0  ;;  %7265 = vmatprep.subr.bf16.mxu0 %v9492_v1  ;;  %v9574_v0 = vld [vmem:[%s12892_s2 + $0xe40] ss:$16 sps:$4 sm:$0xff]   ;;  %v9577_v1 = vld [vmem:[%s12892_s2 + $0xe48] ss:$16 sps:$4 sm:$0xff]  }
 0x398   : > { %7593 = vmatprep.subr.bf16.mxu1 %v9495_v2  ;;  %v9582_v2 = vld [vmem:[%s12892_s2 + $0xe64] ss:$16 sps:$4 sm:$0xff]  }
 0x39a   : > { %7266 = vmatpush1.bf16.msra.mxu0 %v9490_v9  ;;  %v9585_v9 = vld [vmem:[%s12892_s2 + $0xe6c] ss:$16 sps:$4 sm:$0xff]  }
 0x39b   : > { %7594 = vmatpush1.bf16.msra.mxu1 %v9493_v3  ;;  %7267 = vmatprep.subr.bf16.mxu0 %v9498_v5  ;;  %v9580_v3 = vld [vmem:[%s12892_s2 + $0xe60] ss:$16 sps:$4 sm:$0xff]   ;;  %v9583_v5 = vld [vmem:[%s12892_s2 + $0xe68] ss:$16 sps:$4 sm:$0xff]  }
 0x39c   : > { %7595 = vmatprep.subr.bf16.mxu1 %v9501_v6  ;;  %v9588_v6 = vld [vmem:[%s12892_s2 + $0xe84] ss:$16 sps:$4 sm:$0xff]  }
 0x39e   : > { %7268 = vmatpush1.bf16.msra.mxu0 %v9496_v7  ;;  %v9591_v7 = vld [vmem:[%s12892_s2 + $0xe8c] ss:$16 sps:$4 sm:$0xff]  }
 0x39f   : > { %7596 = vmatpush1.bf16.msra.mxu1 %v9499_v11  ;;  %7269 = vmatprep.subr.bf16.mxu0 %v9504_v4  ;;  %v9586_v11 = vld [vmem:[%s12892_s2 + $0xe80] ss:$16 sps:$4 sm:$0xff]   ;;  %v9589_v4 = vld [vmem:[%s12892_s2 + $0xe88] ss:$16 sps:$4 sm:$0xff]  }
 0x3a0   : > { %7597 = vmatprep.subr.bf16.mxu1 %v9507_v17  ;;  %v9594_v17 = vld [vmem:[%s12892_s2 + $0xea4] ss:$16 sps:$4 sm:$0xff]  }
 0x3a2   : > { %7270 = vmatpush1.bf16.msra.mxu0 %v9502_v18  ;;  %v9597_v18 = vld [vmem:[%s12892_s2 + $0xeac] ss:$16 sps:$4 sm:$0xff]  }
 0x3a3   : > { %7598 = vmatpush1.bf16.msra.mxu1 %v9505_v19  ;;  %7271 = vmatprep.subr.bf16.mxu0 %v9510_v20  ;;  %v9592_v19 = vld [vmem:[%s12892_s2 + $0xea0] ss:$16 sps:$4 sm:$0xff]   ;;  %v9595_v20 = vld [vmem:[%s12892_s2 + $0xea8] ss:$16 sps:$4 sm:$0xff]  }
 0x3a4   : > { %7599 = vmatprep.subr.bf16.mxu1 %v9513_v13  ;;  %v9600_v13 = vld [vmem:[%s12892_s2 + $0xec4] ss:$16 sps:$4 sm:$0xff]  }
 0x3a6   : > { %7272 = vmatpush1.bf16.msra.mxu0 %v9508_v21  ;;  %v9603_v21 = vld [vmem:[%s12892_s2 + $0xecc] ss:$16 sps:$4 sm:$0xff]  }
 0x3a7   : > { %7600 = vmatpush1.bf16.msra.mxu1 %v9511_v22  ;;  %7273 = vmatprep.subr.bf16.mxu0 %v9516_v25  ;;  %v9598_v22 = vld [vmem:[%s12892_s2 + $0xec0] ss:$16 sps:$4 sm:$0xff]   ;;  %v9601_v25 = vld [vmem:[%s12892_s2 + $0xec8] ss:$16 sps:$4 sm:$0xff]  }
 0x3a8   : > { %7601 = vmatprep.subr.bf16.mxu1 %v9519_v26  ;;  %v9606_v26 = vld [vmem:[%s12892_s2 + $0xee4] ss:$16 sps:$4 sm:$0xff]  }
 0x3aa   : > { %7274 = vmatpush1.bf16.msra.mxu0 %v9514_v27  ;;  %v9609_v27 = vld [vmem:[%s12892_s2 + $0xeec] ss:$16 sps:$4 sm:$0xff]  }
 0x3ab   : > { %7602 = vmatpush1.bf16.msra.mxu1 %v9517_v28  ;;  %7275 = vmatprep.subr.bf16.mxu0 %v9522_v29  ;;  %v9604_v28 = vld [vmem:[%s12892_s2 + $0xee0] ss:$16 sps:$4 sm:$0xff]   ;;  %v9607_v29 = vld [vmem:[%s12892_s2 + $0xee8] ss:$16 sps:$4 sm:$0xff]  }
 0x3ac   : > { %7603 = vmatprep.subr.bf16.mxu1 %v9525_v30  ;;  %v9612_v30 = vld [vmem:[%s12892_s2 + $0xf04] ss:$16 sps:$4 sm:$0xff]  }
 0x3ae   : > { %7276 = vmatpush1.bf16.msra.mxu0 %v9520_v57  ;;  %v9615_v57 = vld [vmem:[%s12892_s2 + $0xf0c] ss:$16 sps:$4 sm:$0xff]  }
 0x3af   : > { %7604 = vmatpush1.bf16.msra.mxu1 %v9523_v31  ;;  %7277 = vmatprep.subr.bf16.mxu0 %v9528_v33  ;;  %v9610_v31 = vld [vmem:[%s12892_s2 + $0xf00] ss:$16 sps:$4 sm:$0xff]   ;;  %v9613_v33 = vld [vmem:[%s12892_s2 + $0xf08] ss:$16 sps:$4 sm:$0xff]  }
 0x3b0   : > { %7605 = vmatprep.subr.bf16.mxu1 %v9531_v8  ;;  %v9618_v8 = vld [vmem:[%s12892_s2 + $0xf24] ss:$16 sps:$4 sm:$0xff]  }
 0x3b2   : > { %7278 = vmatpush1.bf16.msra.mxu0 %v9526_v34  ;;  %v9621_v34 = vld [vmem:[%s12892_s2 + $0xf2c] ss:$16 sps:$4 sm:$0xff]  }
 0x3b3   : > { %7606 = vmatpush1.bf16.msra.mxu1 %v9529_v35  ;;  %7279 = vmatprep.subr.bf16.mxu0 %v9534_v38  ;;  %v9616_v35 = vld [vmem:[%s12892_s2 + $0xf20] ss:$16 sps:$4 sm:$0xff]   ;;  %v9619_v38 = vld [vmem:[%s12892_s2 + $0xf28] ss:$16 sps:$4 sm:$0xff]  }
 0x3b4   : > { %7607 = vmatprep.subr.bf16.mxu1 %v9537_v12  ;;  %v9624_v12 = vld [vmem:[%s12892_s2 + $0xf44] ss:$16 sps:$4 sm:$0xff]  }
 0x3b6   : > { %7280 = vmatpush1.bf16.msra.mxu0 %v9532_v15  ;;  %v9627_v15 = vld [vmem:[%s12892_s2 + $0xf4c] ss:$16 sps:$4 sm:$0xff]  }
 0x3b7   : > { %7608 = vmatpush1.bf16.msra.mxu1 %v9535_v39  ;;  %7281 = vmatprep.subr.bf16.mxu0 %v9540_v41  ;;  %v9622_v39 = vld [vmem:[%s12892_s2 + $0xf40] ss:$16 sps:$4 sm:$0xff]   ;;  %v9625_v41 = vld [vmem:[%s12892_s2 + $0xf48] ss:$16 sps:$4 sm:$0xff]  }
 0x3b8   : > { %7609 = vmatprep.subr.bf16.mxu1 %v9543_v42  ;;  %v9630_v42 = vld [vmem:[%s12892_s2 + $0xf64] ss:$16 sps:$4 sm:$0xff]  }
 0x3ba   : > { %7282 = vmatpush1.bf16.msra.mxu0 %v9538_v43  ;;  %v9633_v43 = vld [vmem:[%s12892_s2 + $0xf6c] ss:$16 sps:$4 sm:$0xff]  }
 0x3bb   : > { %7610 = vmatpush1.bf16.msra.mxu1 %v9541_v44  ;;  %7283 = vmatprep.subr.bf16.mxu0 %v9546_v10  ;;  %v9628_v44 = vld [vmem:[%s12892_s2 + $0xf60] ss:$16 sps:$4 sm:$0xff]   ;;  %v9631_v10 = vld [vmem:[%s12892_s2 + $0xf68] ss:$16 sps:$4 sm:$0xff]  }
 0x3bc   : > { %7611 = vmatprep.subr.bf16.mxu1 %v9549_v24  ;;  %v9636_v24 = vld [vmem:[%s12892_s2 + $0xf84] ss:$16 sps:$4 sm:$0xff]  }
 0x3be   : > { %7284 = vmatpush1.bf16.msra.mxu0 %v9544_v32  ;;  %v9639_v32 = vld [vmem:[%s12892_s2 + $0xf8c] ss:$16 sps:$4 sm:$0xff]  }
 0x3bf   : > { %7612 = vmatpush1.bf16.msra.mxu1 %v9547_v47  ;;  %7285 = vmatprep.subr.bf16.mxu0 %v9552_v48  ;;  %v9634_v47 = vld [vmem:[%s12892_s2 + $0xf80] ss:$16 sps:$4 sm:$0xff]   ;;  %v9637_v48 = vld [vmem:[%s12892_s2 + $0xf88] ss:$16 sps:$4 sm:$0xff]  }
 0x3c0   : > { %7613 = vmatprep.subr.bf16.mxu1 %v9555_v16  ;;  %v9642_v16 = vld [vmem:[%s12892_s2 + $0xfa4] ss:$16 sps:$4 sm:$0xff]  }
 0x3c2   : > { %7286 = vmatpush1.bf16.msra.mxu0 %v9550_v49  ;;  %v9645_v49 = vld [vmem:[%s12892_s2 + $0xfac] ss:$16 sps:$4 sm:$0xff]  }
 0x3c3   : > { %7614 = vmatpush1.bf16.msra.mxu1 %v9553_v50  ;;  %7287 = vmatprep.subr.bf16.mxu0 %v9558_v40  ;;  %v9640_v50 = vld [vmem:[%s12892_s2 + $0xfa0] ss:$16 sps:$4 sm:$0xff]   ;;  %v9643_v40 = vld [vmem:[%s12892_s2 + $0xfa8] ss:$16 sps:$4 sm:$0xff]  }
 0x3c4   : > { %7615 = vmatprep.subr.bf16.mxu1 %v9561_v14  ;;  %v9648_v14 = vld [vmem:[%s12892_s2 + $0xfc4] ss:$16 sps:$4 sm:$0xff]  }
 0x3c6   : > { %7288 = vmatpush1.bf16.msra.mxu0 %v9556_v51  ;;  %v9651_v51 = vld [vmem:[%s12892_s2 + $0xfcc] ss:$16 sps:$4 sm:$0xff]  }
 0x3c7   : > { %7616 = vmatpush1.bf16.msra.mxu1 %v9559_v53  ;;  %7298 = vmatprep.subr.bf16.mxu0 %v9564_v54  ;;  %v9649_v53 = vld [vmem:[%s12892_s2 + $0xfc8] ss:$16 sps:$4 sm:$0xff]   ;;  %v9654_v54 = vld [vmem:[%s12892_s2 + $0xfe4] ss:$16 sps:$4 sm:$0xff]  }
 0x3c8   : > { %7626 = vmatprep.subr.bf16.mxu1 %v9567_v46  ;;  %v9657_v46 = vld [vmem:[%s12892_s2 + $0xfec] ss:$16 sps:$4 sm:$0xff]  }
 0x3c9   : > { %7290 = vmatmul.mubr.bf16.vlgmr.msra.gmra.mrb[16].mxu0 %v3935_v56 }
 0x3ca   : > { %7618 = vmatmul.mubr.bf16.vlgmr.msra.gmra.mrb[16].mxu1 %v3935_v56  ;;  %7299 = vmatpush1.bf16.msra.mxu0 %v9562_v37  ;;  %v3921_v37 = vmax.f32 %v11981_v45, 0.0  ;;  %v9655_v56 = vld [vmem:[%s12892_s2 + $0xfe8] ss:$16 sps:$4 sm:$0xff]  }
 0x3cb   : > { %7330 = vmatprep.mubr.bf16.mxu0 %v3938_v60  ;;  %7627 = vmatpush1.bf16.msra.mxu1 %v9565_v58  ;;  %v9661_v45 = vld [vmem:[%s9790_s19 + $0x8] sm:$0xff] }
 0x3cc   : > { %7658 = vmatprep.mubr.bf16.mxu1 %v3938_v60  ;;  %7300 = vmatprep.subr.bf16.mxu0 %v9570_v59  ;;  %v3937_v58 = vpack.c.bf16 %v3921_v37, %v3921_v37  ;;  %v9660_v60 = vld [vmem:[%s9790_s19] sm:$0xff] }
 0x3cd   : > { %7628 = vmatprep.subr.bf16.mxu1 %v9573_v23 }
 0x3ce   : > { %7301 = vmatpush1.bf16.msra.mxu0 %v9568_v61 }
 0x3cf   : > { %7629 = vmatpush1.bf16.msra.mxu1 %v9571_v62  ;;  %7302 = vmatprep.subr.bf16.mxu0 %v9576_v36 }
 0x3d0   : > { %7630 = vmatprep.subr.bf16.mxu1 %v9579_v63 }
 0x3d2   : > { %7303 = vmatpush1.bf16.msra.mxu0 %v9574_v0 }
 0x3d3   : > { %7631 = vmatpush1.bf16.msra.mxu1 %v9577_v1  ;;  %7304 = vmatprep.subr.bf16.mxu0 %v9582_v2 }
 0x3d4   : > { %7632 = vmatprep.subr.bf16.mxu1 %v9585_v9  ;;  %v9662_v9 = vld [vmem:[%s9790_s19 + $0x10] sm:$0xff] }
 0x3d6   : > { %7305 = vmatpush1.bf16.msra.mxu0 %v9580_v3 }
 0x3d7   : > { %7633 = vmatpush1.bf16.msra.mxu1 %v9583_v5  ;;  %7306 = vmatprep.subr.bf16.mxu0 %v9588_v6 }
 0x3d8   : > { %7634 = vmatprep.subr.bf16.mxu1 %v9591_v7  ;;  %v9663_v7 = vld [vmem:[%s9790_s19 + $0x18] sm:$0xff] }
 0x3da   : > { %7307 = vmatpush1.bf16.msra.mxu0 %v9586_v11 }
 0x3db   : > { %7635 = vmatpush1.bf16.msra.mxu1 %v9589_v4  ;;  %7308 = vmatprep.subr.bf16.mxu0 %v9594_v17 }
 0x3dc   : > { %7636 = vmatprep.subr.bf16.mxu1 %v9597_v18 }
 0x3de   : > { %7309 = vmatpush1.bf16.msra.mxu0 %v9592_v19 }
 0x3df   : > { %7637 = vmatpush1.bf16.msra.mxu1 %v9595_v20  ;;  %7310 = vmatprep.subr.bf16.mxu0 %v9600_v13 }
 0x3e0   : > { %7638 = vmatprep.subr.bf16.mxu1 %v9603_v21 }
 0x3e2   : > { %7311 = vmatpush1.bf16.msra.mxu0 %v9598_v22 }
 0x3e3   : > { %7639 = vmatpush1.bf16.msra.mxu1 %v9601_v25  ;;  %7312 = vmatprep.subr.bf16.mxu0 %v9606_v26 }
 0x3e4   : > { %7640 = vmatprep.subr.bf16.mxu1 %v9609_v27 }
 0x3e6   : > { %7313 = vmatpush1.bf16.msra.mxu0 %v9604_v28 }
 0x3e7   : > { %7641 = vmatpush1.bf16.msra.mxu1 %v9607_v29  ;;  %7314 = vmatprep.subr.bf16.mxu0 %v9612_v30 }
 0x3e8   : > { %7642 = vmatprep.subr.bf16.mxu1 %v9615_v57 }
 0x3ea   : > { %7315 = vmatpush1.bf16.msra.mxu0 %v9610_v31 }
 0x3eb   : > { %7643 = vmatpush1.bf16.msra.mxu1 %v9613_v33  ;;  %7316 = vmatprep.subr.bf16.mxu0 %v9618_v8 }
 0x3ec   : > { %7644 = vmatprep.subr.bf16.mxu1 %v9621_v34 }
 0x3ee   : > { %7317 = vmatpush1.bf16.msra.mxu0 %v9616_v35 }
 0x3ef   : > { %7645 = vmatpush1.bf16.msra.mxu1 %v9619_v38  ;;  %7318 = vmatprep.subr.bf16.mxu0 %v9624_v12 }
 0x3f0   : > { %7646 = vmatprep.subr.bf16.mxu1 %v9627_v15 }
 0x3f2   : > { %7319 = vmatpush1.bf16.msra.mxu0 %v9622_v39 }
 0x3f3   : > { %7647 = vmatpush1.bf16.msra.mxu1 %v9625_v41  ;;  %7320 = vmatprep.subr.bf16.mxu0 %v9630_v42 }
 0x3f4   : > { %7648 = vmatprep.subr.bf16.mxu1 %v9633_v43 }
 0x3f6   : > { %7321 = vmatpush1.bf16.msra.mxu0 %v9628_v44 }
 0x3f7   : > { %7649 = vmatpush1.bf16.msra.mxu1 %v9631_v10  ;;  %7322 = vmatprep.subr.bf16.mxu0 %v9636_v24 }
 0x3f8   : > { %7650 = vmatprep.subr.bf16.mxu1 %v9639_v32 }
 0x3fa   : > { %7323 = vmatpush1.bf16.msra.mxu0 %v9634_v47 }
 0x3fb   : > { %7651 = vmatpush1.bf16.msra.mxu1 %v9637_v48  ;;  %7324 = vmatprep.subr.bf16.mxu0 %v9642_v16 }
 0x3fc   : > { %7652 = vmatprep.subr.bf16.mxu1 %v9645_v49 }
 0x3fe   : > { %7325 = vmatpush1.bf16.msra.mxu0 %v9640_v50 }
 0x3ff   : > { %7653 = vmatpush1.bf16.msra.mxu1 %v9643_v40  ;;  %7326 = vmatprep.subr.bf16.mxu0 %v9648_v14 }
 0x400   : > { %7654 = vmatprep.subr.bf16.mxu1 %v9651_v51 }
 0x402   : > { %7327 = vmatpush1.bf16.msra.mxu0 %v9646_v52 }
 0x403   : > { %7655 = vmatpush1.bf16.msra.mxu1 %v9649_v53  ;;  %7328 = vmatprep.subr.bf16.mxu0 %v9654_v54 }
 0x404   : > { %7656 = vmatprep.subr.bf16.mxu1 %v9657_v46 }
 0x406   : > { %7329 = vmatpush1.bf16.msra.mxu0 %v9652_v55 }
 0x407   : > { %7657 = vmatpush1.bf16.msra.mxu1 %v9655_v56 }
 0x409   : > { %7331 = vmatmul.mubr.bf16.vlgmr.msra.gmra.mrb[16].mxu0 %v3937_v58 }
 0x40a   : > { %7659 = vmatmul.mubr.bf16.vlgmr.msra.gmra.mrb[16].mxu1 %v3937_v58 }
 0x4dc   : > { %v7332_v59 = vpop.f32.mrb[16].mxu0 }
 0x4dd   : > { %v8790_v23 = vadd.f32 %v9660_v60, %v7332_v59  ;;  %v7660_v61 = vpop.f32.mrb[16].mxu1  ;;  %v7334_v62 = vpop.f32.mrb[17].mxu0 }
 0x4de   : > { %v8791_v36 = vadd.f32 %v9661_v45, %v7334_v62  ;;  %v7662_v63 = vpop.f32.mrb[17].mxu1  ;;  %v7336_v0 = vpop.f32.mrb[18].mxu0  ;;  %v8792_v3 = vadd.f32 %v9662_v9, %v7660_v61 }
 0x4df   : > { %v7664_v1 = vpop.f32.mrb[18].mxu1  ;;  %v7337_v2 = vpop.f32.mrb[19].mxu0  ;;  %v8793_v11 = vadd.f32 %v9663_v7, %v7662_v63 }
 0x4e0   : > { %v7667_v5 = vadd.f32 %v8791_v36, %v8790_v23  ;;  %v7665_v6 = vpop.f32.mrb[19].mxu1 }
 0x4e2   : > { %v7668_v4 = vadd.f32 %v8792_v3, %v7667_v5 }
 0x4e4   : > { %v7669_v17 = vadd.f32 %v8793_v11, %v7668_v4 }
 0x4e6   : > { %7670 = vadd.xlane.f32.xlu0 %v7669_v17 }
 0x573   : > { %v7671_v18 = vpop.xlane.xlu0 %7670 }
 0x574   : > { %v7673_v19 = vmul.f32 0.001953125, %v7671_v18 }
 0x576   : > { %v7674_v20 = vsub.f32 %v8790_v23, %v7673_v19  ;;  %v7675_v13 = vsub.f32 %v8791_v36, %v7673_v19  ;;  %v7676_v21 = vsub.f32 %v8792_v3, %v7673_v19  ;;  %v7677_v22 = vsub.f32 %v8793_v11, %v7673_v19 }
 0x578   : > { %v7678_v25 = vmul.f32 %v7674_v20, %v7674_v20  ;;  %v7679_v26 = vmul.f32 %v7675_v13, %v7675_v13  ;;  %v7680_v27 = vmul.f32 %v7676_v21, %v7676_v21  ;;  %v7681_v29 = vmul.f32 %v7677_v22, %v7677_v22 }
 0x57a   : > { %v7682_v28 = vadd.f32 %v7679_v26, %v7678_v25 }
 0x57c   : > { %v7683_v30 = vadd.f32 %v7682_v28, %v7680_v27 }
 0x57e   : > { %v7684_v57 = vadd.f32 %v7683_v30, %v7681_v29 }
 0x580   : > { %7685 = vadd.xlane.f32.xlu0 %v7684_v57 }
 0x60d   : > { %v7686_v31 = vpop.xlane.xlu0 %7685 }
 0x60e   : > { %v7687_v33 = vmul.f32 0.001953125, %v7686_v31 }
 0x610   : > { %v7688_v8 = vadd.f32 1e-05, %v7687_v33 }
 0x612   : > { %9658 = vrsqrt.f32 %v7688_v8 }
 0x61c   : > { %v9659_v34 = vpop.eup %9658 }
 0x61d   : > { %v7690_v35 = vmul.f32 %v9659_v34, %v7674_v20  ;;  %v7691_v38 = vmul.f32 %v9659_v34, %v7675_v13  ;;  %v7692_v12 = vmul.f32 %v9659_v34, %v7676_v21  ;;  %v7693_v15 = vmul.f32 %v9659_v34, %v7677_v22 }
 0x61f   : > { %7694 = vst [vmem:[%s170_s15] sm:$0xff] %v7690_v35  ;;  %7695 = vst [vmem:[%s170_s15 + $0x8] sm:$0xff] %v7691_v38 }
 0x620   : > { %7696 = vst [vmem:[%s170_s15 + $0x10] sm:$0xff] %v7692_v12  ;;  %7697 = vst [vmem:[%s170_s15 + $0x18] sm:$0xff] %v7693_v15 }
 0x621 PF: > { %s13_s12 = sadd.s32 1, %s9670_s12  }
 0x622   : > { %p10_p4 = scmp.ge.s32.totalorder %s13_s12, 4  }
 0x624   :  { %12 = sbr.rel (!%p10_p4) target bundleno = 1 (0x1), region = 62 }

</bundles_post_ra>
